<compile_context>
chip_gen: v6e
topology: v6e:2x2x1
jax: 0.10.0
libtpu: 0.0.40
codegen_flags: <defaults>
</compile_context>

<pallas_src>
import functools

import jax
import jax.numpy as jnp
from jax.experimental import pallas as pl
from jax.experimental.pallas import tpu as pltpu


def _round_up(x, m):
    return ((x + m - 1) // m) * m


def _vmem_limit(est_bytes):
    # explicit scoped-VMEM budget: 2x margin over the estimated footprint, clamped to
    # [16 MiB, 64 MiB] so it is valid on every generation (v7x physical VMEM is 64 MiB).
    return int(min(64 * 1024 * 1024, max(16 * 1024 * 1024, 2 * est_bytes)))


# --------------------------------------------------------------------------------------
# Pass 1: fused QKV projection, head-major output
# --------------------------------------------------------------------------------------
def _qkv_proj_kernel(x_ref, w_ref, b_ref, q_ref, k_ref, v_ref, *, num_heads, head_dim):
    C = num_heads * head_dim
    xt = x_ref[0].astype(w_ref.dtype)                         # (t, C)
    # Single lane-dense GEMM: (t, C) @ (C, 3C) with f32 accumulation; scale is already
    # folded into the Q columns of w/b at init time.
    y = jnp.dot(xt, w_ref[...], preferred_element_type=jnp.float32) + b_ref[...]  # (t, 3C)
    # Head split: H cheap lane-slice stores into the head-major (1, H, t, Dh) blocks.
    for h in range(num_heads):
        lo = h * head_dim
        q_ref[0, h] = y[:, lo:lo + head_dim].astype(q_ref.dtype)
        k_ref[0, h] = y[:, C + lo:C + lo + head_dim].astype(k_ref.dtype)
        v_ref[0, h] = y[:, 2 * C + lo:2 * C + lo + head_dim].astype(v_ref.dtype)


# --------------------------------------------------------------------------------------
# Pass 2: flash attention + output projection + residual + LayerNorm
# --------------------------------------------------------------------------------------
def _flash_attn_ln_kernel(x_ref, q_ref, k_ref, v_ref,
                          wo_ref, bo_ref, gamma_ref, beta_ref,
                          o_ref,
                          m_sc, l_sc, acc_sc, ctx_sc,
                          *, num_heads, head_dim, n_valid, block_k, masked, eps,
                          approx_reciprocal):
    ki = pl.program_id(2)
    num_k = pl.num_programs(2)

    @pl.when(ki == 0)
    def _():
        m_sc[...] = jnp.full_like(m_sc, -jnp.inf)
        l_sc[...] = jnp.zeros_like(l_sc)
        acc_sc[...] = jnp.zeros_like(acc_sc)

    q = q_ref[0]                                              # (H, tq, Dh), pre-scaled
    k = k_ref[0]                                              # (H, tk, Dh)
    v = v_ref[0]                                              # (H, tk, Dh)

    # Head-batched scores on the MXU (contract last dims; no transposes emitted).
    s = jnp.einsum('hnd,hmd->hnm', q, k,
                   preferred_element_type=jnp.float32)        # (H, tq, tk)

    if masked:  # static: only emitted when N was padded up to a multiple of block_k
        col = ki * block_k + jax.lax.broadcasted_iota(jnp.int32, s.shape, 2)
        s = jnp.where(col < n_valid, s, jnp.float32(-1e30))

    m_prev = m_sc[...]
    m_new = jnp.maximum(m_prev, s.max(axis=-1, keepdims=True))
    alpha = jnp.exp(m_prev - m_new)
    p = jnp.exp(s - m_new)
    l_sc[...] = alpha * l_sc[...] + p.sum(axis=-1, keepdims=True)
    acc_sc[...] = alpha * acc_sc[...] + jnp.einsum(
        'hnm,hmd->hnd', p.astype(v.dtype), v, preferred_element_type=jnp.float32)
    m_sc[...] = m_new

    @pl.when(ki == num_k - 1)
    def _():
        if approx_reciprocal:
            inv_l = pl.reciprocal(l_sc[...], approx=True)     # EUP slot
        else:
            inv_l = 1.0 / l_sc[...]
        attn = acc_sc[...] * inv_l                            # (H, tq, Dh) f32
        # Merge heads back into lane-major layout once (H slice-stores), then a single
        # full-width (tq, C) @ (C, C) GEMM for the output projection.
        for h in range(num_heads):
            lo = h * head_dim
            ctx_sc[:, lo:lo + head_dim] = attn[h]
        out = jnp.dot(ctx_sc[...].astype(wo_ref.dtype), wo_ref[...],
                      preferred_element_type=jnp.float32) + bo_ref[...]   # (tq, C)

        y = x_ref[0] + out                                    # residual
        mean = jnp.mean(y, axis=-1, keepdims=True)
        centered = y - mean
        var = jnp.mean(centered * centered, axis=-1, keepdims=True)
        inv_std = jax.lax.rsqrt(var + eps)
        o_ref[0] = (centered * inv_std * gamma_ref[...] + beta_ref[...]).astype(o_ref.dtype)


# --------------------------------------------------------------------------------------
# Init-time parameter preparation (all transposes / fusions hoisted out of the call)
# --------------------------------------------------------------------------------------
def prepare_params(params, num_heads, compute_dtype=jnp.float32):
    """Host-side, one-time weight prep.

    compute_dtype: dtype of matmul operands (weights + q/k/v intermediates).  Use
    jnp.bfloat16 on v6e/v7x for ~2-3x MXU throughput and half the VMEM/DMA bytes;
    accumulation stays f32 inside the kernels.
    """
    C = params["wq"].shape[0]
    assert C % num_heads == 0, "embed_dim must be divisible by num_heads"
    head_dim = C // num_heads
    scale = head_dim ** (-0.5)
    # Fused QKV right-hand operand (C, 3C), scale folded into the Q columns.
    w_qkv_t = jnp.concatenate(
        [params["wq"] * scale, params["wk"], params["wv"]], axis=0).T.astype(compute_dtype)
    b_qkv = jnp.concatenate(
        [params["bq"] * scale, params["bk"], params["bv"]]).reshape(1, 3 * C).astype(jnp.float32)
    return {
        "w_qkv_t": w_qkv_t,                                      # (C, 3C)
        "b_qkv": b_qkv,                                          # (1, 3C)
        "wo_t": params["wo"].T.astype(compute_dtype),            # (C, C)
        "bo": params["bo"].reshape(1, C).astype(jnp.float32),    # (1, C)
        "gamma": params["gamma"].reshape(1, C).astype(jnp.float32),
        "beta": params["beta"].reshape(1, C).astype(jnp.float32),
    }


# --------------------------------------------------------------------------------------
# Wrapper
# --------------------------------------------------------------------------------------
def residual_self_attention(x, prepared, *, num_heads, block_q=128, block_k=128,
                            eps=1e-5, approx_reciprocal=True):
    """x: (B, N, C) float32. prepared: output of prepare_params()."""
    B, N, C = x.shape
    assert C % num_heads == 0, "embed_dim must be divisible by num_heads"
    head_dim = C // num_heads
    compute_dtype = prepared["w_qkv_t"].dtype
    isz = jnp.dtype(compute_dtype).itemsize

    # Fixed 128x128 sequence tiles: pad N up to a multiple of the tile size; padded key
    # columns are masked in-kernel, padded query rows are sliced off below.
    n_pad = _round_up(N, block_q)
    assert n_pad % block_k == 0
    x_p = jnp.pad(x, ((0, 0), (0, n_pad - N), (0, 0))) if n_pad != N else x
    num_q = n_pad // block_q
    num_k = n_pad // block_k

    # -------------------- pass 1: QKV projection --------------------
    block_r = block_q
    num_r = n_pad // block_r
    const2 = lambda b, r: (0, 0)
    hm_spec = pl.BlockSpec((1, num_heads, block_r, head_dim), lambda b, r: (b, 0, r, 0))

    proj_bytes = (3 * C * C * isz + 3 * C * 4              # fused weights + bias (1 buf)
                  + 2 * block_r * C * 4                     # x tile (double-buffered)
                  + 3 * 2 * block_r * C * isz)              # q/k/v out tiles
    proj_cost = pl.CostEstimate(
        flops=int(2 * B * n_pad * C * 3 * C),
        transcendentals=0,
        bytes_accessed=int(B * n_pad * C * (4 + 3 * isz) + 3 * C * C * isz))

    q_hm, k_hm, v_hm = pl.pallas_call(
        functools.partial(_qkv_proj_kernel, num_heads=num_heads, head_dim=head_dim),
        out_shape=tuple(jax.ShapeDtypeStruct((B, num_heads, n_pad, head_dim), compute_dtype)
                        for _ in range(3)),
        grid_spec=pltpu.PrefetchScalarGridSpec(
            num_scalar_prefetch=0,
            grid=(B, num_r),
            in_specs=[
                pl.BlockSpec((1, block_r, C), lambda b, r: (b, r, 0)),
                pl.BlockSpec((C, 3 * C), const2, pipeline_mode=pl.Buffered(1)),
                pl.BlockSpec((1, 3 * C), const2, pipeline_mode=pl.Buffered(1)),
            ],
            out_specs=[hm_spec, hm_spec, hm_spec],
        ),
        compiler_params=pltpu.CompilerParams(
            dimension_semantics=("parallel", "parallel"),
            vmem_limit_bytes=_vmem_limit(proj_bytes)),
        cost_estimate=proj_cost,
    )(x_p, prepared["w_qkv_t"], prepared["b_qkv"])

    # -------------------- pass 2: flash attention + residual + LN --------------------
    const3 = lambda b, qi, ki: (0, 0)
    flash_bytes = (C * C * isz + 3 * C * 4                  # Wo^T + bo/gamma/beta (1 buf)
                   + 2 * block_q * C * 4                    # x tile
                   + 2 * block_q * C * isz                  # q tile
                   + 4 * block_k * C * isz                  # k + v tiles
                   + 2 * block_q * C * 4                    # out tile
                   + num_heads * block_q * (head_dim + 2) * 4   # m, l, acc scratch
                   + block_q * C * 4)                       # merged-head ctx scratch
    flash_cost = pl.CostEstimate(
        flops=int(B * (4 * n_pad * n_pad * C + 2 * n_pad * C * C)),
        transcendentals=int(B * num_heads * n_pad * n_pad),
        bytes_accessed=int(B * n_pad * C * (2 * 4 + 3 * isz) + C * C * isz + 3 * C * 4))

    kernel = functools.partial(
        _flash_attn_ln_kernel, num_heads=num_heads, head_dim=head_dim,
        n_valid=N, block_k=block_k, masked=(n_pad != N), eps=eps,
        approx_reciprocal=approx_reciprocal)

    out = pl.pallas_call(
        kernel,
        out_shape=jax.ShapeDtypeStruct((B, n_pad, C), x.dtype),
        grid_spec=pltpu.PrefetchScalarGridSpec(
            num_scalar_prefetch=0,
            grid=(B, num_q, num_k),
            in_specs=[
                pl.BlockSpec((1, block_q, C), lambda b, qi, ki: (b, qi, 0)),      # x (residual)
                pl.BlockSpec((1, num_heads, block_q, head_dim),
                             lambda b, qi, ki: (b, 0, qi, 0)),                    # q (pre-scaled)
                pl.BlockSpec((1, num_heads, block_k, head_dim),
                             lambda b, qi, ki: (b, 0, ki, 0)),                    # k
                pl.BlockSpec((1, num_heads, block_k, head_dim),
                             lambda b, qi, ki: (b, 0, ki, 0)),                    # v
                pl.BlockSpec((C, C), const3, pipeline_mode=pl.Buffered(1)),       # Wo^T
                pl.BlockSpec((1, C), const3, pipeline_mode=pl.Buffered(1)),       # bo
                pl.BlockSpec((1, C), const3, pipeline_mode=pl.Buffered(1)),       # gamma
                pl.BlockSpec((1, C), const3, pipeline_mode=pl.Buffered(1)),       # beta
            ],
            out_specs=pl.BlockSpec((1, block_q, C), lambda b, qi, ki: (b, qi, 0)),
            scratch_shapes=[
                pltpu.VMEM((num_heads, block_q, 1), jnp.float32),         # running max m
                pltpu.VMEM((num_heads, block_q, 1), jnp.float32),         # running denom l
                pltpu.VMEM((num_heads, block_q, head_dim), jnp.float32),  # PV accumulator
                pltpu.VMEM((block_q, C), jnp.float32),                    # merged-head ctx
            ],
        ),
        compiler_params=pltpu.CompilerParams(
            dimension_semantics=("parallel", "parallel", "arbitrary"),
            vmem_limit_bytes=_vmem_limit(flash_bytes)),
        cost_estimate=flash_cost,
    )(x_p, q_hm, k_hm, v_hm, prepared["wo_t"], prepared["bo"],
      prepared["gamma"], prepared["beta"])

    return out if n_pad == N else out[:, :N]


# --------------------------------------------------------------------------------------
# Synthetic params + pure-JAX reference + demo
# --------------------------------------------------------------------------------------
def make_params(key, embed_dim):
    """Deterministic synthetic parameters (PyTorch Linear weight shape: (out, in))."""
    ks = jax.random.split(key, 8)
    s = 1.0 / (embed_dim ** 0.5)
    return {
        "wq": jax.random.normal(ks[0], (embed_dim, embed_dim), jnp.float32) * s,
        "bq": jax.random.normal(ks[1], (embed_dim,), jnp.float32) * 0.01,
        "wk": jax.random.normal(ks[2], (embed_dim, embed_dim), jnp.float32) * s,
        "bk": jax.random.normal(ks[3], (embed_dim,), jnp.float32) * 0.01,
        "wv": jax.random.normal(ks[4], (embed_dim, embed_dim), jnp.float32) * s,
        "bv": jax.random.normal(ks[5], (embed_dim,), jnp.float32) * 0.01,
        "wo": jax.random.normal(ks[6], (embed_dim, embed_dim), jnp.float32) * s,
        "bo": jax.random.normal(ks[7], (embed_dim,), jnp.float32) * 0.01,
        "gamma": jnp.ones((embed_dim,), jnp.float32),
        "beta": jnp.zeros((embed_dim,), jnp.float32),
    }


def reference(x, params, *, num_heads):
    """Pure-JAX reference mirroring the PyTorch forward."""
    B, N, C = x.shape
    head_dim = C // num_heads
    scale = head_dim ** (-0.5)

    def lin(v, w, b):
        return v @ w.T + b

    q = lin(x, params["wq"], params["bq"]).reshape(B, N, num_heads, head_dim).transpose(0, 2, 1, 3)
    k = lin(x, params["wk"], params["bk"]).reshape(B, N, num_heads, head_dim).transpose(0, 2, 1, 3)
    v = lin(x, params["wv"], params["bv"]).reshape(B, N, num_heads, head_dim).transpose(0, 2, 1, 3)
    attn = jnp.einsum("bhnd,bhmd->bhnm", q, k) * scale
    attn = jax.nn.softmax(attn, axis=-1)
    out = jnp.einsum("bhnm,bhmd->bhnd", attn, v)
    out = out.transpose(0, 2, 1, 3).reshape(B, N, C)
    out = lin(out, params["wo"], params["bo"])
    y = x + out
    mean = jnp.mean(y, axis=-1, keepdims=True)
    var = jnp.mean((y - mean) ** 2, axis=-1, keepdims=True)
    return (y - mean) / jnp.sqrt(var + 1e-5) * params["gamma"] + params["beta"]


if __name__ == "__main__":
    B, N, C, H = 2, 8, 32, 4
    key = jax.random.PRNGKey(0)
    kx, kp = jax.random.split(key)
    x = jax.random.normal(kx, (B, N, C), jnp.float32)
    params = make_params(kp, C)

    # f32 compute for the tiny demo; pass compute_dtype=jnp.bfloat16 on v6e/v7x.
    prepared = prepare_params(params, H)
    fn = jax.jit(functools.partial(residual_self_attention, num_heads=H))

    out = jax.block_until_ready(fn(x, prepared))

    ref = reference(x, params, num_heads=H)
    err = jnp.max(jnp.abs(out - ref))
    # approx=True softmax reciprocal -> slightly relaxed tolerance vs f32 reference
    assert out.shape == ref.shape
    assert jnp.allclose(out, ref, atol=5e-3, rtol=5e-3), f"max abs err {err}"

    print("KERNEL_OK")
</pallas_src>

<mosaic_0001>
module attributes {stable_mosaic.version = 11 : i64} {
  func.func @_qkv_proj_kernel(%arg0: i32, %arg1: i32, %arg2: memref<1x128x32xf32, #tpu.memory_space<vmem>>, %arg3: memref<32x96xf32, #tpu.memory_space<vmem>>, %arg4: memref<1x96xf32, #tpu.memory_space<vmem>>, %arg5: memref<1x4x128x8xf32, #tpu.memory_space<vmem>>, %arg6: memref<1x4x128x8xf32, #tpu.memory_space<vmem>>, %arg7: memref<1x4x128x8xf32, #tpu.memory_space<vmem>>) attributes {dimension_semantics = [#tpu.dimension_semantics<parallel>, #tpu.dimension_semantics<parallel>], iteration_bounds = array<i64: 2, 1>, scalar_prefetch = 0 : i64, scratch_operands = 0 : i64, tpu.core_type = #tpu.core_type<tc>, window_params = [{transform_indices = @transform_0, window_bounds = array<i64: 1, 128, 32>}, {pipeline_mode = #tpu.pipeline_mode<synchronous>, transform_indices = @transform_1, window_bounds = array<i64: 32, 96>}, {pipeline_mode = #tpu.pipeline_mode<synchronous>, transform_indices = @transform_2, window_bounds = array<i64: 1, 96>}, {transform_indices = @transform_3, window_bounds = array<i64: 1, 4, 128, 8>}, {transform_indices = @transform_4, window_bounds = array<i64: 1, 4, 128, 8>}, {transform_indices = @transform_5, window_bounds = array<i64: 1, 4, 128, 8>}]} {
    %c0 = arith.constant 0 : index
    %c0_0 = arith.constant 0 : index
    %c0_1 = arith.constant 0 : index
    %0 = vector.load %arg2[%c0, %c0_0, %c0_1] : memref<1x128x32xf32, #tpu.memory_space<vmem>>, vector<1x128x32xf32>
    %1 = vector.shape_cast %0 : vector<1x128x32xf32> to vector<128x32xf32>
    %c0_2 = arith.constant 0 : index
    %c0_3 = arith.constant 0 : index
    %2 = vector.load %arg3[%c0_2, %c0_3] : memref<32x96xf32, #tpu.memory_space<vmem>>, vector<32x96xf32>
    %cst = arith.constant dense<0.000000e+00> : vector<128x96xf32>
    %3 = tpu.matmul %1, %2, %cst {dimension_numbers = #tpu.dot_dimension_numbers<[1], [0], [0], [1], [0, 0, 1, 1], [], []>} : vector<128x32xf32>, vector<32x96xf32>, vector<128x96xf32> -> vector<128x96xf32>
    %c0_4 = arith.constant 0 : index
    %c0_5 = arith.constant 0 : index
    %4 = vector.load %arg4[%c0_4, %c0_5] : memref<1x96xf32, #tpu.memory_space<vmem>>, vector<1x96xf32>
    %5 = vector.broadcast %4 : vector<1x96xf32> to vector<128x96xf32>
    %6 = arith.addf %3, %5 : vector<128x96xf32>
    %7 = vector.extract_strided_slice %6 {offsets = [0, 0], sizes = [128, 8], strides = [1, 1]} : vector<128x96xf32> to vector<128x8xf32>
    %c0_6 = arith.constant 0 : index
    %c0_7 = arith.constant 0 : index
    %c0_8 = arith.constant 0 : index
    %c0_9 = arith.constant 0 : index
    %8 = vector.load %arg5[%c0_6, %c0_7, %c0_8, %c0_9] : memref<1x4x128x8xf32, #tpu.memory_space<vmem>>, vector<1x1x128x8xf32>
    %9 = vector.shape_cast %8 : vector<1x1x128x8xf32> to vector<128x8xf32>
    %10 = vector.shape_cast %7 : vector<128x8xf32> to vector<1x1x128x8xf32>
    tpu.vector_store %arg5[%c0_6, %c0_7, %c0_8, %c0_9], %10 {strides = array<i32>} : memref<1x4x128x8xf32, #tpu.memory_space<vmem>>, vector<1x1x128x8xf32>,
    %11 = vector.extract_strided_slice %6 {offsets = [0, 32], sizes = [128, 8], strides = [1, 1]} : vector<128x96xf32> to vector<128x8xf32>
    %c0_10 = arith.constant 0 : index
    %c0_11 = arith.constant 0 : index
    %c0_12 = arith.constant 0 : index
    %c0_13 = arith.constant 0 : index
    %12 = vector.load %arg6[%c0_10, %c0_11, %c0_12, %c0_13] : memref<1x4x128x8xf32, #tpu.memory_space<vmem>>, vector<1x1x128x8xf32>
    %13 = vector.shape_cast %12 : vector<1x1x128x8xf32> to vector<128x8xf32>
    %14 = vector.shape_cast %11 : vector<128x8xf32> to vector<1x1x128x8xf32>
    tpu.vector_store %arg6[%c0_10, %c0_11, %c0_12, %c0_13], %14 {strides = array<i32>} : memref<1x4x128x8xf32, #tpu.memory_space<vmem>>, vector<1x1x128x8xf32>,
    %15 = vector.extract_strided_slice %6 {offsets = [0, 64], sizes = [128, 8], strides = [1, 1]} : vector<128x96xf32> to vector<128x8xf32>
    %c0_14 = arith.constant 0 : index
    %c0_15 = arith.constant 0 : index
    %c0_16 = arith.constant 0 : index
    %c0_17 = arith.constant 0 : index
    %16 = vector.load %arg7[%c0_14, %c0_15, %c0_16, %c0_17] : memref<1x4x128x8xf32, #tpu.memory_space<vmem>>, vector<1x1x128x8xf32>
    %17 = vector.shape_cast %16 : vector<1x1x128x8xf32> to vector<128x8xf32>
    %18 = vector.shape_cast %15 : vector<128x8xf32> to vector<1x1x128x8xf32>
    tpu.vector_store %arg7[%c0_14, %c0_15, %c0_16, %c0_17], %18 {strides = array<i32>} : memref<1x4x128x8xf32, #tpu.memory_space<vmem>>, vector<1x1x128x8xf32>,
    %19 = vector.extract_strided_slice %6 {offsets = [0, 8], sizes = [128, 8], strides = [1, 1]} : vector<128x96xf32> to vector<128x8xf32>
    %c0_18 = arith.constant 0 : index
    %c1 = arith.constant 1 : index
    %c0_19 = arith.constant 0 : index
    %c0_20 = arith.constant 0 : index
    %20 = vector.load %arg5[%c0_18, %c1, %c0_19, %c0_20] : memref<1x4x128x8xf32, #tpu.memory_space<vmem>>, vector<1x1x128x8xf32>
    %21 = vector.shape_cast %20 : vector<1x1x128x8xf32> to vector<128x8xf32>
    %22 = vector.shape_cast %19 : vector<128x8xf32> to vector<1x1x128x8xf32>
    tpu.vector_store %arg5[%c0_18, %c1, %c0_19, %c0_20], %22 {strides = array<i32>} : memref<1x4x128x8xf32, #tpu.memory_space<vmem>>, vector<1x1x128x8xf32>,
    %23 = vector.extract_strided_slice %6 {offsets = [0, 40], sizes = [128, 8], strides = [1, 1]} : vector<128x96xf32> to vector<128x8xf32>
    %c0_21 = arith.constant 0 : index
    %c1_22 = arith.constant 1 : index
    %c0_23 = arith.constant 0 : index
    %c0_24 = arith.constant 0 : index
    %24 = vector.load %arg6[%c0_21, %c1_22, %c0_23, %c0_24] : memref<1x4x128x8xf32, #tpu.memory_space<vmem>>, vector<1x1x128x8xf32>
    %25 = vector.shape_cast %24 : vector<1x1x128x8xf32> to vector<128x8xf32>
    %26 = vector.shape_cast %23 : vector<128x8xf32> to vector<1x1x128x8xf32>
    tpu.vector_store %arg6[%c0_21, %c1_22, %c0_23, %c0_24], %26 {strides = array<i32>} : memref<1x4x128x8xf32, #tpu.memory_space<vmem>>, vector<1x1x128x8xf32>,
    %27 = vector.extract_strided_slice %6 {offsets = [0, 72], sizes = [128, 8], strides = [1, 1]} : vector<128x96xf32> to vector<128x8xf32>
    %c0_25 = arith.constant 0 : index
    %c1_26 = arith.constant 1 : index
    %c0_27 = arith.constant 0 : index
    %c0_28 = arith.constant 0 : index
    %28 = vector.load %arg7[%c0_25, %c1_26, %c0_27, %c0_28] : memref<1x4x128x8xf32, #tpu.memory_space<vmem>>, vector<1x1x128x8xf32>
    %29 = vector.shape_cast %28 : vector<1x1x128x8xf32> to vector<128x8xf32>
    %30 = vector.shape_cast %27 : vector<128x8xf32> to vector<1x1x128x8xf32>
    tpu.vector_store %arg7[%c0_25, %c1_26, %c0_27, %c0_28], %30 {strides = array<i32>} : memref<1x4x128x8xf32, #tpu.memory_space<vmem>>, vector<1x1x128x8xf32>,
    %31 = vector.extract_strided_slice %6 {offsets = [0, 16], sizes = [128, 8], strides = [1, 1]} : vector<128x96xf32> to vector<128x8xf32>
    %c0_29 = arith.constant 0 : index
    %c2 = arith.constant 2 : index
    %c0_30 = arith.constant 0 : index
    %c0_31 = arith.constant 0 : index
    %32 = vector.load %arg5[%c0_29, %c2, %c0_30, %c0_31] : memref<1x4x128x8xf32, #tpu.memory_space<vmem>>, vector<1x1x128x8xf32>
    %33 = vector.shape_cast %32 : vector<1x1x128x8xf32> to vector<128x8xf32>
    %34 = vector.shape_cast %31 : vector<128x8xf32> to vector<1x1x128x8xf32>
    tpu.vector_store %arg5[%c0_29, %c2, %c0_30, %c0_31], %34 {strides = array<i32>} : memref<1x4x128x8xf32, #tpu.memory_space<vmem>>, vector<1x1x128x8xf32>,
    %35 = vector.extract_strided_slice %6 {offsets = [0, 48], sizes = [128, 8], strides = [1, 1]} : vector<128x96xf32> to vector<128x8xf32>
    %c0_32 = arith.constant 0 : index
    %c2_33 = arith.constant 2 : index
    %c0_34 = arith.constant 0 : index
    %c0_35 = arith.constant 0 : index
    %36 = vector.load %arg6[%c0_32, %c2_33, %c0_34, %c0_35] : memref<1x4x128x8xf32, #tpu.memory_space<vmem>>, vector<1x1x128x8xf32>
    %37 = vector.shape_cast %36 : vector<1x1x128x8xf32> to vector<128x8xf32>
    %38 = vector.shape_cast %35 : vector<128x8xf32> to vector<1x1x128x8xf32>
    tpu.vector_store %arg6[%c0_32, %c2_33, %c0_34, %c0_35], %38 {strides = array<i32>} : memref<1x4x128x8xf32, #tpu.memory_space<vmem>>, vector<1x1x128x8xf32>,
    %39 = vector.extract_strided_slice %6 {offsets = [0, 80], sizes = [128, 8], strides = [1, 1]} : vector<128x96xf32> to vector<128x8xf32>
    %c0_36 = arith.constant 0 : index
    %c2_37 = arith.constant 2 : index
    %c0_38 = arith.constant 0 : index
    %c0_39 = arith.constant 0 : index
    %40 = vector.load %arg7[%c0_36, %c2_37, %c0_38, %c0_39] : memref<1x4x128x8xf32, #tpu.memory_space<vmem>>, vector<1x1x128x8xf32>
    %41 = vector.shape_cast %40 : vector<1x1x128x8xf32> to vector<128x8xf32>
    %42 = vector.shape_cast %39 : vector<128x8xf32> to vector<1x1x128x8xf32>
    tpu.vector_store %arg7[%c0_36, %c2_37, %c0_38, %c0_39], %42 {strides = array<i32>} : memref<1x4x128x8xf32, #tpu.memory_space<vmem>>, vector<1x1x128x8xf32>,
    %43 = vector.extract_strided_slice %6 {offsets = [0, 24], sizes = [128, 8], strides = [1, 1]} : vector<128x96xf32> to vector<128x8xf32>
    %c0_40 = arith.constant 0 : index
    %c3 = arith.constant 3 : index
    %c0_41 = arith.constant 0 : index
    %c0_42 = arith.constant 0 : index
    %44 = vector.load %arg5[%c0_40, %c3, %c0_41, %c0_42] : memref<1x4x128x8xf32, #tpu.memory_space<vmem>>, vector<1x1x128x8xf32>
    %45 = vector.shape_cast %44 : vector<1x1x128x8xf32> to vector<128x8xf32>
    %46 = vector.shape_cast %43 : vector<128x8xf32> to vector<1x1x128x8xf32>
    tpu.vector_store %arg5[%c0_40, %c3, %c0_41, %c0_42], %46 {strides = array<i32>} : memref<1x4x128x8xf32, #tpu.memory_space<vmem>>, vector<1x1x128x8xf32>,
    %47 = vector.extract_strided_slice %6 {offsets = [0, 56], sizes = [128, 8], strides = [1, 1]} : vector<128x96xf32> to vector<128x8xf32>
    %c0_43 = arith.constant 0 : index
    %c3_44 = arith.constant 3 : index
    %c0_45 = arith.constant 0 : index
    %c0_46 = arith.constant 0 : index
    %48 = vector.load %arg6[%c0_43, %c3_44, %c0_45, %c0_46] : memref<1x4x128x8xf32, #tpu.memory_space<vmem>>, vector<1x1x128x8xf32>
    %49 = vector.shape_cast %48 : vector<1x1x128x8xf32> to vector<128x8xf32>
    %50 = vector.shape_cast %47 : vector<128x8xf32> to vector<1x1x128x8xf32>
    tpu.vector_store %arg6[%c0_43, %c3_44, %c0_45, %c0_46], %50 {strides = array<i32>} : memref<1x4x128x8xf32, #tpu.memory_space<vmem>>, vector<1x1x128x8xf32>,
    %51 = vector.extract_strided_slice %6 {offsets = [0, 88], sizes = [128, 8], strides = [1, 1]} : vector<128x96xf32> to vector<128x8xf32>
    %c0_47 = arith.constant 0 : index
    %c3_48 = arith.constant 3 : index
    %c0_49 = arith.constant 0 : index
    %c0_50 = arith.constant 0 : index
    %52 = vector.load %arg7[%c0_47, %c3_48, %c0_49, %c0_50] : memref<1x4x128x8xf32, #tpu.memory_space<vmem>>, vector<1x1x128x8xf32>
    %53 = vector.shape_cast %52 : vector<1x1x128x8xf32> to vector<128x8xf32>
    %54 = vector.shape_cast %51 : vector<128x8xf32> to vector<1x1x128x8xf32>
    tpu.vector_store %arg7[%c0_47, %c3_48, %c0_49, %c0_50], %54 {strides = array<i32>} : memref<1x4x128x8xf32, #tpu.memory_space<vmem>>, vector<1x1x128x8xf32>,
    return
  }
  func.func @transform_0(%arg0: i32, %arg1: i32) -> (i32, i32, i32) {
    %c0_i32 = arith.constant 0 : i32
    %c0_i32_0 = arith.constant 0 : i32
    return %arg0, %arg1, %c0_i32 : i32, i32, i32
  }
  func.func @transform_1(%arg0: i32, %arg1: i32) -> (i32, i32) {
    %c0_i32 = arith.constant 0 : i32
    %c0_i32_0 = arith.constant 0 : i32
    %c0_i32_1 = arith.constant 0 : i32
    return %c0_i32, %c0_i32_0 : i32, i32
  }
  func.func @transform_2(%arg0: i32, %arg1: i32) -> (i32, i32) {
    %c0_i32 = arith.constant 0 : i32
    %c0_i32_0 = arith.constant 0 : i32
    %c0_i32_1 = arith.constant 0 : i32
    return %c0_i32, %c0_i32_0 : i32, i32
  }
  func.func @transform_3(%arg0: i32, %arg1: i32) -> (i32, i32, i32, i32) {
    %c0_i32 = arith.constant 0 : i32
    %c0_i32_0 = arith.constant 0 : i32
    %c0_i32_1 = arith.constant 0 : i32
    return %arg0, %c0_i32, %arg1, %c0_i32_0 : i32, i32, i32, i32
  }
  func.func @transform_4(%arg0: i32, %arg1: i32) -> (i32, i32, i32, i32) {
    %c0_i32 = arith.constant 0 : i32
    %c0_i32_0 = arith.constant 0 : i32
    %c0_i32_1 = arith.constant 0 : i32
    return %arg0, %c0_i32, %arg1, %c0_i32_0 : i32, i32, i32, i32
  }
  func.func @transform_5(%arg0: i32, %arg1: i32) -> (i32, i32, i32, i32) {
    %c0_i32 = arith.constant 0 : i32
    %c0_i32_0 = arith.constant 0 : i32
    %c0_i32_1 = arith.constant 0 : i32
    return %arg0, %c0_i32, %arg1, %c0_i32_0 : i32, i32, i32, i32
  }
}

module attributes {stable_mosaic.version = 11 : i64} {
  func.func @_flash_attn_ln_kernel(%arg0: i32, %arg1: i32, %arg2: i32, %arg3: memref<1x128x32xf32, #tpu.memory_space<vmem>>, %arg4: memref<1x4x128x8xf32, #tpu.memory_space<vmem>>, %arg5: memref<1x4x128x8xf32, #tpu.memory_space<vmem>>, %arg6: memref<1x4x128x8xf32, #tpu.memory_space<vmem>>, %arg7: memref<32x32xf32, #tpu.memory_space<vmem>>, %arg8: memref<1x32xf32, #tpu.memory_space<vmem>>, %arg9: memref<1x32xf32, #tpu.memory_space<vmem>>, %arg10: memref<1x32xf32, #tpu.memory_space<vmem>>, %arg11: memref<1x128x32xf32, #tpu.memory_space<vmem>>, %arg12: memref<4x128x1xf32, #tpu.memory_space<vmem>>, %arg13: memref<4x128x1xf32, #tpu.memory_space<vmem>>, %arg14: memref<4x128x8xf32, #tpu.memory_space<vmem>>, %arg15: memref<128x32xf32, #tpu.memory_space<vmem>>) attributes {dimension_semantics = [#tpu.dimension_semantics<parallel>, #tpu.dimension_semantics<parallel>, #tpu.dimension_semantics<arbitrary>], iteration_bounds = array<i64: 2, 1, 1>, scalar_prefetch = 0 : i64, scratch_operands = 4 : i64, tpu.core_type = #tpu.core_type<tc>, window_params = [{transform_indices = @transform_0, window_bounds = array<i64: 1, 128, 32>}, {transform_indices = @transform_1, window_bounds = array<i64: 1, 4, 128, 8>}, {transform_indices = @transform_2, window_bounds = array<i64: 1, 4, 128, 8>}, {transform_indices = @transform_3, window_bounds = array<i64: 1, 4, 128, 8>}, {pipeline_mode = #tpu.pipeline_mode<synchronous>, transform_indices = @transform_4, window_bounds = array<i64: 32, 32>}, {pipeline_mode = #tpu.pipeline_mode<synchronous>, transform_indices = @transform_5, window_bounds = array<i64: 1, 32>}, {pipeline_mode = #tpu.pipeline_mode<synchronous>, transform_indices = @transform_6, window_bounds = array<i64: 1, 32>}, {pipeline_mode = #tpu.pipeline_mode<synchronous>, transform_indices = @transform_7, window_bounds = array<i64: 1, 32>}, {transform_indices = @transform_8, window_bounds = array<i64: 1, 128, 32>}]} {
    %c0_i32 = arith.constant 0 : i32
    %0 = arith.cmpi eq, %arg2, %c0_i32 : i32
    %1 = arith.extui %0 : i1 to i32
    %c0_i32_0 = arith.constant 0 : i32
    %2 = arith.cmpi ne, %1, %c0_i32_0 : i32
    scf.if %2 {
      %cst_36 = arith.constant 0xFF800000 : f32
      %43 = vector.broadcast %cst_36 : f32 to vector<4x128x1xf32>
      %c0_37 = arith.constant 0 : index
      %c0_38 = arith.constant 0 : index
      %c0_39 = arith.constant 0 : index
      %44 = vector.load %arg12[%c0_37, %c0_38, %c0_39] : memref<4x128x1xf32, #tpu.memory_space<vmem>>, vector<4x128x1xf32>
      tpu.vector_store %arg12[%c0_37, %c0_38, %c0_39], %43 {strides = array<i32>} : memref<4x128x1xf32, #tpu.memory_space<vmem>>, vector<4x128x1xf32>,
      %cst_40 = arith.constant 0.000000e+00 : f32
      %45 = vector.broadcast %cst_40 : f32 to vector<4x128x1xf32>
      %c0_41 = arith.constant 0 : index
      %c0_42 = arith.constant 0 : index
      %c0_43 = arith.constant 0 : index
      %46 = vector.load %arg13[%c0_41, %c0_42, %c0_43] : memref<4x128x1xf32, #tpu.memory_space<vmem>>, vector<4x128x1xf32>
      tpu.vector_store %arg13[%c0_41, %c0_42, %c0_43], %45 {strides = array<i32>} : memref<4x128x1xf32, #tpu.memory_space<vmem>>, vector<4x128x1xf32>,
      %cst_44 = arith.constant 0.000000e+00 : f32
      %47 = vector.broadcast %cst_44 : f32 to vector<4x128x8xf32>
      %c0_45 = arith.constant 0 : index
      %c0_46 = arith.constant 0 : index
      %c0_47 = arith.constant 0 : index
      %48 = vector.load %arg14[%c0_45, %c0_46, %c0_47] : memref<4x128x8xf32, #tpu.memory_space<vmem>>, vector<4x128x8xf32>
      tpu.vector_store %arg14[%c0_45, %c0_46, %c0_47], %47 {strides = array<i32>} : memref<4x128x8xf32, #tpu.memory_space<vmem>>, vector<4x128x8xf32>,
    } else {
    }
    %c0 = arith.constant 0 : index
    %c0_1 = arith.constant 0 : index
    %c0_2 = arith.constant 0 : index
    %c0_3 = arith.constant 0 : index
    %3 = vector.load %arg4[%c0, %c0_1, %c0_2, %c0_3] : memref<1x4x128x8xf32, #tpu.memory_space<vmem>>, vector<1x4x128x8xf32>
    %4 = vector.shape_cast %3 : vector<1x4x128x8xf32> to vector<4x128x8xf32>
    %c0_4 = arith.constant 0 : index
    %c0_5 = arith.constant 0 : index
    %c0_6 = arith.constant 0 : index
    %c0_7 = arith.constant 0 : index
    %5 = vector.load %arg5[%c0_4, %c0_5, %c0_6, %c0_7] : memref<1x4x128x8xf32, #tpu.memory_space<vmem>>, vector<1x4x128x8xf32>
    %6 = vector.shape_cast %5 : vector<1x4x128x8xf32> to vector<4x128x8xf32>
    %c0_8 = arith.constant 0 : index
    %c0_9 = arith.constant 0 : index
    %c0_10 = arith.constant 0 : index
    %c0_11 = arith.constant 0 : index
    %7 = vector.load %arg6[%c0_8, %c0_9, %c0_10, %c0_11] : memref<1x4x128x8xf32, #tpu.memory_space<vmem>>, vector<1x4x128x8xf32>
    %8 = vector.shape_cast %7 : vector<1x4x128x8xf32> to vector<4x128x8xf32>
    "tpu.trace_start"() <{level = 10 : i32, message = "hnd,hmd->hnm"}> : () -> ()
    %cst = arith.constant dense<0.000000e+00> : vector<4x128x128xf32>
    %9 = tpu.matmul %4, %6, %cst {dimension_numbers = #tpu.dot_dimension_numbers<[2], [2], [1], [1], [0, 0, 0, 1, 1, 1], [0], [0]>} : vector<4x128x8xf32>, vector<4x128x8xf32>, vector<4x128x128xf32> -> vector<4x128x128xf32>
    "tpu.trace_stop"() : () -> ()
    %c128_i32 = arith.constant 128 : i32
    %10 = arith.muli %arg2, %c128_i32 : i32
    %11 = tpu.iota {dimensions = array<i32: 2>} : vector<4x128x128xi32>
    %12 = vector.broadcast %10 : i32 to vector<4x128x128xi32>
    %13 = arith.addi %12, %11 : vector<4x128x128xi32>
    %c8_i32 = arith.constant 8 : i32
    %14 = vector.broadcast %c8_i32 : i32 to vector<4x128x128xi32>
    %15 = arith.cmpi slt, %13, %14 : vector<4x128x128xi32>
    %cst_12 = arith.constant -1.000000e+30 : f32
    %16 = vector.broadcast %cst_12 : f32 to vector<4x128x128xf32>
    %17 = arith.select %15, %9, %16 : vector<4x128x128xi1>, vector<4x128x128xf32>
    %c0_13 = arith.constant 0 : index
    %c0_14 = arith.constant 0 : index
    %c0_15 = arith.constant 0 : index
    %18 = vector.load %arg12[%c0_13, %c0_14, %c0_15] : memref<4x128x1xf32, #tpu.memory_space<vmem>>, vector<4x128x1xf32>
    %cst_16 = arith.constant dense<0xFF800000> : vector<4x128xf32>
    %19 = vector.multi_reduction <maximumf>, %17, %cst_16 [2] : vector<4x128x128xf32> to vector<4x128xf32>
    %20 = vector.shape_cast %19 : vector<4x128xf32> to vector<4x128x1xf32>
    %21 = arith.maximumf %18, %20 : vector<4x128x1xf32>
    %22 = arith.subf %18, %21 : vector<4x128x1xf32>
    %23 = math.exp %22 : vector<4x128x1xf32>
    %24 = vector.broadcast %21 : vector<4x128x1xf32> to vector<4x128x128xf32>
    %25 = arith.subf %17, %24 : vector<4x128x128xf32>
    %26 = math.exp %25 : vector<4x128x128xf32>
    %c0_17 = arith.constant 0 : index
    %c0_18 = arith.constant 0 : index
    %c0_19 = arith.constant 0 : index
    %27 = vector.load %arg13[%c0_17, %c0_18, %c0_19] : memref<4x128x1xf32, #tpu.memory_space<vmem>>, vector<4x128x1xf32>
    %28 = arith.mulf %23, %27 : vector<4x128x1xf32>
    %cst_20 = arith.constant dense<0.000000e+00> : vector<4x128xf32>
    %29 = vector.multi_reduction <add>, %26, %cst_20 [2] : vector<4x128x128xf32> to vector<4x128xf32>
    %30 = vector.shape_cast %29 : vector<4x128xf32> to vector<4x128x1xf32>
    %31 = arith.addf %28, %30 : vector<4x128x1xf32>
    %c0_21 = arith.constant 0 : index
    %c0_22 = arith.constant 0 : index
    %c0_23 = arith.constant 0 : index
    %32 = vector.load %arg13[%c0_21, %c0_22, %c0_23] : memref<4x128x1xf32, #tpu.memory_space<vmem>>, vector<4x128x1xf32>
    tpu.vector_store %arg13[%c0_21, %c0_22, %c0_23], %31 {strides = array<i32>} : memref<4x128x1xf32, #tpu.memory_space<vmem>>, vector<4x128x1xf32>,
    %c0_24 = arith.constant 0 : index
    %c0_25 = arith.constant 0 : index
    %c0_26 = arith.constant 0 : index
    %33 = vector.load %arg14[%c0_24, %c0_25, %c0_26] : memref<4x128x8xf32, #tpu.memory_space<vmem>>, vector<4x128x8xf32>
    %34 = vector.broadcast %23 : vector<4x128x1xf32> to vector<4x128x8xf32>
    %35 = arith.mulf %34, %33 : vector<4x128x8xf32>
    "tpu.trace_start"() <{level = 10 : i32, message = "hnm,hmd->hnd"}> : () -> ()
    %cst_27 = arith.constant dense<0.000000e+00> : vector<4x128x8xf32>
    %36 = tpu.matmul %26, %8, %cst_27 {dimension_numbers = #tpu.dot_dimension_numbers<[2], [1], [1], [2], [0, 0, 0, 1, 1, 2], [0], [0]>} : vector<4x128x128xf32>, vector<4x128x8xf32>, vector<4x128x8xf32> -> vector<4x128x8xf32>
    "tpu.trace_stop"() : () -> ()
    %37 = arith.addf %35, %36 : vector<4x128x8xf32>
    %c0_28 = arith.constant 0 : index
    %c0_29 = arith.constant 0 : index
    %c0_30 = arith.constant 0 : index
    %38 = vector.load %arg14[%c0_28, %c0_29, %c0_30] : memref<4x128x8xf32, #tpu.memory_space<vmem>>, vector<4x128x8xf32>
    tpu.vector_store %arg14[%c0_28, %c0_29, %c0_30], %37 {strides = array<i32>} : memref<4x128x8xf32, #tpu.memory_space<vmem>>, vector<4x128x8xf32>,
    %c0_31 = arith.constant 0 : index
    %c0_32 = arith.constant 0 : index
    %c0_33 = arith.constant 0 : index
    %39 = vector.load %arg12[%c0_31, %c0_32, %c0_33] : memref<4x128x1xf32, #tpu.memory_space<vmem>>, vector<4x128x1xf32>
    tpu.vector_store %arg12[%c0_31, %c0_32, %c0_33], %21 {strides = array<i32>} : memref<4x128x1xf32, #tpu.memory_space<vmem>>, vector<4x128x1xf32>,
    %c0_i32_34 = arith.constant 0 : i32
    %40 = arith.cmpi eq, %arg2, %c0_i32_34 : i32
    %41 = arith.extui %40 : i1 to i32
    %c0_i32_35 = arith.constant 0 : i32
    %42 = arith.cmpi ne, %41, %c0_i32_35 : i32
    scf.if %42 {
      %c0_36 = arith.constant 0 : index
      %c0_37 = arith.constant 0 : index
      %c0_38 = arith.constant 0 : index
      %43 = vector.load %arg13[%c0_36, %c0_37, %c0_38] : memref<4x128x1xf32, #tpu.memory_space<vmem>>, vector<4x128x1xf32>
      %44 = tpu.reciprocal %43 {approx = true} : vector<4x128x1xf32> -> vector<4x128x1xf32>
      %c0_39 = arith.constant 0 : index
      %c0_40 = arith.constant 0 : index
      %c0_41 = arith.constant 0 : index
      %45 = vector.load %arg14[%c0_39, %c0_40, %c0_41] : memref<4x128x8xf32, #tpu.memory_space<vmem>>, vector<4x128x8xf32>
      %46 = vector.broadcast %44 : vector<4x128x1xf32> to vector<4x128x8xf32>
      %47 = arith.mulf %45, %46 : vector<4x128x8xf32>
      %48 = vector.extract_strided_slice %47 {offsets = [0, 0, 0], sizes = [1, 128, 8], strides = [1, 1, 1]} : vector<4x128x8xf32> to vector<1x128x8xf32>
      %49 = vector.shape_cast %48 : vector<1x128x8xf32> to vector<128x8xf32>
      %c0_42 = arith.constant 0 : index
      %c0_43 = arith.constant 0 : index
      %50 = vector.load %arg15[%c0_42, %c0_43] : memref<128x32xf32, #tpu.memory_space<vmem>>, vector<128x8xf32>
      tpu.vector_store %arg15[%c0_42, %c0_43], %49 {strides = array<i32>} : memref<128x32xf32, #tpu.memory_space<vmem>>, vector<128x8xf32>,
      %51 = vector.extract_strided_slice %47 {offsets = [1, 0, 0], sizes = [1, 128, 8], strides = [1, 1, 1]} : vector<4x128x8xf32> to vector<1x128x8xf32>
      %52 = vector.shape_cast %51 : vector<1x128x8xf32> to vector<128x8xf32>
      %c0_44 = arith.constant 0 : index
      %c8 = arith.constant 8 : index
      %53 = vector.load %arg15[%c0_44, %c8] : memref<128x32xf32, #tpu.memory_space<vmem>>, vector<128x8xf32>
      tpu.vector_store %arg15[%c0_44, %c8], %52 {strides = array<i32>} : memref<128x32xf32, #tpu.memory_space<vmem>>, vector<128x8xf32>,
      %54 = vector.extract_strided_slice %47 {offsets = [2, 0, 0], sizes = [1, 128, 8], strides = [1, 1, 1]} : vector<4x128x8xf32> to vector<1x128x8xf32>
      %55 = vector.shape_cast %54 : vector<1x128x8xf32> to vector<128x8xf32>
      %c0_45 = arith.constant 0 : index
      %c16 = arith.constant 16 : index
      %56 = vector.load %arg15[%c0_45, %c16] : memref<128x32xf32, #tpu.memory_space<vmem>>, vector<128x8xf32>
      tpu.vector_store %arg15[%c0_45, %c16], %55 {strides = array<i32>} : memref<128x32xf32, #tpu.memory_space<vmem>>, vector<128x8xf32>,
      %57 = vector.extract_strided_slice %47 {offsets = [3, 0, 0], sizes = [1, 128, 8], strides = [1, 1, 1]} : vector<4x128x8xf32> to vector<1x128x8xf32>
      %58 = vector.shape_cast %57 : vector<1x128x8xf32> to vector<128x8xf32>
      %c0_46 = arith.constant 0 : index
      %c24 = arith.constant 24 : index
      %59 = vector.load %arg15[%c0_46, %c24] : memref<128x32xf32, #tpu.memory_space<vmem>>, vector<128x8xf32>
      tpu.vector_store %arg15[%c0_46, %c24], %58 {strides = array<i32>} : memref<128x32xf32, #tpu.memory_space<vmem>>, vector<128x8xf32>,
      %c0_47 = arith.constant 0 : index
      %c0_48 = arith.constant 0 : index
      %60 = vector.load %arg15[%c0_47, %c0_48] : memref<128x32xf32, #tpu.memory_space<vmem>>, vector<128x32xf32>
      %c0_49 = arith.constant 0 : index
      %c0_50 = arith.constant 0 : index
      %61 = vector.load %arg7[%c0_49, %c0_50] : memref<32x32xf32, #tpu.memory_space<vmem>>, vector<32x32xf32>
      %cst_51 = arith.constant dense<0.000000e+00> : vector<128x32xf32>
      %62 = tpu.matmul %60, %61, %cst_51 {dimension_numbers = #tpu.dot_dimension_numbers<[1], [0], [0], [1], [0, 0, 1, 1], [], []>} : vector<128x32xf32>, vector<32x32xf32>, vector<128x32xf32> -> vector<128x32xf32>
      %c0_52 = arith.constant 0 : index
      %c0_53 = arith.constant 0 : index
      %63 = vector.load %arg8[%c0_52, %c0_53] : memref<1x32xf32, #tpu.memory_space<vmem>>, vector<1x32xf32>
      %64 = vector.broadcast %63 : vector<1x32xf32> to vector<128x32xf32>
      %65 = arith.addf %62, %64 : vector<128x32xf32>
      %c0_54 = arith.constant 0 : index
      %c0_55 = arith.constant 0 : index
      %c0_56 = arith.constant 0 : index
      %66 = vector.load %arg3[%c0_54, %c0_55, %c0_56] : memref<1x128x32xf32, #tpu.memory_space<vmem>>, vector<1x128x32xf32>
      %67 = vector.shape_cast %66 : vector<1x128x32xf32> to vector<128x32xf32>
      %68 = arith.addf %67, %65 : vector<128x32xf32>
      %cst_57 = arith.constant dense<0.000000e+00> : vector<128xf32>
      %69 = vector.multi_reduction <add>, %68, %cst_57 [1] : vector<128x32xf32> to vector<128xf32>
      %70 = vector.shape_cast %69 : vector<128xf32> to vector<128x1xf32>
      %cst_58 = arith.constant 3.200000e+01 : f32
      %71 = vector.broadcast %cst_58 : f32 to vector<128x1xf32>
      %72 = arith.divf %70, %71 : vector<128x1xf32>
      %73 = vector.broadcast %72 : vector<128x1xf32> to vector<128x32xf32>
      %74 = arith.subf %68, %73 : vector<128x32xf32>
      %75 = arith.mulf %74, %74 : vector<128x32xf32>
      %cst_59 = arith.constant dense<0.000000e+00> : vector<128xf32>
      %76 = vector.multi_reduction <add>, %75, %cst_59 [1] : vector<128x32xf32> to vector<128xf32>
      %77 = vector.shape_cast %76 : vector<128xf32> to vector<128x1xf32>
      %cst_60 = arith.constant 3.200000e+01 : f32
      %78 = vector.broadcast %cst_60 : f32 to vector<128x1xf32>
      %79 = arith.divf %77, %78 : vector<128x1xf32>
      %cst_61 = arith.constant 9.99999974E-6 : f32
      %80 = vector.broadcast %cst_61 : f32 to vector<128x1xf32>
      %81 = arith.addf %79, %80 : vector<128x1xf32>
      %82 = math.rsqrt %81 : vector<128x1xf32>
      %83 = vector.broadcast %82 : vector<128x1xf32> to vector<128x32xf32>
      %84 = arith.mulf %74, %83 : vector<128x32xf32>
      %c0_62 = arith.constant 0 : index
      %c0_63 = arith.constant 0 : index
      %85 = vector.load %arg9[%c0_62, %c0_63] : memref<1x32xf32, #tpu.memory_space<vmem>>, vector<1x32xf32>
      %86 = vector.broadcast %85 : vector<1x32xf32> to vector<128x32xf32>
      %87 = arith.mulf %84, %86 : vector<128x32xf32>
      %c0_64 = arith.constant 0 : index
      %c0_65 = arith.constant 0 : index
      %88 = vector.load %arg10[%c0_64, %c0_65] : memref<1x32xf32, #tpu.memory_space<vmem>>, vector<1x32xf32>
      %89 = vector.broadcast %88 : vector<1x32xf32> to vector<128x32xf32>
      %90 = arith.addf %87, %89 : vector<128x32xf32>
      %c0_66 = arith.constant 0 : index
      %c0_67 = arith.constant 0 : index
      %c0_68 = arith.constant 0 : index
      %91 = vector.load %arg11[%c0_66, %c0_67, %c0_68] : memref<1x128x32xf32, #tpu.memory_space<vmem>>, vector<1x128x32xf32>
      %92 = vector.shape_cast %91 : vector<1x128x32xf32> to vector<128x32xf32>
      %93 = vector.shape_cast %90 : vector<128x32xf32> to vector<1x128x32xf32>
      tpu.vector_store %arg11[%c0_66, %c0_67, %c0_68], %93 {strides = array<i32>} : memref<1x128x32xf32, #tpu.memory_space<vmem>>, vector<1x128x32xf32>,
    } else {
    }
    return
  }
  func.func @transform_0(%arg0: i32, %arg1: i32, %arg2: i32) -> (i32, i32, i32) {
    %c0_i32 = arith.constant 0 : i32
    %c0_i32_0 = arith.constant 0 : i32
    return %arg0, %arg1, %c0_i32 : i32, i32, i32
  }
  func.func @transform_1(%arg0: i32, %arg1: i32, %arg2: i32) -> (i32, i32, i32, i32) {
    %c0_i32 = arith.constant 0 : i32
    %c0_i32_0 = arith.constant 0 : i32
    %c0_i32_1 = arith.constant 0 : i32
    return %arg0, %c0_i32, %arg1, %c0_i32_0 : i32, i32, i32, i32
  }
  func.func @transform_2(%arg0: i32, %arg1: i32, %arg2: i32) -> (i32, i32, i32, i32) {
    %c0_i32 = arith.constant 0 : i32
    %c0_i32_0 = arith.constant 0 : i32
    %c0_i32_1 = arith.constant 0 : i32
    return %arg0, %c0_i32, %arg2, %c0_i32_0 : i32, i32, i32, i32
  }
  func.func @transform_3(%arg0: i32, %arg1: i32, %arg2: i32) -> (i32, i32, i32, i32) {
    %c0_i32 = arith.constant 0 : i32
    %c0_i32_0 = arith.constant 0 : i32
    %c0_i32_1 = arith.constant 0 : i32
    return %arg0, %c0_i32, %arg2, %c0_i32_0 : i32, i32, i32, i32
  }
  func.func @transform_4(%arg0: i32, %arg1: i32, %arg2: i32) -> (i32, i32) {
    %c0_i32 = arith.constant 0 : i32
    %c0_i32_0 = arith.constant 0 : i32
    %c0_i32_1 = arith.constant 0 : i32
    return %c0_i32, %c0_i32_0 : i32, i32
  }
  func.func @transform_5(%arg0: i32, %arg1: i32, %arg2: i32) -> (i32, i32) {
    %c0_i32 = arith.constant 0 : i32
    %c0_i32_0 = arith.constant 0 : i32
    %c0_i32_1 = arith.constant 0 : i32
    return %c0_i32, %c0_i32_0 : i32, i32
  }
  func.func @transform_6(%arg0: i32, %arg1: i32, %arg2: i32) -> (i32, i32) {
    %c0_i32 = arith.constant 0 : i32
    %c0_i32_0 = arith.constant 0 : i32
    %c0_i32_1 = arith.constant 0 : i32
    return %c0_i32, %c0_i32_0 : i32, i32
  }
  func.func @transform_7(%arg0: i32, %arg1: i32, %arg2: i32) -> (i32, i32) {
    %c0_i32 = arith.constant 0 : i32
    %c0_i32_0 = arith.constant 0 : i32
    %c0_i32_1 = arith.constant 0 : i32
    return %c0_i32, %c0_i32_0 : i32, i32
  }
  func.func @transform_8(%arg0: i32, %arg1: i32, %arg2: i32) -> (i32, i32, i32) {
    %c0_i32 = arith.constant 0 : i32
    %c0_i32_0 = arith.constant 0 : i32
    return %arg0, %arg1, %c0_i32 : i32, i32, i32
  }
}

</mosaic_0001>

<bundles_post_ra>
// kernel: residual_self_attention.2
= control target key start
LH: loop header
LB: loop body
LE: loop exit
PB: predicated region body
PF: predicated region fallthrough
CT: control target
= control target key end

     0   :  { %s1805_s18 = smov 0   ;;  %s1807_s19 = smov 0   ;;  %s2710_s0 = inlined_call_operand.vmem [shape: f32[2,128,32], index: 0, kind: input, shape index: {}]   ;;  %s2711_s1 = inlined_call_operand.vmem [shape: f32[32,96], index: 1, kind: input, shape index: {}]   ;;  %s2712_s2 = inlined_call_operand.vmem [shape: f32[1,96], index: 2, kind: input, shape index: {}]   ;;  %s2713_s3 = inlined_call_operand.vmem [shape: f32[2,4,128,8], index: 3, kind: output, shape index: {0}]   ;;  %s2714_s4 = inlined_call_operand.vmem [shape: f32[2,4,128,8], index: 4, kind: output, shape index: {1}]   ;;  %s2715_s5 = inlined_call_operand.vmem [shape: f32[2,4,128,8], index: 5, kind: output, shape index: {2}]  }
   0x1   :  { %s1809_s20 = smov 0  }
   0x2 LB: > { %s28_s21 = sadd.s32 1, %s1758_s19  ;;  %p1469_p0 = scmp.ge.s32.totalorder %s1762_s20, 1  ;;  %s1762_s20 = sphi %s1809_s20, %s16_s20   ;;  %s1758_s19 = sphi %s1807_s19, %s2717_s19   ;;  %s1754_s18 = sphi %s1805_s18, %s2716_s18  }
   0x3   : > { %p30_p1 = scmp.ge.s32.totalorder %s28_s21, 2  ;;  %p217_p2 = scmp.lt.s32.totalorder %s1762_s20, 3 }
   0x5   : > { %s2719_s21 = smov (%p30_p1, %s28_s21), 0  ;;  %p218_p3 = pnand %p1469_p0, %p217_p2 }
   0x6   : > { %p272_p4 = scmp.lt.s32.totalorder (!%p218_p3), %s1754_s18, 1  ;;  %s1764_s15 = smov (!%p218_p3), 96  }
   0x7   : > { %221 = sbr.rel (%p218_p3) target bundleno = 681 (0x2a9), region = 32  ;;  %s1765_s16 = smov (!%p218_p3), 64  }
   0x8   : > { %s1766_s17 = smov (!%p218_p3), 120   ;;  %s1768_s22 = smov (!%p218_p3), 56  }
   0x9   : > { %s1769_s23 = smov (!%p218_p3), 112   ;;  %s1770_s24 = smov (!%p218_p3), 80  }
   0xa   : > { %s1771_s6 = smov (!%p218_p3), 48   ;;  %s1772_s7 = smov (!%p218_p3), 104  }
   0xc   : > { %v330_v0 = vld [vmem:[%s2711_s1 + $0x18] sm:$0xff]  ;;  %v329_v1 = vld [vmem:[%s2711_s1 + $0x10] sm:$0xff]  ;;  %v328_v2 = vld [vmem:[%s2711_s1 + $0x8] sm:$0xff]  ;;  %s2721_s18 = smov (!%p272_p4, %s1754_s18), 1  ;;  %vm338_vm0 = vcmask 261120   ;;  %vm532_vm1 = vcmask 64512  }
   0xd   : > { %1665 = vmatprep.subr.mxu0 %v330_v0  ;;  %1697 = vmatprep.subr.mxu1 %v330_v0  ;;  %v327_v3 = vld [vmem:[%s2711_s1] sm:$0xff]  ;;  %s1641_s30 = sshll.u32 %s2721_s18, 7  ;;  %s1876_s9 = sshll.u32 %s2721_s18, 9 }
   0xe   : > { %1666 = vmatpush3.msra.mxu0 %v330_v0  ;;  %1701 = vmatpush3.msra.mxu1 %v330_v0  ;;  %s1841_s8 = scalar_lea.vmem %s2710_s0, %s1641_s30  ;;  %v1881_v20 = vld [vmem:[%s2712_s2] ss:$0 sm:$0xff]  ;;  %s1887_s14 = scalar_lea.vmem %s2713_s3, %s1876_s9 }
   0xf   : > { %1667 = vmatprep.subr.mxu0 %v329_v1  ;;  %1698 = vmatprep.subr.mxu1 %v329_v1  ;;  %v311_v4 = vld [vmem:[%s1841_s8] sm:$0xff]  ;;  %v312_v6 = vld [vmem:[%s1841_s8 + $0x8] sm:$0xff]  ;;  %v313_v8 = vld [vmem:[%s1841_s8 + $0x10] sm:$0xff]  ;;  %s1767_s18 = smov 88   ;;  %s2105_s27 = scalar_lea.vmem %s2714_s4, %s1876_s9 }
  0x10   : > { %1668 = vmatpush3.msra.mxu0 %v329_v1  ;;  %1702 = vmatpush3.msra.mxu1 %v329_v1  ;;  %v319_v5 = vld [vmem:[%s1841_s8 + $0x40] sm:$0xff]  ;;  %v320_v7 = vld [vmem:[%s1841_s8 + $0x48] sm:$0xff]  ;;  %v321_v9 = vld [vmem:[%s1841_s8 + $0x50] sm:$0xff]  ;;  %s2119_s30 = scalar_lea.vmem %s2715_s5, %s1876_s9  ;;  %s1774_s9 = smov 40  }
  0x11   : > { %1669 = vmatprep.subr.mxu0 %v328_v2  ;;  %1699 = vmatprep.subr.mxu1 %v328_v2  ;;  %v314_v10 = vld [vmem:[%s1841_s8 + $0x18] sm:$0xff]  ;;  %v315_v12 = vld [vmem:[%s1841_s8 + $0x20] sm:$0xff]  ;;  %v316_v14 = vld [vmem:[%s1841_s8 + $0x28] sm:$0xff] }
  0x12   : > { %1670 = vmatpush3.msra.mxu0 %v328_v2  ;;  %1703 = vmatpush3.msra.mxu1 %v328_v2  ;;  %v322_v11 = vld [vmem:[%s1841_s8 + $0x58] sm:$0xff]  ;;  %v323_v13 = vld [vmem:[%s1841_s8 + $0x60] sm:$0xff]  ;;  %v324_v15 = vld [vmem:[%s1841_s8 + $0x68] sm:$0xff] }
  0x13   : > { %1671 = vmatprep.subr.mxu0 %v327_v3  ;;  %1700 = vmatprep.subr.mxu1 %v327_v3  ;;  %v317_v16 = vld [vmem:[%s1841_s8 + $0x30] sm:$0xff]  ;;  %v318_v18 = vld [vmem:[%s1841_s8 + $0x38] sm:$0xff] }
  0x14   : > { %1672 = vmatpush3.msra.mxu0 %v327_v3  ;;  %1704 = vmatpush3.msra.mxu1 %v327_v3  ;;  %v325_v17 = vld [vmem:[%s1841_s8 + $0x70] sm:$0xff]  ;;  %v326_v19 = vld [vmem:[%s1841_s8 + $0x78] sm:$0xff]  ;;  %s1773_s8 = smov 72  }
  0x15   : > { %1673 = vmatprep.mubr.msk.f32.mxu0 %vm338_vm0, %v311_v4  ;;  %1685 = vmatprep.mubr.msk.f32.mxu1 %vm338_vm0, %v319_v5 }
  0x16   : > { %1674 = vmatmul.mubr.msk.f32.vlgmr.msra.gmra.mxu0 %vm338_vm0, %v312_v6  ;;  %1686 = vmatmul.mubr.msk.f32.vlgmr.msra.gmra.mxu1 %vm338_vm0, %v320_v7 }
  0x17   : > { %1676 = vmatprep.mubr.msk.f32.mxu0 %vm338_vm0, %v313_v8  ;;  %1688 = vmatprep.mubr.msk.f32.mxu1 %vm338_vm0, %v321_v9 }
  0x1a   : > { %1677 = vmatmul.mubr.msk.f32.gmra.mxu0 %vm338_vm0, %v314_v10  ;;  %1689 = vmatmul.mubr.msk.f32.gmra.mxu1 %vm338_vm0, %v322_v11 }
  0x1b   : > { %1679 = vmatprep.mubr.msk.f32.mxu0 %vm338_vm0, %v315_v12  ;;  %1691 = vmatprep.mubr.msk.f32.mxu1 %vm338_vm0, %v323_v13 }
  0x1e   : > { %1680 = vmatmul.mubr.msk.f32.gmra.mxu0 %vm338_vm0, %v316_v14  ;;  %1692 = vmatmul.mubr.msk.f32.gmra.mxu1 %vm338_vm0, %v324_v15 }
  0x1f   : > { %1682 = vmatprep.mubr.msk.f32.mxu0 %vm338_vm0, %v317_v16  ;;  %1694 = vmatprep.mubr.msk.f32.mxu1 %vm338_vm0, %v325_v17 }
  0x22   : > { %1683 = vmatmul.mubr.msk.f32.gmra.mxu0 %vm338_vm0, %v318_v18  ;;  %1695 = vmatmul.mubr.msk.f32.gmra.mxu1 %vm338_vm0, %v326_v19 }
  0xd6   : > { %v1675_v21 = vpop.f32.mrf.mxu0  ;;  %v1687_v22 = vpop.f32.mrf.mxu1 }
  0xd7   : > { %v1890_v23 = vadd.f32 %v1675_v21, %v1881_v20  ;;  %v1893_v24 = vadd.f32 %v1687_v22, %v1881_v20 }
  0xd8   : > { %v453_v25 = vpop.f32.mrf.mxu0  ;;  %v493_v26 = vpop.f32.mrf.mxu1 }
  0xd9   : > { %534 = vst.msk [vmem:[%s1887_s14 + $0x8] sm:$0xff] %vm532_vm1, %v1890_v23  ;;  %542 = vst.msk [vmem:[%s1887_s14 + $0x48] sm:$0xff] %vm532_vm1, %v1893_v24  ;;  %v1902_v27 = vadd.f32 %v1881_v20, %v453_v25  ;;  %v1905_v28 = vadd.f32 %v1881_v20, %v493_v26  ;;  %583 = vrot.lane.b32.xlu1 %v1893_v24, %s1764_s15  ;;  %567 = vrot.lane.b32.xlu0 %v1890_v23, %s1764_s15 }
  0xda   : > { %v1678_v29 = vpop.f32.mrf.mxu0  ;;  %v1690_v30 = vpop.f32.mrf.mxu1 }
  0xdb   : > { %533 = vst.msk [vmem:[%s1887_s14] sm:$0xff] %vm532_vm1, %v1902_v27  ;;  %541 = vst.msk [vmem:[%s1887_s14 + $0x40] sm:$0xff] %vm532_vm1, %v1905_v28  ;;  %v1918_v31 = vadd.f32 %v1678_v29, %v1881_v20  ;;  %v1921_v32 = vadd.f32 %v1690_v30, %v1881_v20 }
  0xdc   : > { %v463_v33 = vpop.f32.mrf.mxu0  ;;  %v503_v34 = vpop.f32.mrf.mxu1 }
  0xdd   : > { %631 = vrot.lane.b32.xlu1 %v1890_v23, %s1765_s16  ;;  %565 = vrot.lane.b32.xlu0 %v1902_v27, %s1764_s15  ;;  %536 = vst.msk [vmem:[%s1887_s14 + $0x18] sm:$0xff] %vm532_vm1, %v1918_v31  ;;  %v1931_v35 = vadd.f32 %v1881_v20, %v463_v33  ;;  %544 = vst.msk [vmem:[%s1887_s14 + $0x58] sm:$0xff] %vm532_vm1, %v1921_v32  ;;  %v1937_v36 = vadd.f32 %v1881_v20, %v503_v34 }
  0xde   : > { %v1681_v37 = vpop.f32.mrf.mxu0  ;;  %v1693_v38 = vpop.f32.mrf.mxu1 }
  0xdf   : > { %535 = vst.msk [vmem:[%s1887_s14 + $0x10] sm:$0xff] %vm532_vm1, %v1931_v35  ;;  %543 = vst.msk [vmem:[%s1887_s14 + $0x50] sm:$0xff] %vm532_vm1, %v1937_v36  ;;  %v1946_v39 = vadd.f32 %v1681_v37, %v1881_v20  ;;  %v1949_v40 = vadd.f32 %v1693_v38, %v1881_v20 }
  0xe0   : > { %v473_v41 = vpop.f32.mrf.mxu0  ;;  %v513_v42 = vpop.f32.mrf.mxu1 }
  0xe1   : > { %647 = vrot.lane.b32.xlu1 %v1893_v24, %s1765_s16  ;;  %581 = vrot.lane.b32.xlu0 %v1905_v28, %s1764_s15  ;;  %538 = vst.msk [vmem:[%s1887_s14 + $0x28] sm:$0xff] %vm532_vm1, %v1946_v39  ;;  %v1959_v43 = vadd.f32 %v1881_v20, %v473_v41  ;;  %546 = vst.msk [vmem:[%s1887_s14 + $0x68] sm:$0xff] %vm532_vm1, %v1949_v40  ;;  %v1965_v44 = vadd.f32 %v1881_v20, %v513_v42 }
  0xe2   : > { %v1684_v45 = vpop.f32.mrf.mxu0  ;;  %v1696_v49 = vpop.f32.mrf.mxu1 }
  0xe3   : > { %537 = vst.msk [vmem:[%s1887_s14 + $0x20] sm:$0xff] %vm532_vm1, %v1959_v43  ;;  %545 = vst.msk [vmem:[%s1887_s14 + $0x60] sm:$0xff] %vm532_vm1, %v1965_v44  ;;  %v1998_v46 = vadd.f32 %v1684_v45, %v1881_v20  ;;  %v2011_v50 = vadd.f32 %v1696_v49, %v1881_v20 }
  0xe4   : > { %v483_v47 = vpop.f32.mrf.mxu0  ;;  %v523_v51 = vpop.f32.mrf.mxu1 }
  0xe5   : > { %695 = vrot.lane.b32.xlu1 %v1890_v23, %s1766_s17  ;;  %629 = vrot.lane.b32.xlu0 %v1902_v27, %s1765_s16  ;;  %540 = vst.msk [vmem:[%s1887_s14 + $0x38] sm:$0xff] %vm532_vm1, %v1998_v46  ;;  %v2008_v48 = vadd.f32 %v1881_v20, %v483_v47  ;;  %548 = vst.msk [vmem:[%s1887_s14 + $0x78] sm:$0xff] %vm532_vm1, %v2011_v50  ;;  %v2024_v52 = vadd.f32 %v1881_v20, %v523_v51 }
  0xe7   : > { %539 = vst.msk [vmem:[%s1887_s14 + $0x30] sm:$0xff] %vm532_vm1, %v2008_v48  ;;  %547 = vst.msk [vmem:[%s1887_s14 + $0x70] sm:$0xff] %vm532_vm1, %v2024_v52 }
  0xe9   : > { %711 = vrot.lane.b32.xlu1 %v1893_v24, %s1766_s17  ;;  %645 = vrot.lane.b32.xlu0 %v1905_v28, %s1765_s16 }
  0xed   : > { %760 = vrot.lane.b32.xlu1 %v1890_v23, %s1767_s18  ;;  %693 = vrot.lane.b32.xlu0 %v1902_v27, %s1766_s17 }
  0xf1   : > { %776 = vrot.lane.b32.xlu1 %v1893_v24, %s1767_s18  ;;  %709 = vrot.lane.b32.xlu0 %v1905_v28, %s1766_s17 }
  0xf5   : > { %825 = vrot.lane.b32.xlu1 %v1890_v23, %s1768_s22  ;;  %758 = vrot.lane.b32.xlu0 %v1902_v27, %s1767_s18 }
  0xf9   : > { %841 = vrot.lane.b32.xlu1 %v1893_v24, %s1768_s22  ;;  %774 = vrot.lane.b32.xlu0 %v1905_v28, %s1767_s18 }
  0xfd   : > { %890 = vrot.lane.b32.xlu1 %v1890_v23, %s1769_s23  ;;  %823 = vrot.lane.b32.xlu0 %v1902_v27, %s1768_s22 }
 0x101   : > { %906 = vrot.lane.b32.xlu1 %v1893_v24, %s1769_s23  ;;  %839 = vrot.lane.b32.xlu0 %v1905_v28, %s1768_s22 }
 0x105   : > { %955 = vrot.lane.b32.xlu1 %v1890_v23, %s1770_s24  ;;  %888 = vrot.lane.b32.xlu0 %v1902_v27, %s1769_s23 }
 0x109   : > { %971 = vrot.lane.b32.xlu1 %v1893_v24, %s1770_s24  ;;  %904 = vrot.lane.b32.xlu0 %v1905_v28, %s1769_s23 }
 0x10d   : > { %571 = vrot.lane.b32.xlu1 %v1918_v31, %s1764_s15  ;;  %953 = vrot.lane.b32.xlu0 %v1902_v27, %s1770_s24 }
 0x111   : > { %587 = vrot.lane.b32.xlu1 %v1921_v32, %s1764_s15  ;;  %969 = vrot.lane.b32.xlu0 %v1905_v28, %s1770_s24 }
 0x115   : > { %635 = vrot.lane.b32.xlu1 %v1918_v31, %s1765_s16  ;;  %585 = vrot.lane.b32.xlu0 %v1937_v36, %s1764_s15 }
 0x119   : > { %651 = vrot.lane.b32.xlu1 %v1921_v32, %s1765_s16  ;;  %633 = vrot.lane.b32.xlu0 %v1931_v35, %s1765_s16 }
 0x11d   : > { %699 = vrot.lane.b32.xlu1 %v1918_v31, %s1766_s17  ;;  %649 = vrot.lane.b32.xlu0 %v1937_v36, %s1765_s16 }
 0x121   : > { %715 = vrot.lane.b32.xlu1 %v1921_v32, %s1766_s17  ;;  %697 = vrot.lane.b32.xlu0 %v1931_v35, %s1766_s17 }
 0x125   : > { %764 = vrot.lane.b32.xlu1 %v1918_v31, %s1767_s18  ;;  %713 = vrot.lane.b32.xlu0 %v1937_v36, %s1766_s17 }
 0x129   : > { %780 = vrot.lane.b32.xlu1 %v1921_v32, %s1767_s18  ;;  %762 = vrot.lane.b32.xlu0 %v1931_v35, %s1767_s18 }
 0x12d   : > { %829 = vrot.lane.b32.xlu1 %v1918_v31, %s1768_s22  ;;  %778 = vrot.lane.b32.xlu0 %v1937_v36, %s1767_s18 }
 0x131   : > { %845 = vrot.lane.b32.xlu1 %v1921_v32, %s1768_s22  ;;  %827 = vrot.lane.b32.xlu0 %v1931_v35, %s1768_s22 }
 0x135   : > { %894 = vrot.lane.b32.xlu1 %v1918_v31, %s1769_s23  ;;  %843 = vrot.lane.b32.xlu0 %v1937_v36, %s1768_s22 }
 0x139   : > { %910 = vrot.lane.b32.xlu1 %v1921_v32, %s1769_s23  ;;  %892 = vrot.lane.b32.xlu0 %v1931_v35, %s1769_s23 }
 0x13d   : > { %959 = vrot.lane.b32.xlu1 %v1918_v31, %s1770_s24  ;;  %908 = vrot.lane.b32.xlu0 %v1937_v36, %s1769_s23 }
 0x141   : > { %975 = vrot.lane.b32.xlu1 %v1921_v32, %s1770_s24  ;;  %957 = vrot.lane.b32.xlu0 %v1931_v35, %s1770_s24 }
 0x145   : > { %569 = vrot.lane.b32.xlu1 %v1931_v35, %s1764_s15  ;;  %973 = vrot.lane.b32.xlu0 %v1937_v36, %s1770_s24 }
 0x149   : > { %575 = vrot.lane.b32.xlu1 %v1946_v39, %s1764_s15  ;;  %573 = vrot.lane.b32.xlu0 %v1959_v43, %s1764_s15 }
 0x14b   : > { %v584_v53 = vpop.permute.xlu1 %583  ;;  %v568_v54 = vpop.permute.xlu0 %567 }
 0x14c   : > { %622 = vst.msk [vmem:[%s2105_s27 + $0x48] sm:$0xff] %vm532_vm1, %v584_v53  ;;  %614 = vst.msk [vmem:[%s2105_s27 + $0x8] sm:$0xff] %vm532_vm1, %v568_v54 }
 0x14d   : > { %591 = vrot.lane.b32.xlu1 %v1949_v40, %s1764_s15  ;;  %589 = vrot.lane.b32.xlu0 %v1965_v44, %s1764_s15 }
 0x14f   : > { %v632_v55 = vpop.permute.xlu1 %631  ;;  %v566_v56 = vpop.permute.xlu0 %565 }
 0x150   : > { %678 = vst.msk [vmem:[%s2119_s30 + $0x8] sm:$0xff] %vm532_vm1, %v632_v55  ;;  %613 = vst.msk [vmem:[%s2105_s27] sm:$0xff] %vm532_vm1, %v566_v56 }
 0x151   : > { %639 = vrot.lane.b32.xlu1 %v1946_v39, %s1765_s16  ;;  %637 = vrot.lane.b32.xlu0 %v1959_v43, %s1765_s16 }
 0x153   : > { %v648_v57 = vpop.permute.xlu1 %647  ;;  %v582_v58 = vpop.permute.xlu0 %581 }
 0x154   : > { %686 = vst.msk [vmem:[%s2119_s30 + $0x48] sm:$0xff] %vm532_vm1, %v648_v57  ;;  %621 = vst.msk [vmem:[%s2105_s27 + $0x40] sm:$0xff] %vm532_vm1, %v582_v58 }
 0x155   : > { %655 = vrot.lane.b32.xlu1 %v1949_v40, %s1765_s16  ;;  %653 = vrot.lane.b32.xlu0 %v1965_v44, %s1765_s16 }
 0x157   : > { %v696_v59 = vpop.permute.xlu1 %695  ;;  %v630_v60 = vpop.permute.xlu0 %629 }
 0x158   : > { %1496 = vst.msk [vmem:[%s1887_s14 + $0x88] sm:$0xff] %vm532_vm1, %v696_v59  ;;  %677 = vst.msk [vmem:[%s2119_s30] sm:$0xff] %vm532_vm1, %v630_v60 }
 0x159   : > { %703 = vrot.lane.b32.xlu1 %v1946_v39, %s1766_s17  ;;  %701 = vrot.lane.b32.xlu0 %v1959_v43, %s1766_s17 }
 0x15b   : > { %v712_v61 = vpop.permute.xlu1 %711  ;;  %v646_v62 = vpop.permute.xlu0 %645 }
 0x15c   : > { %1504 = vst.msk [vmem:[%s1887_s14 + $0xc8] sm:$0xff] %vm532_vm1, %v712_v61  ;;  %685 = vst.msk [vmem:[%s2119_s30 + $0x40] sm:$0xff] %vm532_vm1, %v646_v62 }
 0x15d   : > { %719 = vrot.lane.b32.xlu1 %v1949_v40, %s1766_s17  ;;  %717 = vrot.lane.b32.xlu0 %v1965_v44, %s1766_s17 }
 0x15f   : > { %v761_v63 = vpop.permute.xlu1 %760  ;;  %v694_v0 = vpop.permute.xlu0 %693 }
 0x160   : > { %1512 = vst.msk [vmem:[%s2105_s27 + $0x88] sm:$0xff] %vm532_vm1, %v761_v63  ;;  %1495 = vst.msk [vmem:[%s1887_s14 + $0x80] sm:$0xff] %vm532_vm1, %v694_v0 }
 0x161   : > { %768 = vrot.lane.b32.xlu1 %v1946_v39, %s1767_s18  ;;  %766 = vrot.lane.b32.xlu0 %v1959_v43, %s1767_s18 }
 0x163   : > { %v777_v1 = vpop.permute.xlu1 %776  ;;  %v710_v2 = vpop.permute.xlu0 %709 }
 0x164   : > { %1520 = vst.msk [vmem:[%s2105_s27 + $0xc8] sm:$0xff] %vm532_vm1, %v777_v1  ;;  %1503 = vst.msk [vmem:[%s1887_s14 + $0xc0] sm:$0xff] %vm532_vm1, %v710_v2 }
 0x165   : > { %784 = vrot.lane.b32.xlu1 %v1949_v40, %s1767_s18  ;;  %782 = vrot.lane.b32.xlu0 %v1965_v44, %s1767_s18 }
 0x167   : > { %v826_v3 = vpop.permute.xlu1 %825  ;;  %v759_v4 = vpop.permute.xlu0 %758 }
 0x168   : > { %1528 = vst.msk [vmem:[%s2119_s30 + $0x88] sm:$0xff] %vm532_vm1, %v826_v3  ;;  %1511 = vst.msk [vmem:[%s2105_s27 + $0x80] sm:$0xff] %vm532_vm1, %v759_v4 }
 0x169   : > { %833 = vrot.lane.b32.xlu1 %v1946_v39, %s1768_s22  ;;  %831 = vrot.lane.b32.xlu0 %v1959_v43, %s1768_s22 }
 0x16b   : > { %v842_v5 = vpop.permute.xlu1 %841  ;;  %v775_v6 = vpop.permute.xlu0 %774 }
 0x16c   : > { %1536 = vst.msk [vmem:[%s2119_s30 + $0xc8] sm:$0xff] %vm532_vm1, %v842_v5  ;;  %1519 = vst.msk [vmem:[%s2105_s27 + $0xc0] sm:$0xff] %vm532_vm1, %v775_v6 }
 0x16d   : > { %849 = vrot.lane.b32.xlu1 %v1949_v40, %s1768_s22  ;;  %847 = vrot.lane.b32.xlu0 %v1965_v44, %s1768_s22 }
 0x16f   : > { %v891_v7 = vpop.permute.xlu1 %890  ;;  %v824_v8 = vpop.permute.xlu0 %823 }
 0x170   : > { %1544 = vst.msk [vmem:[%s1887_s14 + $0x108] sm:$0xff] %vm532_vm1, %v891_v7  ;;  %1527 = vst.msk [vmem:[%s2119_s30 + $0x80] sm:$0xff] %vm532_vm1, %v824_v8 }
 0x171   : > { %898 = vrot.lane.b32.xlu1 %v1946_v39, %s1769_s23  ;;  %896 = vrot.lane.b32.xlu0 %v1959_v43, %s1769_s23 }
 0x173   : > { %v907_v9 = vpop.permute.xlu1 %906  ;;  %v840_v10 = vpop.permute.xlu0 %839 }
 0x174   : > { %1552 = vst.msk [vmem:[%s1887_s14 + $0x148] sm:$0xff] %vm532_vm1, %v907_v9  ;;  %1535 = vst.msk [vmem:[%s2119_s30 + $0xc0] sm:$0xff] %vm532_vm1, %v840_v10 }
 0x175   : > { %914 = vrot.lane.b32.xlu1 %v1949_v40, %s1769_s23  ;;  %912 = vrot.lane.b32.xlu0 %v1965_v44, %s1769_s23 }
 0x177   : > { %v956_v11 = vpop.permute.xlu1 %955  ;;  %v889_v12 = vpop.permute.xlu0 %888 }
 0x178   : > { %1560 = vst.msk [vmem:[%s2105_s27 + $0x108] sm:$0xff] %vm532_vm1, %v956_v11  ;;  %1543 = vst.msk [vmem:[%s1887_s14 + $0x100] sm:$0xff] %vm532_vm1, %v889_v12 }
 0x179   : > { %963 = vrot.lane.b32.xlu1 %v1946_v39, %s1770_s24  ;;  %961 = vrot.lane.b32.xlu0 %v1959_v43, %s1770_s24 }
 0x17b   : > { %v972_v13 = vpop.permute.xlu1 %971  ;;  %v905_v14 = vpop.permute.xlu0 %904 }
 0x17c   : > { %1568 = vst.msk [vmem:[%s2105_s27 + $0x148] sm:$0xff] %vm532_vm1, %v972_v13  ;;  %1551 = vst.msk [vmem:[%s1887_s14 + $0x140] sm:$0xff] %vm532_vm1, %v905_v14 }
 0x17d   : > { %979 = vrot.lane.b32.xlu1 %v1949_v40, %s1770_s24  ;;  %977 = vrot.lane.b32.xlu0 %v1965_v44, %s1770_s24 }
 0x17f   : > { %v572_v15 = vpop.permute.xlu1 %571  ;;  %v954_v16 = vpop.permute.xlu0 %953 }
 0x180   : > { %616 = vst.msk [vmem:[%s2105_s27 + $0x18] sm:$0xff] %vm532_vm1, %v572_v15  ;;  %1559 = vst.msk [vmem:[%s2105_s27 + $0x100] sm:$0xff] %vm532_vm1, %v954_v16 }
 0x181   : > { %579 = vrot.lane.b32.xlu1 %v1998_v46, %s1764_s15  ;;  %577 = vrot.lane.b32.xlu0 %v2008_v48, %s1764_s15 }
 0x183   : > { %v588_v17 = vpop.permute.xlu1 %587  ;;  %v970_v18 = vpop.permute.xlu0 %969 }
 0x184   : > { %624 = vst.msk [vmem:[%s2105_s27 + $0x58] sm:$0xff] %vm532_vm1, %v588_v17  ;;  %1567 = vst.msk [vmem:[%s2105_s27 + $0x140] sm:$0xff] %vm532_vm1, %v970_v18 }
 0x185   : > { %595 = vrot.lane.b32.xlu1 %v2011_v50, %s1764_s15  ;;  %593 = vrot.lane.b32.xlu0 %v2024_v52, %s1764_s15 }
 0x187   : > { %v636_v19 = vpop.permute.xlu1 %635  ;;  %v586_v20 = vpop.permute.xlu0 %585 }
 0x188   : > { %680 = vst.msk [vmem:[%s2119_s30 + $0x18] sm:$0xff] %vm532_vm1, %v636_v19  ;;  %623 = vst.msk [vmem:[%s2105_s27 + $0x50] sm:$0xff] %vm532_vm1, %v586_v20 }
 0x189   : > { %643 = vrot.lane.b32.xlu1 %v1998_v46, %s1765_s16  ;;  %641 = vrot.lane.b32.xlu0 %v2008_v48, %s1765_s16 }
 0x18b   : > { %v652_v21 = vpop.permute.xlu1 %651  ;;  %v634_v22 = vpop.permute.xlu0 %633 }
 0x18c   : > { %688 = vst.msk [vmem:[%s2119_s30 + $0x58] sm:$0xff] %vm532_vm1, %v652_v21  ;;  %679 = vst.msk [vmem:[%s2119_s30 + $0x10] sm:$0xff] %vm532_vm1, %v634_v22 }
 0x18d   : > { %659 = vrot.lane.b32.xlu1 %v2011_v50, %s1765_s16  ;;  %657 = vrot.lane.b32.xlu0 %v2024_v52, %s1765_s16 }
 0x18f   : > { %v700_v25 = vpop.permute.xlu1 %699  ;;  %v650_v26 = vpop.permute.xlu0 %649 }
 0x190   : > { %1498 = vst.msk [vmem:[%s1887_s14 + $0x98] sm:$0xff] %vm532_vm1, %v700_v25  ;;  %687 = vst.msk [vmem:[%s2119_s30 + $0x50] sm:$0xff] %vm532_vm1, %v650_v26 }
 0x191   : > { %707 = vrot.lane.b32.xlu1 %v1998_v46, %s1766_s17  ;;  %705 = vrot.lane.b32.xlu0 %v2008_v48, %s1766_s17 }
 0x193   : > { %v716_v29 = vpop.permute.xlu1 %715  ;;  %v698_v30 = vpop.permute.xlu0 %697 }
 0x194   : > { %1506 = vst.msk [vmem:[%s1887_s14 + $0xd8] sm:$0xff] %vm532_vm1, %v716_v29  ;;  %1497 = vst.msk [vmem:[%s1887_s14 + $0x90] sm:$0xff] %vm532_vm1, %v698_v30 }
 0x195   : > { %723 = vrot.lane.b32.xlu1 %v2011_v50, %s1766_s17  ;;  %721 = vrot.lane.b32.xlu0 %v2024_v52, %s1766_s17 }
 0x197   : > { %v765_v33 = vpop.permute.xlu1 %764  ;;  %v714_v34 = vpop.permute.xlu0 %713 }
 0x198   : > { %1514 = vst.msk [vmem:[%s2105_s27 + $0x98] sm:$0xff] %vm532_vm1, %v765_v33  ;;  %1505 = vst.msk [vmem:[%s1887_s14 + $0xd0] sm:$0xff] %vm532_vm1, %v714_v34 }
 0x199   : > { %772 = vrot.lane.b32.xlu1 %v1998_v46, %s1767_s18  ;;  %770 = vrot.lane.b32.xlu0 %v2008_v48, %s1767_s18 }
 0x19b   : > { %v781_v37 = vpop.permute.xlu1 %780  ;;  %v763_v38 = vpop.permute.xlu0 %762 }
 0x19c   : > { %1522 = vst.msk [vmem:[%s2105_s27 + $0xd8] sm:$0xff] %vm532_vm1, %v781_v37  ;;  %1513 = vst.msk [vmem:[%s2105_s27 + $0x90] sm:$0xff] %vm532_vm1, %v763_v38 }
 0x19d   : > { %788 = vrot.lane.b32.xlu1 %v2011_v50, %s1767_s18  ;;  %786 = vrot.lane.b32.xlu0 %v2024_v52, %s1767_s18 }
 0x19f   : > { %v830_v41 = vpop.permute.xlu1 %829  ;;  %v779_v42 = vpop.permute.xlu0 %778 }
 0x1a0   : > { %1530 = vst.msk [vmem:[%s2119_s30 + $0x98] sm:$0xff] %vm532_vm1, %v830_v41  ;;  %1521 = vst.msk [vmem:[%s2105_s27 + $0xd0] sm:$0xff] %vm532_vm1, %v779_v42 }
 0x1a1   : > { %837 = vrot.lane.b32.xlu1 %v1998_v46, %s1768_s22  ;;  %835 = vrot.lane.b32.xlu0 %v2008_v48, %s1768_s22 }
 0x1a3   : > { %v846_v45 = vpop.permute.xlu1 %845  ;;  %v828_v47 = vpop.permute.xlu0 %827 }
 0x1a4   : > { %1538 = vst.msk [vmem:[%s2119_s30 + $0xd8] sm:$0xff] %vm532_vm1, %v846_v45  ;;  %1529 = vst.msk [vmem:[%s2119_s30 + $0x90] sm:$0xff] %vm532_vm1, %v828_v47 }
 0x1a5   : > { %853 = vrot.lane.b32.xlu1 %v2011_v50, %s1768_s22  ;;  %851 = vrot.lane.b32.xlu0 %v2024_v52, %s1768_s22 }
 0x1a7   : > { %v895_v49 = vpop.permute.xlu1 %894  ;;  %v844_v51 = vpop.permute.xlu0 %843 }
 0x1a8   : > { %1546 = vst.msk [vmem:[%s1887_s14 + $0x118] sm:$0xff] %vm532_vm1, %v895_v49  ;;  %1537 = vst.msk [vmem:[%s2119_s30 + $0xd0] sm:$0xff] %vm532_vm1, %v844_v51 }
 0x1a9   : > { %902 = vrot.lane.b32.xlu1 %v1998_v46, %s1769_s23  ;;  %900 = vrot.lane.b32.xlu0 %v2008_v48, %s1769_s23 }
 0x1ab   : > { %v911_v53 = vpop.permute.xlu1 %910  ;;  %v893_v54 = vpop.permute.xlu0 %892 }
 0x1ac   : > { %1554 = vst.msk [vmem:[%s1887_s14 + $0x158] sm:$0xff] %vm532_vm1, %v911_v53  ;;  %1545 = vst.msk [vmem:[%s1887_s14 + $0x110] sm:$0xff] %vm532_vm1, %v893_v54 }
 0x1ad   : > { %918 = vrot.lane.b32.xlu1 %v2011_v50, %s1769_s23  ;;  %916 = vrot.lane.b32.xlu0 %v2024_v52, %s1769_s23 }
 0x1af   : > { %v960_v55 = vpop.permute.xlu1 %959  ;;  %v909_v56 = vpop.permute.xlu0 %908 }
 0x1b0   : > { %1562 = vst.msk [vmem:[%s2105_s27 + $0x118] sm:$0xff] %vm532_vm1, %v960_v55  ;;  %1553 = vst.msk [vmem:[%s1887_s14 + $0x150] sm:$0xff] %vm532_vm1, %v909_v56 }
 0x1b1   : > { %967 = vrot.lane.b32.xlu1 %v1998_v46, %s1770_s24  ;;  %965 = vrot.lane.b32.xlu0 %v2008_v48, %s1770_s24 }
 0x1b3   : > { %v976_v57 = vpop.permute.xlu1 %975  ;;  %v958_v58 = vpop.permute.xlu0 %957 }
 0x1b4   : > { %1570 = vst.msk [vmem:[%s2105_s27 + $0x158] sm:$0xff] %vm532_vm1, %v976_v57  ;;  %1561 = vst.msk [vmem:[%s2105_s27 + $0x110] sm:$0xff] %vm532_vm1, %v958_v58 }
 0x1b5   : > { %983 = vrot.lane.b32.xlu1 %v2011_v50, %s1770_s24  ;;  %981 = vrot.lane.b32.xlu0 %v2024_v52, %s1770_s24 }
 0x1b7   : > { %v570_v59 = vpop.permute.xlu1 %569  ;;  %v974_v60 = vpop.permute.xlu0 %973 }
 0x1b8   : > { %615 = vst.msk [vmem:[%s2105_s27 + $0x10] sm:$0xff] %vm532_vm1, %v570_v59  ;;  %1569 = vst.msk [vmem:[%s2105_s27 + $0x150] sm:$0xff] %vm532_vm1, %v974_v60 }
 0x1b9   : > { %1020 = vrot.lane.b32.xlu1 %v1890_v23, %s1771_s6  ;;  %1018 = vrot.lane.b32.xlu0 %v1902_v27, %s1771_s6 }
 0x1bb   : > { %v576_v61 = vpop.permute.xlu1 %575  ;;  %v574_v62 = vpop.permute.xlu0 %573 }
 0x1bc   : > { %618 = vst.msk [vmem:[%s2105_s27 + $0x28] sm:$0xff] %vm532_vm1, %v576_v61  ;;  %617 = vst.msk [vmem:[%s2105_s27 + $0x20] sm:$0xff] %vm532_vm1, %v574_v62 }
 0x1bd   : > { %1024 = vrot.lane.b32.xlu1 %v1918_v31, %s1771_s6  ;;  %1022 = vrot.lane.b32.xlu0 %v1931_v35, %s1771_s6 }
 0x1bf   : > { %v592_v63 = vpop.permute.xlu1 %591  ;;  %v590_v0 = vpop.permute.xlu0 %589 }
 0x1c0   : > { %626 = vst.msk [vmem:[%s2105_s27 + $0x68] sm:$0xff] %vm532_vm1, %v592_v63  ;;  %625 = vst.msk [vmem:[%s2105_s27 + $0x60] sm:$0xff] %vm532_vm1, %v590_v0 }
 0x1c1   : > { %1028 = vrot.lane.b32.xlu1 %v1946_v39, %s1771_s6  ;;  %1026 = vrot.lane.b32.xlu0 %v1959_v43, %s1771_s6 }
 0x1c3   : > { %v640_v1 = vpop.permute.xlu1 %639  ;;  %v638_v2 = vpop.permute.xlu0 %637 }
 0x1c4   : > { %682 = vst.msk [vmem:[%s2119_s30 + $0x28] sm:$0xff] %vm532_vm1, %v640_v1  ;;  %681 = vst.msk [vmem:[%s2119_s30 + $0x20] sm:$0xff] %vm532_vm1, %v638_v2 }
 0x1c5   : > { %1032 = vrot.lane.b32.xlu1 %v1998_v46, %s1771_s6  ;;  %1030 = vrot.lane.b32.xlu0 %v2008_v48, %s1771_s6 }
 0x1c7   : > { %v656_v3 = vpop.permute.xlu1 %655  ;;  %v654_v4 = vpop.permute.xlu0 %653 }
 0x1c8   : > { %690 = vst.msk [vmem:[%s2119_s30 + $0x68] sm:$0xff] %vm532_vm1, %v656_v3  ;;  %689 = vst.msk [vmem:[%s2119_s30 + $0x60] sm:$0xff] %vm532_vm1, %v654_v4 }
 0x1c9   : > { %1036 = vrot.lane.b32.xlu1 %v1893_v24, %s1771_s6  ;;  %1034 = vrot.lane.b32.xlu0 %v1905_v28, %s1771_s6 }
 0x1cb   : > { %v704_v5 = vpop.permute.xlu1 %703  ;;  %v702_v6 = vpop.permute.xlu0 %701 }
 0x1cc   : > { %1500 = vst.msk [vmem:[%s1887_s14 + $0xa8] sm:$0xff] %vm532_vm1, %v704_v5  ;;  %1499 = vst.msk [vmem:[%s1887_s14 + $0xa0] sm:$0xff] %vm532_vm1, %v702_v6 }
 0x1cd   : > { %1040 = vrot.lane.b32.xlu1 %v1921_v32, %s1771_s6  ;;  %1038 = vrot.lane.b32.xlu0 %v1937_v36, %s1771_s6 }
 0x1cf   : > { %v720_v7 = vpop.permute.xlu1 %719  ;;  %v718_v8 = vpop.permute.xlu0 %717 }
 0x1d0   : > { %1508 = vst.msk [vmem:[%s1887_s14 + $0xe8] sm:$0xff] %vm532_vm1, %v720_v7  ;;  %1507 = vst.msk [vmem:[%s1887_s14 + $0xe0] sm:$0xff] %vm532_vm1, %v718_v8 }
 0x1d1   : > { %1044 = vrot.lane.b32.xlu1 %v1949_v40, %s1771_s6  ;;  %1042 = vrot.lane.b32.xlu0 %v1965_v44, %s1771_s6 }
 0x1d3   : > { %v769_v9 = vpop.permute.xlu1 %768  ;;  %v767_v10 = vpop.permute.xlu0 %766 }
 0x1d4   : > { %1516 = vst.msk [vmem:[%s2105_s27 + $0xa8] sm:$0xff] %vm532_vm1, %v769_v9  ;;  %1515 = vst.msk [vmem:[%s2105_s27 + $0xa0] sm:$0xff] %vm532_vm1, %v767_v10 }
 0x1d5   : > { %1048 = vrot.lane.b32.xlu1 %v2011_v50, %s1771_s6  ;;  %1046 = vrot.lane.b32.xlu0 %v2024_v52, %s1771_s6 }
 0x1d7   : > { %v785_v11 = vpop.permute.xlu1 %784  ;;  %v783_v12 = vpop.permute.xlu0 %782 }
 0x1d8   : > { %1524 = vst.msk [vmem:[%s2105_s27 + $0xe8] sm:$0xff] %vm532_vm1, %v785_v11  ;;  %1523 = vst.msk [vmem:[%s2105_s27 + $0xe0] sm:$0xff] %vm532_vm1, %v783_v12 }
 0x1d9   : > { %1085 = vrot.lane.b32.xlu1 %v1890_v23, %s1772_s7  ;;  %1083 = vrot.lane.b32.xlu0 %v1902_v27, %s1772_s7 }
 0x1db   : > { %v834_v13 = vpop.permute.xlu1 %833  ;;  %v832_v14 = vpop.permute.xlu0 %831 }
 0x1dc   : > { %1532 = vst.msk [vmem:[%s2119_s30 + $0xa8] sm:$0xff] %vm532_vm1, %v834_v13  ;;  %1531 = vst.msk [vmem:[%s2119_s30 + $0xa0] sm:$0xff] %vm532_vm1, %v832_v14 }
 0x1dd   : > { %1089 = vrot.lane.b32.xlu1 %v1918_v31, %s1772_s7  ;;  %1087 = vrot.lane.b32.xlu0 %v1931_v35, %s1772_s7 }
 0x1df   : > { %v850_v15 = vpop.permute.xlu1 %849  ;;  %v848_v16 = vpop.permute.xlu0 %847 }
 0x1e0   : > { %1540 = vst.msk [vmem:[%s2119_s30 + $0xe8] sm:$0xff] %vm532_vm1, %v850_v15  ;;  %1539 = vst.msk [vmem:[%s2119_s30 + $0xe0] sm:$0xff] %vm532_vm1, %v848_v16 }
 0x1e1   : > { %1093 = vrot.lane.b32.xlu1 %v1946_v39, %s1772_s7  ;;  %1091 = vrot.lane.b32.xlu0 %v1959_v43, %s1772_s7 }
 0x1e3   : > { %v899_v17 = vpop.permute.xlu1 %898  ;;  %v897_v18 = vpop.permute.xlu0 %896 }
 0x1e4   : > { %1548 = vst.msk [vmem:[%s1887_s14 + $0x128] sm:$0xff] %vm532_vm1, %v899_v17  ;;  %1547 = vst.msk [vmem:[%s1887_s14 + $0x120] sm:$0xff] %vm532_vm1, %v897_v18 }
 0x1e5   : > { %1097 = vrot.lane.b32.xlu1 %v1998_v46, %s1772_s7  ;;  %1095 = vrot.lane.b32.xlu0 %v2008_v48, %s1772_s7 }
 0x1e7   : > { %v915_v19 = vpop.permute.xlu1 %914  ;;  %v913_v20 = vpop.permute.xlu0 %912 }
 0x1e8   : > { %1556 = vst.msk [vmem:[%s1887_s14 + $0x168] sm:$0xff] %vm532_vm1, %v915_v19  ;;  %1555 = vst.msk [vmem:[%s1887_s14 + $0x160] sm:$0xff] %vm532_vm1, %v913_v20 }
 0x1e9   : > { %1101 = vrot.lane.b32.xlu1 %v1893_v24, %s1772_s7  ;;  %1099 = vrot.lane.b32.xlu0 %v1905_v28, %s1772_s7 }
 0x1eb   : > { %v964_v21 = vpop.permute.xlu1 %963  ;;  %v962_v22 = vpop.permute.xlu0 %961 }
 0x1ec   : > { %1564 = vst.msk [vmem:[%s2105_s27 + $0x128] sm:$0xff] %vm532_vm1, %v964_v21  ;;  %1563 = vst.msk [vmem:[%s2105_s27 + $0x120] sm:$0xff] %vm532_vm1, %v962_v22 }
 0x1ed   : > { %1105 = vrot.lane.b32.xlu1 %v1921_v32, %s1772_s7  ;;  %1103 = vrot.lane.b32.xlu0 %v1937_v36, %s1772_s7 }
 0x1ef   : > { %v980_v25 = vpop.permute.xlu1 %979  ;;  %v978_v26 = vpop.permute.xlu0 %977 }
 0x1f0   : > { %1572 = vst.msk [vmem:[%s2105_s27 + $0x168] sm:$0xff] %vm532_vm1, %v980_v25  ;;  %1571 = vst.msk [vmem:[%s2105_s27 + $0x160] sm:$0xff] %vm532_vm1, %v978_v26 }
 0x1f1   : > { %1109 = vrot.lane.b32.xlu1 %v1949_v40, %s1772_s7  ;;  %1107 = vrot.lane.b32.xlu0 %v1965_v44, %s1772_s7 }
 0x1f3   : > { %v580_v29 = vpop.permute.xlu1 %579  ;;  %v578_v30 = vpop.permute.xlu0 %577 }
 0x1f4   : > { %620 = vst.msk [vmem:[%s2105_s27 + $0x38] sm:$0xff] %vm532_vm1, %v580_v29  ;;  %619 = vst.msk [vmem:[%s2105_s27 + $0x30] sm:$0xff] %vm532_vm1, %v578_v30 }
 0x1f5   : > { %1113 = vrot.lane.b32.xlu1 %v2011_v50, %s1772_s7  ;;  %1111 = vrot.lane.b32.xlu0 %v2024_v52, %s1772_s7 }
 0x1f7   : > { %v596_v33 = vpop.permute.xlu1 %595  ;;  %v594_v34 = vpop.permute.xlu0 %593 }
 0x1f8   : > { %628 = vst.msk [vmem:[%s2105_s27 + $0x78] sm:$0xff] %vm532_vm1, %v596_v33  ;;  %627 = vst.msk [vmem:[%s2105_s27 + $0x70] sm:$0xff] %vm532_vm1, %v594_v34 }
 0x1f9   : > { %1150 = vrot.lane.b32.xlu1 %v1890_v23, %s1773_s8  ;;  %1148 = vrot.lane.b32.xlu0 %v1902_v27, %s1773_s8 }
 0x1fb   : > { %v644_v37 = vpop.permute.xlu1 %643  ;;  %v642_v38 = vpop.permute.xlu0 %641 }
 0x1fc   : > { %684 = vst.msk [vmem:[%s2119_s30 + $0x38] sm:$0xff] %vm532_vm1, %v644_v37  ;;  %683 = vst.msk [vmem:[%s2119_s30 + $0x30] sm:$0xff] %vm532_vm1, %v642_v38 }
 0x1fd   : > { %1154 = vrot.lane.b32.xlu1 %v1918_v31, %s1773_s8  ;;  %1152 = vrot.lane.b32.xlu0 %v1931_v35, %s1773_s8 }
 0x1ff   : > { %v660_v41 = vpop.permute.xlu1 %659  ;;  %v658_v42 = vpop.permute.xlu0 %657 }
 0x200   : > { %692 = vst.msk [vmem:[%s2119_s30 + $0x78] sm:$0xff] %vm532_vm1, %v660_v41  ;;  %691 = vst.msk [vmem:[%s2119_s30 + $0x70] sm:$0xff] %vm532_vm1, %v658_v42 }
 0x201   : > { %1158 = vrot.lane.b32.xlu1 %v1946_v39, %s1773_s8  ;;  %1156 = vrot.lane.b32.xlu0 %v1959_v43, %s1773_s8 }
 0x203   : > { %v708_v45 = vpop.permute.xlu1 %707  ;;  %v706_v47 = vpop.permute.xlu0 %705 }
 0x204   : > { %1502 = vst.msk [vmem:[%s1887_s14 + $0xb8] sm:$0xff] %vm532_vm1, %v708_v45  ;;  %1501 = vst.msk [vmem:[%s1887_s14 + $0xb0] sm:$0xff] %vm532_vm1, %v706_v47 }
 0x205   : > { %1162 = vrot.lane.b32.xlu1 %v1998_v46, %s1773_s8  ;;  %1160 = vrot.lane.b32.xlu0 %v2008_v48, %s1773_s8 }
 0x207   : > { %v724_v49 = vpop.permute.xlu1 %723  ;;  %v722_v51 = vpop.permute.xlu0 %721 }
 0x208   : > { %1510 = vst.msk [vmem:[%s1887_s14 + $0xf8] sm:$0xff] %vm532_vm1, %v724_v49  ;;  %1509 = vst.msk [vmem:[%s1887_s14 + $0xf0] sm:$0xff] %vm532_vm1, %v722_v51 }
 0x209   : > { %1166 = vrot.lane.b32.xlu1 %v1893_v24, %s1773_s8  ;;  %1164 = vrot.lane.b32.xlu0 %v1905_v28, %s1773_s8 }
 0x20b   : > { %v773_v53 = vpop.permute.xlu1 %772  ;;  %v771_v54 = vpop.permute.xlu0 %770 }
 0x20c   : > { %1518 = vst.msk [vmem:[%s2105_s27 + $0xb8] sm:$0xff] %vm532_vm1, %v773_v53  ;;  %1517 = vst.msk [vmem:[%s2105_s27 + $0xb0] sm:$0xff] %vm532_vm1, %v771_v54 }
 0x20d   : > { %1170 = vrot.lane.b32.xlu1 %v1921_v32, %s1773_s8  ;;  %1168 = vrot.lane.b32.xlu0 %v1937_v36, %s1773_s8 }
 0x20f   : > { %v789_v55 = vpop.permute.xlu1 %788  ;;  %v787_v56 = vpop.permute.xlu0 %786 }
 0x210   : > { %1526 = vst.msk [vmem:[%s2105_s27 + $0xf8] sm:$0xff] %vm532_vm1, %v789_v55  ;;  %1525 = vst.msk [vmem:[%s2105_s27 + $0xf0] sm:$0xff] %vm532_vm1, %v787_v56 }
 0x211   : > { %1174 = vrot.lane.b32.xlu1 %v1949_v40, %s1773_s8  ;;  %1172 = vrot.lane.b32.xlu0 %v1965_v44, %s1773_s8 }
 0x213   : > { %v838_v57 = vpop.permute.xlu1 %837  ;;  %v836_v58 = vpop.permute.xlu0 %835 }
 0x214   : > { %1534 = vst.msk [vmem:[%s2119_s30 + $0xb8] sm:$0xff] %vm532_vm1, %v838_v57  ;;  %1533 = vst.msk [vmem:[%s2119_s30 + $0xb0] sm:$0xff] %vm532_vm1, %v836_v58 }
 0x215   : > { %1178 = vrot.lane.b32.xlu1 %v2011_v50, %s1773_s8  ;;  %1176 = vrot.lane.b32.xlu0 %v2024_v52, %s1773_s8 }
 0x217   : > { %v854_v59 = vpop.permute.xlu1 %853  ;;  %v852_v60 = vpop.permute.xlu0 %851 }
 0x218   : > { %1542 = vst.msk [vmem:[%s2119_s30 + $0xf8] sm:$0xff] %vm532_vm1, %v854_v59  ;;  %1541 = vst.msk [vmem:[%s2119_s30 + $0xf0] sm:$0xff] %vm532_vm1, %v852_v60 }
 0x219   : > { %1215 = vrot.lane.b32.xlu1 %v1890_v23, %s1774_s9  ;;  %1213 = vrot.lane.b32.xlu0 %v1902_v27, %s1774_s9 }
 0x21b   : > { %v903_v61 = vpop.permute.xlu1 %902  ;;  %v901_v62 = vpop.permute.xlu0 %900 }
 0x21c   : > { %1550 = vst.msk [vmem:[%s1887_s14 + $0x138] sm:$0xff] %vm532_vm1, %v903_v61  ;;  %1549 = vst.msk [vmem:[%s1887_s14 + $0x130] sm:$0xff] %vm532_vm1, %v901_v62 }
 0x21d   : > { %1219 = vrot.lane.b32.xlu1 %v1918_v31, %s1774_s9  ;;  %1217 = vrot.lane.b32.xlu0 %v1931_v35, %s1774_s9 }
 0x21f   : > { %v919_v23 = vpop.permute.xlu1 %918  ;;  %v917_v63 = vpop.permute.xlu0 %916 }
 0x220   : > { %1558 = vst.msk [vmem:[%s1887_s14 + $0x178] sm:$0xff] %vm532_vm1, %v919_v23  ;;  %1557 = vst.msk [vmem:[%s1887_s14 + $0x170] sm:$0xff] %vm532_vm1, %v917_v63 }
 0x221   : > { %1223 = vrot.lane.b32.xlu1 %v1946_v39, %s1774_s9  ;;  %1221 = vrot.lane.b32.xlu0 %v1959_v43, %s1774_s9 }
 0x223   : > { %v968_v27 = vpop.permute.xlu1 %967  ;;  %v966_v31 = vpop.permute.xlu0 %965 }
 0x224   : > { %1566 = vst.msk [vmem:[%s2105_s27 + $0x138] sm:$0xff] %vm532_vm1, %v968_v27  ;;  %1565 = vst.msk [vmem:[%s2105_s27 + $0x130] sm:$0xff] %vm532_vm1, %v966_v31 }
 0x225   : > { %1227 = vrot.lane.b32.xlu1 %v1998_v46, %s1774_s9  ;;  %1225 = vrot.lane.b32.xlu0 %v2008_v48, %s1774_s9 }
 0x227   : > { %v984_v35 = vpop.permute.xlu1 %983  ;;  %v982_v39 = vpop.permute.xlu0 %981 }
 0x228   : > { %1574 = vst.msk [vmem:[%s2105_s27 + $0x178] sm:$0xff] %vm532_vm1, %v984_v35  ;;  %1573 = vst.msk [vmem:[%s2105_s27 + $0x170] sm:$0xff] %vm532_vm1, %v982_v39 }
 0x229   : > { %1231 = vrot.lane.b32.xlu1 %v1893_v24, %s1774_s9  ;;  %1229 = vrot.lane.b32.xlu0 %v1905_v28, %s1774_s9 }
 0x22b   : > { %v1021_v43 = vpop.permute.xlu1 %1020  ;;  %v1019_v46 = vpop.permute.xlu0 %1018 }
 0x22c   : > { %1576 = vst.msk [vmem:[%s2119_s30 + $0x108] sm:$0xff] %vm532_vm1, %v1021_v43  ;;  %1575 = vst.msk [vmem:[%s2119_s30 + $0x100] sm:$0xff] %vm532_vm1, %v1019_v46 }
 0x22d   : > { %1235 = vrot.lane.b32.xlu1 %v1921_v32, %s1774_s9  ;;  %1233 = vrot.lane.b32.xlu0 %v1937_v36, %s1774_s9 }
 0x22f   : > { %v1025_v24 = vpop.permute.xlu1 %1024  ;;  %v1023_v48 = vpop.permute.xlu0 %1022 }
 0x230   : > { %1578 = vst.msk [vmem:[%s2119_s30 + $0x118] sm:$0xff] %vm532_vm1, %v1025_v24  ;;  %1577 = vst.msk [vmem:[%s2119_s30 + $0x110] sm:$0xff] %vm532_vm1, %v1023_v48 }
 0x231   : > { %1239 = vrot.lane.b32.xlu1 %v1949_v40, %s1774_s9  ;;  %1237 = vrot.lane.b32.xlu0 %v1965_v44, %s1774_s9 }
 0x233   : > { %v1029_v28 = vpop.permute.xlu1 %1028  ;;  %v1027_v32 = vpop.permute.xlu0 %1026 }
 0x234   : > { %1580 = vst.msk [vmem:[%s2119_s30 + $0x128] sm:$0xff] %vm532_vm1, %v1029_v28  ;;  %1579 = vst.msk [vmem:[%s2119_s30 + $0x120] sm:$0xff] %vm532_vm1, %v1027_v32 }
 0x235   : > { %1243 = vrot.lane.b32.xlu1 %v2011_v50, %s1774_s9  ;;  %1241 = vrot.lane.b32.xlu0 %v2024_v52, %s1774_s9 }
 0x237   : > { %v1033_v36 = vpop.permute.xlu1 %1032  ;;  %v1031_v40 = vpop.permute.xlu0 %1030 }
 0x238   : > { %1582 = vst.msk [vmem:[%s2119_s30 + $0x138] sm:$0xff] %vm532_vm1, %v1033_v36  ;;  %1581 = vst.msk [vmem:[%s2119_s30 + $0x130] sm:$0xff] %vm532_vm1, %v1031_v40 }
 0x23b   : > { %v1037_v44 = vpop.permute.xlu1 %1036  ;;  %v1035_v0 = vpop.permute.xlu0 %1034 }
 0x23c   : > { %1584 = vst.msk [vmem:[%s2119_s30 + $0x148] sm:$0xff] %vm532_vm1, %v1037_v44  ;;  %1583 = vst.msk [vmem:[%s2119_s30 + $0x140] sm:$0xff] %vm532_vm1, %v1035_v0 }
 0x23f   : > { %v1041_v50 = vpop.permute.xlu1 %1040  ;;  %v1039_v1 = vpop.permute.xlu0 %1038 }
 0x240   : > { %1586 = vst.msk [vmem:[%s2119_s30 + $0x158] sm:$0xff] %vm532_vm1, %v1041_v50  ;;  %1585 = vst.msk [vmem:[%s2119_s30 + $0x150] sm:$0xff] %vm532_vm1, %v1039_v1 }
 0x243   : > { %v1045_v52 = vpop.permute.xlu1 %1044  ;;  %v1043_v2 = vpop.permute.xlu0 %1042 }
 0x244   : > { %1588 = vst.msk [vmem:[%s2119_s30 + $0x168] sm:$0xff] %vm532_vm1, %v1045_v52  ;;  %1587 = vst.msk [vmem:[%s2119_s30 + $0x160] sm:$0xff] %vm532_vm1, %v1043_v2 }
 0x247   : > { %v1049_v3 = vpop.permute.xlu1 %1048  ;;  %v1047_v4 = vpop.permute.xlu0 %1046 }
 0x248   : > { %1590 = vst.msk [vmem:[%s2119_s30 + $0x178] sm:$0xff] %vm532_vm1, %v1049_v3  ;;  %1589 = vst.msk [vmem:[%s2119_s30 + $0x170] sm:$0xff] %vm532_vm1, %v1047_v4 }
 0x24b   : > { %v1086_v5 = vpop.permute.xlu1 %1085  ;;  %v1084_v6 = vpop.permute.xlu0 %1083 }
 0x24c   : > { %1592 = vst.msk [vmem:[%s1887_s14 + $0x188] sm:$0xff] %vm532_vm1, %v1086_v5  ;;  %1591 = vst.msk [vmem:[%s1887_s14 + $0x180] sm:$0xff] %vm532_vm1, %v1084_v6 }
 0x24f   : > { %v1090_v7 = vpop.permute.xlu1 %1089  ;;  %v1088_v8 = vpop.permute.xlu0 %1087 }
 0x250   : > { %1594 = vst.msk [vmem:[%s1887_s14 + $0x198] sm:$0xff] %vm532_vm1, %v1090_v7  ;;  %1593 = vst.msk [vmem:[%s1887_s14 + $0x190] sm:$0xff] %vm532_vm1, %v1088_v8 }
 0x253   : > { %v1094_v9 = vpop.permute.xlu1 %1093  ;;  %v1092_v10 = vpop.permute.xlu0 %1091 }
 0x254   : > { %1596 = vst.msk [vmem:[%s1887_s14 + $0x1a8] sm:$0xff] %vm532_vm1, %v1094_v9  ;;  %1595 = vst.msk [vmem:[%s1887_s14 + $0x1a0] sm:$0xff] %vm532_vm1, %v1092_v10 }
 0x257   : > { %v1098_v11 = vpop.permute.xlu1 %1097  ;;  %v1096_v12 = vpop.permute.xlu0 %1095 }
 0x258   : > { %1598 = vst.msk [vmem:[%s1887_s14 + $0x1b8] sm:$0xff] %vm532_vm1, %v1098_v11  ;;  %1597 = vst.msk [vmem:[%s1887_s14 + $0x1b0] sm:$0xff] %vm532_vm1, %v1096_v12 }
 0x25b   : > { %v1102_v13 = vpop.permute.xlu1 %1101  ;;  %v1100_v14 = vpop.permute.xlu0 %1099 }
 0x25c   : > { %1600 = vst.msk [vmem:[%s1887_s14 + $0x1c8] sm:$0xff] %vm532_vm1, %v1102_v13  ;;  %1599 = vst.msk [vmem:[%s1887_s14 + $0x1c0] sm:$0xff] %vm532_vm1, %v1100_v14 }
 0x25f   : > { %v1106_v15 = vpop.permute.xlu1 %1105  ;;  %v1104_v16 = vpop.permute.xlu0 %1103 }
 0x260   : > { %1602 = vst.msk [vmem:[%s1887_s14 + $0x1d8] sm:$0xff] %vm532_vm1, %v1106_v15  ;;  %1601 = vst.msk [vmem:[%s1887_s14 + $0x1d0] sm:$0xff] %vm532_vm1, %v1104_v16 }
 0x263   : > { %v1110_v17 = vpop.permute.xlu1 %1109  ;;  %v1108_v18 = vpop.permute.xlu0 %1107 }
 0x264   : > { %1604 = vst.msk [vmem:[%s1887_s14 + $0x1e8] sm:$0xff] %vm532_vm1, %v1110_v17  ;;  %1603 = vst.msk [vmem:[%s1887_s14 + $0x1e0] sm:$0xff] %vm532_vm1, %v1108_v18 }
 0x267   : > { %v1114_v19 = vpop.permute.xlu1 %1113  ;;  %v1112_v20 = vpop.permute.xlu0 %1111 }
 0x268   : > { %1606 = vst.msk [vmem:[%s1887_s14 + $0x1f8] sm:$0xff] %vm532_vm1, %v1114_v19  ;;  %1605 = vst.msk [vmem:[%s1887_s14 + $0x1f0] sm:$0xff] %vm532_vm1, %v1112_v20 }
 0x26b   : > { %v1151_v21 = vpop.permute.xlu1 %1150  ;;  %v1149_v22 = vpop.permute.xlu0 %1148 }
 0x26c   : > { %1608 = vst.msk [vmem:[%s2105_s27 + $0x188] sm:$0xff] %vm532_vm1, %v1151_v21  ;;  %1607 = vst.msk [vmem:[%s2105_s27 + $0x180] sm:$0xff] %vm532_vm1, %v1149_v22 }
 0x26f   : > { %v1155_v25 = vpop.permute.xlu1 %1154  ;;  %v1153_v26 = vpop.permute.xlu0 %1152 }
 0x270   : > { %1610 = vst.msk [vmem:[%s2105_s27 + $0x198] sm:$0xff] %vm532_vm1, %v1155_v25  ;;  %1609 = vst.msk [vmem:[%s2105_s27 + $0x190] sm:$0xff] %vm532_vm1, %v1153_v26 }
 0x273   : > { %v1159_v29 = vpop.permute.xlu1 %1158  ;;  %v1157_v30 = vpop.permute.xlu0 %1156 }
 0x274   : > { %1612 = vst.msk [vmem:[%s2105_s27 + $0x1a8] sm:$0xff] %vm532_vm1, %v1159_v29  ;;  %1611 = vst.msk [vmem:[%s2105_s27 + $0x1a0] sm:$0xff] %vm532_vm1, %v1157_v30 }
 0x277   : > { %v1163_v33 = vpop.permute.xlu1 %1162  ;;  %v1161_v34 = vpop.permute.xlu0 %1160 }
 0x278   : > { %1614 = vst.msk [vmem:[%s2105_s27 + $0x1b8] sm:$0xff] %vm532_vm1, %v1163_v33  ;;  %1613 = vst.msk [vmem:[%s2105_s27 + $0x1b0] sm:$0xff] %vm532_vm1, %v1161_v34 }
 0x27b   : > { %v1167_v37 = vpop.permute.xlu1 %1166  ;;  %v1165_v38 = vpop.permute.xlu0 %1164 }
 0x27c   : > { %1616 = vst.msk [vmem:[%s2105_s27 + $0x1c8] sm:$0xff] %vm532_vm1, %v1167_v37  ;;  %1615 = vst.msk [vmem:[%s2105_s27 + $0x1c0] sm:$0xff] %vm532_vm1, %v1165_v38 }
 0x27f   : > { %v1171_v41 = vpop.permute.xlu1 %1170  ;;  %v1169_v42 = vpop.permute.xlu0 %1168 }
 0x280   : > { %1618 = vst.msk [vmem:[%s2105_s27 + $0x1d8] sm:$0xff] %vm532_vm1, %v1171_v41  ;;  %1617 = vst.msk [vmem:[%s2105_s27 + $0x1d0] sm:$0xff] %vm532_vm1, %v1169_v42 }
 0x283   : > { %v1175_v45 = vpop.permute.xlu1 %1174  ;;  %v1173_v47 = vpop.permute.xlu0 %1172 }
 0x284   : > { %1620 = vst.msk [vmem:[%s2105_s27 + $0x1e8] sm:$0xff] %vm532_vm1, %v1175_v45  ;;  %1619 = vst.msk [vmem:[%s2105_s27 + $0x1e0] sm:$0xff] %vm532_vm1, %v1173_v47 }
 0x287   : > { %v1179_v49 = vpop.permute.xlu1 %1178  ;;  %v1177_v51 = vpop.permute.xlu0 %1176 }
 0x288   : > { %1622 = vst.msk [vmem:[%s2105_s27 + $0x1f8] sm:$0xff] %vm532_vm1, %v1179_v49  ;;  %1621 = vst.msk [vmem:[%s2105_s27 + $0x1f0] sm:$0xff] %vm532_vm1, %v1177_v51 }
 0x28b   : > { %v1216_v53 = vpop.permute.xlu1 %1215  ;;  %v1214_v54 = vpop.permute.xlu0 %1213 }
 0x28c   : > { %1624 = vst.msk [vmem:[%s2119_s30 + $0x188] sm:$0xff] %vm532_vm1, %v1216_v53  ;;  %1623 = vst.msk [vmem:[%s2119_s30 + $0x180] sm:$0xff] %vm532_vm1, %v1214_v54 }
 0x28f   : > { %v1220_v55 = vpop.permute.xlu1 %1219  ;;  %v1218_v56 = vpop.permute.xlu0 %1217 }
 0x290   : > { %1626 = vst.msk [vmem:[%s2119_s30 + $0x198] sm:$0xff] %vm532_vm1, %v1220_v55  ;;  %1625 = vst.msk [vmem:[%s2119_s30 + $0x190] sm:$0xff] %vm532_vm1, %v1218_v56 }
 0x293   : > { %v1224_v57 = vpop.permute.xlu1 %1223  ;;  %v1222_v58 = vpop.permute.xlu0 %1221 }
 0x294   : > { %1628 = vst.msk [vmem:[%s2119_s30 + $0x1a8] sm:$0xff] %vm532_vm1, %v1224_v57  ;;  %1627 = vst.msk [vmem:[%s2119_s30 + $0x1a0] sm:$0xff] %vm532_vm1, %v1222_v58 }
 0x297   : > { %v1228_v59 = vpop.permute.xlu1 %1227  ;;  %v1226_v60 = vpop.permute.xlu0 %1225 }
 0x298   : > { %1630 = vst.msk [vmem:[%s2119_s30 + $0x1b8] sm:$0xff] %vm532_vm1, %v1228_v59  ;;  %1629 = vst.msk [vmem:[%s2119_s30 + $0x1b0] sm:$0xff] %vm532_vm1, %v1226_v60 }
 0x29b   : > { %v1232_v61 = vpop.permute.xlu1 %1231  ;;  %v1230_v62 = vpop.permute.xlu0 %1229 }
 0x29c   : > { %1632 = vst.msk [vmem:[%s2119_s30 + $0x1c8] sm:$0xff] %vm532_vm1, %v1232_v61  ;;  %1631 = vst.msk [vmem:[%s2119_s30 + $0x1c0] sm:$0xff] %vm532_vm1, %v1230_v62 }
 0x29f   : > { %v1236_v23 = vpop.permute.xlu1 %1235  ;;  %v1234_v63 = vpop.permute.xlu0 %1233 }
 0x2a0   : > { %1634 = vst.msk [vmem:[%s2119_s30 + $0x1d8] sm:$0xff] %vm532_vm1, %v1236_v23  ;;  %1633 = vst.msk [vmem:[%s2119_s30 + $0x1d0] sm:$0xff] %vm532_vm1, %v1234_v63 }
 0x2a3   : > { %v1240_v27 = vpop.permute.xlu1 %1239  ;;  %v1238_v31 = vpop.permute.xlu0 %1237 }
 0x2a4   : > { %1636 = vst.msk [vmem:[%s2119_s30 + $0x1e8] sm:$0xff] %vm532_vm1, %v1240_v27  ;;  %1635 = vst.msk [vmem:[%s2119_s30 + $0x1e0] sm:$0xff] %vm532_vm1, %v1238_v31 }
 0x2a7   : > { %v1244_v35 = vpop.permute.xlu1 %1243  ;;  %v1242_v39 = vpop.permute.xlu0 %1241 }
 0x2a8   : > { %1638 = vst.msk [vmem:[%s2119_s30 + $0x1f8] sm:$0xff] %vm532_vm1, %v1244_v35  ;;  %1637 = vst.msk [vmem:[%s2119_s30 + $0x1f0] sm:$0xff] %vm532_vm1, %v1242_v39 }
 0x2a9 PF: > { %s16_s20 = sadd.s32 1, %s1762_s20   ;;  %s2716_s18 = smov %s1758_s19 }
 0x2aa   : > { %p13_p5 = scmp.ge.s32.totalorder %s16_s20, 4   ;;  %s2717_s19 = smov %s2719_s21 }
 0x2ac   :  { %15 = sbr.rel (!%p13_p5) target bundleno = 2 (0x2), region = 95 }

// kernel: residual_self_attention.3
= control target key start
LH: loop header
LB: loop body
LE: loop exit
PB: predicated region body
PF: predicated region fallthrough
CT: control target
= control target key end

     0   :  { %s7412_s27 = smov 0   ;;  %s7414_s28 = smov 0   ;;  %s10607_s0 = inlined_call_operand.vmem [shape: f32[2,128,32], index: 0, kind: input, shape index: {}]   ;;  %s10608_s1 = inlined_call_operand.vmem [shape: f32[2,4,128,8], index: 1, kind: input, shape index: {}]   ;;  %s10609_s2 = inlined_call_operand.vmem [shape: f32[2,4,128,8], index: 2, kind: input, shape index: {}]   ;;  %s10610_s3 = inlined_call_operand.vmem [shape: f32[2,4,128,8], index: 3, kind: input, shape index: {}]   ;;  %s10611_s4 = inlined_call_operand.vmem [shape: f32[32,32], index: 4, kind: input, shape index: {}]   ;;  %s10612_s5 = inlined_call_operand.vmem [shape: f32[1,32], index: 5, kind: input, shape index: {}]   ;;  %s10613_s6 = inlined_call_operand.vmem [shape: f32[1,32], index: 6, kind: input, shape index: {}]   ;;  %s10614_s7 = inlined_call_operand.vmem [shape: f32[1,32], index: 7, kind: input, shape index: {}]   ;;  %s10615_s8 = inlined_call_operand.vmem [shape: f32[2,128,32], index: 8, kind: output, shape index: {}]  }
   0x1   :  { %s7416_s29 = smov 0  }
   0x2 LB: > { %s37_s30 = sadd.s32 1, %s7355_s28  ;;  %p5960_p0 = scmp.ge.s32.totalorder %s7359_s29, 1  ;;  %s7359_s29 = sphi %s7416_s29, %s18_s29   ;;  %s7355_s28 = sphi %s7414_s28, %s11128_s28   ;;  %s7351_s27 = sphi %s7412_s27, %s11127_s27  }
   0x3   : > { %p39_p1 = scmp.ge.s32.totalorder %s37_s30, 2  ;;  %p341_p2 = scmp.lt.s32.totalorder %s7359_s29, 3 }
   0x5   : > { %s11130_s30 = smov (%p39_p1, %s37_s30), 0  ;;  %p342_p3 = pnand %p5960_p0, %p341_p2 }
   0x7   : > { %345 = sbr.rel (%p342_p3) target bundleno = 1816 (0x718), region = 52 }
   0xc   : > { %p411_p4 = scmp.lt.s32.totalorder %s7351_s27, 1  ;;  %vm593_vm0 = vcmask 64512   ;;  %vm464_vm2 = vcmask 7168   ;;  %s7364_s19 = smov 8   ;;  %vm5109_vm3 = vcmask 130112   ;;  %vm5190_vm4 = vcmask 195712  }
   0xd   : > { %s7365_s20 = smov 16   ;;  %s7366_s21 = smov 24   ;;  %vm5271_vm5 = vcmask 261312   ;;  %vm5315_vm6 = vcmask 261120  }
   0xe   : > { %s11132_s27 = smov (!%p411_p4, %s7351_s27), 1 }
   0xf   : > { %s7433_s9 = sshll.u32 %s11132_s27, 9 }
  0x10   : > { %s7439_s12 = scalar_lea.vmem %s10609_s2, %s7433_s9  ;;  %s7461_s15 = scalar_lea.vmem %s10608_s1, %s7433_s9 }
  0x11   : > { %v737_v0 = vld [vmem:[%s7439_s12 + $0x78] sm:$0xff]  ;;  %v736_v2 = vld [vmem:[%s7439_s12 + $0x70] sm:$0xff]  ;;  %v735_v4 = vld [vmem:[%s7439_s12 + $0x68] sm:$0xff]  ;;  %s8487_s18 = scalar_lea.vmem %s10610_s3, %s7433_s9 }
  0x12   : > { %v753_v1 = vld [vmem:[%s7439_s12 + $0xf8] sm:$0xff]  ;;  %6401 = vmatprep.subr.msk.mxu0 %vm593_vm0, %v737_v0  ;;  %v752_v3 = vld [vmem:[%s7439_s12 + $0xf0] sm:$0xff]  ;;  %v751_v5 = vld [vmem:[%s7439_s12 + $0xe8] sm:$0xff] }
  0x13   : > { %6457 = vmatprep.subr.msk.mxu1 %vm593_vm0, %v753_v1  ;;  %6402 = vmatpush3.xpose.msk.msra.mxu0 %vm593_vm0, %v737_v0  ;;  %v734_v6 = vld [vmem:[%s7439_s12 + $0x60] sm:$0xff]  ;;  %v733_v10 = vld [vmem:[%s7439_s12 + $0x58] sm:$0xff]  ;;  %v732_v12 = vld [vmem:[%s7439_s12 + $0x50] sm:$0xff] }
  0x14   : > { %6458 = vmatpush3.xpose.msk.msra.mxu1 %vm593_vm0, %v753_v1  ;;  %6403 = vmatprep.subr.msk.mxu0 %vm593_vm0, %v736_v2  ;;  %v750_v7 = vld [vmem:[%s7439_s12 + $0xe0] sm:$0xff]  ;;  %v749_v11 = vld [vmem:[%s7439_s12 + $0xd8] sm:$0xff]  ;;  %v748_v13 = vld [vmem:[%s7439_s12 + $0xd0] sm:$0xff] }
  0x15   : > { %6459 = vmatprep.subr.msk.mxu1 %vm593_vm0, %v752_v3  ;;  %v658_v8 = vld [vmem:[%s7461_s15] sm:$0xff]  ;;  %v731_v14 = vld [vmem:[%s7439_s12 + $0x48] sm:$0xff]  ;;  %v729_v18 = vld [vmem:[%s7439_s12 + $0x38] sm:$0xff] }
  0x16   : > { %v674_v9 = vld [vmem:[%s7461_s15 + $0x80] sm:$0xff]  ;;  %6433 = vmatprep.mubr.msk.f32.mxu0 %vm593_vm0, %v658_v8  ;;  %v747_v15 = vld [vmem:[%s7439_s12 + $0xc8] sm:$0xff]  ;;  %v745_v19 = vld [vmem:[%s7439_s12 + $0xb8] sm:$0xff] }
  0x17   : > { %6404 = vmatpush3.xpose.msk.msra.mxu0 %vm593_vm0, %v736_v2  ;;  %6489 = vmatprep.mubr.msk.f32.mxu1 %vm593_vm0, %v674_v9  ;;  %v730_v16 = vld [vmem:[%s7439_s12 + $0x40] sm:$0xff]  ;;  %v728_v20 = vld [vmem:[%s7439_s12 + $0x30] sm:$0xff]  ;;  %v727_v22 = vld [vmem:[%s7439_s12 + $0x28] sm:$0xff] }
  0x18   : > { %6460 = vmatpush3.xpose.msk.msra.mxu1 %vm593_vm0, %v752_v3  ;;  %6405 = vmatprep.subr.msk.mxu0 %vm593_vm0, %v735_v4  ;;  %v746_v17 = vld [vmem:[%s7439_s12 + $0xc0] sm:$0xff]  ;;  %v744_v21 = vld [vmem:[%s7439_s12 + $0xb0] sm:$0xff]  ;;  %v743_v23 = vld [vmem:[%s7439_s12 + $0xa8] sm:$0xff] }
  0x19   : > { %6461 = vmatprep.subr.msk.mxu1 %vm593_vm0, %v751_v5  ;;  %v726_v24 = vld [vmem:[%s7439_s12 + $0x20] sm:$0xff]  ;;  %v725_v26 = vld [vmem:[%s7439_s12 + $0x18] sm:$0xff]  ;;  %v724_v28 = vld [vmem:[%s7439_s12 + $0x10] sm:$0xff] }
  0x1a   : > { %v742_v25 = vld [vmem:[%s7439_s12 + $0xa0] sm:$0xff]  ;;  %v741_v27 = vld [vmem:[%s7439_s12 + $0x98] sm:$0xff]  ;;  %v740_v29 = vld [vmem:[%s7439_s12 + $0x90] sm:$0xff] }
  0x1b   : > { %6406 = vmatpush3.xpose.msk.msra.mxu0 %vm593_vm0, %v735_v4  ;;  %v723_v30 = vld [vmem:[%s7439_s12 + $0x8] sm:$0xff]  ;;  %v722_v32 = vld [vmem:[%s7439_s12] sm:$0xff]  ;;  %v769_v34 = vld [vmem:[%s7439_s12 + $0x178] sm:$0xff] }
  0x1c   : > { %6462 = vmatpush3.xpose.msk.msra.mxu1 %vm593_vm0, %v751_v5  ;;  %6407 = vmatprep.subr.msk.mxu0 %vm593_vm0, %v734_v6  ;;  %v739_v31 = vld [vmem:[%s7439_s12 + $0x88] sm:$0xff]  ;;  %v738_v33 = vld [vmem:[%s7439_s12 + $0x80] sm:$0xff]  ;;  %v785_v35 = vld [vmem:[%s7439_s12 + $0x1f8] sm:$0xff] }
  0x1d   : > { %6463 = vmatprep.subr.msk.mxu1 %vm593_vm0, %v750_v7  ;;  %v659_v36 = vld [vmem:[%s7461_s15 + $0x8] sm:$0xff]  ;;  %v660_v38 = vld [vmem:[%s7461_s15 + $0x10] sm:$0xff]  ;;  %v661_v42 = vld [vmem:[%s7461_s15 + $0x18] sm:$0xff] }
  0x1e   : > { %v675_v37 = vld [vmem:[%s7461_s15 + $0x88] sm:$0xff]  ;;  %v768_v39 = vld [vmem:[%s7439_s12 + $0x170] sm:$0xff]  ;;  %v677_v43 = vld [vmem:[%s7461_s15 + $0x98] sm:$0xff] }
  0x1f   : > { %6408 = vmatpush3.xpose.msk.msra.mxu0 %vm593_vm0, %v734_v6  ;;  %v676_v40 = vld [vmem:[%s7461_s15 + $0x90] sm:$0xff]  ;;  %v662_v44 = vld [vmem:[%s7461_s15 + $0x20] sm:$0xff]  ;;  %v767_v45 = vld [vmem:[%s7439_s12 + $0x168] sm:$0xff] }
  0x20   : > { %6464 = vmatpush3.xpose.msk.msra.mxu1 %vm593_vm0, %v750_v7  ;;  %6409 = vmatprep.subr.msk.mxu0 %vm593_vm0, %v733_v10  ;;  %v784_v41 = vld [vmem:[%s7439_s12 + $0x1f0] sm:$0xff]  ;;  %v783_v46 = vld [vmem:[%s7439_s12 + $0x1e8] sm:$0xff]  ;;  %v678_v47 = vld [vmem:[%s7461_s15 + $0xa0] sm:$0xff] }
  0x21   : > { %6465 = vmatprep.subr.msk.mxu1 %vm593_vm0, %v749_v11  ;;  %v663_v48 = vld [vmem:[%s7461_s15 + $0x28] sm:$0xff]  ;;  %v664_v50 = vld [vmem:[%s7461_s15 + $0x30] sm:$0xff]  ;;  %v766_v51 = vld [vmem:[%s7439_s12 + $0x160] sm:$0xff] }
  0x22   : > { %v679_v49 = vld [vmem:[%s7461_s15 + $0xa8] sm:$0xff]  ;;  %v782_v52 = vld [vmem:[%s7439_s12 + $0x1e0] sm:$0xff]  ;;  %v680_v53 = vld [vmem:[%s7461_s15 + $0xb0] sm:$0xff] }
  0x23   : > { %6410 = vmatpush3.xpose.msk.msra.mxu0 %vm593_vm0, %v733_v10  ;;  %v665_v54 = vld [vmem:[%s7461_s15 + $0x38] sm:$0xff]  ;;  %v666_v56 = vld [vmem:[%s7461_s15 + $0x40] sm:$0xff]  ;;  %v667_v60 = vld [vmem:[%s7461_s15 + $0x48] sm:$0xff] }
  0x24   : > { %6466 = vmatpush3.xpose.msk.msra.mxu1 %vm593_vm0, %v749_v11  ;;  %6411 = vmatprep.subr.msk.mxu0 %vm593_vm0, %v732_v12  ;;  %v681_v55 = vld [vmem:[%s7461_s15 + $0xb8] sm:$0xff]  ;;  %v682_v59 = vld [vmem:[%s7461_s15 + $0xc0] sm:$0xff]  ;;  %v683_v61 = vld [vmem:[%s7461_s15 + $0xc8] sm:$0xff] }
  0x25   : > { %6467 = vmatprep.subr.msk.mxu1 %vm593_vm0, %v748_v13  ;;  %v765_v57 = vld [vmem:[%s7439_s12 + $0x158] sm:$0xff]  ;;  %v668_v62 = vld [vmem:[%s7461_s15 + $0x50] sm:$0xff]  ;;  %v670_v4 = vld [vmem:[%s7461_s15 + $0x60] sm:$0xff] }
  0x26   : > { %v781_v58 = vld [vmem:[%s7439_s12 + $0x1d8] sm:$0xff]  ;;  %v764_v63 = vld [vmem:[%s7439_s12 + $0x150] sm:$0xff]  ;;  %v763_v5 = vld [vmem:[%s7439_s12 + $0x148] sm:$0xff] }
  0x27   : > { %6412 = vmatpush3.xpose.msk.msra.mxu0 %vm593_vm0, %v732_v12  ;;  %v780_v0 = vld [vmem:[%s7439_s12 + $0x1d0] sm:$0xff]  ;;  %v669_v2 = vld [vmem:[%s7461_s15 + $0x58] sm:$0xff]  ;;  %v779_v6 = vld [vmem:[%s7439_s12 + $0x1c8] sm:$0xff] }
  0x28   : > { %6468 = vmatpush3.xpose.msk.msra.mxu1 %vm593_vm0, %v748_v13  ;;  %6413 = vmatprep.subr.msk.mxu0 %vm593_vm0, %v731_v14  ;;  %v684_v1 = vld [vmem:[%s7461_s15 + $0xd0] sm:$0xff]  ;;  %v685_v3 = vld [vmem:[%s7461_s15 + $0xd8] sm:$0xff]  ;;  %v686_v7 = vld [vmem:[%s7461_s15 + $0xe0] sm:$0xff] }
  0x29   : > { %6469 = vmatprep.subr.msk.mxu1 %vm593_vm0, %v747_v15  ;;  %v671_v8 = vld [vmem:[%s7461_s15 + $0x68] sm:$0xff]  ;;  %v672_v10 = vld [vmem:[%s7461_s15 + $0x70] sm:$0xff]  ;;  %v762_v11 = vld [vmem:[%s7439_s12 + $0x140] sm:$0xff] }
  0x2a   : > { %v687_v9 = vld [vmem:[%s7461_s15 + $0xe8] sm:$0xff]  ;;  %v778_v12 = vld [vmem:[%s7439_s12 + $0x1c0] sm:$0xff]  ;;  %v688_v13 = vld [vmem:[%s7461_s15 + $0xf0] sm:$0xff] }
  0x2b   : > { %6414 = vmatpush3.xpose.msk.msra.mxu0 %vm593_vm0, %v731_v14  ;;  %v673_v14 = vld [vmem:[%s7461_s15 + $0x78] sm:$0xff] }
  0x2c   : > { %6470 = vmatpush3.xpose.msk.msra.mxu1 %vm593_vm0, %v747_v15  ;;  %6415 = vmatprep.subr.msk.mxu0 %vm593_vm0, %v730_v16  ;;  %v689_v15 = vld [vmem:[%s7461_s15 + $0xf8] sm:$0xff] }
  0x2d   : > { %6471 = vmatprep.subr.msk.mxu1 %vm593_vm0, %v746_v17 }
  0x2f   : > { %6416 = vmatpush3.xpose.msk.msra.mxu0 %vm593_vm0, %v730_v16  ;;  %v690_v16 = vld [vmem:[%s7461_s15 + $0x100] sm:$0xff] }
  0x30   : > { %6472 = vmatpush3.xpose.msk.msra.mxu1 %vm593_vm0, %v746_v17  ;;  %6417 = vmatprep.subr.msk.mxu0 %vm593_vm0, %v729_v18  ;;  %v761_v17 = vld [vmem:[%s7439_s12 + $0x138] sm:$0xff] }
  0x31   : > { %6473 = vmatprep.subr.msk.mxu1 %vm593_vm0, %v745_v19 }
  0x33   : > { %6418 = vmatpush3.xpose.msk.msra.mxu0 %vm593_vm0, %v729_v18  ;;  %v777_v18 = vld [vmem:[%s7439_s12 + $0x1b8] sm:$0xff] }
  0x34   : > { %6474 = vmatpush3.xpose.msk.msra.mxu1 %vm593_vm0, %v745_v19  ;;  %6419 = vmatprep.subr.msk.mxu0 %vm593_vm0, %v728_v20  ;;  %v706_v19 = vld [vmem:[%s7461_s15 + $0x180] sm:$0xff] }
  0x35   : > { %6475 = vmatprep.subr.msk.mxu1 %vm593_vm0, %v744_v21 }
  0x37   : > { %6420 = vmatpush3.xpose.msk.msra.mxu0 %vm593_vm0, %v728_v20  ;;  %v760_v20 = vld [vmem:[%s7439_s12 + $0x130] sm:$0xff] }
  0x38   : > { %6476 = vmatpush3.xpose.msk.msra.mxu1 %vm593_vm0, %v744_v21  ;;  %6421 = vmatprep.subr.msk.mxu0 %vm593_vm0, %v727_v22  ;;  %v776_v21 = vld [vmem:[%s7439_s12 + $0x1b0] sm:$0xff] }
  0x39   : > { %6477 = vmatprep.subr.msk.mxu1 %vm593_vm0, %v743_v23 }
  0x3b   : > { %6422 = vmatpush3.xpose.msk.msra.mxu0 %vm593_vm0, %v727_v22  ;;  %v759_v22 = vld [vmem:[%s7439_s12 + $0x128] sm:$0xff] }
  0x3c   : > { %6478 = vmatpush3.xpose.msk.msra.mxu1 %vm593_vm0, %v743_v23  ;;  %6423 = vmatprep.subr.msk.mxu0 %vm593_vm0, %v726_v24  ;;  %v775_v23 = vld [vmem:[%s7439_s12 + $0x1a8] sm:$0xff] }
  0x3d   : > { %6479 = vmatprep.subr.msk.mxu1 %vm593_vm0, %v742_v25 }
  0x3f   : > { %6424 = vmatpush3.xpose.msk.msra.mxu0 %vm593_vm0, %v726_v24  ;;  %v758_v24 = vld [vmem:[%s7439_s12 + $0x120] sm:$0xff] }
  0x40   : > { %6480 = vmatpush3.xpose.msk.msra.mxu1 %vm593_vm0, %v742_v25  ;;  %6425 = vmatprep.subr.msk.mxu0 %vm593_vm0, %v725_v26  ;;  %v774_v25 = vld [vmem:[%s7439_s12 + $0x1a0] sm:$0xff] }
  0x41   : > { %6481 = vmatprep.subr.msk.mxu1 %vm593_vm0, %v741_v27 }
  0x43   : > { %6426 = vmatpush3.xpose.msk.msra.mxu0 %vm593_vm0, %v725_v26  ;;  %v757_v26 = vld [vmem:[%s7439_s12 + $0x118] sm:$0xff] }
  0x44   : > { %6482 = vmatpush3.xpose.msk.msra.mxu1 %vm593_vm0, %v741_v27  ;;  %6427 = vmatprep.subr.msk.mxu0 %vm593_vm0, %v724_v28  ;;  %v773_v27 = vld [vmem:[%s7439_s12 + $0x198] sm:$0xff] }
  0x45   : > { %6483 = vmatprep.subr.msk.mxu1 %vm593_vm0, %v740_v29 }
  0x47   : > { %6428 = vmatpush3.xpose.msk.msra.mxu0 %vm593_vm0, %v724_v28  ;;  %v756_v28 = vld [vmem:[%s7439_s12 + $0x110] sm:$0xff] }
  0x48   : > { %6484 = vmatpush3.xpose.msk.msra.mxu1 %vm593_vm0, %v740_v29  ;;  %6429 = vmatprep.subr.msk.mxu0 %vm593_vm0, %v723_v30  ;;  %v772_v29 = vld [vmem:[%s7439_s12 + $0x190] sm:$0xff] }
  0x49   : > { %6485 = vmatprep.subr.msk.mxu1 %vm593_vm0, %v739_v31 }
  0x4b   : > { %6430 = vmatpush3.xpose.msk.msra.mxu0 %vm593_vm0, %v723_v30  ;;  %v755_v30 = vld [vmem:[%s7439_s12 + $0x108] sm:$0xff] }
  0x4c   : > { %6486 = vmatpush3.xpose.msk.msra.mxu1 %vm593_vm0, %v739_v31  ;;  %6431 = vmatprep.subr.msk.mxu0 %vm593_vm0, %v722_v32  ;;  %v771_v31 = vld [vmem:[%s7439_s12 + $0x188] sm:$0xff] }
  0x4d   : > { %6487 = vmatprep.subr.msk.mxu1 %vm593_vm0, %v738_v33 }
  0x4f   : > { %6432 = vmatpush3.xpose.msk.msra.mxu0 %vm593_vm0, %v722_v32  ;;  %v754_v32 = vld [vmem:[%s7439_s12 + $0x100] sm:$0xff] }
  0x50   : > { %6488 = vmatpush3.xpose.msk.msra.mxu1 %vm593_vm0, %v738_v33  ;;  %6513 = vmatprep.subr.msk.mxu0 %vm593_vm0, %v769_v34  ;;  %v770_v33 = vld [vmem:[%s7439_s12 + $0x180] sm:$0xff]  ;;  %s6120_s12 = sshll.u32 %s11132_s27, 7 }
  0x51   : > { %6569 = vmatprep.subr.msk.mxu1 %vm593_vm0, %v785_v35  ;;  %s10519_s24 = scalar_lea.vmem %s10615_s8, %s6120_s12 }
  0x52   : > { %6434 = vmatmul.mubr.msk.f32.vlgmr.msra.gmra.mxu0 %vm593_vm0, %v659_v36  ;;  %v692_v36 = vld [vmem:[%s7461_s15 + $0x110] sm:$0xff] }
  0x53   : > { %6490 = vmatmul.mubr.msk.f32.vlgmr.msra.gmra.mxu1 %vm593_vm0, %v675_v37  ;;  %6514 = vmatpush3.xpose.msk.msra.mxu0 %vm593_vm0, %v769_v34  ;;  %v691_v34 = vld [vmem:[%s7461_s15 + $0x108] sm:$0xff]  ;;  %v708_v37 = vld [vmem:[%s7461_s15 + $0x190] sm:$0xff] }
  0x54   : > { %6436 = vmatprep.mubr.msk.f32.mxu0 %vm593_vm0, %v660_v38  ;;  %6515 = vmatprep.subr.msk.mxu0 %vm593_vm0, %v768_v39  ;;  %v693_v38 = vld [vmem:[%s7461_s15 + $0x118] sm:$0xff] }
  0x55   : > { %6570 = vmatpush3.xpose.msk.msra.mxu1 %vm593_vm0, %v785_v35  ;;  %6492 = vmatprep.mubr.msk.f32.mxu1 %vm593_vm0, %v676_v40  ;;  %v707_v35 = vld [vmem:[%s7461_s15 + $0x188] sm:$0xff]  ;;  %v694_v40 = vld [vmem:[%s7461_s15 + $0x120] sm:$0xff] }
  0x56   : > { %6571 = vmatprep.subr.msk.mxu1 %vm593_vm0, %v784_v41  ;;  %6437 = vmatmul.mubr.msk.f32.gmra.mxu0 %vm593_vm0, %v661_v42  ;;  %v695_v42 = vld [vmem:[%s7461_s15 + $0x128] sm:$0xff] }
  0x57   : > { %6493 = vmatmul.mubr.msk.f32.gmra.mxu1 %vm593_vm0, %v677_v43  ;;  %6516 = vmatpush3.xpose.msk.msra.mxu0 %vm593_vm0, %v768_v39  ;;  %v709_v39 = vld [vmem:[%s7461_s15 + $0x198] sm:$0xff]  ;;  %v711_v43 = vld [vmem:[%s7461_s15 + $0x1a8] sm:$0xff] }
  0x58   : > { %6439 = vmatprep.mubr.msk.f32.mxu0 %vm593_vm0, %v662_v44  ;;  %6517 = vmatprep.subr.msk.mxu0 %vm593_vm0, %v767_v45  ;;  %v696_v44 = vld [vmem:[%s7461_s15 + $0x130] sm:$0xff] }
  0x59   : > { %6572 = vmatpush3.xpose.msk.msra.mxu1 %vm593_vm0, %v784_v41  ;;  %6495 = vmatprep.mubr.msk.f32.mxu1 %vm593_vm0, %v678_v47  ;;  %v710_v41 = vld [vmem:[%s7461_s15 + $0x1a0] sm:$0xff]  ;;  %v713_v47 = vld [vmem:[%s7461_s15 + $0x1b8] sm:$0xff] }
  0x5a   : > { %6573 = vmatprep.subr.msk.mxu1 %vm593_vm0, %v783_v46  ;;  %6440 = vmatmul.mubr.msk.f32.gmra.mxu0 %vm593_vm0, %v663_v48  ;;  %v698_v48 = vld [vmem:[%s7461_s15 + $0x140] sm:$0xff] }
  0x5b   : > { %6496 = vmatmul.mubr.msk.f32.gmra.mxu1 %vm593_vm0, %v679_v49  ;;  %6518 = vmatpush3.xpose.msk.msra.mxu0 %vm593_vm0, %v767_v45  ;;  %v712_v45 = vld [vmem:[%s7461_s15 + $0x1b0] sm:$0xff]  ;;  %v714_v49 = vld [vmem:[%s7461_s15 + $0x1c0] sm:$0xff] }
  0x5c   : > { %6442 = vmatprep.mubr.msk.f32.mxu0 %vm593_vm0, %v664_v50  ;;  %6519 = vmatprep.subr.msk.mxu0 %vm593_vm0, %v766_v51  ;;  %v699_v50 = vld [vmem:[%s7461_s15 + $0x148] sm:$0xff] }
  0x5d   : > { %6574 = vmatpush3.xpose.msk.msra.mxu1 %vm593_vm0, %v783_v46  ;;  %6498 = vmatprep.mubr.msk.f32.mxu1 %vm593_vm0, %v680_v53  ;;  %v697_v46 = vld [vmem:[%s7461_s15 + $0x138] sm:$0xff]  ;;  %v716_v53 = vld [vmem:[%s7461_s15 + $0x1d0] sm:$0xff] }
  0x5e   : > { %6575 = vmatprep.subr.msk.mxu1 %vm593_vm0, %v782_v52  ;;  %6443 = vmatmul.mubr.msk.f32.gmra.mxu0 %vm593_vm0, %v665_v54  ;;  %v701_v54 = vld [vmem:[%s7461_s15 + $0x158] sm:$0xff] }
  0x5f   : > { %6499 = vmatmul.mubr.msk.f32.gmra.mxu1 %vm593_vm0, %v681_v55  ;;  %6520 = vmatpush3.xpose.msk.msra.mxu0 %vm593_vm0, %v766_v51  ;;  %v715_v51 = vld [vmem:[%s7461_s15 + $0x1c8] sm:$0xff]  ;;  %v717_v55 = vld [vmem:[%s7461_s15 + $0x1d8] sm:$0xff] }
  0x60   : > { %6445 = vmatprep.mubr.msk.f32.mxu0 %vm593_vm0, %v666_v56  ;;  %6521 = vmatprep.subr.msk.mxu0 %vm593_vm0, %v765_v57  ;;  %v702_v56 = vld [vmem:[%s7461_s15 + $0x160] sm:$0xff] }
  0x61   : > { %6576 = vmatpush3.xpose.msk.msra.mxu1 %vm593_vm0, %v782_v52  ;;  %6501 = vmatprep.mubr.msk.f32.mxu1 %vm593_vm0, %v682_v59  ;;  %v700_v52 = vld [vmem:[%s7461_s15 + $0x150] sm:$0xff]  ;;  %v719_v59 = vld [vmem:[%s7461_s15 + $0x1e8] sm:$0xff] }
  0x62   : > { %6577 = vmatprep.subr.msk.mxu1 %vm593_vm0, %v781_v58  ;;  %6446 = vmatmul.mubr.msk.f32.gmra.mxu0 %vm593_vm0, %v667_v60  ;;  %v704_v60 = vld [vmem:[%s7461_s15 + $0x170] sm:$0xff] }
  0x63   : > { %6502 = vmatmul.mubr.msk.f32.gmra.mxu1 %vm593_vm0, %v683_v61  ;;  %6522 = vmatpush3.xpose.msk.msra.mxu0 %vm593_vm0, %v765_v57  ;;  %v718_v57 = vld [vmem:[%s7461_s15 + $0x1e0] sm:$0xff]  ;;  %v720_v61 = vld [vmem:[%s7461_s15 + $0x1f0] sm:$0xff] }
  0x64   : > { %6448 = vmatprep.mubr.msk.f32.mxu0 %vm593_vm0, %v668_v62  ;;  %6523 = vmatprep.subr.msk.mxu0 %vm593_vm0, %v764_v63  ;;  %v705_v62 = vld [vmem:[%s7461_s15 + $0x178] sm:$0xff] }
  0x65   : > { %6578 = vmatpush3.xpose.msk.msra.mxu1 %vm593_vm0, %v781_v58  ;;  %6504 = vmatprep.mubr.msk.f32.mxu1 %vm593_vm0, %v684_v1  ;;  %v703_v58 = vld [vmem:[%s7461_s15 + $0x168] sm:$0xff] }
  0x66   : > { %6579 = vmatprep.subr.msk.mxu1 %vm593_vm0, %v780_v0  ;;  %6449 = vmatmul.mubr.msk.f32.gmra.mxu0 %vm593_vm0, %v669_v2 }
  0x67   : > { %6505 = vmatmul.mubr.msk.f32.gmra.mxu1 %vm593_vm0, %v685_v3  ;;  %6524 = vmatpush3.xpose.msk.msra.mxu0 %vm593_vm0, %v764_v63  ;;  %v721_v63 = vld [vmem:[%s7461_s15 + $0x1f8] sm:$0xff]  ;;  %s10302_s15 = scalar_lea.vmem %s10607_s0, %s6120_s12 }
  0x68   : > { %6451 = vmatprep.mubr.msk.f32.mxu0 %vm593_vm0, %v670_v4  ;;  %6525 = vmatprep.subr.msk.mxu0 %vm593_vm0, %v763_v5 }
  0x69   : > { %6580 = vmatpush3.xpose.msk.msra.mxu1 %vm593_vm0, %v780_v0  ;;  %6507 = vmatprep.mubr.msk.f32.mxu1 %vm593_vm0, %v686_v7  ;;  %v1816_v0 = vlaneseq }
  0x6a   : > { %6581 = vmatprep.subr.msk.mxu1 %vm593_vm0, %v779_v6  ;;  %6452 = vmatmul.mubr.msk.f32.gmra.mxu0 %vm593_vm0, %v671_v8 }
  0x6b   : > { %6508 = vmatmul.mubr.msk.f32.gmra.mxu1 %vm593_vm0, %v687_v9  ;;  %6526 = vmatpush3.xpose.msk.msra.mxu0 %vm593_vm0, %v763_v5  ;;  %v7767_v1 = vand.u32 127, %v1816_v0 }
  0x6c   : > { %6454 = vmatprep.mubr.msk.f32.mxu0 %vm593_vm0, %v672_v10  ;;  %6527 = vmatprep.subr.msk.mxu0 %vm593_vm0, %v762_v11 }
  0x6d   : > { %6582 = vmatpush3.xpose.msk.msra.mxu1 %vm593_vm0, %v779_v6  ;;  %6510 = vmatprep.mubr.msk.f32.mxu1 %vm593_vm0, %v688_v13  ;;  %vm1820_vm1 = vcmp.lt.s32.totalorder %v7767_v1, 8  ;;  %v7361_v6 = vmov -inf   ;;  %v816_v1 = vld [vmem:[%s8487_s18 + $0xf0] sm:$0xff] }
  0x6e   : > { %6583 = vmatprep.subr.msk.mxu1 %vm593_vm0, %v778_v12  ;;  %6455 = vmatmul.mubr.msk.f32.gmra.mxu0 %vm593_vm0, %v673_v14  ;;  %482 = vst.msk [vmem:[#allocation2 + $0x88] sm:$0xff] %vm464_vm2, %v7361_v6  ;;  %465 = vst.msk [vmem:[#allocation2] sm:$0xff] %vm464_vm2, %v7361_v6 }
  0x6f   : > { %6511 = vmatmul.mubr.msk.f32.gmra.mxu1 %vm593_vm0, %v689_v15  ;;  %6528 = vmatpush3.xpose.msk.msra.mxu0 %vm593_vm0, %v762_v11  ;;  %466 = vst.msk [vmem:[#allocation2 + $0x8] sm:$0xff] %vm464_vm2, %v7361_v6  ;;  %467 = vst.msk [vmem:[#allocation2 + $0x10] sm:$0xff] %vm464_vm2, %v7361_v6 }
  0x70   : > { %6545 = vmatprep.mubr.msk.f32.mxu0 %vm593_vm0, %v690_v16  ;;  %6529 = vmatprep.subr.msk.mxu0 %vm593_vm0, %v761_v17  ;;  %468 = vst.msk [vmem:[#allocation2 + $0x18] sm:$0xff] %vm464_vm2, %v7361_v6  ;;  %469 = vst.msk [vmem:[#allocation2 + $0x20] sm:$0xff] %vm464_vm2, %v7361_v6 }
  0x71   : > { %6584 = vmatpush3.xpose.msk.msra.mxu1 %vm593_vm0, %v778_v12  ;;  %6601 = vmatprep.mubr.msk.f32.mxu1 %vm593_vm0, %v706_v19  ;;  %470 = vst.msk [vmem:[#allocation2 + $0x28] sm:$0xff] %vm464_vm2, %v7361_v6  ;;  %471 = vst.msk [vmem:[#allocation2 + $0x30] sm:$0xff] %vm464_vm2, %v7361_v6 }
  0x72   : > { %6585 = vmatprep.subr.msk.mxu1 %vm593_vm0, %v777_v18  ;;  %472 = vst.msk [vmem:[#allocation2 + $0x38] sm:$0xff] %vm464_vm2, %v7361_v6  ;;  %473 = vst.msk [vmem:[#allocation2 + $0x40] sm:$0xff] %vm464_vm2, %v7361_v6 }
  0x73   : > { %6530 = vmatpush3.xpose.msk.msra.mxu0 %vm593_vm0, %v761_v17  ;;  %474 = vst.msk [vmem:[#allocation2 + $0x48] sm:$0xff] %vm464_vm2, %v7361_v6  ;;  %475 = vst.msk [vmem:[#allocation2 + $0x50] sm:$0xff] %vm464_vm2, %v7361_v6 }
  0x74   : > { %6531 = vmatprep.subr.msk.mxu0 %vm593_vm0, %v760_v20  ;;  %476 = vst.msk [vmem:[#allocation2 + $0x58] sm:$0xff] %vm464_vm2, %v7361_v6  ;;  %477 = vst.msk [vmem:[#allocation2 + $0x60] sm:$0xff] %vm464_vm2, %v7361_v6 }
  0x75   : > { %6586 = vmatpush3.xpose.msk.msra.mxu1 %vm593_vm0, %v777_v18  ;;  %478 = vst.msk [vmem:[#allocation2 + $0x68] sm:$0xff] %vm464_vm2, %v7361_v6  ;;  %479 = vst.msk [vmem:[#allocation2 + $0x70] sm:$0xff] %vm464_vm2, %v7361_v6 }
  0x76   : > { %6587 = vmatprep.subr.msk.mxu1 %vm593_vm0, %v776_v21  ;;  %480 = vst.msk [vmem:[#allocation2 + $0x78] sm:$0xff] %vm464_vm2, %v7361_v6  ;;  %481 = vst.msk [vmem:[#allocation2 + $0x80] sm:$0xff] %vm464_vm2, %v7361_v6 }
  0x77   : > { %6532 = vmatpush3.xpose.msk.msra.mxu0 %vm593_vm0, %v760_v20  ;;  %483 = vst.msk [vmem:[#allocation2 + $0x90] sm:$0xff] %vm464_vm2, %v7361_v6  ;;  %484 = vst.msk [vmem:[#allocation2 + $0x98] sm:$0xff] %vm464_vm2, %v7361_v6 }
  0x78   : > { %6533 = vmatprep.subr.msk.mxu0 %vm593_vm0, %v759_v22  ;;  %485 = vst.msk [vmem:[#allocation2 + $0xa0] sm:$0xff] %vm464_vm2, %v7361_v6  ;;  %486 = vst.msk [vmem:[#allocation2 + $0xa8] sm:$0xff] %vm464_vm2, %v7361_v6 }
  0x79   : > { %6588 = vmatpush3.xpose.msk.msra.mxu1 %vm593_vm0, %v776_v21  ;;  %487 = vst.msk [vmem:[#allocation2 + $0xb0] sm:$0xff] %vm464_vm2, %v7361_v6  ;;  %488 = vst.msk [vmem:[#allocation2 + $0xb8] sm:$0xff] %vm464_vm2, %v7361_v6 }
  0x7a   : > { %6589 = vmatprep.subr.msk.mxu1 %vm593_vm0, %v775_v23  ;;  %489 = vst.msk [vmem:[#allocation2 + $0xc0] sm:$0xff] %vm464_vm2, %v7361_v6  ;;  %490 = vst.msk [vmem:[#allocation2 + $0xc8] sm:$0xff] %vm464_vm2, %v7361_v6 }
  0x7b   : > { %6534 = vmatpush3.xpose.msk.msra.mxu0 %vm593_vm0, %v759_v22  ;;  %491 = vst.msk [vmem:[#allocation2 + $0xd0] sm:$0xff] %vm464_vm2, %v7361_v6  ;;  %492 = vst.msk [vmem:[#allocation2 + $0xd8] sm:$0xff] %vm464_vm2, %v7361_v6 }
  0x7c   : > { %6535 = vmatprep.subr.msk.mxu0 %vm593_vm0, %v758_v24  ;;  %493 = vst.msk [vmem:[#allocation2 + $0xe0] sm:$0xff] %vm464_vm2, %v7361_v6  ;;  %494 = vst.msk [vmem:[#allocation2 + $0xe8] sm:$0xff] %vm464_vm2, %v7361_v6 }
  0x7d   : > { %6590 = vmatpush3.xpose.msk.msra.mxu1 %vm593_vm0, %v775_v23  ;;  %495 = vst.msk [vmem:[#allocation2 + $0xf0] sm:$0xff] %vm464_vm2, %v7361_v6  ;;  %496 = vst.msk [vmem:[#allocation2 + $0xf8] sm:$0xff] %vm464_vm2, %v7361_v6 }
  0x7e   : > { %6591 = vmatprep.subr.msk.mxu1 %vm593_vm0, %v774_v25  ;;  %497 = vst.msk [vmem:[#allocation2 + $0x100] sm:$0xff] %vm464_vm2, %v7361_v6  ;;  %498 = vst.msk [vmem:[#allocation2 + $0x108] sm:$0xff] %vm464_vm2, %v7361_v6 }
  0x7f   : > { %6536 = vmatpush3.xpose.msk.msra.mxu0 %vm593_vm0, %v758_v24  ;;  %499 = vst.msk [vmem:[#allocation2 + $0x110] sm:$0xff] %vm464_vm2, %v7361_v6  ;;  %500 = vst.msk [vmem:[#allocation2 + $0x118] sm:$0xff] %vm464_vm2, %v7361_v6  ;;  %v7362_v24 = vmov 0  }
  0x80   : > { %6537 = vmatprep.subr.msk.mxu0 %vm593_vm0, %v757_v26  ;;  %501 = vst.msk [vmem:[#allocation2 + $0x120] sm:$0xff] %vm464_vm2, %v7361_v6  ;;  %502 = vst.msk [vmem:[#allocation2 + $0x128] sm:$0xff] %vm464_vm2, %v7361_v6  ;;  %6919 = vset.pattern.permute.xlu1 %v7362_v24 }
  0x81   : > { %6592 = vmatpush3.xpose.msk.msra.mxu1 %vm593_vm0, %v774_v25  ;;  %503 = vst.msk [vmem:[#allocation2 + $0x130] sm:$0xff] %vm464_vm2, %v7361_v6  ;;  %504 = vst.msk [vmem:[#allocation2 + $0x138] sm:$0xff] %vm464_vm2, %v7361_v6  ;;  %6920 = vset.pattern.permute.xlu0 %v7362_v24 }
  0x82   : > { %6593 = vmatprep.subr.msk.mxu1 %vm593_vm0, %v773_v27  ;;  %505 = vst.msk [vmem:[#allocation2 + $0x140] sm:$0xff] %vm464_vm2, %v7361_v6  ;;  %506 = vst.msk [vmem:[#allocation2 + $0x148] sm:$0xff] %vm464_vm2, %v7361_v6 }
  0x83   : > { %6538 = vmatpush3.xpose.msk.msra.mxu0 %vm593_vm0, %v757_v26  ;;  %507 = vst.msk [vmem:[#allocation2 + $0x150] sm:$0xff] %vm464_vm2, %v7361_v6  ;;  %508 = vst.msk [vmem:[#allocation2 + $0x158] sm:$0xff] %vm464_vm2, %v7361_v6 }
  0x84   : > { %6539 = vmatprep.subr.msk.mxu0 %vm593_vm0, %v756_v28  ;;  %509 = vst.msk [vmem:[#allocation2 + $0x160] sm:$0xff] %vm464_vm2, %v7361_v6  ;;  %510 = vst.msk [vmem:[#allocation2 + $0x168] sm:$0xff] %vm464_vm2, %v7361_v6 }
  0x85   : > { %6594 = vmatpush3.xpose.msk.msra.mxu1 %vm593_vm0, %v773_v27  ;;  %511 = vst.msk [vmem:[#allocation2 + $0x170] sm:$0xff] %vm464_vm2, %v7361_v6  ;;  %512 = vst.msk [vmem:[#allocation2 + $0x178] sm:$0xff] %vm464_vm2, %v7361_v6 }
  0x86   : > { %6595 = vmatprep.subr.msk.mxu1 %vm593_vm0, %v772_v29  ;;  %513 = vst.msk [vmem:[#allocation2 + $0x180] sm:$0xff] %vm464_vm2, %v7361_v6  ;;  %514 = vst.msk [vmem:[#allocation2 + $0x188] sm:$0xff] %vm464_vm2, %v7361_v6 }
  0x87   : > { %6540 = vmatpush3.xpose.msk.msra.mxu0 %vm593_vm0, %v756_v28  ;;  %515 = vst.msk [vmem:[#allocation2 + $0x190] sm:$0xff] %vm464_vm2, %v7361_v6  ;;  %516 = vst.msk [vmem:[#allocation2 + $0x198] sm:$0xff] %vm464_vm2, %v7361_v6 }
  0x88   : > { %6541 = vmatprep.subr.msk.mxu0 %vm593_vm0, %v755_v30  ;;  %517 = vst.msk [vmem:[#allocation2 + $0x1a0] sm:$0xff] %vm464_vm2, %v7361_v6  ;;  %518 = vst.msk [vmem:[#allocation2 + $0x1a8] sm:$0xff] %vm464_vm2, %v7361_v6 }
  0x89   : > { %6596 = vmatpush3.xpose.msk.msra.mxu1 %vm593_vm0, %v772_v29  ;;  %519 = vst.msk [vmem:[#allocation2 + $0x1b0] sm:$0xff] %vm464_vm2, %v7361_v6  ;;  %520 = vst.msk [vmem:[#allocation2 + $0x1b8] sm:$0xff] %vm464_vm2, %v7361_v6 }
  0x8a   : > { %6597 = vmatprep.subr.msk.mxu1 %vm593_vm0, %v771_v31  ;;  %521 = vst.msk [vmem:[#allocation2 + $0x1c0] sm:$0xff] %vm464_vm2, %v7361_v6  ;;  %522 = vst.msk [vmem:[#allocation2 + $0x1c8] sm:$0xff] %vm464_vm2, %v7361_v6 }
  0x8b   : > { %6542 = vmatpush3.xpose.msk.msra.mxu0 %vm593_vm0, %v755_v30  ;;  %523 = vst.msk [vmem:[#allocation2 + $0x1d0] sm:$0xff] %vm464_vm2, %v7361_v6  ;;  %524 = vst.msk [vmem:[#allocation2 + $0x1d8] sm:$0xff] %vm464_vm2, %v7361_v6 }
  0x8c   : > { %6543 = vmatprep.subr.msk.mxu0 %vm593_vm0, %v754_v32  ;;  %525 = vst.msk [vmem:[#allocation2 + $0x1e0] sm:$0xff] %vm464_vm2, %v7361_v6  ;;  %526 = vst.msk [vmem:[#allocation2 + $0x1e8] sm:$0xff] %vm464_vm2, %v7361_v6 }
  0x8d   : > { %6598 = vmatpush3.xpose.msk.msra.mxu1 %vm593_vm0, %v771_v31  ;;  %527 = vst.msk [vmem:[#allocation2 + $0x1f0] sm:$0xff] %vm464_vm2, %v7361_v6  ;;  %528 = vst.msk [vmem:[#allocation2 + $0x1f8] sm:$0xff] %vm464_vm2, %v7361_v6 }
  0x8e   : > { %6599 = vmatprep.subr.msk.mxu1 %vm593_vm0, %v770_v33 }
  0x8f   : > { %6544 = vmatpush3.xpose.msk.msra.mxu0 %vm593_vm0, %v754_v32 }
  0x91   : > { %6600 = vmatpush3.xpose.msk.msra.mxu1 %vm593_vm0, %v770_v33 }
  0x92   : > { %6546 = vmatmul.mubr.msk.f32.vlgmr.msra.gmra.mxu0 %vm593_vm0, %v691_v34 }
  0x93   : > { %6548 = vmatprep.mubr.msk.f32.mxu0 %vm593_vm0, %v692_v36 }
  0x94   : > { %6602 = vmatmul.mubr.msk.f32.vlgmr.msra.gmra.mxu1 %vm593_vm0, %v707_v35  ;;  %v7363_v35 = vmov 0.0  }
  0x95   : > { %6604 = vmatprep.mubr.msk.f32.mxu1 %vm593_vm0, %v708_v37  ;;  %611 = vst.msk [vmem:[#allocation4 + $0x88] sm:$0xff] %vm593_vm0, %v7363_v35  ;;  %594 = vst.msk [vmem:[#allocation4] sm:$0xff] %vm593_vm0, %v7363_v35 }
  0x96   : > { %6549 = vmatmul.mubr.msk.f32.gmra.mxu0 %vm593_vm0, %v693_v38  ;;  %529 = vst.msk [vmem:[#allocation3] sm:$0xff] %vm464_vm2, %v7363_v35  ;;  %530 = vst.msk [vmem:[#allocation3 + $0x8] sm:$0xff] %vm464_vm2, %v7363_v35 }
  0x97   : > { %6551 = vmatprep.mubr.msk.f32.mxu0 %vm593_vm0, %v694_v40  ;;  %531 = vst.msk [vmem:[#allocation3 + $0x10] sm:$0xff] %vm464_vm2, %v7363_v35  ;;  %532 = vst.msk [vmem:[#allocation3 + $0x18] sm:$0xff] %vm464_vm2, %v7363_v35 }
  0x98   : > { %6605 = vmatmul.mubr.msk.f32.gmra.mxu1 %vm593_vm0, %v709_v39  ;;  %533 = vst.msk [vmem:[#allocation3 + $0x20] sm:$0xff] %vm464_vm2, %v7363_v35  ;;  %534 = vst.msk [vmem:[#allocation3 + $0x28] sm:$0xff] %vm464_vm2, %v7363_v35 }
  0x99   : > { %6607 = vmatprep.mubr.msk.f32.mxu1 %vm593_vm0, %v710_v41  ;;  %535 = vst.msk [vmem:[#allocation3 + $0x30] sm:$0xff] %vm464_vm2, %v7363_v35  ;;  %536 = vst.msk [vmem:[#allocation3 + $0x38] sm:$0xff] %vm464_vm2, %v7363_v35 }
  0x9a   : > { %6552 = vmatmul.mubr.msk.f32.gmra.mxu0 %vm593_vm0, %v695_v42  ;;  %537 = vst.msk [vmem:[#allocation3 + $0x40] sm:$0xff] %vm464_vm2, %v7363_v35  ;;  %538 = vst.msk [vmem:[#allocation3 + $0x48] sm:$0xff] %vm464_vm2, %v7363_v35 }
  0x9b   : > { %6554 = vmatprep.mubr.msk.f32.mxu0 %vm593_vm0, %v696_v44  ;;  %539 = vst.msk [vmem:[#allocation3 + $0x50] sm:$0xff] %vm464_vm2, %v7363_v35  ;;  %540 = vst.msk [vmem:[#allocation3 + $0x58] sm:$0xff] %vm464_vm2, %v7363_v35 }
  0x9c   : > { %6608 = vmatmul.mubr.msk.f32.gmra.mxu1 %vm593_vm0, %v711_v43  ;;  %541 = vst.msk [vmem:[#allocation3 + $0x60] sm:$0xff] %vm464_vm2, %v7363_v35  ;;  %542 = vst.msk [vmem:[#allocation3 + $0x68] sm:$0xff] %vm464_vm2, %v7363_v35 }
  0x9d   : > { %6610 = vmatprep.mubr.msk.f32.mxu1 %vm593_vm0, %v712_v45  ;;  %543 = vst.msk [vmem:[#allocation3 + $0x70] sm:$0xff] %vm464_vm2, %v7363_v35  ;;  %544 = vst.msk [vmem:[#allocation3 + $0x78] sm:$0xff] %vm464_vm2, %v7363_v35 }
  0x9e   : > { %6555 = vmatmul.mubr.msk.f32.gmra.mxu0 %vm593_vm0, %v697_v46  ;;  %545 = vst.msk [vmem:[#allocation3 + $0x80] sm:$0xff] %vm464_vm2, %v7363_v35  ;;  %546 = vst.msk [vmem:[#allocation3 + $0x88] sm:$0xff] %vm464_vm2, %v7363_v35 }
  0x9f   : > { %6557 = vmatprep.mubr.msk.f32.mxu0 %vm593_vm0, %v698_v48  ;;  %547 = vst.msk [vmem:[#allocation3 + $0x90] sm:$0xff] %vm464_vm2, %v7363_v35  ;;  %548 = vst.msk [vmem:[#allocation3 + $0x98] sm:$0xff] %vm464_vm2, %v7363_v35 }
  0xa0   : > { %6611 = vmatmul.mubr.msk.f32.gmra.mxu1 %vm593_vm0, %v713_v47  ;;  %549 = vst.msk [vmem:[#allocation3 + $0xa0] sm:$0xff] %vm464_vm2, %v7363_v35  ;;  %550 = vst.msk [vmem:[#allocation3 + $0xa8] sm:$0xff] %vm464_vm2, %v7363_v35 }
  0xa1   : > { %6613 = vmatprep.mubr.msk.f32.mxu1 %vm593_vm0, %v714_v49  ;;  %551 = vst.msk [vmem:[#allocation3 + $0xb0] sm:$0xff] %vm464_vm2, %v7363_v35  ;;  %552 = vst.msk [vmem:[#allocation3 + $0xb8] sm:$0xff] %vm464_vm2, %v7363_v35 }
  0xa2   : > { %6558 = vmatmul.mubr.msk.f32.gmra.mxu0 %vm593_vm0, %v699_v50  ;;  %553 = vst.msk [vmem:[#allocation3 + $0xc0] sm:$0xff] %vm464_vm2, %v7363_v35  ;;  %554 = vst.msk [vmem:[#allocation3 + $0xc8] sm:$0xff] %vm464_vm2, %v7363_v35 }
  0xa3   : > { %6560 = vmatprep.mubr.msk.f32.mxu0 %vm593_vm0, %v700_v52  ;;  %555 = vst.msk [vmem:[#allocation3 + $0xd0] sm:$0xff] %vm464_vm2, %v7363_v35  ;;  %556 = vst.msk [vmem:[#allocation3 + $0xd8] sm:$0xff] %vm464_vm2, %v7363_v35 }
  0xa4   : > { %6614 = vmatmul.mubr.msk.f32.gmra.mxu1 %vm593_vm0, %v715_v51  ;;  %557 = vst.msk [vmem:[#allocation3 + $0xe0] sm:$0xff] %vm464_vm2, %v7363_v35  ;;  %558 = vst.msk [vmem:[#allocation3 + $0xe8] sm:$0xff] %vm464_vm2, %v7363_v35 }
  0xa5   : > { %6616 = vmatprep.mubr.msk.f32.mxu1 %vm593_vm0, %v716_v53  ;;  %559 = vst.msk [vmem:[#allocation3 + $0xf0] sm:$0xff] %vm464_vm2, %v7363_v35  ;;  %560 = vst.msk [vmem:[#allocation3 + $0xf8] sm:$0xff] %vm464_vm2, %v7363_v35 }
  0xa6   : > { %6561 = vmatmul.mubr.msk.f32.gmra.mxu0 %vm593_vm0, %v701_v54  ;;  %561 = vst.msk [vmem:[#allocation3 + $0x100] sm:$0xff] %vm464_vm2, %v7363_v35  ;;  %562 = vst.msk [vmem:[#allocation3 + $0x108] sm:$0xff] %vm464_vm2, %v7363_v35 }
  0xa7   : > { %6563 = vmatprep.mubr.msk.f32.mxu0 %vm593_vm0, %v702_v56  ;;  %563 = vst.msk [vmem:[#allocation3 + $0x110] sm:$0xff] %vm464_vm2, %v7363_v35  ;;  %564 = vst.msk [vmem:[#allocation3 + $0x118] sm:$0xff] %vm464_vm2, %v7363_v35 }
  0xa8   : > { %6617 = vmatmul.mubr.msk.f32.gmra.mxu1 %vm593_vm0, %v717_v55  ;;  %565 = vst.msk [vmem:[#allocation3 + $0x120] sm:$0xff] %vm464_vm2, %v7363_v35  ;;  %566 = vst.msk [vmem:[#allocation3 + $0x128] sm:$0xff] %vm464_vm2, %v7363_v35 }
  0xa9   : > { %6619 = vmatprep.mubr.msk.f32.mxu1 %vm593_vm0, %v718_v57  ;;  %567 = vst.msk [vmem:[#allocation3 + $0x130] sm:$0xff] %vm464_vm2, %v7363_v35  ;;  %568 = vst.msk [vmem:[#allocation3 + $0x138] sm:$0xff] %vm464_vm2, %v7363_v35 }
  0xaa   : > { %6564 = vmatmul.mubr.msk.f32.gmra.mxu0 %vm593_vm0, %v703_v58  ;;  %569 = vst.msk [vmem:[#allocation3 + $0x140] sm:$0xff] %vm464_vm2, %v7363_v35  ;;  %570 = vst.msk [vmem:[#allocation3 + $0x148] sm:$0xff] %vm464_vm2, %v7363_v35 }
  0xab   : > { %6566 = vmatprep.mubr.msk.f32.mxu0 %vm593_vm0, %v704_v60  ;;  %571 = vst.msk [vmem:[#allocation3 + $0x150] sm:$0xff] %vm464_vm2, %v7363_v35  ;;  %572 = vst.msk [vmem:[#allocation3 + $0x158] sm:$0xff] %vm464_vm2, %v7363_v35 }
  0xac   : > { %6620 = vmatmul.mubr.msk.f32.gmra.mxu1 %vm593_vm0, %v719_v59  ;;  %573 = vst.msk [vmem:[#allocation3 + $0x160] sm:$0xff] %vm464_vm2, %v7363_v35  ;;  %574 = vst.msk [vmem:[#allocation3 + $0x168] sm:$0xff] %vm464_vm2, %v7363_v35 }
  0xad   : > { %6622 = vmatprep.mubr.msk.f32.mxu1 %vm593_vm0, %v720_v61  ;;  %575 = vst.msk [vmem:[#allocation3 + $0x170] sm:$0xff] %vm464_vm2, %v7363_v35  ;;  %576 = vst.msk [vmem:[#allocation3 + $0x178] sm:$0xff] %vm464_vm2, %v7363_v35 }
  0xae   : > { %6567 = vmatmul.mubr.msk.f32.gmra.mxu0 %vm593_vm0, %v705_v62  ;;  %577 = vst.msk [vmem:[#allocation3 + $0x180] sm:$0xff] %vm464_vm2, %v7363_v35  ;;  %578 = vst.msk [vmem:[#allocation3 + $0x188] sm:$0xff] %vm464_vm2, %v7363_v35 }
  0xaf   : > { %579 = vst.msk [vmem:[#allocation3 + $0x190] sm:$0xff] %vm464_vm2, %v7363_v35  ;;  %580 = vst.msk [vmem:[#allocation3 + $0x198] sm:$0xff] %vm464_vm2, %v7363_v35 }
  0xb0   : > { %6623 = vmatmul.mubr.msk.f32.gmra.mxu1 %vm593_vm0, %v721_v63  ;;  %581 = vst.msk [vmem:[#allocation3 + $0x1a0] sm:$0xff] %vm464_vm2, %v7363_v35  ;;  %582 = vst.msk [vmem:[#allocation3 + $0x1a8] sm:$0xff] %vm464_vm2, %v7363_v35 }
  0xb1   : > { %583 = vst.msk [vmem:[#allocation3 + $0x1b0] sm:$0xff] %vm464_vm2, %v7363_v35  ;;  %584 = vst.msk [vmem:[#allocation3 + $0x1b8] sm:$0xff] %vm464_vm2, %v7363_v35 }
  0xb2   : > { %585 = vst.msk [vmem:[#allocation3 + $0x1c0] sm:$0xff] %vm464_vm2, %v7363_v35  ;;  %586 = vst.msk [vmem:[#allocation3 + $0x1c8] sm:$0xff] %vm464_vm2, %v7363_v35 }
  0xb3   : > { %587 = vst.msk [vmem:[#allocation3 + $0x1d0] sm:$0xff] %vm464_vm2, %v7363_v35  ;;  %588 = vst.msk [vmem:[#allocation3 + $0x1d8] sm:$0xff] %vm464_vm2, %v7363_v35 }
  0xb4   : > { %589 = vst.msk [vmem:[#allocation3 + $0x1e0] sm:$0xff] %vm464_vm2, %v7363_v35  ;;  %590 = vst.msk [vmem:[#allocation3 + $0x1e8] sm:$0xff] %vm464_vm2, %v7363_v35 }
  0xb5   : > { %591 = vst.msk [vmem:[#allocation3 + $0x1f0] sm:$0xff] %vm464_vm2, %v7363_v35  ;;  %592 = vst.msk [vmem:[#allocation3 + $0x1f8] sm:$0xff] %vm464_vm2, %v7363_v35 }
  0xb6   : > { %595 = vst.msk [vmem:[#allocation4 + $0x8] sm:$0xff] %vm593_vm0, %v7363_v35  ;;  %596 = vst.msk [vmem:[#allocation4 + $0x10] sm:$0xff] %vm593_vm0, %v7363_v35 }
  0xb7   : > { %597 = vst.msk [vmem:[#allocation4 + $0x18] sm:$0xff] %vm593_vm0, %v7363_v35  ;;  %598 = vst.msk [vmem:[#allocation4 + $0x20] sm:$0xff] %vm593_vm0, %v7363_v35 }
  0xb8   : > { %599 = vst.msk [vmem:[#allocation4 + $0x28] sm:$0xff] %vm593_vm0, %v7363_v35  ;;  %600 = vst.msk [vmem:[#allocation4 + $0x30] sm:$0xff] %vm593_vm0, %v7363_v35 }
  0xb9   : > { %601 = vst.msk [vmem:[#allocation4 + $0x38] sm:$0xff] %vm593_vm0, %v7363_v35  ;;  %602 = vst.msk [vmem:[#allocation4 + $0x40] sm:$0xff] %vm593_vm0, %v7363_v35 }
  0xba   : > { %603 = vst.msk [vmem:[#allocation4 + $0x48] sm:$0xff] %vm593_vm0, %v7363_v35  ;;  %604 = vst.msk [vmem:[#allocation4 + $0x50] sm:$0xff] %vm593_vm0, %v7363_v35 }
  0xbb   : > { %605 = vst.msk [vmem:[#allocation4 + $0x58] sm:$0xff] %vm593_vm0, %v7363_v35  ;;  %606 = vst.msk [vmem:[#allocation4 + $0x60] sm:$0xff] %vm593_vm0, %v7363_v35 }
  0xbc   : > { %607 = vst.msk [vmem:[#allocation4 + $0x68] sm:$0xff] %vm593_vm0, %v7363_v35  ;;  %608 = vst.msk [vmem:[#allocation4 + $0x70] sm:$0xff] %vm593_vm0, %v7363_v35 }
  0xbd   : > { %609 = vst.msk [vmem:[#allocation4 + $0x78] sm:$0xff] %vm593_vm0, %v7363_v35  ;;  %610 = vst.msk [vmem:[#allocation4 + $0x80] sm:$0xff] %vm593_vm0, %v7363_v35 }
  0xbe   : > { %612 = vst.msk [vmem:[#allocation4 + $0x90] sm:$0xff] %vm593_vm0, %v7363_v35  ;;  %613 = vst.msk [vmem:[#allocation4 + $0x98] sm:$0xff] %vm593_vm0, %v7363_v35 }
  0xbf   : > { %614 = vst.msk [vmem:[#allocation4 + $0xa0] sm:$0xff] %vm593_vm0, %v7363_v35  ;;  %615 = vst.msk [vmem:[#allocation4 + $0xa8] sm:$0xff] %vm593_vm0, %v7363_v35 }
  0xc0   : > { %616 = vst.msk [vmem:[#allocation4 + $0xb0] sm:$0xff] %vm593_vm0, %v7363_v35  ;;  %617 = vst.msk [vmem:[#allocation4 + $0xb8] sm:$0xff] %vm593_vm0, %v7363_v35 }
  0xc1   : > { %618 = vst.msk [vmem:[#allocation4 + $0xc0] sm:$0xff] %vm593_vm0, %v7363_v35  ;;  %619 = vst.msk [vmem:[#allocation4 + $0xc8] sm:$0xff] %vm593_vm0, %v7363_v35 }
  0xc2   : > { %620 = vst.msk [vmem:[#allocation4 + $0xd0] sm:$0xff] %vm593_vm0, %v7363_v35  ;;  %621 = vst.msk [vmem:[#allocation4 + $0xd8] sm:$0xff] %vm593_vm0, %v7363_v35 }
  0xc3   : > { %622 = vst.msk [vmem:[#allocation4 + $0xe0] sm:$0xff] %vm593_vm0, %v7363_v35  ;;  %623 = vst.msk [vmem:[#allocation4 + $0xe8] sm:$0xff] %vm593_vm0, %v7363_v35 }
  0xc4   : > { %624 = vst.msk [vmem:[#allocation4 + $0xf0] sm:$0xff] %vm593_vm0, %v7363_v35  ;;  %625 = vst.msk [vmem:[#allocation4 + $0xf8] sm:$0xff] %vm593_vm0, %v7363_v35 }
  0xc5   : > { %626 = vst.msk [vmem:[#allocation4 + $0x100] sm:$0xff] %vm593_vm0, %v7363_v35  ;;  %627 = vst.msk [vmem:[#allocation4 + $0x108] sm:$0xff] %vm593_vm0, %v7363_v35 }
  0xc6   : > { %628 = vst.msk [vmem:[#allocation4 + $0x110] sm:$0xff] %vm593_vm0, %v7363_v35  ;;  %629 = vst.msk [vmem:[#allocation4 + $0x118] sm:$0xff] %vm593_vm0, %v7363_v35 }
  0xc7   : > { %630 = vst.msk [vmem:[#allocation4 + $0x120] sm:$0xff] %vm593_vm0, %v7363_v35  ;;  %631 = vst.msk [vmem:[#allocation4 + $0x128] sm:$0xff] %vm593_vm0, %v7363_v35 }
  0xc8   : > { %632 = vst.msk [vmem:[#allocation4 + $0x130] sm:$0xff] %vm593_vm0, %v7363_v35  ;;  %633 = vst.msk [vmem:[#allocation4 + $0x138] sm:$0xff] %vm593_vm0, %v7363_v35 }
  0xc9   : > { %634 = vst.msk [vmem:[#allocation4 + $0x140] sm:$0xff] %vm593_vm0, %v7363_v35  ;;  %635 = vst.msk [vmem:[#allocation4 + $0x148] sm:$0xff] %vm593_vm0, %v7363_v35 }
  0xca   : > { %636 = vst.msk [vmem:[#allocation4 + $0x150] sm:$0xff] %vm593_vm0, %v7363_v35  ;;  %637 = vst.msk [vmem:[#allocation4 + $0x158] sm:$0xff] %vm593_vm0, %v7363_v35 }
  0xcb   : > { %638 = vst.msk [vmem:[#allocation4 + $0x160] sm:$0xff] %vm593_vm0, %v7363_v35  ;;  %639 = vst.msk [vmem:[#allocation4 + $0x168] sm:$0xff] %vm593_vm0, %v7363_v35 }
  0xcc   : > { %640 = vst.msk [vmem:[#allocation4 + $0x170] sm:$0xff] %vm593_vm0, %v7363_v35  ;;  %641 = vst.msk [vmem:[#allocation4 + $0x178] sm:$0xff] %vm593_vm0, %v7363_v35 }
  0xcd   : > { %642 = vst.msk [vmem:[#allocation4 + $0x180] sm:$0xff] %vm593_vm0, %v7363_v35  ;;  %643 = vst.msk [vmem:[#allocation4 + $0x188] sm:$0xff] %vm593_vm0, %v7363_v35 }
  0xce   : > { %644 = vst.msk [vmem:[#allocation4 + $0x190] sm:$0xff] %vm593_vm0, %v7363_v35  ;;  %645 = vst.msk [vmem:[#allocation4 + $0x198] sm:$0xff] %vm593_vm0, %v7363_v35 }
  0xcf   : > { %646 = vst.msk [vmem:[#allocation4 + $0x1a0] sm:$0xff] %vm593_vm0, %v7363_v35  ;;  %647 = vst.msk [vmem:[#allocation4 + $0x1a8] sm:$0xff] %vm593_vm0, %v7363_v35 }
  0xd0   : > { %648 = vst.msk [vmem:[#allocation4 + $0x1b0] sm:$0xff] %vm593_vm0, %v7363_v35  ;;  %649 = vst.msk [vmem:[#allocation4 + $0x1b8] sm:$0xff] %vm593_vm0, %v7363_v35 }
  0xd1   : > { %650 = vst.msk [vmem:[#allocation4 + $0x1c0] sm:$0xff] %vm593_vm0, %v7363_v35  ;;  %651 = vst.msk [vmem:[#allocation4 + $0x1c8] sm:$0xff] %vm593_vm0, %v7363_v35 }
  0xd2   : > { %652 = vst.msk [vmem:[#allocation4 + $0x1d0] sm:$0xff] %vm593_vm0, %v7363_v35  ;;  %653 = vst.msk [vmem:[#allocation4 + $0x1d8] sm:$0xff] %vm593_vm0, %v7363_v35 }
  0xd3   : > { %654 = vst.msk [vmem:[#allocation4 + $0x1e0] sm:$0xff] %vm593_vm0, %v7363_v35  ;;  %655 = vst.msk [vmem:[#allocation4 + $0x1e8] sm:$0xff] %vm593_vm0, %v7363_v35 }
  0xd4   : > { %656 = vst.msk [vmem:[#allocation4 + $0x1f0] sm:$0xff] %vm593_vm0, %v7363_v35  ;;  %657 = vst.msk [vmem:[#allocation4 + $0x1f8] sm:$0xff] %vm593_vm0, %v7363_v35 }
 0x112   : > { %v6435_v2 = vpop.f32.mrf.mxu0 }
 0x113   : > { %v6491_v3 = vpop.f32.mrf.mxu1  ;;  %v7776_v5 = vsel %vm1820_vm1, %v6435_v2, -1e+30 }
 0x114   : > { %v7772_v4 = vsel %vm1820_vm1, %v6491_v3, -1e+30  ;;  %1951 = vmax.xlane.f32.xlu0 %v7776_v5  ;;  %v1013_v7 = vpop.f32.mrf.mxu0 }
 0x115   : > { %1983 = vmax.xlane.f32.xlu1 %v7772_v4  ;;  %v1254_v8 = vpop.f32.mrf.mxu1  ;;  %v7910_v11 = vsel %vm1820_vm1, %v1013_v7, -1e+30 }
 0x116   : > { %v6438_v9 = vpop.f32.mrf.mxu0  ;;  %v7924_v17 = vsel %vm1820_vm1, %v1254_v8, -1e+30 }
 0x117   : > { %v6494_v10 = vpop.f32.mrf.mxu1  ;;  %v7914_v12 = vsel %vm1820_vm1, %v6438_v9, -1e+30 }
 0x118   : > { %1949 = vmax.xlane.f32.xlu0 %v7910_v11  ;;  %v1023_v13 = vpop.f32.mrf.mxu0  ;;  %v7920_v14 = vsel %vm1820_vm1, %v6494_v10, -1e+30 }
 0x119   : > { %1955 = vmax.xlane.f32.xlu1 %v7914_v12  ;;  %v1264_v15 = vpop.f32.mrf.mxu1  ;;  %v7934_v21 = vsel %vm1820_vm1, %v1023_v13, -1e+30 }
 0x11a   : > { %v6441_v16 = vpop.f32.mrf.mxu0  ;;  %v7930_v18 = vsel %vm1820_vm1, %v1264_v15, -1e+30 }
 0x11b   : > { %10768 = vst [vmem:[#allocation6_spill] sm:$0xff] %v7930_v18  ;;  %v6497_v20 = vpop.f32.mrf.mxu1  ;;  %v7940_v22 = vsel %vm1820_vm1, %v6441_v16, -1e+30 }
 0x11c   : > { %1981 = vmax.xlane.f32.xlu0 %v7924_v17  ;;  %v1033_v19 = vpop.f32.mrf.mxu0  ;;  %10769 = vst [vmem:[#allocation7_spill] sm:$0xff] %v7940_v22  ;;  %v7950_v27 = vsel %vm1820_vm1, %v6497_v20, -1e+30 }
 0x11d   : > { %1987 = vmax.xlane.f32.xlu1 %v7920_v14  ;;  %v7944_v23 = vsel %vm1820_vm1, %v1033_v19, -1e+30  ;;  %v1274_v25 = vpop.f32.mrf.mxu1  ;;  %10771 = vst [vmem:[#allocation9_spill] sm:$0xff] %v7950_v27 }
 0x11e   : > { %10770 = vst [vmem:[#allocation8_spill] sm:$0xff] %v7944_v23  ;;  %v6444_v26 = vpop.f32.mrf.mxu0  ;;  %v7954_v28 = vsel %vm1820_vm1, %v1274_v25, -1e+30 }
 0x11f   : > { %10772 = vst [vmem:[#allocation10_spill] sm:$0xff] %v7954_v28  ;;  %v7956_v30 = vpop.f32.mrf.mxu1  ;;  %v7962_v31 = vsel %vm1820_vm1, %v6444_v26, -1e+30 }
 0x120   : > { %1985 = vmax.xlane.f32.xlu0 %v7930_v18  ;;  %v1043_v29 = vpop.f32.mrf.mxu0  ;;  %10773 = vst [vmem:[#allocation11_spill] sm:$0xff] %v7962_v31  ;;  %v8233_v36 = vsel %vm1820_vm1, %v7956_v30, -1e+30  ;;  %v8799_v18 = vld [vmem:[#allocation2 + $0x108] sm:$0xff] }
 0x121   : > { %1953 = vmax.xlane.f32.xlu1 %v7934_v21  ;;  %v7966_v32 = vsel %vm1820_vm1, %v1043_v29, -1e+30  ;;  %v7968_v33 = vpop.f32.mrf.mxu1  ;;  %10775 = vst [vmem:[#allocation13_spill] sm:$0xff] %v8233_v36  ;;  %10831 = vst [vmem:[#allocation69_spill] sm:$0xff] %v8799_v18 }
 0x122   : > { %10774 = vst [vmem:[#allocation12_spill] sm:$0xff] %v7966_v32  ;;  %v7970_v34 = vpop.f32.mrf.mxu0  ;;  %v8238_v37 = vsel %vm1820_vm1, %v7968_v33, -1e+30 }
 0x123   : > { %10776 = vst [vmem:[#allocation14_spill] sm:$0xff] %v8238_v37  ;;  %v6503_v39 = vpop.f32.mrf.mxu1  ;;  %v8245_v40 = vsel %vm1820_vm1, %v7970_v34, -1e+30 }
 0x124   : > { %1957 = vmax.xlane.f32.xlu0 %v7944_v23  ;;  %v1053_v38 = vpop.f32.mrf.mxu0  ;;  %10777 = vst [vmem:[#allocation15_spill] sm:$0xff] %v8245_v40  ;;  %v8255_v44 = vsel %vm1820_vm1, %v6503_v39, -1e+30 }
 0x125   : > { %1959 = vmax.xlane.f32.xlu1 %v7940_v22  ;;  %v8249_v41 = vsel %vm1820_vm1, %v1053_v38, -1e+30  ;;  %v1294_v42 = vpop.f32.mrf.mxu1  ;;  %10779 = vst [vmem:[#allocation17_spill] sm:$0xff] %v8255_v44 }
 0x126   : > { %10778 = vst [vmem:[#allocation16_spill] sm:$0xff] %v8249_v41  ;;  %v6450_v43 = vpop.f32.mrf.mxu0  ;;  %v8259_v45 = vsel %vm1820_vm1, %v1294_v42, -1e+30 }
 0x127   : > { %10780 = vst [vmem:[#allocation18_spill] sm:$0xff] %v8259_v45  ;;  %v6506_v47 = vpop.f32.mrf.mxu1  ;;  %v8265_v48 = vsel %vm1820_vm1, %v6450_v43, -1e+30 }
 0x128   : > { %1989 = vmax.xlane.f32.xlu0 %v7954_v28  ;;  %v1063_v46 = vpop.f32.mrf.mxu0  ;;  %10781 = vst [vmem:[#allocation19_spill] sm:$0xff] %v8265_v48  ;;  %v8275_v52 = vsel %vm1820_vm1, %v6506_v47, -1e+30 }
 0x129   : > { %1991 = vmax.xlane.f32.xlu1 %v7950_v27  ;;  %v8269_v49 = vsel %vm1820_vm1, %v1063_v46, -1e+30  ;;  %v1304_v50 = vpop.f32.mrf.mxu1  ;;  %10783 = vst [vmem:[#allocation21_spill] sm:$0xff] %v8275_v52 }
 0x12a   : > { %10782 = vst [vmem:[#allocation20_spill] sm:$0xff] %v8269_v49  ;;  %v6453_v51 = vpop.f32.mrf.mxu0  ;;  %v8279_v53 = vsel %vm1820_vm1, %v1304_v50, -1e+30 }
 0x12b   : > { %10784 = vst [vmem:[#allocation22_spill] sm:$0xff] %v8279_v53  ;;  %v6509_v55 = vpop.f32.mrf.mxu1  ;;  %v8285_v56 = vsel %vm1820_vm1, %v6453_v51, -1e+30 }
 0x12c   : > { %1961 = vmax.xlane.f32.xlu0 %v7966_v32  ;;  %v1073_v54 = vpop.f32.mrf.mxu0  ;;  %10785 = vst [vmem:[#allocation23_spill] sm:$0xff] %v8285_v56  ;;  %v8295_v60 = vsel %vm1820_vm1, %v6509_v55, -1e+30  ;;  %v8757_v32 = vld [vmem:[#allocation2 + $0x70] sm:$0xff] }
 0x12d   : > { %1963 = vmax.xlane.f32.xlu1 %v7962_v31  ;;  %v8289_v57 = vsel %vm1820_vm1, %v1073_v54, -1e+30  ;;  %v1314_v58 = vpop.f32.mrf.mxu1  ;;  %10787 = vst [vmem:[#allocation25_spill] sm:$0xff] %v8295_v60 }
 0x12e   : > { %10786 = vst [vmem:[#allocation24_spill] sm:$0xff] %v8289_v57  ;;  %v6456_v59 = vpop.f32.mrf.mxu0  ;;  %v8299_v61 = vsel %vm1820_vm1, %v1314_v58, -1e+30 }
 0x12f   : > { %10788 = vst [vmem:[#allocation26_spill] sm:$0xff] %v8299_v61  ;;  %v6512_v63 = vpop.f32.mrf.mxu1  ;;  %v8305_v0 = vsel %vm1820_vm1, %v6456_v59, -1e+30 }
 0x130   : > { %1993 = vmax.xlane.f32.xlu0 %v8238_v37  ;;  %v1083_v62 = vpop.f32.mrf.mxu0  ;;  %10789 = vst [vmem:[#allocation27_spill] sm:$0xff] %v8305_v0  ;;  %v8315_v6 = vsel %vm1820_vm1, %v6512_v63, -1e+30 }
 0x131   : > { %1995 = vmax.xlane.f32.xlu1 %v8233_v36  ;;  %v8309_v2 = vsel %vm1820_vm1, %v1083_v62, -1e+30  ;;  %v1324_v3 = vpop.f32.mrf.mxu1  ;;  %10791 = vst [vmem:[#allocation29_spill] sm:$0xff] %v8315_v6  ;;  %v8755_v36 = vld [vmem:[#allocation2 + $0x78] sm:$0xff] }
 0x132   : > { %10790 = vst [vmem:[#allocation28_spill] sm:$0xff] %v8309_v2  ;;  %v8319_v7 = vsel %vm1820_vm1, %v1324_v3, -1e+30 }
 0x133   : > { %10792 = vst [vmem:[#allocation30_spill] sm:$0xff] %v8319_v7 }
 0x134   : > { %1965 = vmax.xlane.f32.xlu0 %v8249_v41  ;;  %v8701_v41 = vld [vmem:[#allocation2 + $0xd8] sm:$0xff] }
 0x135   : > { %1967 = vmax.xlane.f32.xlu1 %v8245_v40 }
 0x138   : > { %1997 = vmax.xlane.f32.xlu0 %v8259_v45  ;;  %v8681_v45 = vld [vmem:[#allocation2 + $0x50] sm:$0xff] }
 0x139   : > { %1999 = vmax.xlane.f32.xlu1 %v8255_v44 }
 0x13c   : > { %1969 = vmax.xlane.f32.xlu0 %v8269_v49  ;;  %v8661_v49 = vld [vmem:[#allocation2 + $0xc0] sm:$0xff] }
 0x13d   : > { %1971 = vmax.xlane.f32.xlu1 %v8265_v48  ;;  %v8679_v48 = vld [vmem:[#allocation2 + $0x58] sm:$0xff] }
 0x140   : > { %2001 = vmax.xlane.f32.xlu0 %v8279_v53  ;;  %v8641_v53 = vld [vmem:[#allocation2 + $0x40] sm:$0xff] }
 0x141   : > { %2003 = vmax.xlane.f32.xlu1 %v8275_v52  ;;  %v8659_v52 = vld [vmem:[#allocation2 + $0xc8] sm:$0xff] }
 0x144   : > { %1973 = vmax.xlane.f32.xlu0 %v8289_v57  ;;  %v802_v57 = vld [vmem:[%s8487_s18 + $0x80] sm:$0xff] }
 0x145   : > { %1975 = vmax.xlane.f32.xlu1 %v8285_v56  ;;  %v8639_v56 = vld [vmem:[#allocation2 + $0x48] sm:$0xff] }
 0x148   : > { %2005 = vmax.xlane.f32.xlu0 %v8299_v61  ;;  %v8623_v61 = vld [vmem:[#allocation2 + $0xb0] sm:$0xff] }
 0x149   : > { %2007 = vmax.xlane.f32.xlu1 %v8295_v60  ;;  %v803_v60 = vld [vmem:[%s8487_s18 + $0x88] sm:$0xff] }
 0x14c   : > { %1977 = vmax.xlane.f32.xlu0 %v8309_v2  ;;  %v8604_v2 = vld [vmem:[#allocation2 + $0x30] sm:$0xff] }
 0x14d   : > { %1979 = vmax.xlane.f32.xlu1 %v8305_v0  ;;  %v8621_v0 = vld [vmem:[#allocation2 + $0xb8] sm:$0xff] }
 0x150   : > { %2009 = vmax.xlane.f32.xlu0 %v8319_v7  ;;  %v805_v7 = vld [vmem:[%s8487_s18 + $0x98] sm:$0xff] }
 0x151   : > { %2011 = vmax.xlane.f32.xlu1 %v8315_v6  ;;  %v8602_v6 = vld [vmem:[#allocation2 + $0x38] sm:$0xff] }
 0x152   : > { %v6547_v8 = vpop.f32.mrf.mxu0 }
 0x153   : > { %v8325_v9 = vsel %vm1820_vm1, %v6547_v8, -1e+30 }
 0x154   : > { %10793 = vst [vmem:[#allocation31_spill] sm:$0xff] %v8325_v9  ;;  %v6603_v10 = vpop.f32.mrf.mxu1  ;;  %v1495_v13 = vpop.f32.mrf.mxu0 }
 0x155   : > { %2015 = vmax.xlane.f32.xlu1 %v8325_v9  ;;  %v8330_v15 = vsel %vm1820_vm1, %v1495_v13, -1e+30  ;;  %v8334_v19 = vsel %vm1820_vm1, %v6603_v10, -1e+30  ;;  %v791_v9 = vld [vmem:[%s8487_s18 + $0x28] sm:$0xff] }
 0x156   : > { %10794 = vst [vmem:[#allocation32_spill] sm:$0xff] %v8330_v15  ;;  %v1736_v16 = vpop.f32.mrf.mxu1  ;;  %10795 = vst [vmem:[#allocation33_spill] sm:$0xff] %v8334_v19  ;;  %2013 = vmax.xlane.f32.xlu0 %v8330_v15  ;;  %v6550_v20 = vpop.f32.mrf.mxu0 }
 0x157   : > { %v8339_v24 = vsel %vm1820_vm1, %v1736_v16, -1e+30  ;;  %v8344_v29 = vsel %vm1820_vm1, %v6550_v20, -1e+30 }
 0x158   : > { %10796 = vst [vmem:[#allocation34_spill] sm:$0xff] %v8339_v24  ;;  %v1505_v25 = vpop.f32.mrf.mxu0  ;;  %v6606_v26 = vpop.f32.mrf.mxu1  ;;  %10797 = vst [vmem:[#allocation35_spill] sm:$0xff] %v8344_v29 }
 0x159   : > { %2047 = vmax.xlane.f32.xlu1 %v8334_v19  ;;  %v8349_v30 = vsel %vm1820_vm1, %v1505_v25, -1e+30  ;;  %v8354_v35 = vsel %vm1820_vm1, %v6606_v26, -1e+30  ;;  %v806_v19 = vld [vmem:[%s8487_s18 + $0xa0] sm:$0xff] }
 0x15a   : > { %2045 = vmax.xlane.f32.xlu0 %v8339_v24  ;;  %10798 = vst [vmem:[#allocation36_spill] sm:$0xff] %v8349_v30  ;;  %v1746_v33 = vpop.f32.mrf.mxu1  ;;  %v6553_v34 = vpop.f32.mrf.mxu0  ;;  %10799 = vst [vmem:[#allocation37_spill] sm:$0xff] %v8354_v35  ;;  %v792_v24 = vld [vmem:[%s8487_s18 + $0x30] sm:$0xff] }
 0x15b   : > { %v8359_v38 = vsel %vm1820_vm1, %v1746_v33, -1e+30  ;;  %v8364_v43 = vsel %vm1820_vm1, %v6553_v34, -1e+30 }
 0x15c   : > { %10800 = vst [vmem:[#allocation38_spill] sm:$0xff] %v8359_v38  ;;  %v1515_v39 = vpop.f32.mrf.mxu0  ;;  %v6609_v42 = vpop.f32.mrf.mxu1  ;;  %10801 = vst [vmem:[#allocation39_spill] sm:$0xff] %v8364_v43 }
 0x15d   : > { %2019 = vmax.xlane.f32.xlu1 %v8344_v29  ;;  %v8369_v46 = vsel %vm1820_vm1, %v1515_v39, -1e+30  ;;  %v8374_v51 = vsel %vm1820_vm1, %v6609_v42, -1e+30  ;;  %v8582_v29 = vld [vmem:[#allocation2 + $0xa0] sm:$0xff] }
 0x15e   : > { %2017 = vmax.xlane.f32.xlu0 %v8349_v30  ;;  %10802 = vst [vmem:[#allocation40_spill] sm:$0xff] %v8369_v46  ;;  %v1756_v47 = vpop.f32.mrf.mxu1  ;;  %v6556_v50 = vpop.f32.mrf.mxu0  ;;  %10803 = vst [vmem:[#allocation41_spill] sm:$0xff] %v8374_v51  ;;  %v8580_v30 = vld [vmem:[#allocation2 + $0xa8] sm:$0xff] }
 0x15f   : > { %v8379_v54 = vsel %vm1820_vm1, %v1756_v47, -1e+30  ;;  %v8384_v59 = vsel %vm1820_vm1, %v6556_v50, -1e+30 }
 0x160   : > { %10804 = vst [vmem:[#allocation42_spill] sm:$0xff] %v8379_v54  ;;  %v1525_v55 = vpop.f32.mrf.mxu0  ;;  %v6612_v58 = vpop.f32.mrf.mxu1  ;;  %10805 = vst [vmem:[#allocation43_spill] sm:$0xff] %v8384_v59 }
 0x161   : > { %2051 = vmax.xlane.f32.xlu1 %v8354_v35  ;;  %v8389_v62 = vsel %vm1820_vm1, %v1525_v55, -1e+30  ;;  %v8394_v8 = vsel %vm1820_vm1, %v6612_v58, -1e+30  ;;  %v8564_v35 = vld [vmem:[#allocation2 + $0x20] sm:$0xff] }
 0x162   : > { %2049 = vmax.xlane.f32.xlu0 %v8359_v38  ;;  %10806 = vst [vmem:[#allocation44_spill] sm:$0xff] %v8389_v62  ;;  %v1766_v63 = vpop.f32.mrf.mxu1  ;;  %v6559_v3 = vpop.f32.mrf.mxu0  ;;  %10807 = vst [vmem:[#allocation45_spill] sm:$0xff] %v8394_v8  ;;  %v8562_v38 = vld [vmem:[#allocation2 + $0x28] sm:$0xff] }
 0x163   : > { %v8399_v10 = vsel %vm1820_vm1, %v1766_v63, -1e+30  ;;  %v8404_v20 = vsel %vm1820_vm1, %v6559_v3, -1e+30 }
 0x164   : > { %10808 = vst [vmem:[#allocation46_spill] sm:$0xff] %v8399_v10  ;;  %v1535_v13 = vpop.f32.mrf.mxu0  ;;  %v6615_v16 = vpop.f32.mrf.mxu1  ;;  %10809 = vst [vmem:[#allocation47_spill] sm:$0xff] %v8404_v20 }
 0x165   : > { %2023 = vmax.xlane.f32.xlu1 %v8364_v43  ;;  %v8409_v25 = vsel %vm1820_vm1, %v1535_v13, -1e+30  ;;  %v8414_v34 = vsel %vm1820_vm1, %v6615_v16, -1e+30  ;;  %v808_v43 = vld [vmem:[%s8487_s18 + $0xb0] sm:$0xff] }
 0x166   : > { %2021 = vmax.xlane.f32.xlu0 %v8369_v46  ;;  %10810 = vst [vmem:[#allocation48_spill] sm:$0xff] %v8409_v25  ;;  %v1776_v26 = vpop.f32.mrf.mxu1  ;;  %v6562_v33 = vpop.f32.mrf.mxu0  ;;  %10811 = vst [vmem:[#allocation49_spill] sm:$0xff] %v8414_v34  ;;  %v794_v46 = vld [vmem:[%s8487_s18 + $0x40] sm:$0xff] }
 0x167   : > { %v8419_v39 = vsel %vm1820_vm1, %v1776_v26, -1e+30  ;;  %v8424_v50 = vsel %vm1820_vm1, %v6562_v33, -1e+30 }
 0x168   : > { %10812 = vst [vmem:[#allocation50_spill] sm:$0xff] %v8419_v39  ;;  %v1545_v42 = vpop.f32.mrf.mxu0  ;;  %v6618_v47 = vpop.f32.mrf.mxu1  ;;  %10813 = vst [vmem:[#allocation51_spill] sm:$0xff] %v8424_v50 }
 0x169   : > { %2055 = vmax.xlane.f32.xlu1 %v8374_v51  ;;  %v8429_v55 = vsel %vm1820_vm1, %v1545_v42, -1e+30  ;;  %v8434_v3 = vsel %vm1820_vm1, %v6618_v47, -1e+30  ;;  %v809_v51 = vld [vmem:[%s8487_s18 + $0xb8] sm:$0xff] }
 0x16a   : > { %2053 = vmax.xlane.f32.xlu0 %v8379_v54  ;;  %10814 = vst [vmem:[#allocation52_spill] sm:$0xff] %v8429_v55  ;;  %v1786_v58 = vpop.f32.mrf.mxu1  ;;  %v6565_v63 = vpop.f32.mrf.mxu0  ;;  %10815 = vst [vmem:[#allocation53_spill] sm:$0xff] %v8434_v3  ;;  %v8542_v54 = vld [vmem:[#allocation2 + $0x90] sm:$0xff] }
 0x16b   : > { %v8439_v13 = vsel %vm1820_vm1, %v1786_v58, -1e+30  ;;  %v8444_v33 = vsel %vm1820_vm1, %v6565_v63, -1e+30 }
 0x16c   : > { %10816 = vst [vmem:[#allocation54_spill] sm:$0xff] %v8439_v13  ;;  %v1555_v16 = vpop.f32.mrf.mxu0  ;;  %v6621_v26 = vpop.f32.mrf.mxu1  ;;  %10817 = vst [vmem:[#allocation55_spill] sm:$0xff] %v8444_v33 }
 0x16d   : > { %2027 = vmax.xlane.f32.xlu1 %v8384_v59  ;;  %v8449_v42 = vsel %vm1820_vm1, %v1555_v16, -1e+30  ;;  %v8454_v58 = vsel %vm1820_vm1, %v6621_v26, -1e+30 }
 0x16e   : > { %2025 = vmax.xlane.f32.xlu0 %v8389_v62  ;;  %10818 = vst [vmem:[#allocation56_spill] sm:$0xff] %v8449_v42  ;;  %v1796_v47 = vpop.f32.mrf.mxu1  ;;  %10819 = vst [vmem:[#allocation57_spill] sm:$0xff] %v8454_v58 }
 0x16f   : > { %v8459_v63 = vsel %vm1820_vm1, %v1796_v47, -1e+30 }
 0x170   : > { %10820 = vst [vmem:[#allocation58_spill] sm:$0xff] %v8459_v63  ;;  %v6624_v16 = vpop.f32.mrf.mxu1 }
 0x171   : > { %2059 = vmax.xlane.f32.xlu1 %v8394_v8  ;;  %v8474_v47 = vsel %vm1820_vm1, %v6624_v16, -1e+30  ;;  %v801_v16 = vld [vmem:[%s8487_s18 + $0x78] sm:$0xff]  ;;  %v811_v8 = vld [vmem:[%s8487_s18 + $0xc8] sm:$0xff] }
 0x172   : > { %2057 = vmax.xlane.f32.xlu0 %v8399_v10  ;;  %10823 = vst [vmem:[#allocation61_spill] sm:$0xff] %v8474_v47  ;;  %6625 = vmatprep.subr.mxu0 %v801_v16  ;;  %v797_v10 = vld [vmem:[%s8487_s18 + $0x58] sm:$0xff] }
 0x173   : > { %6626 = vmatpush3.msra.mxu0 %v801_v16  ;;  %v813_v16 = vld [vmem:[%s8487_s18 + $0xd8] sm:$0xff] }
 0x175   : > { %2031 = vmax.xlane.f32.xlu1 %v8404_v20  ;;  %v8524_v20 = vld [vmem:[#allocation2 + $0x80] sm:$0xff] }
 0x176   : > { %2029 = vmax.xlane.f32.xlu0 %v8409_v25 }
 0x179   : > { %2063 = vmax.xlane.f32.xlu1 %v8414_v34  ;;  %v812_v34 = vld [vmem:[%s8487_s18 + $0xd0] sm:$0xff] }
 0x17a   : > { %2061 = vmax.xlane.f32.xlu0 %v8419_v39  ;;  %v799_v39 = vld [vmem:[%s8487_s18 + $0x68] sm:$0xff] }
 0x17d   : > { %2035 = vmax.xlane.f32.xlu1 %v8424_v50  ;;  %v8507_v50 = vld [vmem:[#allocation2 + $0x18] sm:$0xff] }
 0x17e   : > { %2033 = vmax.xlane.f32.xlu0 %v8429_v55  ;;  %v6568_v55 = vpop.f32.mrf.mxu0 }
 0x181   : > { %2067 = vmax.xlane.f32.xlu1 %v8434_v3  ;;  %v8504_v3 = vld [vmem:[#allocation2] sm:$0xff] }
 0x182   : > { %2065 = vmax.xlane.f32.xlu0 %v8439_v13  ;;  %v1565_v13 = vpop.f32.mrf.mxu0 }
 0x183   : > { %v8469_v26 = vsel %vm1820_vm1, %v1565_v13, -1e+30  ;;  %v8491_v13 = vld [vmem:[#allocation2 + $0x88] sm:$0xff] }
 0x184   : > { %10822 = vst [vmem:[#allocation60_spill] sm:$0xff] %v8469_v26 }
 0x185   : > { %2039 = vmax.xlane.f32.xlu1 %v8444_v33  ;;  %v8464_v33 = vsel %vm1820_vm1, %v6568_v55, -1e+30  ;;  %v817_v55 = vld [vmem:[%s8487_s18 + $0xf8] sm:$0xff] }
 0x186   : > { %2037 = vmax.xlane.f32.xlu0 %v8449_v42  ;;  %10821 = vst [vmem:[#allocation59_spill] sm:$0xff] %v8464_v33  ;;  %v1806_v42 = vpop.f32.mrf.mxu1  ;;  %6681 = vmatprep.subr.mxu1 %v817_v55 }
 0x187   : > { %6682 = vmatpush3.msra.mxu1 %v817_v55 }
 0x188   : > { %6683 = vmatprep.subr.mxu1 %v816_v1 }
 0x189   : > { %2071 = vmax.xlane.f32.xlu1 %v8454_v58  ;;  %v8479_v58 = vsel %vm1820_vm1, %v1806_v42, -1e+30  ;;  %v8493_v42 = vld [vmem:[#allocation2 + $0x8] sm:$0xff]  ;;  %6684 = vmatpush3.msra.mxu1 %v816_v1  ;;  %v814_v1 = vld [vmem:[%s8487_s18 + $0xe0] sm:$0xff] }
 0x18a   : > { %2069 = vmax.xlane.f32.xlu0 %v8459_v63  ;;  %10824 = vst [vmem:[#allocation62_spill] sm:$0xff] %v8479_v58 }
 0x18d   : > { %2043 = vmax.xlane.f32.xlu1 %v8464_v33  ;;  %v800_v33 = vld [vmem:[%s8487_s18 + $0x70] sm:$0xff] }
 0x18e   : > { %2041 = vmax.xlane.f32.xlu0 %v8469_v26  ;;  %6627 = vmatprep.subr.mxu0 %v800_v33 }
 0x18f   : > { %6628 = vmatpush3.msra.mxu0 %v800_v33 }
 0x190   : > { %6629 = vmatprep.subr.mxu0 %v799_v39 }
 0x191   : > { %2075 = vmax.xlane.f32.xlu1 %v8474_v47  ;;  %6630 = vmatpush3.msra.mxu0 %v799_v39 }
 0x192   : > { %2073 = vmax.xlane.f32.xlu0 %v8479_v58  ;;  %v815_v58 = vld [vmem:[%s8487_s18 + $0xe8] sm:$0xff] }
 0x193   : > { %6685 = vmatprep.subr.mxu1 %v815_v58 }
 0x194   : > { %6686 = vmatpush3.msra.mxu1 %v815_v58 }
 0x195   : > { %6687 = vmatprep.subr.mxu1 %v814_v1 }
 0x196   : > { %6688 = vmatpush3.msra.mxu1 %v814_v1  ;;  %v8526_v1 = vld [vmem:[#allocation2 + $0x98] sm:$0xff] }
 0x197   : > { %6689 = vmatprep.subr.mxu1 %v813_v16 }
 0x198   : > { %6690 = vmatpush3.msra.mxu1 %v813_v16  ;;  %v796_v16 = vld [vmem:[%s8487_s18 + $0x50] sm:$0xff] }
 0x199   : > { %6691 = vmatprep.subr.mxu1 %v812_v34 }
 0x19a   : > { %6692 = vmatpush3.msra.mxu1 %v812_v34  ;;  %v795_v34 = vld [vmem:[%s8487_s18 + $0x48] sm:$0xff] }
 0x19b   : > { %6693 = vmatprep.subr.mxu1 %v811_v8 }
 0x19c   : > { %6694 = vmatpush3.msra.mxu1 %v811_v8 }
 0x19d   : > { %v1952_v26 = vpop.xlane.xlu0 %1951 }
 0x19e   : > { %v1984_v47 = vpop.xlane.xlu1 %1983  ;;  %v8502_v63 = vmax.f32 %v8493_v42, %v1952_v26 }
 0x19f   : > { %v8499_v55 = vmax.f32 %v8491_v13, %v1984_v47  ;;  %v798_v47 = vld [vmem:[%s8487_s18 + $0x60] sm:$0xff] }
 0x1a0   : > { %4387 = vst.msk [vmem:[#allocation2 + $0x8] sm:$0xff] %vm464_vm2, %v8502_v63  ;;  %6631 = vmatprep.subr.mxu0 %v798_v47 }
 0x1a1   : > { %4403 = vst.msk [vmem:[#allocation2 + $0x88] sm:$0xff] %vm464_vm2, %v8499_v55  ;;  %v1950_v58 = vpop.xlane.xlu0 %1949  ;;  %6632 = vmatpush3.msra.mxu0 %v798_v47  ;;  %v8544_v47 = vld [vmem:[#allocation2 + $0x10] sm:$0xff] }
 0x1a2   : > { %v1956_v26 = vpop.xlane.xlu1 %1955  ;;  %2340 = vperm.xlu1 %6919, %v8502_v63   ;;  %v8519_v33 = vmax.f32 %v8504_v3, %v1950_v58  ;;  %6633 = vmatprep.subr.mxu0 %v797_v10 }
 0x1a3   : > { %v8522_v25 = vmax.f32 %v8507_v50, %v1956_v26  ;;  %v810_v26 = vld [vmem:[%s8487_s18 + $0xc0] sm:$0xff]  ;;  %6634 = vmatpush3.msra.mxu0 %v797_v10 }
 0x1a4   : > { %4386 = vst.msk [vmem:[#allocation2] sm:$0xff] %vm464_vm2, %v8519_v33  ;;  %6635 = vmatprep.subr.mxu0 %v796_v16  ;;  %6695 = vmatprep.subr.mxu1 %v810_v26 }
 0x1a5   : > { %4389 = vst.msk [vmem:[#allocation2 + $0x18] sm:$0xff] %vm464_vm2, %v8522_v25  ;;  %v1982_v58 = vpop.xlane.xlu0 %1981  ;;  %6636 = vmatpush3.msra.mxu0 %v796_v16  ;;  %6696 = vmatpush3.msra.mxu1 %v810_v26  ;;  %v793_v16 = vld [vmem:[%s8487_s18 + $0x38] sm:$0xff]  ;;  %v807_v26 = vld [vmem:[%s8487_s18 + $0xa8] sm:$0xff] }
 0x1a6   : > { %v1988_v39 = vpop.xlane.xlu1 %1987  ;;  %v8537_v62 = vmax.f32 %v8524_v20, %v1982_v58  ;;  %6637 = vmatprep.subr.mxu0 %v795_v34  ;;  %6697 = vmatprep.subr.mxu1 %v809_v51 }
 0x1a7   : > { %v8540_v59 = vmax.f32 %v8526_v1, %v1988_v39  ;;  %6638 = vmatpush3.msra.mxu0 %v795_v34  ;;  %6698 = vmatpush3.msra.mxu1 %v809_v51 }
 0x1a8   : > { %4402 = vst.msk [vmem:[#allocation2 + $0x80] sm:$0xff] %vm464_vm2, %v8537_v62  ;;  %2415 = vperm.xlu1 %6919, %v8537_v62   ;;  %2420 = vperm.xlu0 %6920, %v8499_v55  }
 0x1a9   : > { %4405 = vst.msk [vmem:[#allocation2 + $0x98] sm:$0xff] %vm464_vm2, %v8540_v59  ;;  %v1986_v10 = vpop.xlane.xlu0 %1985  ;;  %6639 = vmatprep.subr.mxu0 %v794_v46  ;;  %6699 = vmatprep.subr.mxu1 %v808_v43 }
 0x1aa   : > { %v1954_v8 = vpop.xlane.xlu1 %1953  ;;  %v8555_v58 = vmax.f32 %v8542_v54, %v1986_v10  ;;  %6640 = vmatpush3.msra.mxu0 %v794_v46  ;;  %6700 = vmatpush3.msra.mxu1 %v808_v43 }
 0x1ab   : > { %v8558_v39 = vmax.f32 %v8544_v47, %v1954_v8  ;;  %6641 = vmatprep.subr.mxu0 %v793_v16  ;;  %6701 = vmatprep.subr.mxu1 %v807_v26 }
 0x1ac   : > { %4404 = vst.msk [vmem:[#allocation2 + $0x90] sm:$0xff] %vm464_vm2, %v8555_v58  ;;  %2350 = vperm.xlu1 %6919, %v8522_v25   ;;  %2335 = vperm.xlu0 %6920, %v8519_v33  }
 0x1ad   : > { %4388 = vst.msk [vmem:[#allocation2 + $0x10] sm:$0xff] %vm464_vm2, %v8558_v39  ;;  %v1958_v8 = vpop.xlane.xlu0 %1957  ;;  %6642 = vmatpush3.msra.mxu0 %v793_v16  ;;  %6702 = vmatpush3.msra.mxu1 %v807_v26 }
 0x1ae   : > { %v1960_v10 = vpop.xlane.xlu1 %1959  ;;  %v8578_v34 = vmax.f32 %v8564_v35, %v1958_v8  ;;  %6643 = vmatprep.subr.mxu0 %v792_v24  ;;  %6703 = vmatprep.subr.mxu1 %v806_v19 }
 0x1af   : > { %v8575_v51 = vmax.f32 %v8562_v38, %v1960_v10  ;;  %v2158_v10 = vsub.f32 %v8491_v13, %v8499_v55  ;;  %6644 = vmatpush3.msra.mxu0 %v792_v24  ;;  %6704 = vmatpush3.msra.mxu1 %v806_v19  ;;  %v790_v13 = vld [vmem:[%s8487_s18 + $0x20] sm:$0xff]  ;;  %v804_v55 = vld [vmem:[%s8487_s18 + $0x90] sm:$0xff] }
 0x1b0   : > { %4390 = vst.msk [vmem:[#allocation2 + $0x20] sm:$0xff] %vm464_vm2, %v8578_v34  ;;  %2345 = vperm.xlu1 %6919, %v8558_v39   ;;  %2430 = vperm.xlu0 %6920, %v8540_v59  }
 0x1b1   : > { %4391 = vst.msk [vmem:[#allocation2 + $0x28] sm:$0xff] %vm464_vm2, %v8575_v51  ;;  %v1990_v43 = vpop.xlane.xlu0 %1989  ;;  %6645 = vmatprep.subr.mxu0 %v791_v9  ;;  %6705 = vmatprep.subr.mxu1 %v805_v7  ;;  %v2239_v19 = vmul.f32 1.442695, %v2158_v10 }
 0x1b2   : > { %v1992_v46 = vpop.xlane.xlu1 %1991  ;;  %v8598_v15 = vmax.f32 %v8582_v29, %v1990_v43  ;;  %6646 = vmatpush3.msra.mxu0 %v791_v9  ;;  %6706 = vmatpush3.msra.mxu1 %v805_v7  ;;  %v789_v43 = vld [vmem:[%s8487_s18 + $0x18] sm:$0xff]  ;;  %v788_v7 = vld [vmem:[%s8487_s18 + $0x10] sm:$0xff] }
 0x1b3   : > { %v8595_v8 = vmax.f32 %v8580_v30, %v1992_v46  ;;  %6647 = vmatprep.subr.mxu0 %v790_v13  ;;  %6707 = vmatprep.subr.mxu1 %v804_v55  ;;  %6921 = vpow2.f32 %v2239_v19 }
 0x1b4   : > { %4406 = vst.msk [vmem:[#allocation2 + $0xa0] sm:$0xff] %vm464_vm2, %v8598_v15  ;;  %2425 = vperm.xlu1 %6919, %v8555_v58   ;;  %6648 = vmatpush3.msra.mxu0 %v790_v13  ;;  %v787_v13 = vld [vmem:[%s8487_s18 + $0x8] sm:$0xff] }
 0x1b5   : > { %4407 = vst.msk [vmem:[#allocation2 + $0xa8] sm:$0xff] %vm464_vm2, %v8595_v8  ;;  %2440 = vperm.xlu0 %6920, %v8595_v8   ;;  %v1962_v26 = vpop.xlane.xlu0 %1961  ;;  %6708 = vmatpush3.msra.mxu1 %v804_v55  ;;  %v2162_v31 = vsub.f32 %v8580_v30, %v8595_v8 }
 0x1b6   : > { %v1964_v16 = vpop.xlane.xlu1 %1963  ;;  %v8618_v46 = vmax.f32 %v8604_v2, %v1962_v26  ;;  %6649 = vmatprep.subr.mxu0 %v789_v43  ;;  %6709 = vmatprep.subr.mxu1 %v803_v60 }
 0x1b7   : > { %v8615_v24 = vmax.f32 %v8602_v6, %v1964_v16  ;;  %6650 = vmatpush3.msra.mxu0 %v789_v43  ;;  %6710 = vmatpush3.msra.mxu1 %v803_v60  ;;  %v2141_v60 = vsub.f32 %v8504_v3, %v8519_v33  ;;  %v2144_v3 = vsub.f32 %v8507_v50, %v8522_v25 }
 0x1b8   : > { %4392 = vst.msk [vmem:[#allocation2 + $0x30] sm:$0xff] %vm464_vm2, %v8618_v46  ;;  %2360 = vperm.xlu1 %6919, %v8575_v51   ;;  %6651 = vmatprep.subr.mxu0 %v788_v7 }
 0x1b9   : > { %4393 = vst.msk [vmem:[#allocation2 + $0x38] sm:$0xff] %vm464_vm2, %v8615_v24  ;;  %v1994_v10 = vpop.xlane.xlu0 %1993  ;;  %6711 = vmatprep.subr.mxu1 %v802_v57  ;;  %6652 = vmatpush3.msra.mxu0 %v788_v7  ;;  %v2211_v50 = vmul.f32 1.442695, %v2144_v3 }
 0x1ba   : > { %v1996_v9 = vpop.xlane.xlu1 %1995  ;;  %v8636_v26 = vmax.f32 %v8623_v61, %v1994_v10  ;;  %6712 = vmatpush3.msra.mxu1 %v802_v57  ;;  %6653 = vmatprep.subr.mxu0 %v787_v13  ;;  %v786_v10 = vld [vmem:[%s8487_s18] sm:$0xff]  ;;  %v2142_v57 = vsub.f32 %v8493_v42, %v8502_v63  ;;  %v2157_v63 = vsub.f32 %v8524_v20, %v8537_v62 }
 0x1bb   : > { %v8633_v16 = vmax.f32 %v8621_v0, %v1996_v9  ;;  %6654 = vmatpush3.msra.mxu0 %v787_v13  ;;  %v2205_v13 = vmul.f32 1.442695, %v2141_v60 }
 0x1bc   : > { %4408 = vst.msk [vmem:[#allocation2 + $0xb0] sm:$0xff] %vm464_vm2, %v8636_v26  ;;  %2355 = vperm.xlu1 %6919, %v8578_v34   ;;  %6655 = vmatprep.subr.mxu0 %v786_v10  ;;  %v2207_v25 = vmul.f32 1.442695, %v2142_v57  ;;  %v8703_v57 = vld [vmem:[#allocation2 + $0xd0] sm:$0xff] }
 0x1bd   : > { %4409 = vst.msk [vmem:[#allocation2 + $0xb8] sm:$0xff] %vm464_vm2, %v8633_v16  ;;  %2450 = vperm.xlu0 %6920, %v8633_v16   ;;  %v1966_v19 = vpop.xlane.xlu0 %1965  ;;  %6656 = vmatpush3.msra.mxu0 %v786_v10  ;;  %6923 = vpow2.f32 %v2205_v13  ;;  %v2160_v10 = vsub.f32 %v8526_v1, %v8540_v59  ;;  %v2237_v59 = vmul.f32 1.442695, %v2157_v63 }
 0x1be   : > { %v1968_v55 = vpop.xlane.xlu1 %1967  ;;  %v8656_v9 = vmax.f32 %v8641_v53, %v1966_v19  ;;  %6925 = vpow2.f32 %v2207_v25 }
 0x1bf   : > { %v8653_v43 = vmax.f32 %v8639_v56, %v1968_v55  ;;  %6927 = vpow2.f32 %v2211_v50  ;;  %v2243_v1 = vmul.f32 1.442695, %v2160_v10 }
 0x1c0   : > { %4394 = vst.msk [vmem:[#allocation2 + $0x40] sm:$0xff] %vm464_vm2, %v8656_v9  ;;  %2435 = vperm.xlu1 %6919, %v8598_v15   ;;  %v8699_v44 = vpop.eup %6921  ;;  %6929 = vpow2.f32 %v2237_v59  ;;  %v2143_v59 = vsub.f32 %v8544_v47, %v8558_v39 }
 0x1c1   : > { %4395 = vst.msk [vmem:[#allocation2 + $0x48] sm:$0xff] %vm464_vm2, %v8653_v43  ;;  %2380 = vperm.xlu0 %6920, %v8653_v43   ;;  %v1998_v7 = vpop.xlane.xlu0 %1997  ;;  %10825 = vst [vmem:[#allocation63_spill] sm:$0xff] %v8699_v44  ;;  %6931 = vpow2.f32 %v2243_v1 }
 0x1c2   : > { %v2000_v33 = vpop.xlane.xlu1 %1999  ;;  %v8677_v19 = vmax.f32 %v8661_v49, %v1998_v7  ;;  %v2209_v47 = vmul.f32 1.442695, %v2143_v59 }
 0x1c3   : > { %v8674_v55 = vmax.f32 %v8659_v52, %v2000_v33 }
 0x1c4   : > { %4410 = vst.msk [vmem:[#allocation2 + $0xc0] sm:$0xff] %vm464_vm2, %v8677_v19  ;;  %2370 = vperm.xlu1 %6919, %v8615_v24   ;;  %6933 = vpow2.f32 %v2209_v47 }
 0x1c5   : > { %4411 = vst.msk [vmem:[#allocation2 + $0xc8] sm:$0xff] %vm464_vm2, %v8674_v55  ;;  %2460 = vperm.xlu0 %6920, %v8674_v55   ;;  %v1970_v60 = vpop.xlane.xlu0 %1969 }
 0x1c6   : > { %v1972_v42 = vpop.xlane.xlu1 %1971  ;;  %v8697_v7 = vmax.f32 %v8681_v45, %v1970_v60  ;;  %v8719_v60 = vld [vmem:[#allocation2 + $0x60] sm:$0xff] }
 0x1c7   : > { %v8694_v33 = vmax.f32 %v8679_v48, %v1972_v42  ;;  %v8717_v42 = vld [vmem:[#allocation2 + $0x68] sm:$0xff] }
 0x1c8   : > { %4396 = vst.msk [vmem:[#allocation2 + $0x50] sm:$0xff] %vm464_vm2, %v8697_v7  ;;  %2365 = vperm.xlu1 %6919, %v8618_v46  }
 0x1c9   : > { %4397 = vst.msk [vmem:[#allocation2 + $0x58] sm:$0xff] %vm464_vm2, %v8694_v33  ;;  %3381 = vperm.xlu0 %6920, %v8699_v44   ;;  %v2002_v20 = vpop.xlane.xlu0 %2001 }
 0x1ca   : > { %v2004_v62 = vpop.xlane.xlu1 %2003  ;;  %v8715_v13 = vmax.f32 %v8703_v57, %v2002_v20  ;;  %v8735_v20 = vld [vmem:[#allocation2 + $0xe0] sm:$0xff]  ;;  %v8753_v37 = vpop.eup %6923 }
 0x1cb   : > { %v8712_v3 = vmax.f32 %v8701_v41, %v2004_v62  ;;  %v8733_v62 = vld [vmem:[#allocation2 + $0xe8] sm:$0xff]  ;;  %10826 = vst [vmem:[#allocation64_spill] sm:$0xff] %v8753_v37 }
 0x1cc   : > { %4412 = vst.msk [vmem:[#allocation2 + $0xd0] sm:$0xff] %vm464_vm2, %v8715_v13  ;;  %2445 = vperm.xlu1 %6919, %v8636_v26  }
 0x1cd   : > { %4413 = vst.msk [vmem:[#allocation2 + $0xd8] sm:$0xff] %vm464_vm2, %v8712_v3  ;;  %2390 = vperm.xlu0 %6920, %v8694_v33   ;;  %v1974_v50 = vpop.xlane.xlu0 %1973 }
 0x1ce   : > { %v1976_v25 = vpop.xlane.xlu1 %1975  ;;  %v8731_v10 = vmax.f32 %v8719_v60, %v1974_v50  ;;  %v2146_v50 = vsub.f32 %v8562_v38, %v8575_v51  ;;  %v2159_v38 = vsub.f32 %v8542_v54, %v8555_v58  ;;  %v8781_v54 = vld [vmem:[#allocation2 + $0xf0] sm:$0xff] }
 0x1cf   : > { %v8728_v63 = vmax.f32 %v8717_v42, %v1976_v25 }
 0x1d0   : > { %4398 = vst.msk [vmem:[#allocation2 + $0x60] sm:$0xff] %vm464_vm2, %v8731_v10  ;;  %2375 = vperm.xlu1 %6919, %v8656_v9   ;;  %v2241_v30 = vmul.f32 1.442695, %v2159_v38  ;;  %v8807_v38 = vld [vmem:[#allocation2 + $0x100] sm:$0xff] }
 0x1d1   : > { %4399 = vst.msk [vmem:[#allocation2 + $0x68] sm:$0xff] %vm464_vm2, %v8728_v63  ;;  %2470 = vperm.xlu0 %6920, %v8712_v3   ;;  %v2006_v25 = vpop.xlane.xlu0 %2005  ;;  %10832 = vst [vmem:[#allocation70_spill] sm:$0xff] %v8807_v38 }
 0x1d2   : > { %v2008_v1 = vpop.xlane.xlu1 %2007  ;;  %v8751_v40 = vmax.f32 %v8735_v20, %v2006_v25  ;;  %v2215_v25 = vmul.f32 1.442695, %v2146_v50  ;;  %v2247_v50 = vmul.f32 1.442695, %v2162_v31 }
 0x1d3   : > { %v8748_v44 = vmax.f32 %v8733_v62, %v2008_v1  ;;  %v8767_v1 = vpop.eup %6925 }
 0x1d4   : > { %4414 = vst.msk [vmem:[#allocation2 + $0xe0] sm:$0xff] %vm464_vm2, %v8751_v40  ;;  %2455 = vperm.xlu1 %6919, %v8677_v19   ;;  %10827 = vst [vmem:[#allocation65_spill] sm:$0xff] %v8767_v1  ;;  %v8777_v23 = vpop.eup %6927  ;;  %6935 = vpow2.f32 %v2215_v25 }
 0x1d5   : > { %4415 = vst.msk [vmem:[#allocation2 + $0xe8] sm:$0xff] %vm464_vm2, %v8748_v44  ;;  %3296 = vperm.xlu0 %6920, %v8753_v37   ;;  %v1978_v51 = vpop.xlane.xlu0 %1977  ;;  %10828 = vst [vmem:[#allocation66_spill] sm:$0xff] %v8777_v23  ;;  %v8779_v37 = vld [vmem:[#allocation2 + $0xf8] sm:$0xff]  ;;  %v8789_v59 = vpop.eup %6929  ;;  %6937 = vpow2.f32 %v2241_v30  ;;  %v2145_v30 = vsub.f32 %v8564_v35, %v8578_v34  ;;  %v2161_v34 = vsub.f32 %v8582_v29, %v8598_v15 }
 0x1d6   : > { %v1980_v39 = vpop.xlane.xlu1 %1979  ;;  %v8775_v27 = vmax.f32 %v8757_v32, %v1978_v51  ;;  %10829 = vst [vmem:[#allocation67_spill] sm:$0xff] %v8789_v59  ;;  %v8797_v22 = vpop.eup %6931  ;;  %6939 = vpow2.f32 %v2247_v50  ;;  %v2150_v15 = vsub.f32 %v8639_v56, %v8653_v43  ;;  %v8895_v43 = vld [vmem:[#allocation2 + $0x120] sm:$0xff] }
 0x1d7   : > { %v8772_v28 = vmax.f32 %v8755_v36, %v1980_v39  ;;  %10830 = vst [vmem:[#allocation68_spill] sm:$0xff] %v8797_v22  ;;  %10841 = vst [vmem:[#allocation79_spill] sm:$0xff] %v8895_v43 }
 0x1d8   : > { %4400 = vst.msk [vmem:[#allocation2 + $0x70] sm:$0xff] %vm464_vm2, %v8775_v27  ;;  %3301 = vperm.xlu1 %6919, %v8767_v1  }
 0x1d9   : > { %4401 = vst.msk [vmem:[#allocation2 + $0x78] sm:$0xff] %vm464_vm2, %v8772_v28  ;;  %3311 = vperm.xlu0 %6920, %v8777_v23   ;;  %v2010_v8 = vpop.xlane.xlu0 %2009 }
 0x1da   : > { %v2012_v58 = vpop.xlane.xlu1 %2011  ;;  %v8795_v51 = vmax.f32 %v8781_v54, %v2010_v8 }
 0x1db   : > { %v8792_v39 = vmax.f32 %v8779_v37, %v2012_v58  ;;  %v8812_v58 = vld [vmem:[#allocation2 + $0x188] sm:$0xff] }
 0x1dc   : > { %4416 = vst.msk [vmem:[#allocation2 + $0xf0] sm:$0xff] %vm464_vm2, %v8795_v51  ;;  %3376 = vperm.xlu1 %6919, %v8789_v59   ;;  %10833 = vst [vmem:[#allocation71_spill] sm:$0xff] %v8812_v58  ;;  %v8834_v59 = vld [vmem:[#allocation2 + $0x118] sm:$0xff] }
 0x1dd   : > { %4417 = vst.msk [vmem:[#allocation2 + $0xf8] sm:$0xff] %vm464_vm2, %v8792_v39  ;;  %3391 = vperm.xlu0 %6920, %v8797_v22   ;;  %v2148_v22 = vsub.f32 %v8602_v6, %v8615_v24  ;;  %v2213_v6 = vmul.f32 1.442695, %v2145_v30 }
 0x1de   : > { %v2016_v31 = vpop.xlane.xlu1 %2015 }
 0x1df   : > { %v8810_v47 = vmax.f32 %v8799_v18, %v2016_v31  ;;  %v2014_v25 = vpop.xlane.xlu0 %2013  ;;  %v8825_v31 = vld [vmem:[#allocation2 + $0x180] sm:$0xff]  ;;  %v2219_v1 = vmul.f32 1.442695, %v2148_v22  ;;  %v8860_v18 = vld [vmem:[#allocation2 + $0x198] sm:$0xff]  ;;  %6941 = vpow2.f32 %v2213_v6 }
 0x1e0   : > { %v8819_v23 = vmax.f32 %v8807_v38, %v2014_v25  ;;  %2385 = vperm.xlu1 %6919, %v8697_v7   ;;  %10834 = vst [vmem:[#allocation72_spill] sm:$0xff] %v8825_v31  ;;  %v8849_v38 = vpop.eup %6933 }
 0x1e1   : > { %4419 = vst.msk [vmem:[#allocation2 + $0x108] sm:$0xff] %vm464_vm2, %v8810_v47  ;;  %2400 = vperm.xlu0 %6920, %v8728_v63   ;;  %10836 = vst [vmem:[#allocation74_spill] sm:$0xff] %v8849_v38  ;;  %6943 = vpow2.f32 %v2219_v1 }
 0x1e2   : > { %v2048_v50 = vpop.xlane.xlu1 %2047  ;;  %4418 = vst.msk [vmem:[#allocation2 + $0x100] sm:$0xff] %vm464_vm2, %v8819_v23 }
 0x1e3   : > { %v8832_v8 = vmax.f32 %v8812_v58, %v2048_v50  ;;  %v2046_v25 = vpop.xlane.xlu0 %2045  ;;  %v8847_v50 = vld [vmem:[#allocation2 + $0x110] sm:$0xff]  ;;  %v2164_v58 = vsub.f32 %v8621_v0, %v8633_v16  ;;  %v2245_v0 = vmul.f32 1.442695, %v2161_v34  ;;  %v8884_v34 = vld [vmem:[#allocation2 + $0x128] sm:$0xff] }
 0x1e4   : > { %v8841_v35 = vmax.f32 %v8825_v31, %v2046_v25  ;;  %2465 = vperm.xlu1 %6919, %v8715_v13   ;;  %v8858_v31 = vpop.eup %6935  ;;  %v8871_v16 = vld [vmem:[#allocation2 + $0x190] sm:$0xff] }
 0x1e5   : > { %4435 = vst.msk [vmem:[#allocation2 + $0x188] sm:$0xff] %vm464_vm2, %v8832_v8  ;;  %2480 = vperm.xlu0 %6920, %v8748_v44   ;;  %10837 = vst [vmem:[#allocation75_spill] sm:$0xff] %v8858_v31  ;;  %6945 = vpow2.f32 %v2245_v0  ;;  %v2152_v0 = vsub.f32 %v8679_v48, %v8694_v33  ;;  %v2163_v33 = vsub.f32 %v8623_v61, %v8636_v26  ;;  %v8952_v61 = vld [vmem:[#allocation2 + $0x1b8] sm:$0xff] }
 0x1e6   : > { %10835 = vst [vmem:[#allocation73_spill] sm:$0xff] %v8841_v35  ;;  %v2020_v24 = vpop.xlane.xlu1 %2019  ;;  %4434 = vst.msk [vmem:[#allocation2 + $0x180] sm:$0xff] %vm464_vm2, %v8841_v35  ;;  %v2251_v35 = vmul.f32 1.442695, %v2164_v58  ;;  %v2223_v58 = vmul.f32 1.442695, %v2150_v15 }
 0x1e7   : > { %v8856_v25 = vmax.f32 %v8834_v59, %v2020_v24  ;;  %v2018_v30 = vpop.xlane.xlu0 %2017  ;;  %10838 = vst [vmem:[#allocation76_spill] sm:$0xff] %v8871_v16  ;;  %v8873_v24 = vpop.eup %6937  ;;  %v8917_v15 = vld [vmem:[#allocation2 + $0x1a0] sm:$0xff]  ;;  %10847 = vst [vmem:[#allocation85_spill] sm:$0xff] %v8952_v61 }
 0x1e8   : > { %v8867_v22 = vmax.f32 %v8847_v50, %v2018_v30  ;;  %3306 = vperm.xlu1 %6919, %v8849_v38   ;;  %10839 = vst [vmem:[#allocation77_spill] sm:$0xff] %v8873_v24  ;;  %v8882_v38 = vpop.eup %6939  ;;  %6947 = vpow2.f32 %v2251_v35  ;;  %10843 = vst [vmem:[#allocation81_spill] sm:$0xff] %v8917_v15 }
 0x1e9   : > { %4421 = vst.msk [vmem:[#allocation2 + $0x118] sm:$0xff] %vm464_vm2, %v8856_v25  ;;  %3321 = vperm.xlu0 %6920, %v8858_v31   ;;  %10840 = vst [vmem:[#allocation78_spill] sm:$0xff] %v8882_v38  ;;  %6949 = vpow2.f32 %v2223_v58 }
 0x1ea   : > { %v2052_v29 = vpop.xlane.xlu1 %2051  ;;  %4420 = vst.msk [vmem:[#allocation2 + $0x110] sm:$0xff] %vm464_vm2, %v8867_v22 }
 0x1eb   : > { %v8880_v30 = vmax.f32 %v8860_v18, %v2052_v29  ;;  %v2050_v6 = vpop.xlane.xlu0 %2049  ;;  %v2166_v29 = vsub.f32 %v8659_v52, %v8674_v55  ;;  %v2147_v52 = vsub.f32 %v8604_v2, %v8618_v46  ;;  %v2227_v2 = vmul.f32 1.442695, %v2152_v0 }
 0x1ec   : > { %v8891_v1 = vmax.f32 %v8871_v16, %v2050_v6  ;;  %3386 = vperm.xlu1 %6919, %v8873_v24   ;;  %v8904_v16 = vld [vmem:[#allocation2 + $0x1a8] sm:$0xff]  ;;  %v8926_v24 = vld [vmem:[#allocation2 + $0x138] sm:$0xff] }
 0x1ed   : > { %4437 = vst.msk [vmem:[#allocation2 + $0x198] sm:$0xff] %vm464_vm2, %v8880_v30  ;;  %3401 = vperm.xlu0 %6920, %v8882_v38   ;;  %10842 = vst [vmem:[#allocation80_spill] sm:$0xff] %v8904_v16  ;;  %v2217_v48 = vmul.f32 1.442695, %v2147_v52 }
 0x1ee   : > { %v2024_v56 = vpop.xlane.xlu1 %2023  ;;  %4436 = vst.msk [vmem:[#allocation2 + $0x190] sm:$0xff] %vm464_vm2, %v8891_v1 }
 0x1ef   : > { %v8902_v31 = vmax.f32 %v8884_v34, %v2024_v56  ;;  %v2022_v6 = vpop.xlane.xlu0 %2021  ;;  %v2255_v56 = vmul.f32 1.442695, %v2166_v29  ;;  %v8939_v29 = vld [vmem:[#allocation2 + $0x130] sm:$0xff] }
 0x1f0   : > { %v8911_v35 = vmax.f32 %v8895_v43, %v2022_v6  ;;  %2395 = vperm.xlu1 %6919, %v8731_v10   ;;  %10844 = vst [vmem:[#allocation82_spill] sm:$0xff] %v8939_v29 }
 0x1f1   : > { %4423 = vst.msk [vmem:[#allocation2 + $0x128] sm:$0xff] %vm464_vm2, %v8902_v31  ;;  %2410 = vperm.xlu0 %6920, %v8772_v28   ;;  %6951 = vpow2.f32 %v2255_v56 }
 0x1f2   : > { %v2056_v55 = vpop.xlane.xlu1 %2055  ;;  %4422 = vst.msk [vmem:[#allocation2 + $0x120] sm:$0xff] %vm464_vm2, %v8911_v35  ;;  %6953 = vpow2.f32 %v2217_v48 }
 0x1f3   : > { %v8924_v6 = vmax.f32 %v8904_v16, %v2056_v55  ;;  %v2054_v38 = vpop.xlane.xlu0 %2053  ;;  %v8941_v55 = vpop.eup %6941  ;;  %v2168_v16 = vsub.f32 %v8701_v41, %v8712_v3  ;;  %v2249_v41 = vmul.f32 1.442695, %v2163_v33  ;;  %v2149_v3 = vsub.f32 %v8641_v53, %v8656_v9  ;;  %v8978_v53 = vld [vmem:[#allocation2 + $0x148] sm:$0xff] }
 0x1f4   : > { %v8933_v46 = vmax.f32 %v8917_v15, %v2054_v38  ;;  %2475 = vperm.xlu1 %6919, %v8751_v40   ;;  %10845 = vst [vmem:[#allocation83_spill] sm:$0xff] %v8941_v55  ;;  %v8950_v52 = vpop.eup %6943  ;;  %6955 = vpow2.f32 %v2227_v2  ;;  %v8989_v2 = vld [vmem:[#allocation2 + $0x140] sm:$0xff] }
 0x1f5   : > { %4439 = vst.msk [vmem:[#allocation2 + $0x1a8] sm:$0xff] %vm464_vm2, %v8924_v6  ;;  %2490 = vperm.xlu0 %6920, %v8792_v39   ;;  %10846 = vst [vmem:[#allocation84_spill] sm:$0xff] %v8950_v52  ;;  %v8967_v43 = vpop.eup %6945  ;;  %v2259_v26 = vmul.f32 1.442695, %v2168_v16  ;;  %6957 = vpow2.f32 %v2249_v41 }
 0x1f6   : > { %v2028_v58 = vpop.xlane.xlu1 %2027  ;;  %4438 = vst.msk [vmem:[#allocation2 + $0x1a0] sm:$0xff] %vm464_vm2, %v8933_v46  ;;  %10849 = vst [vmem:[#allocation87_spill] sm:$0xff] %v8967_v43  ;;  %v8976_v48 = vpop.eup %6947 }
 0x1f7   : > { %v8948_v38 = vmax.f32 %v8926_v24, %v2028_v58  ;;  %v2026_v15 = vpop.xlane.xlu0 %2025  ;;  %v8965_v58 = vld [vmem:[#allocation2 + $0x1b0] sm:$0xff]  ;;  %10850 = vst [vmem:[#allocation88_spill] sm:$0xff] %v8976_v48  ;;  %10851 = vst [vmem:[#allocation89_spill] sm:$0xff] %v8989_v2  ;;  %6959 = vpow2.f32 %v2259_v26  ;;  %v9011_v26 = vld [vmem:[#allocation2 + $0x1c0] sm:$0xff] }
 0x1f8   : > { %v8959_v0 = vmax.f32 %v8939_v29, %v2026_v15  ;;  %3316 = vperm.xlu1 %6919, %v8941_v55   ;;  %10848 = vst [vmem:[#allocation86_spill] sm:$0xff] %v8965_v58  ;;  %v2154_v15 = vsub.f32 %v8717_v42, %v8728_v63  ;;  %v2221_v42 = vmul.f32 1.442695, %v2149_v3  ;;  %v2165_v63 = vsub.f32 %v8661_v49, %v8677_v19  ;;  %v9000_v3 = vld [vmem:[#allocation2 + $0x1c8] sm:$0xff] }
 0x1f9   : > { %4425 = vst.msk [vmem:[#allocation2 + $0x138] sm:$0xff] %vm464_vm2, %v8948_v38  ;;  %3331 = vperm.xlu0 %6920, %v8950_v52   ;;  %v2170_v55 = vsub.f32 %v8733_v62, %v8748_v44  ;;  %v2151_v19 = vsub.f32 %v8681_v45, %v8697_v7 }
 0x1fa   : > { %v2060_v56 = vpop.xlane.xlu1 %2059  ;;  %4424 = vst.msk [vmem:[#allocation2 + $0x130] sm:$0xff] %vm464_vm2, %v8959_v0  ;;  %6961 = vpow2.f32 %v2221_v42  ;;  %v2253_v44 = vmul.f32 1.442695, %v2165_v63  ;;  %v9022_v63 = vld [vmem:[#allocation2 + $0x158] sm:$0xff] }
 0x1fb   : > { %v8974_v52 = vmax.f32 %v8952_v61, %v2060_v56  ;;  %v2058_v33 = vpop.xlane.xlu0 %2057  ;;  %v2231_v56 = vmul.f32 1.442695, %v2154_v15  ;;  %v2263_v15 = vmul.f32 1.442695, %v2170_v55  ;;  %v9033_v55 = vld [vmem:[#allocation2 + $0x150] sm:$0xff] }
 0x1fc   : > { %v8983_v9 = vmax.f32 %v8965_v58, %v2058_v33  ;;  %3396 = vperm.xlu1 %6919, %v8967_v43   ;;  %10854 = vst [vmem:[#allocation92_spill] sm:$0xff] %v9033_v55 }
 0x1fd   : > { %4441 = vst.msk [vmem:[#allocation2 + $0x1b8] sm:$0xff] %vm464_vm2, %v8974_v52  ;;  %3411 = vperm.xlu0 %6920, %v8976_v48   ;;  %v8998_v48 = vpop.eup %6949  ;;  %6963 = vpow2.f32 %v2231_v56 }
 0x1fe   : > { %v2032_v16 = vpop.xlane.xlu1 %2031  ;;  %4440 = vst.msk [vmem:[#allocation2 + $0x1b0] sm:$0xff] %vm464_vm2, %v8983_v9  ;;  %10852 = vst [vmem:[#allocation90_spill] sm:$0xff] %v8998_v48  ;;  %6965 = vpow2.f32 %v2253_v44 }
 0x1ff   : > { %v8996_v33 = vmax.f32 %v8978_v53, %v2032_v16  ;;  %v2030_v41 = vpop.xlane.xlu0 %2029  ;;  %v2156_v16 = vsub.f32 %v8755_v36, %v8772_v28  ;;  %v2225_v28 = vmul.f32 1.442695, %v2151_v19  ;;  %v2167_v36 = vsub.f32 %v8703_v57, %v8715_v13  ;;  %v9046_v57 = vld [vmem:[#allocation2 + $0x1d8] sm:$0xff] }
 0x200   : > { %v9005_v49 = vmax.f32 %v8989_v2, %v2030_v41  ;;  %2405 = vperm.xlu1 %6919, %v8775_v27   ;;  %6967 = vpow2.f32 %v2263_v15  ;;  %v9055_v15 = vld [vmem:[#allocation2 + $0x1d0] sm:$0xff]  ;;  %v2171_v2 = vsub.f32 %v8781_v54, %v8795_v51 }
 0x201   : > { %4427 = vst.msk [vmem:[#allocation2 + $0x148] sm:$0xff] %vm464_vm2, %v8996_v33  ;;  %3341 = vperm.xlu0 %6920, %v8998_v48   ;;  %v9020_v48 = vpop.eup %6951  ;;  %6969 = vpow2.f32 %v2225_v28 }
 0x202   : > { %v2064_v62 = vpop.xlane.xlu1 %2063  ;;  %4426 = vst.msk [vmem:[#allocation2 + $0x140] sm:$0xff] %vm464_vm2, %v9005_v49  ;;  %10853 = vst [vmem:[#allocation91_spill] sm:$0xff] %v9020_v48  ;;  %v9035_v56 = vpop.eup %6953 }
 0x203   : > { %v9018_v41 = vmax.f32 %v9000_v3, %v2064_v62  ;;  %v2062_v42 = vpop.xlane.xlu0 %2061  ;;  %10855 = vst [vmem:[#allocation93_spill] sm:$0xff] %v9035_v56  ;;  %v2235_v62 = vmul.f32 1.442695, %v2156_v16  ;;  %v9044_v44 = vpop.eup %6955 }
 0x204   : > { %v9027_v45 = vmax.f32 %v9011_v26, %v2062_v42  ;;  %2485 = vperm.xlu1 %6919, %v8795_v51   ;;  %v2172_v42 = vsub.f32 %v8779_v37, %v8792_v39  ;;  %10856 = vst [vmem:[#allocation94_spill] sm:$0xff] %v9044_v44  ;;  %v2257_v37 = vmul.f32 1.442695, %v2167_v36  ;;  %v9057_v16 = vpop.eup %6957  ;;  %v9068_v36 = vld [vmem:[#allocation2 + $0x168] sm:$0xff] }
 0x205   : > { %4443 = vst.msk [vmem:[#allocation2 + $0x1c8] sm:$0xff] %vm464_vm2, %v9018_v41  ;;  %3421 = vperm.xlu0 %6920, %v9020_v48   ;;  %10857 = vst [vmem:[#allocation95_spill] sm:$0xff] %v9057_v16  ;;  %6971 = vpow2.f32 %v2235_v62 }
 0x206   : > { %v2036_v7 = vpop.xlane.xlu1 %2035  ;;  %4442 = vst.msk [vmem:[#allocation2 + $0x1c0] sm:$0xff] %vm464_vm2, %v9027_v45  ;;  %v2267_v43 = vmul.f32 1.442695, %v2172_v42  ;;  %6973 = vpow2.f32 %v2257_v37  ;;  %v9090_v37 = vld [vmem:[#allocation2 + $0x1e8] sm:$0xff] }
 0x207   : > { %v9042_v48 = vmax.f32 %v9022_v63, %v2036_v7  ;;  %v2034_v19 = vpop.xlane.xlu0 %2033  ;;  %v2153_v7 = vsub.f32 %v8719_v60, %v8731_v10  ;;  %v9077_v10 = vld [vmem:[#allocation2 + $0x160] sm:$0xff] }
 0x208   : > { %v9051_v13 = vmax.f32 %v9033_v55, %v2034_v19  ;;  %3326 = vperm.xlu1 %6919, %v9035_v56   ;;  %v9066_v56 = vpop.eup %6959  ;;  %10859 = vst [vmem:[#allocation97_spill] sm:$0xff] %v9077_v10  ;;  %6975 = vpow2.f32 %v2267_v43  ;;  %v2155_v55 = vsub.f32 %v8757_v32, %v8775_v27  ;;  %v9121_v32 = vld [vmem:[#allocation2 + $0x170] sm:$0xff] }
 0x209   : > { %4429 = vst.msk [vmem:[#allocation2 + $0x158] sm:$0xff] %vm464_vm2, %v9042_v48  ;;  %3351 = vperm.xlu0 %6920, %v9044_v44   ;;  %10858 = vst [vmem:[#allocation96_spill] sm:$0xff] %v9066_v56  ;;  %v9079_v62 = vpop.eup %6961  ;;  %v2229_v42 = vmul.f32 1.442695, %v2153_v7 }
 0x20a   : > { %v2068_v39 = vpop.xlane.xlu1 %2067  ;;  %4428 = vst.msk [vmem:[#allocation2 + $0x150] sm:$0xff] %vm464_vm2, %v9051_v13  ;;  %10860 = vst [vmem:[#allocation98_spill] sm:$0xff] %v9079_v62 }
 0x20b   : > { %v9064_v19 = vmax.f32 %v9046_v57, %v2068_v39  ;;  %v2066_v28 = vpop.xlane.xlu0 %2065  ;;  %v2169_v39 = vsub.f32 %v8735_v20, %v8751_v40  ;;  %v9099_v20 = vld [vmem:[#allocation2 + $0x1e0] sm:$0xff]  ;;  %6977 = vpow2.f32 %v2229_v42  ;;  %10866 = vst [vmem:[#allocation104_spill] sm:$0xff] %v9121_v32 }
 0x20c   : > { %v9073_v44 = vmax.f32 %v9055_v15, %v2066_v28  ;;  %3406 = vperm.xlu1 %6919, %v9057_v16   ;;  %v9088_v16 = vpop.eup %6963  ;;  %10862 = vst [vmem:[#allocation100_spill] sm:$0xff] %v9099_v20 }
 0x20d   : > { %4445 = vst.msk [vmem:[#allocation2 + $0x1d8] sm:$0xff] %vm464_vm2, %v9064_v19  ;;  %3431 = vperm.xlu0 %6920, %v9066_v56   ;;  %10861 = vst [vmem:[#allocation99_spill] sm:$0xff] %v9088_v16  ;;  %v9101_v43 = vpop.eup %6965 }
 0x20e   : > { %v2040_v60 = vpop.xlane.xlu1 %2039  ;;  %4444 = vst.msk [vmem:[#allocation2 + $0x1d0] sm:$0xff] %vm464_vm2, %v9073_v44  ;;  %10863 = vst [vmem:[#allocation101_spill] sm:$0xff] %v9101_v43 }
 0x20f   : > { %v9086_v28 = vmax.f32 %v9068_v36, %v2040_v60  ;;  %v2038_v56 = vpop.xlane.xlu0 %2037  ;;  %v2261_v60 = vmul.f32 1.442695, %v2169_v39 }
 0x210   : > { %v9095_v7 = vmax.f32 %v9077_v10, %v2038_v56  ;;  %3336 = vperm.xlu1 %6919, %v9079_v62   ;;  %v9110_v10 = vpop.eup %6967 }
 0x211   : > { %4431 = vst.msk [vmem:[#allocation2 + $0x168] sm:$0xff] %vm464_vm2, %v9086_v28  ;;  %3361 = vperm.xlu0 %6920, %v9088_v16   ;;  %10864 = vst [vmem:[#allocation102_spill] sm:$0xff] %v9110_v10  ;;  %v9112_v16 = vld [vmem:[#allocation2 + $0x178] sm:$0xff]  ;;  %v9123_v39 = vpop.eup %6969  ;;  %6979 = vpow2.f32 %v2261_v60 }
 0x212   : > { %v2072_v40 = vpop.xlane.xlu1 %2071  ;;  %4430 = vst.msk [vmem:[#allocation2 + $0x160] sm:$0xff] %vm464_vm2, %v9095_v7  ;;  %10865 = vst [vmem:[#allocation103_spill] sm:$0xff] %v9112_v16  ;;  %v9132_v58 = vpop.eup %6971 }
 0x213   : > { %v9108_v56 = vmax.f32 %v9090_v37, %v2072_v40  ;;  %v2070_v62 = vpop.xlane.xlu0 %2069  ;;  %10867 = vst [vmem:[#allocation105_spill] sm:$0xff] %v9123_v39  ;;  %v2233_v40 = vmul.f32 1.442695, %v2155_v55  ;;  %10868 = vst [vmem:[#allocation106_spill] sm:$0xff] %v9132_v58  ;;  %v9143_v55 = vld [vmem:[#allocation2 + $0x1f0] sm:$0xff]  ;;  %v9145_v60 = vpop.eup %6973 }
 0x214   : > { %v9117_v42 = vmax.f32 %v9099_v20, %v2070_v62  ;;  %3416 = vperm.xlu1 %6919, %v9101_v43   ;;  %10871 = vst [vmem:[#allocation109_spill] sm:$0xff] %v9143_v55  ;;  %10872 = vst [vmem:[#allocation110_spill] sm:$0xff] %v9145_v60 }
 0x215   : > { %4447 = vst.msk [vmem:[#allocation2 + $0x1e8] sm:$0xff] %vm464_vm2, %v9108_v56  ;;  %3441 = vperm.xlu0 %6920, %v9110_v10   ;;  %v9134_v10 = vld [vmem:[#allocation2 + $0x1f8] sm:$0xff]  ;;  %6981 = vpow2.f32 %v2233_v40 }
 0x216   : > { %v2044_v27 = vpop.xlane.xlu1 %2043  ;;  %4446 = vst.msk [vmem:[#allocation2 + $0x1e0] sm:$0xff] %vm464_vm2, %v9117_v42  ;;  %10869 = vst [vmem:[#allocation107_spill] sm:$0xff] %v9134_v10 }
 0x217   : > { %v9130_v62 = vmax.f32 %v9112_v16, %v2044_v27  ;;  %v2042_v43 = vpop.xlane.xlu0 %2041  ;;  %v2265_v27 = vmul.f32 1.442695, %v2171_v2 }
 0x218   : > { %3346 = vperm.xlu1 %6919, %v9123_v39   ;;  %v9141_v54 = vmax.f32 %v9121_v32, %v2042_v43  ;;  %v9152_v39 = vpop.eup %6975  ;;  %v849_v32 = vld [vmem:[%s8487_s18 + $0x1f8] sm:$0xff] }
 0x219   : > { %4433 = vst.msk [vmem:[#allocation2 + $0x178] sm:$0xff] %vm464_vm2, %v9130_v62  ;;  %3371 = vperm.xlu0 %6920, %v9132_v58   ;;  %10873 = vst [vmem:[#allocation111_spill] sm:$0xff] %v9152_v39  ;;  %6983 = vpow2.f32 %v2265_v27  ;;  %v9163_v2 = vpop.eup %6977  ;;  %6793 = vmatprep.subr.mxu1 %v849_v32 }
 0x21a   : > { %10870 = vst [vmem:[#allocation108_spill] sm:$0xff] %v9141_v54  ;;  %v2076_v51 = vpop.xlane.xlu1 %2075  ;;  %4432 = vst.msk [vmem:[#allocation2 + $0x170] sm:$0xff] %vm464_vm2, %v9141_v54 }
 0x21b   : > { %v9150_v29 = vmax.f32 %v9134_v10, %v2076_v51  ;;  %v2074_v58 = vpop.xlane.xlu0 %2073  ;;  %10875 = vst [vmem:[#allocation113_spill] sm:$0xff] %v9163_v2  ;;  %v9166_v51 = vld [vmem:[%s8487_s18 + $0x178] sm:$0xff] }
 0x21c   : > { %3426 = vperm.xlu1 %6919, %v9145_v60   ;;  %v9159_v43 = vmax.f32 %v9143_v55, %v2074_v58  ;;  %6737 = vmatprep.subr.mxu0 %v9166_v51 }
 0x21d   : > { %4449 = vst.msk [vmem:[#allocation2 + $0x1f8] sm:$0xff] %vm464_vm2, %v9150_v29  ;;  %3451 = vperm.xlu0 %6920, %v9152_v39  }
 0x21e   : > { %10874 = vst [vmem:[#allocation112_spill] sm:$0xff] %v9159_v43  ;;  %4448 = vst.msk [vmem:[#allocation2 + $0x1f0] sm:$0xff] %vm464_vm2, %v9159_v43  ;;  %v2341_v40 = vpop.permute.xlu1 %2340  ;;  %v9171_v60 = vpop.eup %6979 }
 0x21f   : > { %10876 = vst [vmem:[#allocation114_spill] sm:$0xff] %v9171_v60 }
 0x220   : > { %3356 = vperm.xlu1 %6919, %v9163_v2   ;;  %v2654_v2 = vsub.f32 %v7776_v5, %v2341_v40 }
 0x221   : > { %2500 = vperm.xlu0 %6920, %v8810_v47  }
 0x222   : > { %v9179_v10 = vpop.eup %6981 }
 0x223   : > { %v2416_v39 = vpop.permute.xlu1 %2415  ;;  %v2421_v58 = vpop.permute.xlu0 %2420  ;;  %10877 = vst [vmem:[#allocation115_spill] sm:$0xff] %v9179_v10 }
 0x224   : > { %v2669_v27 = vsub.f32 %v7924_v17, %v2416_v39  ;;  %v2670_v54 = vsub.f32 %v7772_v4, %v2421_v58  ;;  %3436 = vperm.xlu1 %6919, %v9171_v60   ;;  %v2719_v4 = vmul.f32 1.442695, %v2654_v2 }
 0x225   : > { %2580 = vperm.xlu0 %6920, %v8832_v8  }
 0x226   : > { %v2749_v55 = vmul.f32 1.442695, %v2669_v27  ;;  %v2751_v43 = vmul.f32 1.442695, %v2670_v54  ;;  %v9185_v58 = vpop.eup %6983 }
 0x227   : > { %v2351_v16 = vpop.permute.xlu1 %2350  ;;  %v2336_v61 = vpop.permute.xlu0 %2335  ;;  %10878 = vst [vmem:[#allocation116_spill] sm:$0xff] %v9185_v58 }
 0x228   : > { %6985 = vpow2.f32 %v2749_v55  ;;  %v2653_v20 = vsub.f32 %v7910_v11, %v2336_v61  ;;  %3366 = vperm.xlu1 %6919, %v9179_v10   ;;  %v2656_v17 = vsub.f32 %v7914_v12, %v2351_v16  ;;  %v10879_v12 = vld [vmem:[#allocation6_spill] sm:$0xff] }
 0x229   : > { %2510 = vperm.xlu0 %6920, %v8856_v25   ;;  %6987 = vpow2.f32 %v2751_v43 }
 0x22a   : > { %v2717_v39 = vmul.f32 1.442695, %v2653_v20  ;;  %v2723_v61 = vmul.f32 1.442695, %v2656_v17 }
 0x22b   : > { %v2346_v5 = vpop.permute.xlu1 %2345  ;;  %v2431_v54 = vpop.permute.xlu0 %2430 }
 0x22c   : > { %v2655_v40 = vsub.f32 %v7934_v21, %v2346_v5  ;;  %3446 = vperm.xlu1 %6919, %v9185_v58   ;;  %6989 = vpow2.f32 %v2717_v39  ;;  %v2672_v11 = vsub.f32 %v7920_v14, %v2431_v54  ;;  %v10880_v39 = vld [vmem:[#allocation73_spill] sm:$0xff] }
 0x22d   : > { %2590 = vperm.xlu0 %6920, %v8880_v30   ;;  %6991 = vpow2.f32 %v2719_v4  ;;  %v10881_v4 = vld [vmem:[#allocation7_spill] sm:$0xff]  ;;  %v10883_v54 = vld [vmem:[#allocation69_spill] sm:$0xff] }
 0x22e   : > { %v2721_v55 = vmul.f32 1.442695, %v2655_v40  ;;  %v2755_v20 = vmul.f32 1.442695, %v2672_v11  ;;  %v10884_v40 = vsub.f32 %v10883_v54, %v8810_v47 }
 0x22f   : > { %v2426_v43 = vpop.permute.xlu1 %2425 }
 0x230   : > { %6993 = vpow2.f32 %v2721_v55  ;;  %v2671_v16 = vsub.f32 %v10879_v12, %v2426_v43  ;;  %2495 = vperm.xlu1 %6919, %v8819_v23   ;;  %v2441_v2 = vpop.permute.xlu0 %2440  ;;  %v2271_v11 = vmul.f32 1.442695, %v10884_v40  ;;  %v848_v43 = vld [vmem:[%s8487_s18 + $0x1f0] sm:$0xff] }
 0x231   : > { %2520 = vperm.xlu0 %6920, %v8902_v31   ;;  %6995 = vpow2.f32 %v2723_v61  ;;  %v10885_v12 = vld [vmem:[#allocation8_spill] sm:$0xff] }
 0x232   : > { %v2753_v21 = vmul.f32 1.442695, %v2671_v16 }
 0x233   : > { %v2361_v27 = vpop.permute.xlu1 %2360 }
 0x234   : > { %6997 = vpow2.f32 %v2753_v21  ;;  %2575 = vperm.xlu1 %6919, %v10880_v39   ;;  %v2658_v17 = vsub.f32 %v10881_v4, %v2361_v27 }
 0x235   : > { %2600 = vperm.xlu0 %6920, %v8924_v6   ;;  %v9196_v14 = vpop.eup %6985  ;;  %6999 = vpow2.f32 %v2755_v20  ;;  %v10886_v20 = vld [vmem:[#allocation9_spill] sm:$0xff] }
 0x236   : > { %v9199_v5 = vpop.eup %6987  ;;  %6713 = vmatprep.mubr.f32.mxu1 %v9196_v14  ;;  %v2674_v21 = vsub.f32 %v10886_v20, %v2441_v2  ;;  %v2727_v27 = vmul.f32 1.442695, %v2658_v17  ;;  %7001 = vpow2.f32 %v2271_v11  ;;  %v10888_v2 = vld [vmem:[#allocation10_spill] sm:$0xff] }
 0x237   : > { %10882 = vst [vmem:[#allocation6_spill] sm:$0xff] %v9199_v5  ;;  %v2356_v61 = vpop.permute.xlu1 %2355  ;;  %6714 = vmatmul.mubr.f32.vlgmr.msra.gmra.mxu1 %v9199_v5 }
 0x238   : > { %v9206_v55 = vpop.permute.xlu0 %2450  ;;  %v2657_v16 = vsub.f32 %v10885_v12, %v2356_v61  ;;  %2505 = vperm.xlu1 %6919, %v8867_v22   ;;  %6794 = vmatpush3.msra.mxu1 %v849_v32  ;;  %v832_v12 = vld [vmem:[%s8487_s18 + $0x170] sm:$0xff]  ;;  %v847_v32 = vld [vmem:[%s8487_s18 + $0x1e8] sm:$0xff]  ;;  %v2759_v20 = vmul.f32 1.442695, %v2674_v21  ;;  %v830_v21 = vld [vmem:[%s8487_s18 + $0x160] sm:$0xff] }
 0x239   : > { %2530 = vperm.xlu0 %6920, %v8948_v38   ;;  %v9213_v47 = vpop.eup %6989  ;;  %6795 = vmatprep.subr.mxu1 %v848_v43 }
 0x23a   : > { %10887 = vst [vmem:[#allocation73_spill] sm:$0xff] %v9213_v47  ;;  %v2725_v4 = vmul.f32 1.442695, %v2657_v16  ;;  %v9215_v54 = vpop.eup %6991  ;;  %6657 = vmatprep.mubr.f32.mxu0 %v9213_v47  ;;  %6796 = vmatpush3.msra.mxu1 %v848_v43  ;;  %v831_v43 = vld [vmem:[%s8487_s18 + $0x168] sm:$0xff]  ;;  %v846_v47 = vld [vmem:[%s8487_s18 + $0x1e0] sm:$0xff] }
 0x23b   : > { %v2436_v40 = vpop.permute.xlu1 %2435  ;;  %6658 = vmatmul.mubr.f32.vlgmr.msra.gmra.mxu0 %v9215_v54  ;;  %6797 = vmatprep.subr.mxu1 %v847_v32 }
 0x23c   : > { %v9218_v61 = vpop.permute.xlu0 %2380  ;;  %7003 = vpow2.f32 %v2725_v4  ;;  %v2673_v17 = vsub.f32 %v10888_v2, %v2436_v40  ;;  %2585 = vperm.xlu1 %6919, %v8891_v1   ;;  %6738 = vmatpush3.msra.mxu0 %v9166_v51 }
 0x23d   : > { %v9225_v16 = vpop.eup %6993  ;;  %7005 = vpow2.f32 %v2727_v27  ;;  %2610 = vperm.xlu0 %6920, %v8974_v52   ;;  %6739 = vmatprep.subr.mxu0 %v832_v12  ;;  %v10891_v27 = vld [vmem:[#allocation11_spill] sm:$0xff] }
 0x23e   : > { %v2757_v11 = vmul.f32 1.442695, %v2673_v17  ;;  %6660 = vmatprep.mubr.f32.mxu0 %v9225_v16  ;;  %v9231_v4 = vpop.eup %6995  ;;  %6740 = vmatpush3.msra.mxu0 %v832_v12  ;;  %v829_v12 = vld [vmem:[%s8487_s18 + $0x158] sm:$0xff] }
 0x23f   : > { %10889 = vst [vmem:[#allocation7_spill] sm:$0xff] %v9231_v4  ;;  %v2371_v40 = vpop.permute.xlu1 %2370  ;;  %6661 = vmatmul.mubr.f32.gmra.mxu0 %v9231_v4  ;;  %6741 = vmatprep.subr.mxu0 %v831_v43  ;;  %v828_v4 = vld [vmem:[%s8487_s18 + $0x150] sm:$0xff] }
 0x240   : > { %v9233_v2 = vpop.permute.xlu0 %2460  ;;  %7007 = vpow2.f32 %v2757_v11  ;;  %2515 = vperm.xlu1 %6919, %v8911_v35   ;;  %v2660_v17 = vsub.f32 %v10891_v27, %v2371_v40  ;;  %6742 = vmatpush3.msra.mxu0 %v831_v43  ;;  %v10893_v11 = vsub.f32 %v8834_v59, %v8856_v25  ;;  %v10895_v40 = vld [vmem:[#allocation12_spill] sm:$0xff]  ;;  %v10896_v43 = vld [vmem:[#allocation13_spill] sm:$0xff]  ;;  %v10897_v59 = vld [vmem:[#allocation70_spill] sm:$0xff] }
 0x241   : > { %v9238_v51 = vpop.eup %6997  ;;  %7009 = vpow2.f32 %v2759_v20  ;;  %2540 = vperm.xlu0 %6920, %v8996_v33   ;;  %6743 = vmatprep.subr.mxu0 %v830_v21  ;;  %v2676_v5 = vsub.f32 %v10896_v43, %v9206_v55  ;;  %v2173_v25 = vsub.f32 %v10897_v59, %v8819_v23  ;;  %v827_v55 = vld [vmem:[%s8487_s18 + $0x148] sm:$0xff]  ;;  %v10901_v43 = vld [vmem:[#allocation14_spill] sm:$0xff] }
 0x242   : > { %10890 = vst [vmem:[#allocation69_spill] sm:$0xff] %v9238_v51  ;;  %v9242_v58 = vpop.eup %6999  ;;  %6716 = vmatprep.mubr.f32.mxu1 %v9238_v51  ;;  %v2275_v10 = vmul.f32 1.442695, %v10893_v11  ;;  %6744 = vmatpush3.msra.mxu0 %v830_v21  ;;  %v2731_v51 = vmul.f32 1.442695, %v2660_v17  ;;  %v10898_v11 = vld [vmem:[#allocation71_spill] sm:$0xff] }
 0x243   : > { %10892 = vst [vmem:[#allocation8_spill] sm:$0xff] %v9242_v58  ;;  %v2366_v60 = vpop.permute.xlu1 %2365  ;;  %6717 = vmatmul.mubr.f32.gmra.mxu1 %v9242_v58  ;;  %6745 = vmatprep.subr.mxu0 %v829_v12  ;;  %v9267_v17 = vpop.eup %7001  ;;  %v2269_v59 = vmul.f32 1.442695, %v2173_v25  ;;  %v844_v25 = vld [vmem:[%s8487_s18 + $0x1d0] sm:$0xff] }
 0x244   : > { %v9250_v20 = vpop.permute.xlu0 %3381  ;;  %v2659_v27 = vsub.f32 %v10895_v40, %v2366_v60  ;;  %2595 = vperm.xlu1 %6919, %v8933_v46   ;;  %6746 = vmatpush3.msra.mxu0 %v829_v12  ;;  %7011 = vpow2.f32 %v2275_v10  ;;  %10900 = vst [vmem:[#allocation10_spill] sm:$0xff] %v9267_v17  ;;  %v2763_v12 = vmul.f32 1.442695, %v2676_v5  ;;  %v10902_v10 = vld [vmem:[#allocation15_spill] sm:$0xff] }
 0x245   : > { %10894 = vst [vmem:[#allocation9_spill] sm:$0xff] %v9250_v20  ;;  %2620 = vperm.xlu0 %6920, %v9018_v41   ;;  %v10899_v20 = vsub.f32 %v10898_v11, %v8832_v8  ;;  %6798 = vmatpush3.msra.mxu1 %v847_v32  ;;  %v845_v8 = vld [vmem:[%s8487_s18 + $0x1d8] sm:$0xff]  ;;  %v2662_v32 = vsub.f32 %v10902_v10, %v9218_v61  ;;  %v10903_v11 = vld [vmem:[#allocation72_spill] sm:$0xff] }
 0x246   : > { %v2729_v40 = vmul.f32 1.442695, %v2659_v27  ;;  %6747 = vmatprep.subr.mxu0 %v828_v4  ;;  %6799 = vmatprep.subr.mxu1 %v846_v47 }
 0x247   : > { %v2303_v60 = vmul.f32 1.442695, %v10899_v20  ;;  %v2446_v21 = vpop.permute.xlu1 %2445  ;;  %6748 = vmatpush3.msra.mxu0 %v828_v4  ;;  %6800 = vmatpush3.msra.mxu1 %v846_v47  ;;  %v2189_v4 = vsub.f32 %v10903_v11, %v10880_v39  ;;  %v10904_v47 = vld [vmem:[#allocation16_spill] sm:$0xff]  ;;  %v2735_v39 = vmul.f32 1.442695, %v2662_v32 }
 0x248   : > { %v9264_v58 = vpop.permute.xlu0 %2390  ;;  %7013 = vpow2.f32 %v2729_v40  ;;  %v2675_v23 = vsub.f32 %v10901_v43, %v2446_v21  ;;  %2525 = vperm.xlu1 %6919, %v8959_v0   ;;  %6749 = vmatprep.subr.mxu0 %v827_v55  ;;  %v10905_v43 = vld [vmem:[#allocation17_spill] sm:$0xff] }
 0x249   : > { %v9272_v20 = vpop.eup %7003  ;;  %7015 = vpow2.f32 %v2731_v51  ;;  %3461 = vperm.xlu0 %6920, %v9267_v17   ;;  %6801 = vmatprep.subr.mxu1 %v845_v8  ;;  %v826_v51 = vld [vmem:[%s8487_s18 + $0x140] sm:$0xff]  ;;  %v2301_v11 = vmul.f32 1.442695, %v2189_v4  ;;  %v2182_v17 = vsub.f32 %v8978_v53, %v8996_v33  ;;  %v821_v53 = vld [vmem:[%s8487_s18 + $0x118] sm:$0xff] }
 0x24a   : > { %v9277_v27 = vpop.eup %7005  ;;  %7017 = vpow2.f32 %v2303_v60  ;;  %v2761_v40 = vmul.f32 1.442695, %v2675_v23  ;;  %6663 = vmatprep.mubr.f32.mxu0 %v9272_v20  ;;  %6750 = vmatpush3.msra.mxu0 %v827_v55  ;;  %v2678_v23 = vsub.f32 %v10905_v43, %v9233_v2  ;;  %v10906_v55 = vsub.f32 %v8884_v34, %v8902_v31  ;;  %v824_v31 = vld [vmem:[%s8487_s18 + $0x130] sm:$0xff] }
 0x24b   : > { %v2376_v5 = vpop.permute.xlu1 %2375  ;;  %6664 = vmatmul.mubr.f32.gmra.mxu0 %v9277_v27  ;;  %6802 = vmatpush3.msra.mxu1 %v845_v8  ;;  %v825_v8 = vld [vmem:[%s8487_s18 + $0x138] sm:$0xff] }
 0x24c   : > { %v9283_v61 = vpop.permute.xlu0 %2470  ;;  %7019 = vpow2.f32 %v2761_v40  ;;  %v2661_v21 = vsub.f32 %v10904_v47, %v2376_v5  ;;  %2605 = vperm.xlu1 %6919, %v8983_v9   ;;  %6751 = vmatprep.subr.mxu0 %v826_v51  ;;  %v843_v5 = vld [vmem:[%s8487_s18 + $0x1c8] sm:$0xff]  ;;  %v2767_v47 = vmul.f32 1.442695, %v2678_v23 }
 0x24d   : > { %v9289_v60 = vpop.eup %7007  ;;  %7021 = vpow2.f32 %v2763_v12  ;;  %2550 = vperm.xlu0 %6920, %v9042_v48   ;;  %v2279_v12 = vmul.f32 1.442695, %v10906_v55  ;;  %6803 = vmatprep.subr.mxu1 %v844_v25 }
 0x24e   : > { %v9294_v10 = vpop.eup %7009  ;;  %7023 = vpow2.f32 %v2269_v59  ;;  %v2733_v40 = vmul.f32 1.442695, %v2661_v21  ;;  %6719 = vmatprep.mubr.f32.mxu1 %v9289_v60  ;;  %v10907_v59 = vld [vmem:[#allocation18_spill] sm:$0xff]  ;;  %6752 = vmatpush3.msra.mxu0 %v826_v51 }
 0x24f   : > { %v2456_v32 = vpop.permute.xlu1 %2455  ;;  %6720 = vmatmul.mubr.f32.gmra.mxu1 %v9294_v10  ;;  %6753 = vmatprep.subr.mxu0 %v825_v8  ;;  %v842_v21 = vld [vmem:[%s8487_s18 + $0x1c0] sm:$0xff] }
 0x250   : > { %v9301_v2 = vpop.permute.xlu0 %3296  ;;  %7025 = vpow2.f32 %v2733_v40  ;;  %v2677_v4 = vsub.f32 %v10907_v59, %v2456_v32  ;;  %2535 = vperm.xlu1 %6919, %v9005_v49   ;;  %6804 = vmatpush3.msra.mxu1 %v844_v25  ;;  %v10911_v59 = vld [vmem:[#allocation19_spill] sm:$0xff] }
 0x251   : > { %7027 = vpow2.f32 %v2735_v39  ;;  %2630 = vperm.xlu0 %6920, %v9064_v19   ;;  %6805 = vmatprep.subr.mxu1 %v843_v5  ;;  %v9314_v51 = vpop.eup %7011  ;;  %v823_v39 = vld [vmem:[%s8487_s18 + $0x128] sm:$0xff] }
 0x252   : > { %7029 = vpow2.f32 %v2301_v11  ;;  %v2765_v34 = vmul.f32 1.442695, %v2677_v4  ;;  %6754 = vmatpush3.msra.mxu0 %v825_v8  ;;  %6806 = vmatpush3.msra.mxu1 %v843_v5  ;;  %10908 = vst [vmem:[#allocation11_spill] sm:$0xff] %v9314_v51  ;;  %v841_v11 = vld [vmem:[%s8487_s18 + $0x1b8] sm:$0xff]  ;;  %v822_v8 = vld [vmem:[%s8487_s18 + $0x120] sm:$0xff]  ;;  %v2664_v4 = vsub.f32 %v10911_v59, %v9264_v58  ;;  %v10914_v58 = vsub.f32 %v8926_v24, %v8948_v38 }
 0x253   : > { %7031 = vpow2.f32 %v2279_v12  ;;  %v9310_v43 = vpop.permute.xlu1 %3301  ;;  %6755 = vmatprep.subr.mxu0 %v824_v31  ;;  %6807 = vmatprep.subr.mxu1 %v842_v21  ;;  %v10916_v24 = vld [vmem:[#allocation21_spill] sm:$0xff] }
 0x254   : > { %v9312_v40 = vpop.permute.xlu0 %3311  ;;  %7033 = vpow2.f32 %v2765_v34  ;;  %2615 = vperm.xlu1 %6919, %v9027_v45   ;;  %6756 = vmatpush3.msra.mxu0 %v824_v31  ;;  %v2175_v31 = vsub.f32 %v8847_v50, %v8867_v22  ;;  %v10912_v34 = vsub.f32 %v8860_v18, %v8880_v30  ;;  %v2283_v59 = vmul.f32 1.442695, %v10914_v58  ;;  %v10915_v18 = vld [vmem:[#allocation20_spill] sm:$0xff] }
 0x255   : > { %v9317_v25 = vpop.eup %7013  ;;  %7035 = vpow2.f32 %v2767_v47  ;;  %3471 = vperm.xlu0 %6920, %v9314_v51   ;;  %6808 = vmatpush3.msra.mxu1 %v842_v21  ;;  %v840_v51 = vld [vmem:[%s8487_s18 + $0x1b0] sm:$0xff]  ;;  %v2680_v38 = vsub.f32 %v10916_v24, %v9283_v61  ;;  %v2287_v61 = vmul.f32 1.442695, %v2182_v17  ;;  %v2198_v24 = vsub.f32 %v9000_v3, %v9018_v41 }
 0x256   : > { %v9321_v23 = vpop.eup %7015  ;;  %6666 = vmatprep.mubr.f32.mxu0 %v9317_v25  ;;  %6757 = vmatprep.subr.mxu0 %v823_v39  ;;  %v2307_v21 = vmul.f32 1.442695, %v10912_v34  ;;  %v2273_v34 = vmul.f32 1.442695, %v2175_v31 }
 0x257   : > { %v9325_v55 = vpop.eup %7017  ;;  %v9327_v12 = vpop.permute.xlu1 %3376  ;;  %6667 = vmatmul.mubr.f32.gmra.mxu0 %v9321_v23  ;;  %6809 = vmatprep.subr.mxu1 %v841_v11  ;;  %v2771_v3 = vmul.f32 1.442695, %v2680_v38 }
 0x258   : > { %10909 = vst [vmem:[#allocation12_spill] sm:$0xff] %v9325_v55  ;;  %v9330_v32 = vpop.permute.xlu0 %3391  ;;  %3541 = vperm.xlu1 %6919, %v9325_v55   ;;  %6758 = vmatpush3.msra.mxu0 %v823_v39  ;;  %v2739_v39 = vmul.f32 1.442695, %v2664_v4  ;;  %7037 = vpow2.f32 %v2307_v21  ;;  %v10920_v21 = vld [vmem:[#allocation22_spill] sm:$0xff] }
 0x259   : > { %10910 = vst [vmem:[#allocation13_spill] sm:$0xff] %v9330_v32  ;;  %v9334_v5 = vpop.eup %7019  ;;  %2560 = vperm.xlu0 %6920, %v9086_v28   ;;  %6759 = vmatprep.subr.mxu0 %v822_v8  ;;  %7039 = vpow2.f32 %v2283_v59  ;;  %v820_v59 = vld [vmem:[%s8487_s18 + $0x110] sm:$0xff] }
 0x25a   : > { %v9339_v47 = vpop.eup %7021  ;;  %6722 = vmatprep.mubr.f32.mxu1 %v9334_v5  ;;  %6810 = vmatpush3.msra.mxu1 %v841_v11  ;;  %v839_v11 = vld [vmem:[%s8487_s18 + $0x1a8] sm:$0xff] }
 0x25b   : > { %v9348_v55 = vpop.eup %7023  ;;  %v2386_v32 = vpop.permute.xlu1 %2385  ;;  %6723 = vmatmul.mubr.f32.gmra.mxu1 %v9339_v47  ;;  %6811 = vmatprep.subr.mxu1 %v840_v51 }
 0x25c   : > { %10913 = vst [vmem:[#allocation70_spill] sm:$0xff] %v9348_v55  ;;  %v9356_v50 = vpop.permute.xlu0 %2400  ;;  %v2663_v22 = vsub.f32 %v10915_v18, %v2386_v32  ;;  %3456 = vperm.xlu1 %6919, %v9348_v55   ;;  %v10917_v32 = vld [vmem:[#allocation76_spill] sm:$0xff]  ;;  %6760 = vmatpush3.msra.mxu0 %v822_v8 }
 0x25d   : > { %v9360_v30 = vpop.eup %7025  ;;  %2640 = vperm.xlu0 %6920, %v9108_v56   ;;  %v2191_v58 = vsub.f32 %v10917_v32, %v8891_v1  ;;  %6812 = vmatpush3.msra.mxu1 %v840_v51  ;;  %v2319_v32 = vmul.f32 1.442695, %v2198_v24  ;;  %v836_v24 = vld [vmem:[%s8487_s18 + $0x190] sm:$0xff] }
 0x25e   : > { %v9366_v33 = vpop.eup %7027  ;;  %v2737_v18 = vmul.f32 1.442695, %v2663_v22  ;;  %6669 = vmatprep.mubr.f32.mxu0 %v9360_v30  ;;  %6761 = vmatprep.subr.mxu0 %v821_v53 }
 0x25f   : > { %v9372_v4 = vpop.eup %7029  ;;  %v2466_v55 = vpop.permute.xlu1 %2465  ;;  %6670 = vmatmul.mubr.f32.gmra.mxu0 %v9366_v33  ;;  %6813 = vmatprep.subr.mxu1 %v839_v11  ;;  %v2305_v51 = vmul.f32 1.442695, %v2191_v58 }
 0x260   : > { %10918 = vst [vmem:[#allocation71_spill] sm:$0xff] %v9372_v4  ;;  %v9377_v31 = vpop.permute.xlu0 %2480  ;;  %v9379_v1 = vpop.eup %7031  ;;  %7041 = vpow2.f32 %v2737_v18  ;;  %v2679_v8 = vsub.f32 %v10920_v21, %v2466_v55  ;;  %3536 = vperm.xlu1 %6919, %v9372_v4   ;;  %6762 = vmatpush3.msra.mxu0 %v821_v53  ;;  %v838_v55 = vld [vmem:[%s8487_s18 + $0x1a0] sm:$0xff]  ;;  %v837_v53 = vld [vmem:[%s8487_s18 + $0x198] sm:$0xff]  ;;  %v10921_v21 = vld [vmem:[#allocation23_spill] sm:$0xff] }
 0x261   : > { %10919 = vst [vmem:[#allocation14_spill] sm:$0xff] %v9379_v1  ;;  %v9384_v17 = vpop.eup %7033  ;;  %7043 = vpow2.f32 %v2739_v39  ;;  %3481 = vperm.xlu0 %6920, %v9379_v1   ;;  %v2197_v39 = vsub.f32 %v9011_v26, %v9027_v45  ;;  %6763 = vmatprep.subr.mxu0 %v820_v59  ;;  %v2184_v45 = vsub.f32 %v9022_v63, %v9042_v48 }
 0x262   : > { %v9387_v41 = vpop.eup %7035  ;;  %7045 = vpow2.f32 %v2273_v34  ;;  %v2769_v22 = vmul.f32 1.442695, %v2679_v8  ;;  %6725 = vmatprep.mubr.f32.mxu1 %v9384_v17  ;;  %6814 = vmatpush3.msra.mxu1 %v839_v11  ;;  %v819_v34 = vld [vmem:[%s8487_s18 + $0x108] sm:$0xff]  ;;  %v2666_v8 = vsub.f32 %v10921_v21, %v9356_v50 }
 0x263   : > { %7047 = vpow2.f32 %v2287_v61  ;;  %v9393_v38 = vpop.permute.xlu1 %3306  ;;  %6726 = vmatmul.mubr.f32.gmra.mxu1 %v9387_v41  ;;  %6815 = vmatprep.subr.mxu1 %v838_v55  ;;  %v2317_v26 = vmul.f32 1.442695, %v2197_v39  ;;  %v818_v61 = vld [vmem:[%s8487_s18 + $0x100] sm:$0xff]  ;;  %v2291_v63 = vmul.f32 1.442695, %v2184_v45 }
 0x264   : > { %v9396_v18 = vpop.permute.xlu0 %3321  ;;  %7049 = vpow2.f32 %v2769_v22  ;;  %2545 = vperm.xlu1 %6919, %v9051_v13   ;;  %6764 = vmatpush3.msra.mxu0 %v820_v59  ;;  %v835_v59 = vld [vmem:[%s8487_s18 + $0x188] sm:$0xff] }
 0x265   : > { %7051 = vpow2.f32 %v2771_v3  ;;  %2570 = vperm.xlu0 %6920, %v9130_v62   ;;  %6816 = vmatpush3.msra.mxu1 %v838_v55  ;;  %v9415_v48 = vpop.eup %7037  ;;  %v2200_v3 = vsub.f32 %v9046_v57, %v9064_v19  ;;  %v834_v55 = vld [vmem:[%s8487_s18 + $0x180] sm:$0xff]  ;;  %v10926_v19 = vld [vmem:[#allocation79_spill] sm:$0xff] }
 0x266   : > { %7053 = vpow2.f32 %v2305_v51  ;;  %6765 = vmatprep.subr.mxu0 %v819_v34  ;;  %6817 = vmatprep.subr.mxu1 %v837_v53  ;;  %10922 = vst [vmem:[#allocation15_spill] sm:$0xff] %v9415_v48  ;;  %v9422_v50 = vpop.eup %7039 }
 0x267   : > { %7055 = vpow2.f32 %v2319_v32  ;;  %v9404_v58 = vpop.permute.xlu1 %3386  ;;  %6766 = vmatpush3.msra.mxu0 %v819_v34  ;;  %6818 = vmatpush3.msra.mxu1 %v837_v53  ;;  %10923 = vst [vmem:[#allocation72_spill] sm:$0xff] %v9422_v50  ;;  %v10924_v32 = vld [vmem:[#allocation24_spill] sm:$0xff]  ;;  %v2743_v53 = vmul.f32 1.442695, %v2666_v8 }
 0x268   : > { %v9406_v11 = vpop.permute.xlu0 %3401  ;;  %2625 = vperm.xlu1 %6919, %v9073_v44   ;;  %6767 = vmatprep.subr.mxu0 %v818_v61  ;;  %7057 = vpow2.f32 %v2317_v26  ;;  %v10925_v26 = vld [vmem:[#allocation25_spill] sm:$0xff] }
 0x269   : > { %2650 = vperm.xlu0 %6920, %v9150_v29   ;;  %6819 = vmatprep.subr.mxu1 %v836_v24  ;;  %v2682_v45 = vsub.f32 %v10925_v26, %v9377_v31  ;;  %7059 = vpow2.f32 %v2291_v63  ;;  %v2323_v31 = vmul.f32 1.442695, %v2200_v3  ;;  %v10932_v3 = vld [vmem:[#allocation81_spill] sm:$0xff] }
 0x26a   : > { %6768 = vmatpush3.msra.mxu0 %v818_v61  ;;  %6820 = vmatpush3.msra.mxu1 %v836_v24  ;;  %v2177_v61 = vsub.f32 %v10926_v19, %v8911_v35  ;;  %v10927_v24 = vld [vmem:[#allocation80_spill] sm:$0xff] }
 0x26b   : > { %v2396_v51 = vpop.permute.xlu1 %2395  ;;  %6821 = vmatprep.subr.mxu1 %v835_v59  ;;  %v10928_v21 = vsub.f32 %v10927_v24, %v8924_v6  ;;  %v10931_v6 = vld [vmem:[#allocation26_spill] sm:$0xff]  ;;  %v2775_v63 = vmul.f32 1.442695, %v2682_v45 }
 0x26c   : > { %v9419_v22 = vpop.permute.xlu0 %2410  ;;  %v2665_v39 = vsub.f32 %v10924_v32, %v2396_v51  ;;  %3551 = vperm.xlu1 %6919, %v9415_v48   ;;  %6822 = vmatpush3.msra.mxu1 %v835_v59  ;;  %v2199_v59 = vsub.f32 %v9055_v15, %v9073_v44  ;;  %v2277_v15 = vmul.f32 1.442695, %v2177_v61 }
 0x26d   : > { %v9426_v34 = vpop.eup %7041  ;;  %3491 = vperm.xlu0 %6920, %v9422_v50   ;;  %v2311_v51 = vmul.f32 1.442695, %v10928_v21  ;;  %6823 = vmatprep.subr.mxu1 %v834_v55 }
 0x26e   : > { %v9431_v57 = vpop.eup %7043  ;;  %v2741_v32 = vmul.f32 1.442695, %v2665_v39  ;;  %6672 = vmatprep.mubr.f32.mxu0 %v9426_v34  ;;  %6824 = vmatpush3.msra.mxu1 %v834_v55  ;;  %v2193_v55 = vsub.f32 %v10932_v3, %v8933_v46 }
 0x26f   : > { %v9439_v8 = vpop.eup %7045  ;;  %v2476_v26 = vpop.permute.xlu1 %2475  ;;  %6673 = vmatmul.mubr.f32.gmra.mxu0 %v9431_v57 }
 0x270   : > { %10929 = vst [vmem:[#allocation16_spill] sm:$0xff] %v9439_v8  ;;  %v9444_v50 = vpop.permute.xlu0 %2490  ;;  %v9446_v35 = vpop.eup %7047  ;;  %7061 = vpow2.f32 %v2741_v32  ;;  %v2681_v39 = vsub.f32 %v10931_v6, %v2476_v26  ;;  %3466 = vperm.xlu1 %6919, %v9439_v8   ;;  %v2321_v32 = vmul.f32 1.442695, %v2199_v59  ;;  %v2309_v46 = vmul.f32 1.442695, %v2193_v55  ;;  %v10936_v6 = vld [vmem:[#allocation27_spill] sm:$0xff] }
 0x271   : > { %10930 = vst [vmem:[#allocation17_spill] sm:$0xff] %v9446_v35  ;;  %v9450_v19 = vpop.eup %7049  ;;  %7063 = vpow2.f32 %v2743_v53  ;;  %3501 = vperm.xlu0 %6920, %v9446_v35   ;;  %v2186_v53 = vsub.f32 %v9068_v36, %v9086_v28  ;;  %v2202_v36 = vsub.f32 %v9090_v37, %v9108_v56 }
 0x272   : > { %v9453_v44 = vpop.eup %7051  ;;  %7065 = vpow2.f32 %v2311_v51  ;;  %v2773_v24 = vmul.f32 1.442695, %v2681_v39  ;;  %6728 = vmatprep.mubr.f32.mxu1 %v9450_v19  ;;  %v2668_v39 = vsub.f32 %v10936_v6, %v9419_v22  ;;  %v10941_v6 = vld [vmem:[#allocation29_spill] sm:$0xff] }
 0x273   : > { %v9458_v21 = vpop.eup %7053  ;;  %7067 = vpow2.f32 %v2323_v31  ;;  %v9462_v45 = vpop.permute.xlu1 %3316  ;;  %6729 = vmatmul.mubr.f32.gmra.mxu1 %v9453_v44  ;;  %v2295_v51 = vmul.f32 1.442695, %v2186_v53 }
 0x274   : > { %10933 = vst [vmem:[#allocation18_spill] sm:$0xff] %v9458_v21  ;;  %v9465_v26 = vpop.permute.xlu0 %3331  ;;  %v9467_v61 = vpop.eup %7055  ;;  %7069 = vpow2.f32 %v2773_v24  ;;  %3546 = vperm.xlu1 %6919, %v9458_v21   ;;  %v10940_v24 = vld [vmem:[#allocation28_spill] sm:$0xff]  ;;  %v2747_v22 = vmul.f32 1.442695, %v2668_v39 }
 0x275   : > { %10934 = vst [vmem:[#allocation19_spill] sm:$0xff] %v9467_v61  ;;  %7071 = vpow2.f32 %v2775_v63  ;;  %3581 = vperm.xlu0 %6920, %v9467_v61   ;;  %v9477_v59 = vpop.eup %7057  ;;  %v2327_v63 = vmul.f32 1.442695, %v2202_v36  ;;  %v10942_v36 = vld [vmem:[#allocation85_spill] sm:$0xff] }
 0x276   : > { %7073 = vpow2.f32 %v2277_v15  ;;  %10935 = vst [vmem:[#allocation20_spill] sm:$0xff] %v9477_v59  ;;  %v10937_v15 = vld [vmem:[#allocation100_spill] sm:$0xff]  ;;  %v9487_v55 = vpop.eup %7059 }
 0x277   : > { %7075 = vpow2.f32 %v2321_v32  ;;  %v9473_v28 = vpop.permute.xlu1 %3396  ;;  %v2201_v3 = vsub.f32 %v10937_v15, %v9117_v42  ;;  %10939 = vst [vmem:[#allocation76_spill] sm:$0xff] %v9487_v55  ;;  %v2196_v15 = vsub.f32 %v10942_v36, %v8974_v52 }
 0x278   : > { %v9475_v31 = vpop.permute.xlu0 %3411  ;;  %2555 = vperm.xlu1 %6919, %v9095_v7   ;;  %7077 = vpow2.f32 %v2309_v46  ;;  %v2684_v46 = vsub.f32 %v10941_v6, %v9444_v50 }
 0x279   : > { %3576 = vperm.xlu0 %6920, %v9477_v59   ;;  %7079 = vpow2.f32 %v2295_v51 }
 0x27a   : > { %7081 = vpow2.f32 %v2327_v63  ;;  %v2779_v63 = vmul.f32 1.442695, %v2684_v46 }
 0x27b   : > { %v2406_v37 = vpop.permute.xlu1 %2405 }
 0x27c   : > { %v9485_v56 = vpop.permute.xlu0 %3341  ;;  %v2667_v32 = vsub.f32 %v10940_v24, %v2406_v37  ;;  %2635 = vperm.xlu1 %6919, %v9117_v42   ;;  %v2325_v42 = vmul.f32 1.442695, %v2201_v3  ;;  %v10944_v37 = vld [vmem:[#allocation103_spill] sm:$0xff] }
 0x27d   : > { %10938 = vst [vmem:[#allocation21_spill] sm:$0xff] %v9485_v56  ;;  %v9491_v53 = vpop.eup %7061  ;;  %3511 = vperm.xlu0 %6920, %v9487_v55   ;;  %v2188_v39 = vsub.f32 %v10944_v37, %v9130_v62  ;;  %v10947_v55 = vld [vmem:[#allocation30_spill] sm:$0xff]  ;;  %v2315_v37 = vmul.f32 1.442695, %v2196_v15 }
 0x27e   : > { %v9496_v51 = vpop.eup %7063  ;;  %v2745_v61 = vmul.f32 1.442695, %v2667_v32  ;;  %6675 = vmatprep.mubr.f32.mxu0 %v9491_v53  ;;  %v10948_v62 = vld [vmem:[#allocation82_spill] sm:$0xff] }
 0x27f   : > { %v9501_v35 = vpop.eup %7065  ;;  %v2486_v24 = vpop.permute.xlu1 %2485  ;;  %6676 = vmatmul.mubr.f32.gmra.mxu0 %v9496_v51  ;;  %v2179_v36 = vsub.f32 %v10948_v62, %v8959_v0  ;;  %v10953_v15 = vld [vmem:[#allocation86_spill] sm:$0xff]  ;;  %v10956_v62 = vld [vmem:[#allocation109_spill] sm:$0xff] }
 0x280   : > { %10943 = vst [vmem:[#allocation22_spill] sm:$0xff] %v9501_v35  ;;  %v9506_v50 = vpop.permute.xlu0 %3421  ;;  %v9508_v6 = vpop.eup %7067  ;;  %7083 = vpow2.f32 %v2745_v61  ;;  %v2683_v52 = vsub.f32 %v10947_v55, %v2486_v24  ;;  %3561 = vperm.xlu1 %6919, %v9501_v35   ;;  %v2299_v55 = vmul.f32 1.442695, %v2188_v39  ;;  %v10950_v24 = vld [vmem:[#allocation107_spill] sm:$0xff] }
 0x281   : > { %10945 = vst [vmem:[#allocation23_spill] sm:$0xff] %v9506_v50  ;;  %10946 = vst [vmem:[#allocation24_spill] sm:$0xff] %v9508_v6  ;;  %v9512_v32 = vpop.eup %7069  ;;  %7085 = vpow2.f32 %v2747_v22  ;;  %3591 = vperm.xlu0 %6920, %v9508_v6   ;;  %v2204_v35 = vsub.f32 %v10950_v24, %v9150_v29  ;;  %v2281_v0 = vmul.f32 1.442695, %v2179_v36 }
 0x282   : > { %v9515_v3 = vpop.eup %7071  ;;  %v2777_v1 = vmul.f32 1.442695, %v2683_v52  ;;  %6731 = vmatprep.mubr.f32.mxu1 %v9512_v32  ;;  %7087 = vpow2.f32 %v2325_v42  ;;  %v2195_v42 = vsub.f32 %v10953_v15, %v8983_v9  ;;  %v10955_v52 = vld [vmem:[#allocation112_spill] sm:$0xff]  ;;  %v10960_v9 = vld [vmem:[#allocation89_spill] sm:$0xff] }
 0x283   : > { %v9520_v61 = vpop.eup %7073  ;;  %v9524_v22 = vpop.permute.xlu1 %3326  ;;  %6732 = vmatmul.mubr.f32.gmra.mxu1 %v9515_v3  ;;  %v2331_v39 = vmul.f32 1.442695, %v2204_v35  ;;  %v2203_v24 = vsub.f32 %v10956_v62, %v10955_v52  ;;  %v2181_v36 = vsub.f32 %v10960_v9, %v9005_v49  ;;  %v10964_v62 = vld [vmem:[#allocation108_spill] sm:$0xff] }
 0x284   : > { %10949 = vst [vmem:[#allocation25_spill] sm:$0xff] %v9520_v61  ;;  %v9527_v46 = vpop.permute.xlu0 %3351  ;;  %v9529_v6 = vpop.eup %7075  ;;  %7089 = vpow2.f32 %v2777_v1  ;;  %3476 = vperm.xlu1 %6919, %v9520_v61   ;;  %v10965_v49 = vld [vmem:[#allocation92_spill] sm:$0xff] }
 0x285   : > { %10951 = vst [vmem:[#allocation79_spill] sm:$0xff] %v9527_v46  ;;  %10952 = vst [vmem:[#allocation80_spill] sm:$0xff] %v9529_v6  ;;  %7091 = vpow2.f32 %v2779_v63  ;;  %3586 = vperm.xlu0 %6920, %v9529_v6   ;;  %v9535_v29 = vpop.eup %7077  ;;  %v2313_v63 = vmul.f32 1.442695, %v2195_v42  ;;  %v2329_v35 = vmul.f32 1.442695, %v2203_v24  ;;  %v2183_v42 = vsub.f32 %v10965_v49, %v9051_v13 }
 0x286   : > { %7093 = vpow2.f32 %v2315_v37  ;;  %10954 = vst [vmem:[#allocation26_spill] sm:$0xff] %v9535_v29  ;;  %v9543_v48 = vpop.eup %7079 }
 0x287   : > { %7095 = vpow2.f32 %v2299_v55  ;;  %v9539_v59 = vpop.permute.xlu1 %3406  ;;  %10959 = vst [vmem:[#allocation100_spill] sm:$0xff] %v9543_v48  ;;  %v9553_v15 = vpop.eup %7081  ;;  %v2289_v13 = vmul.f32 1.442695, %v2183_v42 }
 0x288   : > { %10957 = vst [vmem:[#allocation81_spill] sm:$0xff] %v9539_v59  ;;  %v9541_v1 = vpop.permute.xlu0 %3431  ;;  %3556 = vperm.xlu1 %6919, %v9535_v29   ;;  %7097 = vpow2.f32 %v2281_v0  ;;  %10963 = vst [vmem:[#allocation85_spill] sm:$0xff] %v9553_v15  ;;  %v2285_v0 = vmul.f32 1.442695, %v2181_v36  ;;  %v10969_v36 = vld [vmem:[#allocation97_spill] sm:$0xff] }
 0x289   : > { %10958 = vst [vmem:[#allocation27_spill] sm:$0xff] %v9541_v1  ;;  %3521 = vperm.xlu0 %6920, %v9543_v48   ;;  %7099 = vpow2.f32 %v2331_v39 }
 0x28a   : > { %7101 = vpow2.f32 %v2313_v63 }
 0x28b   : > { %v9549_v37 = vpop.permute.xlu1 %3336  ;;  %7103 = vpow2.f32 %v2329_v35  ;;  %v2185_v35 = vsub.f32 %v10969_v36, %v9095_v7  ;;  %v10974_v7 = vld [vmem:[#allocation104_spill] sm:$0xff] }
 0x28c   : > { %10961 = vst [vmem:[#allocation28_spill] sm:$0xff] %v9549_v37  ;;  %v9551_v55 = vpop.permute.xlu0 %3361  ;;  %2565 = vperm.xlu1 %6919, %v10964_v62   ;;  %7105 = vpow2.f32 %v2285_v0  ;;  %v2187_v42 = vsub.f32 %v10974_v7, %v10964_v62 }
 0x28d   : > { %10962 = vst [vmem:[#allocation29_spill] sm:$0xff] %v9551_v55  ;;  %v9556_v6 = vpop.eup %7083  ;;  %3601 = vperm.xlu0 %6920, %v9553_v15   ;;  %7107 = vpow2.f32 %v2289_v13  ;;  %v2293_v0 = vmul.f32 1.442695, %v2185_v35 }
 0x28e   : > { %v9559_v48 = vpop.eup %7085  ;;  %6678 = vmatprep.mubr.f32.mxu0 %v9556_v6 }
 0x28f   : > { %v9564_v39 = vpop.permute.xlu1 %3416  ;;  %6679 = vmatmul.mubr.f32.gmra.mxu0 %v9559_v48  ;;  %v9569_v9 = vpop.eup %7087  ;;  %7109 = vpow2.f32 %v2293_v0 }
 0x290   : > { %10966 = vst [vmem:[#allocation103_spill] sm:$0xff] %v9564_v39  ;;  %v9567_v24 = vpop.permute.xlu0 %3441  ;;  %10968 = vst [vmem:[#allocation82_spill] sm:$0xff] %v9569_v9  ;;  %2645 = vperm.xlu1 %6919, %v10955_v52  }
 0x291   : > { %10967 = vst [vmem:[#allocation30_spill] sm:$0xff] %v9567_v24  ;;  %v9572_v15 = vpop.eup %7089  ;;  %3596 = vperm.xlu0 %6920, %v9569_v9  }
 0x292   : > { %v9575_v63 = vpop.eup %7091  ;;  %6734 = vmatprep.mubr.f32.mxu1 %v9572_v15 }
 0x293   : > { %v9580_v49 = vpop.eup %7093  ;;  %v9582_v29 = vpop.permute.xlu1 %3346  ;;  %6735 = vmatmul.mubr.f32.gmra.mxu1 %v9575_v63 }
 0x294   : > { %10970 = vst [vmem:[#allocation107_spill] sm:$0xff] %v9580_v49  ;;  %10971 = vst [vmem:[#allocation86_spill] sm:$0xff] %v9582_v29  ;;  %v9585_v52 = vpop.permute.xlu0 %3371  ;;  %v9587_v61 = vpop.eup %7095  ;;  %3571 = vperm.xlu1 %6919, %v9580_v49   ;;  %v2297_v49 = vmul.f32 1.442695, %v2187_v42 }
 0x295   : > { %10972 = vst [vmem:[#allocation112_spill] sm:$0xff] %v9585_v52  ;;  %10973 = vst [vmem:[#allocation109_spill] sm:$0xff] %v9587_v61  ;;  %3531 = vperm.xlu0 %6920, %v9587_v61   ;;  %v9593_v36 = vpop.eup %7097 }
 0x296   : > { %10975 = vst [vmem:[#allocation89_spill] sm:$0xff] %v9593_v36  ;;  %v9599_v8 = vpop.eup %7099  ;;  %7111 = vpow2.f32 %v2297_v49  ;;  %v10988_v49 = vld [vmem:[#allocation31_spill] sm:$0xff] }
 0x297   : > { %v9595_v9 = vpop.permute.xlu1 %3426  ;;  %10978 = vst [vmem:[#allocation97_spill] sm:$0xff] %v9599_v8  ;;  %v9603_v61 = vpop.eup %7101 }
 0x298   : > { %10976 = vst [vmem:[#allocation108_spill] sm:$0xff] %v9595_v9  ;;  %v9597_v21 = vpop.permute.xlu0 %3451  ;;  %3486 = vperm.xlu1 %6919, %v9593_v36   ;;  %10979 = vst [vmem:[#allocation104_spill] sm:$0xff] %v9603_v61  ;;  %v9607_v62 = vpop.eup %7103  ;;  %v10991_v9 = vld [vmem:[#allocation33_spill] sm:$0xff] }
 0x299   : > { %10977 = vst [vmem:[#allocation92_spill] sm:$0xff] %v9597_v21  ;;  %3611 = vperm.xlu0 %6920, %v9599_v8   ;;  %10981 = vst [vmem:[#allocation118_spill] sm:$0xff] %v9607_v62  ;;  %v9611_v7 = vpop.eup %7105 }
 0x29a   : > { %10982 = vst [vmem:[#allocation119_spill] sm:$0xff] %v9611_v7  ;;  %v9616_v0 = vpop.eup %7107 }
 0x29b   : > { %v9605_v13 = vpop.permute.xlu1 %3356  ;;  %10984 = vst [vmem:[#allocation121_spill] sm:$0xff] %v9616_v0 }
 0x29c   : > { %10980 = vst [vmem:[#allocation117_spill] sm:$0xff] %v9605_v13  ;;  %v2501_v35 = vpop.permute.xlu0 %2500  ;;  %3566 = vperm.xlu1 %6919, %v9603_v61   ;;  %v9621_v21 = vpop.eup %7109  ;;  %v10990_v13 = vld [vmem:[#allocation32_spill] sm:$0xff] }
 0x29d   : > { %3606 = vperm.xlu0 %6920, %v9607_v62   ;;  %10986 = vst [vmem:[#allocation123_spill] sm:$0xff] %v9621_v21  ;;  %v2686_v52 = vsub.f32 %v10988_v49, %v2501_v35  ;;  %v10993_v35 = vld [vmem:[#allocation35_spill] sm:$0xff] }
 0x29f   : > { %v9613_v4 = vpop.permute.xlu1 %3436 }
 0x2a0   : > { %10983 = vst [vmem:[#allocation120_spill] sm:$0xff] %v9613_v4  ;;  %v2581_v36 = vpop.permute.xlu0 %2580  ;;  %3496 = vperm.xlu1 %6919, %v9611_v7  }
 0x2a3   : > { %v9618_v42 = vpop.permute.xlu1 %3366  ;;  %v9627_v4 = vpop.eup %7111 }
 0x2a4   : > { %10985 = vst [vmem:[#allocation122_spill] sm:$0xff] %v9618_v42  ;;  %v2511_v8 = vpop.permute.xlu0 %2510  ;;  %3506 = vperm.xlu1 %6919, %v9616_v0   ;;  %10989 = vst [vmem:[#allocation31_spill] sm:$0xff] %v9627_v4  ;;  %v2783_v42 = vmul.f32 1.442695, %v2686_v52  ;;  %v2702_v0 = vsub.f32 %v10991_v9, %v2581_v36 }
 0x2a5   : > { %v2688_v49 = vsub.f32 %v10993_v35, %v2511_v8 }
 0x2a7   : > { %v9623_v61 = vpop.permute.xlu1 %3446  ;;  %v2787_v52 = vmul.f32 1.442695, %v2688_v49 }
 0x2a8   : > { %10987 = vst [vmem:[#allocation124_spill] sm:$0xff] %v9623_v61  ;;  %v2591_v62 = vpop.permute.xlu0 %2590  ;;  %3516 = vperm.xlu1 %6919, %v9621_v21   ;;  %v10992_v61 = vld [vmem:[#allocation34_spill] sm:$0xff]  ;;  %v2815_v21 = vmul.f32 1.442695, %v2702_v0  ;;  %v10997_v0 = vld [vmem:[#allocation39_spill] sm:$0xff] }
 0x2ab   : > { %v2496_v24 = vpop.permute.xlu1 %2495 }
 0x2ac   : > { %v2521_v7 = vpop.permute.xlu0 %2520  ;;  %v2685_v55 = vsub.f32 %v10990_v13, %v2496_v24  ;;  %3526 = vperm.xlu1 %6919, %v9627_v4   ;;  %v10994_v24 = vld [vmem:[#allocation36_spill] sm:$0xff]  ;;  %v10995_v4 = vld [vmem:[#allocation37_spill] sm:$0xff] }
 0x2ad   : > { %v2704_v9 = vsub.f32 %v10995_v4, %v2591_v62  ;;  %v2690_v8 = vsub.f32 %v10997_v0, %v2521_v7  ;;  %v10999_v62 = vld [vmem:[#allocation41_spill] sm:$0xff] }
 0x2ae   : > { %v2781_v1 = vmul.f32 1.442695, %v2685_v55 }
 0x2af   : > { %v2576_v29 = vpop.permute.xlu1 %2575  ;;  %v2791_v4 = vmul.f32 1.442695, %v2690_v8  ;;  %v11002_v8 = vld [vmem:[#allocation44_spill] sm:$0xff] }
 0x2b0   : > { %v2601_v46 = vpop.permute.xlu0 %2600  ;;  %7113 = vpow2.f32 %v2781_v1  ;;  %v2701_v39 = vsub.f32 %v10992_v61, %v2576_v29  ;;  %v10996_v1 = vld [vmem:[#allocation38_spill] sm:$0xff]  ;;  %v2819_v29 = vmul.f32 1.442695, %v2704_v9 }
 0x2b1   : > { %7115 = vpow2.f32 %v2783_v42  ;;  %v2706_v49 = vsub.f32 %v10999_v62, %v2601_v46 }
 0x2b2   : > { %v2813_v50 = vmul.f32 1.442695, %v2701_v39 }
 0x2b3   : > { %v2506_v37 = vpop.permute.xlu1 %2505 }
 0x2b4   : > { %v2531_v56 = vpop.permute.xlu0 %2530  ;;  %7117 = vpow2.f32 %v2813_v50  ;;  %v2687_v13 = vsub.f32 %v10994_v24, %v2506_v37  ;;  %v10998_v50 = vld [vmem:[#allocation40_spill] sm:$0xff] }
 0x2b5   : > { %7119 = vpow2.f32 %v2815_v21 }
 0x2b6   : > { %v2785_v55 = vmul.f32 1.442695, %v2687_v13 }
 0x2b7   : > { %v2586_v36 = vpop.permute.xlu1 %2585 }
 0x2b8   : > { %7121 = vpow2.f32 %v2785_v55  ;;  %v2703_v59 = vsub.f32 %v10996_v1, %v2586_v36  ;;  %v2611_v61 = vpop.permute.xlu0 %2610  ;;  %v2823_v55 = vmul.f32 1.442695, %v2706_v49  ;;  %v11001_v36 = vld [vmem:[#allocation43_spill] sm:$0xff] }
 0x2b9   : > { %7123 = vpow2.f32 %v2787_v52  ;;  %v2692_v46 = vsub.f32 %v11001_v36, %v2531_v56  ;;  %v11004_v56 = vld [vmem:[#allocation45_spill] sm:$0xff] }
 0x2ba   : > { %v2817_v39 = vmul.f32 1.442695, %v2703_v59  ;;  %v11000_v59 = vld [vmem:[#allocation42_spill] sm:$0xff] }
 0x2bb   : > { %v2516_v42 = vpop.permute.xlu1 %2515 }
 0x2bc   : > { %7125 = vpow2.f32 %v2817_v39  ;;  %v2689_v35 = vsub.f32 %v10998_v50, %v2516_v42  ;;  %2975 = vadd.xlane.f32.xlu0 %v9215_v54  ;;  %v2541_v21 = vpop.permute.xlu0 %2540  ;;  %v2795_v50 = vmul.f32 1.442695, %v2692_v46 }
 0x2bd   : > { %v9640_v37 = vpop.eup %7113  ;;  %7127 = vpow2.f32 %v2819_v29 }
 0x2be   : > { %v9643_v24 = vpop.eup %7115  ;;  %v2789_v13 = vmul.f32 1.442695, %v2689_v35  ;;  %6769 = vmatprep.mubr.f32.mxu0 %v9640_v37  ;;  %v2708_v35 = vsub.f32 %v11004_v56, %v2611_v61  ;;  %v11007_v61 = vld [vmem:[#allocation47_spill] sm:$0xff] }
 0x2bf   : > { %v2596_v7 = vpop.permute.xlu1 %2595  ;;  %6770 = vmatmul.mubr.f32.vlgmr.msra.gmra.mxu0 %v9643_v24  ;;  %v2694_v36 = vsub.f32 %v11007_v61, %v2541_v21 }
 0x2c0   : > { %7129 = vpow2.f32 %v2789_v13  ;;  %v2705_v52 = vsub.f32 %v11000_v59, %v2596_v7  ;;  %3005 = vadd.xlane.f32.xlu0 %v9196_v14  ;;  %v2621_v54 = vpop.permute.xlu0 %2620  ;;  %v11005_v13 = vld [vmem:[#allocation46_spill] sm:$0xff] }
 0x2c1   : > { %v9649_v9 = vpop.eup %7117  ;;  %7131 = vpow2.f32 %v2791_v4 }
 0x2c2   : > { %v9652_v1 = vpop.eup %7119  ;;  %v2821_v29 = vmul.f32 1.442695, %v2705_v52  ;;  %6825 = vmatprep.mubr.f32.mxu1 %v9649_v9 }
 0x2c3   : > { %v2526_v0 = vpop.permute.xlu1 %2525  ;;  %6826 = vmatmul.mubr.f32.vlgmr.msra.gmra.mxu1 %v9652_v1 }
 0x2c4   : > { %7133 = vpow2.f32 %v2821_v29  ;;  %v2691_v39 = vsub.f32 %v11002_v8, %v2526_v0  ;;  %2977 = vadd.xlane.f32.xlu0 %v9225_v16  ;;  %v9658_v14 = vpop.permute.xlu0 %3461  ;;  %v11006_v16 = vld [vmem:[#allocation69_spill] sm:$0xff]  ;;  %v11008_v8 = vld [vmem:[#allocation48_spill] sm:$0xff] }
 0x2c5   : > { %11003 = vst [vmem:[#allocation32_spill] sm:$0xff] %v9658_v14  ;;  %v9660_v42 = vpop.eup %7121  ;;  %7135 = vpow2.f32 %v2823_v55  ;;  %v2827_v55 = vmul.f32 1.442695, %v2708_v35  ;;  %v11009_v35 = vld [vmem:[#allocation49_spill] sm:$0xff] }
 0x2c6   : > { %v9663_v4 = vpop.eup %7123  ;;  %v2793_v62 = vmul.f32 1.442695, %v2691_v39  ;;  %6772 = vmatprep.mubr.f32.mxu0 %v9660_v42 }
 0x2c7   : > { %v2606_v49 = vpop.permute.xlu1 %2605  ;;  %6773 = vmatmul.mubr.f32.gmra.mxu0 %v9663_v4 }
 0x2c8   : > { %7137 = vpow2.f32 %v2793_v62  ;;  %v2707_v7 = vsub.f32 %v11005_v13, %v2606_v49  ;;  %3009 = vadd.xlane.f32.xlu0 %v11006_v16  ;;  %v9669_v59 = vpop.permute.xlu0 %2550  ;;  %v2710_v62 = vsub.f32 %v11009_v35, %v2621_v54  ;;  %v11010_v16 = vld [vmem:[#allocation50_spill] sm:$0xff] }
 0x2c9   : > { %v9671_v52 = vpop.eup %7125  ;;  %7139 = vpow2.f32 %v2795_v50  ;;  %v2799_v50 = vmul.f32 1.442695, %v2694_v36 }
 0x2ca   : > { %v9674_v46 = vpop.eup %7127  ;;  %v2825_v29 = vmul.f32 1.442695, %v2707_v7  ;;  %6828 = vmatprep.mubr.f32.mxu1 %v9671_v52  ;;  %v2831_v54 = vmul.f32 1.442695, %v2710_v62  ;;  %v11016_v62 = vld [vmem:[#allocation7_spill] sm:$0xff] }
 0x2cb   : > { %v2536_v0 = vpop.permute.xlu1 %2535  ;;  %6829 = vmatmul.mubr.f32.gmra.mxu1 %v9674_v46 }
 0x2cc   : > { %7141 = vpow2.f32 %v2825_v29  ;;  %v2693_v39 = vsub.f32 %v11008_v8, %v2536_v0  ;;  %2981 = vadd.xlane.f32.xlu0 %v9272_v20  ;;  %v2631_v13 = vpop.permute.xlu0 %2630  ;;  %v11011_v20 = vld [vmem:[#allocation6_spill] sm:$0xff] }
 0x2cd   : > { %v9680_v56 = vpop.eup %7129  ;;  %7143 = vpow2.f32 %v2827_v55 }
 0x2ce   : > { %v9683_v21 = vpop.eup %7131  ;;  %v2797_v49 = vmul.f32 1.442695, %v2693_v39  ;;  %6775 = vmatprep.mubr.f32.mxu0 %v9680_v56 }
 0x2cf   : > { %v2616_v7 = vpop.permute.xlu1 %2615  ;;  %6776 = vmatmul.mubr.f32.gmra.mxu0 %v9683_v21 }
 0x2d0   : > { %7145 = vpow2.f32 %v2797_v49  ;;  %v2709_v61 = vsub.f32 %v11010_v16, %v2616_v7  ;;  %3013 = vadd.xlane.f32.xlu0 %v9289_v60  ;;  %3007 = vadd.xlane.f32.xlu1 %v11011_v20  ;;  %v9698_v8 = vpop.permute.xlu0 %3471  ;;  %v11014_v60 = vld [vmem:[#allocation73_spill] sm:$0xff] }
 0x2d1   : > { %v9690_v55 = vpop.eup %7133  ;;  %7147 = vpow2.f32 %v2799_v50  ;;  %11013 = vst [vmem:[#allocation34_spill] sm:$0xff] %v9698_v8  ;;  %v11021_v8 = vld [vmem:[#allocation52_spill] sm:$0xff] }
 0x2d2   : > { %v9692_v36 = vpop.eup %7135  ;;  %v2829_v29 = vmul.f32 1.442695, %v2709_v61  ;;  %6831 = vmatprep.mubr.f32.mxu1 %v9690_v55  ;;  %v11018_v61 = vld [vmem:[#allocation8_spill] sm:$0xff] }
 0x2d3   : > { %v9695_v0 = vpop.permute.xlu1 %3541  ;;  %6832 = vmatmul.mubr.f32.gmra.mxu1 %v9692_v36 }
 0x2d4   : > { %11012 = vst [vmem:[#allocation33_spill] sm:$0xff] %v9695_v0  ;;  %7149 = vpow2.f32 %v2829_v29  ;;  %2985 = vadd.xlane.f32.xlu0 %v9317_v25  ;;  %2973 = vadd.xlane.f32.xlu1 %v11014_v60  ;;  %v2561_v7 = vpop.permute.xlu0 %2560  ;;  %v11022_v0 = vld [vmem:[#allocation53_spill] sm:$0xff] }
 0x2d5   : > { %v9702_v39 = vpop.eup %7137  ;;  %7151 = vpow2.f32 %v2831_v54 }
 0x2d6   : > { %v9704_v50 = vpop.eup %7139  ;;  %6778 = vmatprep.mubr.f32.mxu0 %v9702_v39 }
 0x2d7   : > { %v9707_v35 = vpop.permute.xlu1 %3456  ;;  %6779 = vmatmul.mubr.f32.gmra.mxu0 %v9704_v50 }
 0x2d8   : > { %11015 = vst [vmem:[#allocation35_spill] sm:$0xff] %v9707_v35  ;;  %3017 = vadd.xlane.f32.xlu0 %v9334_v5  ;;  %2979 = vadd.xlane.f32.xlu1 %v11016_v62  ;;  %v11019_v5 = vld [vmem:[#allocation51_spill] sm:$0xff]  ;;  %v9730_v62 = vpop.permute.xlu0 %2640 }
 0x2d9   : > { %v9712_v49 = vpop.eup %7141  ;;  %v2696_v54 = vsub.f32 %v11019_v5, %v9669_v59  ;;  %v2712_v59 = vsub.f32 %v11022_v0, %v2631_v13 }
 0x2da   : > { %v9714_v25 = vpop.eup %7143  ;;  %6834 = vmatprep.mubr.f32.mxu1 %v9712_v49 }
 0x2db   : > { %v9717_v16 = vpop.permute.xlu1 %3536  ;;  %6835 = vmatmul.mubr.f32.gmra.mxu1 %v9714_v25 }
 0x2dc   : > { %11017 = vst [vmem:[#allocation36_spill] sm:$0xff] %v9717_v16  ;;  %2989 = vadd.xlane.f32.xlu0 %v9360_v30  ;;  %3011 = vadd.xlane.f32.xlu1 %v11018_v61  ;;  %v2803_v61 = vmul.f32 1.442695, %v2696_v54 }
 0x2dd   : > { %v9722_v20 = vpop.eup %7145 }
 0x2de   : > { %v9726_v29 = vpop.eup %7147  ;;  %6781 = vmatprep.mubr.f32.mxu0 %v9722_v20 }
 0x2df   : > { %11020 = vst [vmem:[#allocation37_spill] sm:$0xff] %v9726_v29  ;;  %v2546_v60 = vpop.permute.xlu1 %2545  ;;  %6782 = vmatmul.mubr.f32.gmra.mxu0 %v9726_v29  ;;  %v11023_v29 = vld [vmem:[#allocation54_spill] sm:$0xff] }
 0x2e0   : > { %v2695_v16 = vsub.f32 %v11021_v8, %v2546_v60  ;;  %3021 = vadd.xlane.f32.xlu0 %v9384_v17  ;;  %2983 = vadd.xlane.f32.xlu1 %v9277_v27  ;;  %v2835_v27 = vmul.f32 1.442695, %v2712_v59  ;;  %v9745_v17 = vpop.permute.xlu0 %3481 }
 0x2e1   : > { %v9735_v30 = vpop.eup %7149  ;;  %11024 = vst [vmem:[#allocation38_spill] sm:$0xff] %v9745_v17 }
 0x2e2   : > { %v9738_v5 = vpop.eup %7151  ;;  %v2801_v35 = vmul.f32 1.442695, %v2695_v16  ;;  %6837 = vmatprep.mubr.f32.mxu1 %v9735_v30 }
 0x2e3   : > { %v2626_v14 = vpop.permute.xlu1 %2625  ;;  %6838 = vmatmul.mubr.f32.gmra.mxu1 %v9738_v5 }
 0x2e4   : > { %7153 = vpow2.f32 %v2801_v35  ;;  %v2711_v8 = vsub.f32 %v11023_v29, %v2626_v14  ;;  %2993 = vadd.xlane.f32.xlu0 %v9426_v34  ;;  %3015 = vadd.xlane.f32.xlu1 %v9294_v10  ;;  %v9753_v14 = vpop.permute.xlu0 %2570  ;;  %v3247_v29 = vld [vmem:[#allocation4 + $0x88] sm:$0xff] }
 0x2e5   : > { %7155 = vpow2.f32 %v2803_v61  ;;  %v11029_v61 = vld [vmem:[#allocation57_spill] sm:$0xff] }
 0x2e6   : > { %v2833_v13 = vmul.f32 1.442695, %v2711_v8  ;;  %v2714_v59 = vsub.f32 %v11029_v61, %v9730_v62  ;;  %v3230_v61 = vld [vmem:[#allocation4] sm:$0xff] }
 0x2e7   : > { %v9747_v0 = vpop.permute.xlu1 %3551 }
 0x2e8   : > { %11025 = vst [vmem:[#allocation39_spill] sm:$0xff] %v9747_v0  ;;  %7157 = vpow2.f32 %v2833_v13  ;;  %3025 = vadd.xlane.f32.xlu0 %v9450_v19  ;;  %2987 = vadd.xlane.f32.xlu1 %v9321_v23  ;;  %v11027_v19 = vld [vmem:[#allocation55_spill] sm:$0xff]  ;;  %v9766_v54 = vpop.permute.xlu0 %2650 }
 0x2e9   : > { %7159 = vpow2.f32 %v2835_v27  ;;  %v2698_v16 = vsub.f32 %v11027_v19, %v2561_v7  ;;  %v11030_v27 = vld [vmem:[#allocation9_spill] sm:$0xff] }
 0x2ea   : > { %v3631_v13 = vmul.f32 %v11030_v27, %v3247_v29  ;;  %v2839_v29 = vmul.f32 1.442695, %v2714_v59 }
 0x2eb   : > { %v9751_v35 = vpop.permute.xlu1 %3466  ;;  %v2807_v7 = vmul.f32 1.442695, %v2698_v16  ;;  %v11031_v16 = vld [vmem:[#allocation58_spill] sm:$0xff] }
 0x2ec   : > { %2997 = vadd.xlane.f32.xlu0 %v9491_v53  ;;  %3019 = vadd.xlane.f32.xlu1 %v9339_v47  ;;  %v11028_v47 = vld [vmem:[#allocation56_spill] sm:$0xff] }
 0x2ef   : > { %v9757_v10 = vpop.permute.xlu1 %3546 }
 0x2f0   : > { %11026 = vst [vmem:[#allocation40_spill] sm:$0xff] %v9757_v10  ;;  %3029 = vadd.xlane.f32.xlu0 %v9512_v32  ;;  %2991 = vadd.xlane.f32.xlu1 %v9366_v33  ;;  %v3246_v32 = vld [vmem:[#allocation4 + $0x80] sm:$0xff] }
 0x2f1   : > { %v9761_v34 = vpop.eup %7153 }
 0x2f2   : > { %v9764_v23 = vpop.eup %7155  ;;  %6784 = vmatprep.mubr.f32.mxu0 %v9761_v34 }
 0x2f3   : > { %v2556_v53 = vpop.permute.xlu1 %2555  ;;  %6785 = vmatmul.mubr.f32.gmra.mxu0 %v9764_v23 }
 0x2f4   : > { %v2697_v60 = vsub.f32 %v11028_v47, %v2556_v53  ;;  %3001 = vadd.xlane.f32.xlu0 %v9556_v6  ;;  %3023 = vadd.xlane.f32.xlu1 %v9387_v41  ;;  %v3231_v6 = vld [vmem:[#allocation4 + $0x8] sm:$0xff]  ;;  %v3630_v41 = vmul.f32 %v9327_v12, %v3246_v32  ;;  %v9783_v47 = vpop.permute.xlu0 %3491 }
 0x2f5   : > { %v9773_v33 = vpop.eup %7157  ;;  %v3615_v12 = vmul.f32 %v9310_v43, %v3231_v6 }
 0x2f6   : > { %v9777_v8 = vpop.eup %7159  ;;  %v2805_v19 = vmul.f32 1.442695, %v2697_v60  ;;  %6840 = vmatprep.mubr.f32.mxu1 %v9773_v33 }
 0x2f7   : > { %v2636_v17 = vpop.permute.xlu1 %2635  ;;  %v6715_v53 = vpop.f32.mrf.mxu1  ;;  %6841 = vmatmul.mubr.f32.gmra.mxu1 %v9777_v8 }
 0x2f8   : > { %7161 = vpow2.f32 %v2805_v19  ;;  %v2713_v10 = vsub.f32 %v11031_v16, %v2636_v17  ;;  %v4275_v62 = vadd.f32 %v6715_v53, %v3631_v13  ;;  %3033 = vadd.xlane.f32.xlu0 %v9572_v15  ;;  %2995 = vadd.xlane.f32.xlu1 %v9431_v57  ;;  %v3233_v19 = vld [vmem:[#allocation4 + $0x18] sm:$0xff]  ;;  %v3614_v57 = vmul.f32 %v9301_v2, %v3230_v61 }
 0x2f9   : > { %7163 = vpow2.f32 %v2807_v7  ;;  %v3889_v60 = vpop.f32.mrf.mxu1  ;;  %v9796_v7 = vpop.permute.xlu0 %3501  ;;  %v3617_v43 = vmul.f32 %v9312_v40, %v3233_v19  ;;  %v3249_v13 = vld [vmem:[#allocation4 + $0x98] sm:$0xff] }
 0x2fa   : > { %v2837_v27 = vmul.f32 1.442695, %v2713_v10  ;;  %4339 = vst.msk [vmem:[#allocation4 + $0x88] sm:$0xff] %vm593_vm0, %v4275_v62  ;;  %v4274_v0 = vadd.f32 %v3889_v60, %v3630_v41  ;;  %v3232_v10 = vld [vmem:[#allocation4 + $0x10] sm:$0xff]  ;;  %v11032_v41 = vld [vmem:[#allocation13_spill] sm:$0xff] }
 0x2fb   : > { %v9790_v32 = vpop.permute.xlu1 %3561  ;;  %v6659_v17 = vpop.f32.mrf.mxu0  ;;  %v3616_v2 = vmul.f32 %v9393_v38, %v3232_v10  ;;  %v3633_v16 = vmul.f32 %v11032_v41, %v3249_v13  ;;  %v3234_v10 = vld [vmem:[#allocation4 + $0x20] sm:$0xff] }
 0x2fc   : > { %7165 = vpow2.f32 %v2837_v27  ;;  %4338 = vst.msk [vmem:[#allocation4 + $0x80] sm:$0xff] %vm593_vm0, %v4274_v0  ;;  %3037 = vadd.xlane.f32.xlu0 %v9640_v37  ;;  %3027 = vadd.xlane.f32.xlu1 %v9453_v44  ;;  %v4259_v15 = vadd.f32 %v6659_v17, %v3615_v12  ;;  %v3248_v44 = vld [vmem:[#allocation4 + $0x90] sm:$0xff]  ;;  %v11033_v27 = vld [vmem:[#allocation59_spill] sm:$0xff] }
 0x2fd   : > { %7167 = vpow2.f32 %v2839_v29  ;;  %v3744_v59 = vpop.f32.mrf.mxu0  ;;  %v3632_v61 = vmul.f32 %v9404_v58, %v3248_v44  ;;  %v2700_v12 = vsub.f32 %v11033_v27, %v9753_v14 }
 0x2fe   : > { %4323 = vst.msk [vmem:[#allocation4 + $0x8] sm:$0xff] %vm593_vm0, %v4259_v15  ;;  %v4258_v53 = vadd.f32 %v3744_v59, %v3614_v57  ;;  %v3235_v57 = vld [vmem:[#allocation4 + $0x28] sm:$0xff] }
 0x2ff   : > { %v9800_v0 = vpop.permute.xlu1 %3476  ;;  %v6662_v6 = vpop.f32.mrf.mxu0  ;;  %v2811_v59 = vmul.f32 1.442695, %v2700_v12 }
 0x300   : > { %3069 = vadd.xlane.f32.xlu0 %v9649_v9  ;;  %2999 = vadd.xlane.f32.xlu1 %v9496_v51  ;;  %4322 = vst.msk [vmem:[#allocation4] sm:$0xff] %vm593_vm0, %v4258_v53  ;;  %v4261_v37 = vadd.f32 %v6662_v6, %v3617_v43  ;;  %v9811_v9 = vpop.permute.xlu0 %3581  ;;  %v11035_v43 = vld [vmem:[#allocation61_spill] sm:$0xff]  ;;  %v3619_v6 = vmul.f32 %v9396_v18, %v3235_v57  ;;  %v3250_v18 = vld [vmem:[#allocation4 + $0xa0] sm:$0xff] }
 0x301   : > { %v3754_v40 = vpop.f32.mrf.mxu0  ;;  %v2716_v13 = vsub.f32 %v11035_v43, %v9766_v54 }
 0x302   : > { %4325 = vst.msk [vmem:[#allocation4 + $0x18] sm:$0xff] %vm593_vm0, %v4261_v37  ;;  %v4260_v62 = vadd.f32 %v3754_v40, %v3616_v2  ;;  %v3251_v37 = vld [vmem:[#allocation4 + $0xa8] sm:$0xff] }
 0x303   : > { %v9808_v29 = vpop.permute.xlu1 %3556  ;;  %v6718_v60 = vpop.f32.mrf.mxu1 }
 0x304   : > { %v4277_v51 = vadd.f32 %v6718_v60, %v3633_v16  ;;  %3041 = vadd.xlane.f32.xlu0 %v9660_v42  ;;  %3031 = vadd.xlane.f32.xlu1 %v9515_v3  ;;  %4324 = vst.msk [vmem:[#allocation4 + $0x10] sm:$0xff] %vm593_vm0, %v4260_v62  ;;  %v11034_v3 = vld [vmem:[#allocation60_spill] sm:$0xff]  ;;  %v9836_v2 = vpop.permute.xlu0 %3576  ;;  %v11036_v16 = vld [vmem:[#allocation62_spill] sm:$0xff]  ;;  %v2843_v62 = vmul.f32 1.442695, %v2716_v13  ;;  %v3239_v13 = vld [vmem:[#allocation4 + $0x48] sm:$0xff] }
 0x305   : > { %v9815_v38 = vpop.eup %7161  ;;  %v3899_v19 = vpop.f32.mrf.mxu1 }
 0x306   : > { %v9820_v17 = vpop.eup %7163  ;;  %4341 = vst.msk [vmem:[#allocation4 + $0x98] sm:$0xff] %vm593_vm0, %v4277_v51  ;;  %v4276_v58 = vadd.f32 %v3899_v19, %v3632_v61  ;;  %6787 = vmatprep.mubr.f32.mxu0 %v9815_v38  ;;  %v3635_v61 = vmul.f32 %v9406_v11, %v3251_v37 }
 0x307   : > { %v2566_v15 = vpop.permute.xlu1 %2565  ;;  %6788 = vmatmul.mubr.f32.gmra.mxu0 %v9820_v17 }
 0x308   : > { %4340 = vst.msk [vmem:[#allocation4 + $0x90] sm:$0xff] %vm593_vm0, %v4276_v58  ;;  %v2699_v42 = vsub.f32 %v11034_v3, %v2566_v15  ;;  %3073 = vadd.xlane.f32.xlu0 %v9671_v52  ;;  %3003 = vadd.xlane.f32.xlu1 %v9559_v48  ;;  %v3618_v48 = vmul.f32 %v9462_v45, %v3234_v10  ;;  %v3237_v58 = vld [vmem:[#allocation4 + $0x38] sm:$0xff] }
 0x309   : > { %v9829_v14 = vpop.eup %7165  ;;  %v3634_v45 = vmul.f32 %v9473_v28, %v3250_v18  ;;  %v3236_v28 = vld [vmem:[#allocation4 + $0x30] sm:$0xff]  ;;  %v3621_v57 = vmul.f32 %v9465_v26, %v3237_v58 }
 0x30a   : > { %v9833_v53 = vpop.eup %7167  ;;  %v2809_v44 = vmul.f32 1.442695, %v2699_v42  ;;  %6843 = vmatprep.mubr.f32.mxu1 %v9829_v14  ;;  %v3620_v3 = vmul.f32 %v9524_v22, %v3236_v28 }
 0x30b   : > { %v2646_v52 = vpop.permute.xlu1 %2645  ;;  %v6665_v41 = vpop.f32.mrf.mxu0  ;;  %6844 = vmatmul.mubr.f32.gmra.mxu1 %v9833_v53 }
 0x30c   : > { %7169 = vpow2.f32 %v2809_v44  ;;  %v2715_v40 = vsub.f32 %v11036_v16, %v2646_v52  ;;  %v4263_v54 = vadd.f32 %v6665_v41, %v3619_v6  ;;  %3045 = vadd.xlane.f32.xlu0 %v9680_v56  ;;  %3035 = vadd.xlane.f32.xlu1 %v9575_v63  ;;  %v9850_v63 = vpop.permute.xlu0 %3511 }
 0x30d   : > { %7171 = vpow2.f32 %v2811_v59  ;;  %v3764_v60 = vpop.f32.mrf.mxu0  ;;  %v3252_v59 = vld [vmem:[#allocation4 + $0xb0] sm:$0xff] }
 0x30e   : > { %v2841_v51 = vmul.f32 1.442695, %v2715_v40  ;;  %4327 = vst.msk [vmem:[#allocation4 + $0x28] sm:$0xff] %vm593_vm0, %v4263_v54  ;;  %v4262_v27 = vadd.f32 %v3764_v60, %v3618_v48  ;;  %v11038_v48 = vld [vmem:[#allocation21_spill] sm:$0xff]  ;;  %v3255_v54 = vld [vmem:[#allocation4 + $0xc8] sm:$0xff]  ;;  %v3254_v60 = vld [vmem:[#allocation4 + $0xc0] sm:$0xff] }
 0x30f   : > { %v6721_v12 = vpop.f32.mrf.mxu1  ;;  %v3623_v16 = vmul.f32 %v11038_v48, %v3239_v13  ;;  %v11045_v13 = vld [vmem:[#allocation27_spill] sm:$0xff] }
 0x310   : > { %7173 = vpow2.f32 %v2841_v51  ;;  %4326 = vst.msk [vmem:[#allocation4 + $0x20] sm:$0xff] %vm593_vm0, %v4262_v27  ;;  %v4279_v19 = vadd.f32 %v6721_v12, %v3635_v61  ;;  %3077 = vadd.xlane.f32.xlu0 %v9690_v55  ;;  %3039 = vadd.xlane.f32.xlu1 %v9643_v24  ;;  %v3253_v55 = vld [vmem:[#allocation4 + $0xb8] sm:$0xff]  ;;  %v9857_v15 = vpop.permute.xlu0 %3591  ;;  %v11040_v51 = vld [vmem:[#allocation23_spill] sm:$0xff] }
 0x311   : > { %7175 = vpow2.f32 %v2843_v62  ;;  %v3909_v56 = vpop.f32.mrf.mxu1  ;;  %v3639_v27 = vmul.f32 %v11040_v51, %v3255_v54 }
 0x312   : > { %4343 = vst.msk [vmem:[#allocation4 + $0xa8] sm:$0xff] %vm593_vm0, %v4279_v19  ;;  %v4278_v11 = vadd.f32 %v3909_v56, %v3634_v45  ;;  %v11041_v56 = vld [vmem:[#allocation103_spill] sm:$0xff] }
 0x314   : > { %4342 = vst.msk [vmem:[#allocation4 + $0xa0] sm:$0xff] %vm593_vm0, %v4278_v11  ;;  %3049 = vadd.xlane.f32.xlu0 %v9702_v39  ;;  %3071 = vadd.xlane.f32.xlu1 %v9652_v1  ;;  %v3637_v1 = vmul.f32 %v9475_v31, %v3253_v55  ;;  %v3238_v31 = vld [vmem:[#allocation4 + $0x40] sm:$0xff]  ;;  %v9876_v37 = vpop.permute.xlu0 %3586  ;;  %v3638_v11 = vmul.f32 %v11041_v56, %v3254_v60  ;;  %v11042_v55 = vld [vmem:[#allocation79_spill] sm:$0xff]  ;;  %v11048_v60 = vld [vmem:[#allocation117_spill] sm:$0xff] }
 0x317   : > { %v6668_v24 = vpop.f32.mrf.mxu0 }
 0x318   : > { %v4265_v42 = vadd.f32 %v6668_v24, %v3621_v57  ;;  %3081 = vadd.xlane.f32.xlu0 %v9712_v49  ;;  %3043 = vadd.xlane.f32.xlu1 %v9663_v4  ;;  %v11037_v49 = vld [vmem:[#allocation81_spill] sm:$0xff]  ;;  %v9890_v45 = vpop.permute.xlu0 %3521 }
 0x319   : > { %v9862_v10 = vpop.eup %7169  ;;  %v3774_v39 = vpop.f32.mrf.mxu0  ;;  %v3636_v6 = vmul.f32 %v11037_v49, %v3252_v59  ;;  %v3241_v57 = vld [vmem:[#allocation4 + $0x58] sm:$0xff]  ;;  %v11043_v59 = vld [vmem:[#allocation86_spill] sm:$0xff] }
 0x31a   : > { %v9864_v43 = vpop.eup %7171  ;;  %4329 = vst.msk [vmem:[#allocation4 + $0x38] sm:$0xff] %vm593_vm0, %v4265_v42  ;;  %v4264_v26 = vadd.f32 %v3774_v39, %v3620_v3  ;;  %6790 = vmatprep.mubr.f32.mxu0 %v9862_v10  ;;  %v3257_v24 = vld [vmem:[#allocation4 + $0xd8] sm:$0xff] }
 0x31b   : > { %v6724_v22 = vpop.f32.mrf.mxu1  ;;  %6791 = vmatmul.mubr.f32.gmra.mxu0 %v9864_v43 }
 0x31c   : > { %4328 = vst.msk [vmem:[#allocation4 + $0x30] sm:$0xff] %vm593_vm0, %v4264_v26  ;;  %v4281_v4 = vadd.f32 %v6724_v22, %v3637_v1  ;;  %3053 = vadd.xlane.f32.xlu0 %v9722_v20  ;;  %3075 = vadd.xlane.f32.xlu1 %v9674_v46  ;;  %v11039_v46 = vld [vmem:[#allocation28_spill] sm:$0xff]  ;;  %v9900_v28 = vpop.permute.xlu0 %3601  ;;  %v9908_v1 = vpop.permute.xlu1 %3571 }
 0x31d   : > { %v9874_v44 = vpop.eup %7173  ;;  %v3919_v52 = vpop.f32.mrf.mxu1  ;;  %v3622_v20 = vmul.f32 %v11039_v46, %v3238_v31  ;;  %v3256_v26 = vld [vmem:[#allocation4 + $0xd0] sm:$0xff] }
 0x31e   : > { %v9878_v41 = vpop.eup %7175  ;;  %4345 = vst.msk [vmem:[#allocation4 + $0xb8] sm:$0xff] %vm593_vm0, %v4281_v4  ;;  %v4280_v40 = vadd.f32 %v3919_v52, %v3636_v6  ;;  %6846 = vmatprep.mubr.f32.mxu1 %v9874_v44  ;;  %v11046_v6 = vld [vmem:[#allocation108_spill] sm:$0xff] }
 0x31f   : > { %v6671_v18 = vpop.f32.mrf.mxu0  ;;  %6847 = vmatmul.mubr.f32.gmra.mxu1 %v9878_v41  ;;  %v3640_v4 = vmul.f32 %v11046_v6, %v3256_v26  ;;  %v2847_v26 = vld [vmem:[#allocation3 + $0x10] sm:$0xff] }
 0x320   : > { %4344 = vst.msk [vmem:[#allocation4 + $0xb0] sm:$0xff] %vm593_vm0, %v4280_v40  ;;  %v4267_v62 = vadd.f32 %v6671_v18, %v3623_v16  ;;  %3085 = vadd.xlane.f32.xlu0 %v9735_v30  ;;  %3047 = vadd.xlane.f32.xlu1 %v9683_v21  ;;  %v9905_v3 = vpop.permute.xlu0 %3596  ;;  %v9920_v48 = vpop.permute.xlu1 %3486  ;;  %v3243_v40 = vld [vmem:[#allocation4 + $0x68] sm:$0xff]  ;;  %v11047_v18 = vld [vmem:[#allocation29_spill] sm:$0xff] }
 0x321   : > { %v3784_v61 = vpop.f32.mrf.mxu0  ;;  %v3627_v46 = vmul.f32 %v11047_v18, %v3243_v40  ;;  %v3261_v40 = vld [vmem:[#allocation4 + $0xf8] sm:$0xff] }
 0x322   : > { %4331 = vst.msk [vmem:[#allocation4 + $0x48] sm:$0xff] %vm593_vm0, %v4267_v62  ;;  %v4266_v12 = vadd.f32 %v3784_v61, %v3622_v20  ;;  %v3259_v20 = vld [vmem:[#allocation4 + $0xe8] sm:$0xff] }
 0x323   : > { %v6727_v19 = vpop.f32.mrf.mxu1 }
 0x324   : > { %4330 = vst.msk [vmem:[#allocation4 + $0x40] sm:$0xff] %vm593_vm0, %v4266_v12  ;;  %v4283_v58 = vadd.f32 %v6727_v19, %v3639_v27  ;;  %3057 = vadd.xlane.f32.xlu0 %v9761_v34  ;;  %3079 = vadd.xlane.f32.xlu1 %v9692_v36  ;;  %v3240_v34 = vld [vmem:[#allocation4 + $0x50] sm:$0xff]  ;;  %v3625_v36 = vmul.f32 %v11042_v55, %v3241_v57  ;;  %v2846_v12 = vld [vmem:[#allocation3 + $0x8] sm:$0xff]  ;;  %v11049_v19 = vld [vmem:[#allocation30_spill] sm:$0xff] }
 0x325   : > { %v3929_v21 = vpop.f32.mrf.mxu1  ;;  %v3624_v39 = vmul.f32 %v11043_v59, %v3240_v34  ;;  %v3643_v56 = vmul.f32 %v11049_v19, %v3259_v20 }
 0x326   : > { %4347 = vst.msk [vmem:[#allocation4 + $0xc8] sm:$0xff] %vm593_vm0, %v4283_v58  ;;  %v4282_v30 = vadd.f32 %v3929_v21, %v3638_v11  ;;  %v11050_v21 = vld [vmem:[#allocation120_spill] sm:$0xff] }
 0x328   : > { %4346 = vst.msk [vmem:[#allocation4 + $0xc0] sm:$0xff] %vm593_vm0, %v4282_v30  ;;  %3089 = vadd.xlane.f32.xlu0 %v9773_v33  ;;  %3051 = vadd.xlane.f32.xlu1 %v9704_v50  ;;  %v11044_v50 = vld [vmem:[#allocation37_spill] sm:$0xff] }
 0x32c   : > { %3061 = vadd.xlane.f32.xlu0 %v9815_v38  ;;  %3083 = vadd.xlane.f32.xlu1 %v9714_v25  ;;  %v3641_v25 = vmul.f32 %v11045_v13, %v3257_v24  ;;  %v2861_v24 = vld [vmem:[#allocation3 + $0x80] sm:$0xff]  ;;  %v3245_v13 = vld [vmem:[#allocation4 + $0x78] sm:$0xff] }
 0x32f   : > { %v6674_v42 = vpop.f32.mrf.mxu0 }
 0x330   : > { %v4269_v33 = vadd.f32 %v6674_v42, %v3625_v36  ;;  %3093 = vadd.xlane.f32.xlu0 %v9829_v14  ;;  %3055 = vadd.xlane.f32.xlu1 %v11044_v50  ;;  %v9918_v14 = vpop.permute.xlu0 %3531 }
 0x331   : > { %v3794_v38 = vpop.f32.mrf.mxu0 }
 0x332   : > { %4333 = vst.msk [vmem:[#allocation4 + $0x58] sm:$0xff] %vm593_vm0, %v4269_v33  ;;  %v4268_v22 = vadd.f32 %v3794_v38, %v3624_v39  ;;  %v11052_v33 = vld [vmem:[#allocation67_spill] sm:$0xff] }
 0x333   : > { %v6730_v49 = vpop.f32.mrf.mxu1  ;;  %v2925_v50 = vmul.f32 %v11052_v33, %v2861_v24  ;;  %v2862_v33 = vld [vmem:[#allocation3 + $0x88] sm:$0xff] }
 0x334   : > { %4332 = vst.msk [vmem:[#allocation4 + $0x50] sm:$0xff] %vm593_vm0, %v4268_v22  ;;  %v4285_v31 = vadd.f32 %v6730_v49, %v3641_v25  ;;  %3065 = vadd.xlane.f32.xlu0 %v9862_v10  ;;  %3087 = vadd.xlane.f32.xlu1 %v9738_v5  ;;  %v9926_v54 = vpop.permute.xlu0 %3611  ;;  %v9928_v10 = vpop.permute.xlu1 %3566  ;;  %v3242_v5 = vld [vmem:[#allocation4 + $0x60] sm:$0xff]  ;;  %v3244_v49 = vld [vmem:[#allocation4 + $0x70] sm:$0xff] }
 0x335   : > { %v3939_v52 = vpop.f32.mrf.mxu1  ;;  %v3626_v61 = vmul.f32 %v11048_v60, %v3242_v5  ;;  %v11053_v25 = vld [vmem:[#allocation74_spill] sm:$0xff] }
 0x336   : > { %4349 = vst.msk [vmem:[#allocation4 + $0xd8] sm:$0xff] %vm593_vm0, %v4285_v31  ;;  %v4284_v16 = vadd.f32 %v3939_v52, %v3640_v4  ;;  %v2911_v22 = vmul.f32 %v11053_v25, %v2847_v26  ;;  %v2863_v4 = vld [vmem:[#allocation3 + $0x90] sm:$0xff]  ;;  %v11060_v26 = vld [vmem:[#allocation87_spill] sm:$0xff] }
 0x337   : > { %v11054_v31 = vld [vmem:[#allocation112_spill] sm:$0xff] }
 0x338   : > { %4348 = vst.msk [vmem:[#allocation4 + $0xd0] sm:$0xff] %vm593_vm0, %v4284_v16  ;;  %3097 = vadd.xlane.f32.xlu0 %v9874_v44  ;;  %3059 = vadd.xlane.f32.xlu1 %v9764_v23  ;;  %v3258_v44 = vld [vmem:[#allocation4 + $0xe0] sm:$0xff]  ;;  %v9934_v27 = vpop.permute.xlu0 %3606  ;;  %v9937_v11 = vpop.permute.xlu1 %3496  ;;  %v3629_v52 = vmul.f32 %v11054_v31, %v3245_v13  ;;  %v11061_v13 = vld [vmem:[#allocation63_spill] sm:$0xff] }
 0x339   : > { %v3642_v30 = vmul.f32 %v11050_v21, %v3258_v44  ;;  %v2926_v25 = vmul.f32 %v11061_v13, %v2862_v33 }
 0x33c   : > { %3091 = vadd.xlane.f32.xlu1 %v9777_v8  ;;  %v9945_v39 = vpop.permute.xlu1 %3506 }
 0x33f   : > { %v6677_v62 = vpop.f32.mrf.mxu0 }
 0x340   : > { %v4271_v51 = vadd.f32 %v6677_v62, %v3627_v46  ;;  %3063 = vadd.xlane.f32.xlu1 %v9820_v17  ;;  %v11051_v17 = vld [vmem:[#allocation65_spill] sm:$0xff]  ;;  %v9955_v16 = vpop.permute.xlu1 %3516  ;;  %v11055_v46 = vld [vmem:[#allocation122_spill] sm:$0xff] }
 0x341   : > { %v3804_v23 = vpop.f32.mrf.mxu0  ;;  %v2910_v34 = vmul.f32 %v11051_v17, %v2846_v12  ;;  %v3628_v20 = vmul.f32 %v11055_v46, %v3244_v49  ;;  %v11057_v12 = vld [vmem:[#allocation92_spill] sm:$0xff] }
 0x342   : > { %4335 = vst.msk [vmem:[#allocation4 + $0x68] sm:$0xff] %vm593_vm0, %v4271_v51  ;;  %v4270_v8 = vadd.f32 %v3804_v23, %v3626_v61  ;;  %v3260_v61 = vld [vmem:[#allocation4 + $0xf0] sm:$0xff]  ;;  %v2849_v23 = vld [vmem:[#allocation3 + $0x20] sm:$0xff]  ;;  %v3645_v19 = vmul.f32 %v11057_v12, %v3261_v40 }
 0x343   : > { %v6733_v58 = vpop.f32.mrf.mxu1  ;;  %v11065_v12 = vld [vmem:[#allocation66_spill] sm:$0xff] }
 0x344   : > { %4334 = vst.msk [vmem:[#allocation4 + $0x60] sm:$0xff] %vm593_vm0, %v4270_v8  ;;  %v4287_v57 = vadd.f32 %v6733_v58, %v3643_v56  ;;  %3095 = vadd.xlane.f32.xlu1 %v9833_v53  ;;  %v9963_v17 = vpop.permute.xlu1 %3526 }
 0x345   : > { %v2976_v55 = vpop.xlane.xlu0 %2975  ;;  %v3949_v36 = vpop.f32.mrf.mxu1 }
 0x346   : > { %4351 = vst.msk [vmem:[#allocation4 + $0xe8] sm:$0xff] %vm593_vm0, %v4287_v57  ;;  %v3102_v42 = vadd.f32 %v2976_v55, %v2910_v34  ;;  %v4286_v59 = vadd.f32 %v3949_v36, %v3642_v30  ;;  %v11058_v30 = vld [vmem:[#allocation124_spill] sm:$0xff]  ;;  %v11059_v55 = vld [vmem:[#allocation83_spill] sm:$0xff] }
 0x347   : > { %v3644_v57 = vmul.f32 %v11058_v30, %v3260_v61  ;;  %v2913_v36 = vmul.f32 %v11059_v55, %v2849_v23  ;;  %v2864_v30 = vld [vmem:[#allocation3 + $0x98] sm:$0xff] }
 0x348   : > { %3167 = vst.msk [vmem:[#allocation3 + $0x8] sm:$0xff] %vm464_vm2, %v3102_v42  ;;  %3067 = vadd.xlane.f32.xlu1 %v9864_v43 }
 0x349   : > { %4350 = vst.msk [vmem:[#allocation4 + $0xe0] sm:$0xff] %vm593_vm0, %v4286_v59  ;;  %v3006_v53 = vpop.xlane.xlu0 %3005  ;;  %v2865_v59 = vld [vmem:[#allocation3 + $0xa0] sm:$0xff] }
 0x34a   : > { %v3117_v38 = vadd.f32 %v3006_v53, %v2925_v50 }
 0x34c   : > { %3182 = vst.msk [vmem:[#allocation3 + $0x80] sm:$0xff] %vm464_vm2, %v3117_v38  ;;  %3099 = vadd.xlane.f32.xlu1 %v9878_v41  ;;  %v11056_v41 = vld [vmem:[#allocation77_spill] sm:$0xff]  ;;  %v2929_v38 = vmul.f32 %v11060_v26, %v2865_v59  ;;  %v2850_v26 = vld [vmem:[#allocation3 + $0x28] sm:$0xff] }
 0x34d   : > { %v2978_v6 = vpop.xlane.xlu0 %2977  ;;  %v2927_v60 = vmul.f32 %v11056_v41, %v2863_v4  ;;  %v2845_v4 = vld [vmem:[#allocation3] sm:$0xff]  ;;  %v2867_v41 = vld [vmem:[#allocation3 + $0xb0] sm:$0xff] }
 0x34e   : > { %v3103_v43 = vadd.f32 %v2978_v6, %v2911_v22  ;;  %v2851_v6 = vld [vmem:[#allocation3 + $0x30] sm:$0xff] }
 0x34f   : > { %v4454_v5 = vld [vmem:[#allocation3 + $0x8] sm:$0xff]  ;;  %v6680_v18 = vpop.f32.mrf.mxu0 }
 0x350   : > { %7177 = vrcp.f32 %v4454_v5  ;;  %3168 = vst.msk [vmem:[#allocation3 + $0x10] sm:$0xff] %vm464_vm2, %v3103_v43  ;;  %v4273_v62 = vadd.f32 %v6680_v18, %v3629_v52  ;;  %v11062_v43 = vld [vmem:[#allocation93_spill] sm:$0xff]  ;;  %v11063_v5 = vld [vmem:[#allocation64_spill] sm:$0xff] }
 0x351   : > { %v3010_v51 = vpop.xlane.xlu0 %3009  ;;  %v3814_v44 = vpop.f32.mrf.mxu0  ;;  %v2915_v40 = vmul.f32 %v11062_v43, %v2851_v6  ;;  %v2909_v18 = vmul.f32 %v11063_v5, %v2845_v4  ;;  %v11069_v6 = vld [vmem:[#allocation75_spill] sm:$0xff]  ;;  %v2855_v43 = vld [vmem:[#allocation3 + $0x50] sm:$0xff] }
 0x352   : > { %4337 = vst.msk [vmem:[#allocation4 + $0x78] sm:$0xff] %vm593_vm0, %v4273_v62  ;;  %v3119_v56 = vadd.f32 %v3010_v51, %v2927_v60  ;;  %v4272_v8 = vadd.f32 %v3814_v44, %v3628_v20  ;;  %v2848_v60 = vld [vmem:[#allocation3 + $0x18] sm:$0xff]  ;;  %v11064_v44 = vld [vmem:[#allocation95_spill] sm:$0xff]  ;;  %v2914_v4 = vmul.f32 %v11069_v6, %v2850_v26 }
 0x353   : > { %v4469_v58 = vld [vmem:[#allocation3 + $0x80] sm:$0xff]  ;;  %v6736_v21 = vpop.f32.mrf.mxu1  ;;  %v2931_v23 = vmul.f32 %v11064_v44, %v2867_v41  ;;  %v2852_v44 = vld [vmem:[#allocation3 + $0x38] sm:$0xff] }
 0x354   : > { %7179 = vrcp.f32 %v4469_v58  ;;  %3184 = vst.msk [vmem:[#allocation3 + $0x90] sm:$0xff] %vm464_vm2, %v3119_v56  ;;  %v4289_v34 = vadd.f32 %v6736_v21, %v3645_v19  ;;  %v2912_v19 = vmul.f32 %v11065_v12, %v2848_v60  ;;  %v2853_v21 = vld [vmem:[#allocation3 + $0x40] sm:$0xff] }
 0x355   : > { %4336 = vst.msk [vmem:[#allocation4 + $0x70] sm:$0xff] %vm593_vm0, %v4272_v8  ;;  %v2982_v24 = vpop.xlane.xlu0 %2981  ;;  %v3959_v42 = vpop.f32.mrf.mxu1 }
 0x356   : > { %4353 = vst.msk [vmem:[#allocation4 + $0xf8] sm:$0xff] %vm593_vm0, %v4289_v34  ;;  %v3105_v50 = vadd.f32 %v2982_v24, %v2913_v36  ;;  %v4288_v53 = vadd.f32 %v3959_v42, %v3644_v57  ;;  %v11066_v36 = vld [vmem:[#allocation98_spill] sm:$0xff]  ;;  %v11067_v42 = vld [vmem:[#allocation68_spill] sm:$0xff] }
 0x357   : > { %v2917_v24 = vmul.f32 %v11066_v36, %v2853_v21  ;;  %v2928_v59 = vmul.f32 %v11067_v42, %v2864_v30 }
 0x358   : > { %3170 = vst.msk [vmem:[#allocation3 + $0x20] sm:$0xff] %vm464_vm2, %v3105_v50 }
 0x359   : > { %4352 = vst.msk [vmem:[#allocation4 + $0xf0] sm:$0xff] %vm593_vm0, %v4288_v53  ;;  %v3014_v22 = vpop.xlane.xlu0 %3013  ;;  %v3008_v49 = vpop.xlane.xlu1 %3007  ;;  %v2869_v53 = vld [vmem:[#allocation3 + $0xc0] sm:$0xff] }
 0x35a   : > { %v3121_v31 = vadd.f32 %v3014_v22, %v2929_v38  ;;  %v3118_v52 = vadd.f32 %v3008_v49, %v2926_v25  ;;  %v11068_v22 = vld [vmem:[#allocation101_spill] sm:$0xff] }
 0x35b   : > { %v2933_v49 = vmul.f32 %v11068_v22, %v2869_v53  ;;  %v11075_v53 = vld [vmem:[#allocation88_spill] sm:$0xff]  ;;  %v2854_v22 = vld [vmem:[#allocation3 + $0x48] sm:$0xff] }
 0x35c   : > { %3186 = vst.msk [vmem:[#allocation3 + $0xa0] sm:$0xff] %vm464_vm2, %v3121_v31  ;;  %3183 = vst.msk [vmem:[#allocation3 + $0x88] sm:$0xff] %vm464_vm2, %v3118_v52  ;;  %v4471_v6 = vld [vmem:[#allocation3 + $0x90] sm:$0xff] }
 0x35d   : > { %v7178_v46 = vpop.eup %7177  ;;  %v2986_v20 = vpop.xlane.xlu0 %2985 }
 0x35e   : > { %v2974_v62 = vpop.xlane.xlu1 %2973  ;;  %v3107_v61 = vadd.f32 %v2986_v20, %v2915_v40  ;;  %4652 = vperm.xlu1 %6919, %v7178_v46   ;;  %v2866_v40 = vld [vmem:[#allocation3 + $0xa8] sm:$0xff]  ;;  %v11070_v46 = vld [vmem:[#allocation105_spill] sm:$0xff] }
 0x35f   : > { %v3101_v51 = vadd.f32 %v2974_v62, %v2909_v18  ;;  %v2919_v20 = vmul.f32 %v11070_v46, %v2855_v43  ;;  %v11071_v62 = vld [vmem:[#allocation78_spill] sm:$0xff] }
 0x360   : > { %3172 = vst.msk [vmem:[#allocation3 + $0x30] sm:$0xff] %vm464_vm2, %v3107_v61  ;;  %v2930_v41 = vmul.f32 %v11071_v62, %v2866_v40  ;;  %v11077_v40 = vld [vmem:[#allocation90_spill] sm:$0xff]  ;;  %v2870_v62 = vld [vmem:[#allocation3 + $0xc8] sm:$0xff] }
 0x361   : > { %3166 = vst.msk [vmem:[#allocation3] sm:$0xff] %vm464_vm2, %v3101_v51  ;;  %v7180_v56 = vpop.eup %7179  ;;  %v3018_v8 = vpop.xlane.xlu0 %3017  ;;  %v2871_v51 = vld [vmem:[#allocation3 + $0xd0] sm:$0xff] }
 0x362   : > { %v2980_v58 = vpop.xlane.xlu1 %2979  ;;  %v3123_v57 = vadd.f32 %v3018_v8, %v2931_v23  ;;  %4727 = vperm.xlu1 %6919, %v7180_v56   ;;  %v11072_v56 = vld [vmem:[#allocation110_spill] sm:$0xff] }
 0x363   : > { %v3104_v34 = vadd.f32 %v2980_v58, %v2912_v19  ;;  %v4470_v55 = vld [vmem:[#allocation3 + $0x88] sm:$0xff]  ;;  %v2935_v8 = vmul.f32 %v11072_v56, %v2871_v51  ;;  %v11073_v58 = vld [vmem:[#allocation84_spill] sm:$0xff] }
 0x364   : > { %3188 = vst.msk [vmem:[#allocation3 + $0xb0] sm:$0xff] %vm464_vm2, %v3123_v57  ;;  %7181 = vrcp.f32 %v4470_v55  ;;  %v2916_v21 = vmul.f32 %v11073_v58, %v2852_v44  ;;  %v2868_v55 = vld [vmem:[#allocation3 + $0xb8] sm:$0xff]  ;;  %v3263_v51 = vld [vmem:[#allocation4 + $0x108] sm:$0xff]  ;;  %v2875_v58 = vld [vmem:[#allocation3 + $0xf0] sm:$0xff] }
 0x365   : > { %3169 = vst.msk [vmem:[#allocation3 + $0x18] sm:$0xff] %vm464_vm2, %v3104_v34  ;;  %v2990_v33 = vpop.xlane.xlu0 %2989  ;;  %v2857_v34 = vld [vmem:[#allocation3 + $0x60] sm:$0xff]  ;;  %v2932_v26 = vmul.f32 %v11075_v53, %v2868_v55  ;;  %v11078_v44 = vld [vmem:[#allocation115_spill] sm:$0xff]  ;;  %v11081_v53 = vld [vmem:[#allocation116_spill] sm:$0xff] }
 0x366   : > { %v3012_v50 = vpop.xlane.xlu1 %3011  ;;  %v3109_v38 = vadd.f32 %v2990_v33, %v2917_v24  ;;  %v11074_v33 = vld [vmem:[#allocation113_spill] sm:$0xff]  ;;  %v3262_v55 = vld [vmem:[#allocation4 + $0x100] sm:$0xff] }
 0x367   : > { %v3120_v13 = vadd.f32 %v3012_v50, %v2928_v59  ;;  %v2921_v50 = vmul.f32 %v11074_v33, %v2857_v34 }
 0x368   : > { %v4453_v25 = vld [vmem:[#allocation3] sm:$0xff]  ;;  %3174 = vst.msk [vmem:[#allocation3 + $0x40] sm:$0xff] %vm464_vm2, %v3109_v38 }
 0x369   : > { %3185 = vst.msk [vmem:[#allocation3 + $0x98] sm:$0xff] %vm464_vm2, %v3120_v13  ;;  %7183 = vrcp.f32 %v4453_v25  ;;  %v3022_v31 = vpop.xlane.xlu0 %3021  ;;  %v2873_v25 = vld [vmem:[#allocation3 + $0xe0] sm:$0xff] }
 0x36a   : > { %v2984_v52 = vpop.xlane.xlu1 %2983  ;;  %v3125_v5 = vadd.f32 %v3022_v31, %v2933_v49 }
 0x36b   : > { %v3106_v18 = vadd.f32 %v2984_v52, %v2914_v4  ;;  %v11076_v52 = vld [vmem:[#allocation114_spill] sm:$0xff] }
 0x36c   : > { %3190 = vst.msk [vmem:[#allocation3 + $0xc0] sm:$0xff] %vm464_vm2, %v3125_v5  ;;  %v4456_v24 = vld [vmem:[#allocation3 + $0x18] sm:$0xff]  ;;  %v2937_v43 = vmul.f32 %v11076_v52, %v2873_v25  ;;  %v2918_v5 = vmul.f32 %v11077_v40, %v2854_v22  ;;  %v11083_v25 = vld [vmem:[#allocation35_spill] sm:$0xff] }
 0x36d   : > { %3171 = vst.msk [vmem:[#allocation3 + $0x28] sm:$0xff] %vm464_vm2, %v3106_v18  ;;  %v2994_v60 = vpop.xlane.xlu0 %2993  ;;  %v3646_v22 = vmul.f32 %v11083_v25, %v3262_v55  ;;  %v2872_v52 = vld [vmem:[#allocation3 + $0xd8] sm:$0xff]  ;;  %v2858_v55 = vld [vmem:[#allocation3 + $0x68] sm:$0xff] }
 0x36e   : > { %v3016_v61 = vpop.xlane.xlu1 %3015  ;;  %v3111_v23 = vadd.f32 %v2994_v60, %v2919_v20  ;;  %v2859_v20 = vld [vmem:[#allocation3 + $0x70] sm:$0xff]  ;;  %v11084_v40 = vld [vmem:[#allocation33_spill] sm:$0xff] }
 0x36f   : > { %v3122_v12 = vadd.f32 %v3016_v61, %v2930_v41  ;;  %v4455_v41 = vld [vmem:[#allocation3 + $0x10] sm:$0xff] }
 0x370   : > { %v4472_v19 = vld [vmem:[#allocation3 + $0x98] sm:$0xff]  ;;  %3176 = vst.msk [vmem:[#allocation3 + $0x50] sm:$0xff] %vm464_vm2, %v3111_v23  ;;  %v2923_v23 = vmul.f32 %v11078_v44, %v2859_v20 }
 0x371   : > { %3187 = vst.msk [vmem:[#allocation3 + $0xa8] sm:$0xff] %vm464_vm2, %v3122_v12  ;;  %7185 = vrcp.f32 %v4472_v19  ;;  %v3026_v30 = vpop.xlane.xlu0 %3025  ;;  %v7182_v36 = vpop.eup %7181  ;;  %v11079_v12 = vld [vmem:[#allocation91_spill] sm:$0xff] }
 0x372   : > { %v2988_v57 = vpop.xlane.xlu1 %2987  ;;  %v3127_v42 = vadd.f32 %v3026_v30, %v2935_v8  ;;  %4732 = vperm.xlu0 %6920, %v7182_v36   ;;  %7187 = vrcp.f32 %v4456_v24  ;;  %v2934_v19 = vmul.f32 %v11079_v12, %v2870_v62 }
 0x373   : > { %v3108_v59 = vadd.f32 %v2988_v57, %v2916_v21  ;;  %7189 = vrcp.f32 %v4471_v6  ;;  %v2856_v21 = vld [vmem:[#allocation3 + $0x58] sm:$0xff]  ;;  %v11080_v57 = vld [vmem:[#allocation32_spill] sm:$0xff] }
 0x374   : > { %3192 = vst.msk [vmem:[#allocation3 + $0xd0] sm:$0xff] %vm464_vm2, %v3127_v42  ;;  %7191 = vrcp.f32 %v4455_v41  ;;  %v3647_v34 = vmul.f32 %v11080_v57, %v3263_v51  ;;  %v3265_v41 = vld [vmem:[#allocation4 + $0x118] sm:$0xff] }
 0x375   : > { %3173 = vst.msk [vmem:[#allocation3 + $0x38] sm:$0xff] %vm464_vm2, %v3108_v59  ;;  %v2998_v38 = vpop.xlane.xlu0 %2997  ;;  %v3279_v59 = vld [vmem:[#allocation4 + $0x188] sm:$0xff] }
 0x376   : > { %v3020_v13 = vpop.xlane.xlu1 %3019  ;;  %v7184_v49 = vpop.eup %7183  ;;  %v3113_v4 = vadd.f32 %v2998_v38, %v2921_v50  ;;  %v11082_v38 = vld [vmem:[#allocation94_spill] sm:$0xff] }
 0x377   : > { %v3124_v31 = vadd.f32 %v3020_v13, %v2932_v26  ;;  %4647 = vperm.xlu1 %6919, %v7184_v49   ;;  %v2939_v26 = vmul.f32 %v11081_v53, %v2875_v58  ;;  %v2920_v13 = vmul.f32 %v11082_v38, %v2856_v21  ;;  %v4458_v49 = vld [vmem:[#allocation3 + $0x28] sm:$0xff]  ;;  %v4473_v21 = vld [vmem:[#allocation3 + $0xa0] sm:$0xff]  ;;  %v3281_v38 = vld [vmem:[#allocation4 + $0x198] sm:$0xff] }
 0x378   : > { %3178 = vst.msk [vmem:[#allocation3 + $0x60] sm:$0xff] %vm464_vm2, %v3113_v4  ;;  %v4474_v36 = vld [vmem:[#allocation3 + $0xa8] sm:$0xff] }
 0x379   : > { %3189 = vst.msk [vmem:[#allocation3 + $0xb8] sm:$0xff] %vm464_vm2, %v3124_v31  ;;  %v3030_v18 = vpop.xlane.xlu0 %3029  ;;  %7193 = vrcp.f32 %v4474_v36  ;;  %v2877_v31 = vld [vmem:[#allocation3 + $0x100] sm:$0xff] }
 0x37a   : > { %v2992_v46 = vpop.xlane.xlu1 %2991  ;;  %v3129_v60 = vadd.f32 %v3030_v18, %v2937_v43  ;;  %v3278_v18 = vld [vmem:[#allocation4 + $0x180] sm:$0xff]  ;;  %7195 = vrcp.f32 %v4458_v49  ;;  %v11089_v49 = vld [vmem:[#allocation71_spill] sm:$0xff] }
 0x37b   : > { %v3110_v61 = vadd.f32 %v2992_v46, %v2918_v5  ;;  %v3663_v5 = vmul.f32 %v11084_v40, %v3279_v59  ;;  %v3264_v59 = vld [vmem:[#allocation4 + $0x110] sm:$0xff] }
 0x37c   : > { %3194 = vst.msk [vmem:[#allocation3 + $0xe0] sm:$0xff] %vm464_vm2, %v3129_v60 }
 0x37d   : > { %3175 = vst.msk [vmem:[#allocation3 + $0x48] sm:$0xff] %vm464_vm2, %v3110_v61  ;;  %v3002_v56 = vpop.xlane.xlu0 %3001 }
 0x37e   : > { %v3024_v8 = vpop.xlane.xlu1 %3023  ;;  %v7186_v30 = vpop.eup %7185  ;;  %v3115_v24 = vadd.f32 %v3002_v56, %v2923_v23  ;;  %v11085_v23 = vld [vmem:[#allocation70_spill] sm:$0xff] }
 0x37f   : > { %v3126_v42 = vadd.f32 %v3024_v8, %v2934_v19  ;;  %4742 = vperm.xlu1 %6919, %v7186_v30   ;;  %v6771_v33 = vpop.f32.mrf.mxu0  ;;  %v7188_v43 = vpop.eup %7187  ;;  %v2941_v12 = vmul.f32 %v11085_v23, %v2877_v31  ;;  %v11086_v19 = vld [vmem:[#allocation96_spill] sm:$0xff] }
 0x380   : > { %3180 = vst.msk [vmem:[#allocation3 + $0x70] sm:$0xff] %vm464_vm2, %v3115_v24  ;;  %v4291_v50 = vadd.f32 %v6771_v33, %v3647_v34  ;;  %v2936_v56 = vmul.f32 %v11086_v19, %v2872_v52  ;;  %v11087_v8 = vld [vmem:[#allocation36_spill] sm:$0xff]  ;;  %v2893_v34 = vld [vmem:[#allocation3 + $0x180] sm:$0xff]  ;;  %v7190_v36 = vpop.eup %7189  ;;  %v3648_v52 = vmul.f32 %v9751_v35, %v3264_v59  ;;  %v2860_v59 = vld [vmem:[#allocation3 + $0x78] sm:$0xff] }
 0x381   : > { %3191 = vst.msk [vmem:[#allocation3 + $0xc8] sm:$0xff] %vm464_vm2, %v3126_v42  ;;  %v3034_v6 = vpop.xlane.xlu0 %3033  ;;  %v4034_v62 = vpop.f32.mrf.mxu0  ;;  %v3662_v58 = vmul.f32 %v11087_v8, %v3278_v18  ;;  %v11088_v24 = vld [vmem:[#allocation34_spill] sm:$0xff]  ;;  %v2879_v18 = vld [vmem:[#allocation3 + $0x110] sm:$0xff] }
 0x382   : > { %v2996_v4 = vpop.xlane.xlu1 %2995  ;;  %4355 = vst.msk [vmem:[#allocation4 + $0x108] sm:$0xff] %vm593_vm0, %v4291_v50  ;;  %v3131_v46 = vadd.f32 %v3034_v6, %v2939_v26  ;;  %v4290_v61 = vadd.f32 %v4034_v62, %v3646_v22  ;;  %v3649_v42 = vmul.f32 %v11088_v24, %v3265_v41  ;;  %v4477_v33 = vld [vmem:[#allocation3 + $0xc0] sm:$0xff]  ;;  %v2957_v6 = vmul.f32 %v11089_v49, %v2893_v34  ;;  %v11091_v62 = vld [vmem:[#allocation39_spill] sm:$0xff]  ;;  %v11092_v8 = vld [vmem:[#allocation16_spill] sm:$0xff] }
 0x383   : > { %v3112_v20 = vadd.f32 %v2996_v4, %v2920_v13  ;;  %4662 = vperm.xlu1 %6919, %v7188_v43   ;;  %v6827_v51 = vpop.f32.mrf.mxu1  ;;  %v11090_v4 = vld [vmem:[#allocation99_spill] sm:$0xff]  ;;  %v4457_v43 = vld [vmem:[#allocation3 + $0x20] sm:$0xff]  ;;  %v3665_v41 = vmul.f32 %v11091_v62, %v3281_v38 }
 0x384   : > { %v4462_v60 = vld [vmem:[#allocation3 + $0x48] sm:$0xff]  ;;  %3196 = vst.msk [vmem:[#allocation3 + $0xf0] sm:$0xff] %vm464_vm2, %v3131_v46  ;;  %v4307_v44 = vadd.f32 %v6827_v51, %v3663_v5  ;;  %v2922_v31 = vmul.f32 %v11090_v4, %v2858_v55  ;;  %v4476_v55 = vld [vmem:[#allocation3 + $0xb8] sm:$0xff] }
 0x385   : > { %3177 = vst.msk [vmem:[#allocation3 + $0x58] sm:$0xff] %vm464_vm2, %v3112_v20  ;;  %7197 = vrcp.f32 %v4462_v60  ;;  %v3038_v30 = vpop.xlane.xlu0 %3037  ;;  %v4179_v26 = vpop.f32.mrf.mxu1  ;;  %v2874_v46 = vld [vmem:[#allocation3 + $0xe8] sm:$0xff]  ;;  %v3280_v60 = vld [vmem:[#allocation4 + $0x190] sm:$0xff] }
 0x386   : > { %4354 = vst.msk [vmem:[#allocation4 + $0x100] sm:$0xff] %vm593_vm0, %v4290_v61  ;;  %v3028_v57 = vpop.xlane.xlu1 %3027  ;;  %4371 = vst.msk [vmem:[#allocation4 + $0x188] sm:$0xff] %vm593_vm0, %v4307_v44  ;;  %v3133_v50 = vadd.f32 %v3038_v30, %v2941_v12  ;;  %v4306_v13 = vadd.f32 %v4179_v26, %v3662_v58  ;;  %7199 = vrcp.f32 %v4473_v21  ;;  %v7192_v20 = vpop.eup %7191  ;;  %v4461_v61 = vld [vmem:[#allocation3 + $0x40] sm:$0xff]  ;;  %v3267_v12 = vld [vmem:[#allocation4 + $0x128] sm:$0xff]  ;;  %v2943_v58 = vmul.f32 %v11092_v8, %v2879_v18 }
 0x387   : > { %v3128_v53 = vadd.f32 %v3028_v57, %v2936_v56  ;;  %4737 = vperm.xlu1 %6919, %v7190_v36   ;;  %v6774_v25 = vpop.f32.mrf.mxu0  ;;  %7201 = vrcp.f32 %v4477_v33  ;;  %v11093_v21 = vld [vmem:[#allocation102_spill] sm:$0xff]  ;;  %v11094_v57 = vld [vmem:[#allocation40_spill] sm:$0xff]  ;;  %v7194_v33 = vpop.eup %7193  ;;  %v3269_v8 = vld [vmem:[#allocation4 + $0x138] sm:$0xff] }
 0x388   : > { %3198 = vst.msk [vmem:[#allocation3 + $0x100] sm:$0xff] %vm464_vm2, %v3133_v50  ;;  %v4293_v22 = vadd.f32 %v6774_v25, %v3649_v42  ;;  %7203 = vrcp.f32 %v4457_v43  ;;  %v2938_v30 = vmul.f32 %v11093_v21, %v2874_v46  ;;  %v3664_v34 = vmul.f32 %v11094_v57, %v3280_v60  ;;  %v2895_v42 = vld [vmem:[#allocation3 + $0x190] sm:$0xff]  ;;  %v11095_v50 = vld [vmem:[#allocation38_spill] sm:$0xff]  ;;  %v7196_v18 = vpop.eup %7195  ;;  %v11099_v57 = vld [vmem:[#allocation111_spill] sm:$0xff] }
 0x389   : > { %3193 = vst.msk [vmem:[#allocation3 + $0xd8] sm:$0xff] %vm464_vm2, %v3128_v53  ;;  %v3070_v40 = vpop.xlane.xlu0 %3069  ;;  %v4044_v23 = vpop.f32.mrf.mxu0  ;;  %7205 = vrcp.f32 %v4461_v61  ;;  %v3651_v53 = vmul.f32 %v11095_v50, %v3267_v12  ;;  %v3266_v26 = vld [vmem:[#allocation4 + $0x120] sm:$0xff]  ;;  %v2876_v61 = vld [vmem:[#allocation3 + $0xf8] sm:$0xff]  ;;  %v2878_v50 = vld [vmem:[#allocation3 + $0x108] sm:$0xff] }
 0x38a   : > { %4370 = vst.msk [vmem:[#allocation4 + $0x180] sm:$0xff] %vm593_vm0, %v4306_v13  ;;  %v3000_v5 = vpop.xlane.xlu1 %2999  ;;  %4357 = vst.msk [vmem:[#allocation4 + $0x118] sm:$0xff] %vm593_vm0, %v4293_v22  ;;  %v3149_v51 = vadd.f32 %v3070_v40, %v2957_v6  ;;  %v4292_v35 = vadd.f32 %v4044_v23, %v3648_v52  ;;  %v3283_v22 = vld [vmem:[#allocation4 + $0x1a8] sm:$0xff]  ;;  %7207 = vrcp.f32 %v4476_v55  ;;  %v11096_v52 = vld [vmem:[#allocation18_spill] sm:$0xff]  ;;  %v3650_v46 = vmul.f32 %v9800_v0, %v3266_v26 }
 0x38b   : > { %v3114_v44 = vadd.f32 %v3000_v5, %v2922_v31  ;;  %4657 = vperm.xlu1 %6919, %v7192_v20   ;;  %v6830_v19 = vpop.f32.mrf.mxu1  ;;  %v2959_v43 = vmul.f32 %v11096_v52, %v2895_v42  ;;  %v11097_v40 = vld [vmem:[#allocation106_spill] sm:$0xff]  ;;  %v4460_v20 = vld [vmem:[#allocation3 + $0x38] sm:$0xff]  ;;  %v3653_v26 = vmul.f32 %v9783_v47, %v3269_v8 }
 0x38c   : > { %3214 = vst.msk [vmem:[#allocation3 + $0x180] sm:$0xff] %vm464_vm2, %v3149_v51  ;;  %v4309_v56 = vadd.f32 %v6830_v19, %v3665_v41  ;;  %v2924_v5 = vmul.f32 %v11097_v40, %v2860_v59  ;;  %v2881_v60 = vld [vmem:[#allocation3 + $0x120] sm:$0xff]  ;;  %v4464_v12 = vld [vmem:[#allocation3 + $0x58] sm:$0xff] }
 0x38d   : > { %3179 = vst.msk [vmem:[#allocation3 + $0x68] sm:$0xff] %vm464_vm2, %v3114_v44  ;;  %v3042_v36 = vpop.xlane.xlu0 %3041  ;;  %v4189_v25 = vpop.f32.mrf.mxu1  ;;  %v3667_v44 = vmul.f32 %v9790_v32, %v3283_v22  ;;  %v3282_v23 = vld [vmem:[#allocation4 + $0x1a0] sm:$0xff] }
 0x38e   : > { %4356 = vst.msk [vmem:[#allocation4 + $0x110] sm:$0xff] %vm593_vm0, %v4292_v35  ;;  %v3032_v24 = vpop.xlane.xlu1 %3031  ;;  %4373 = vst.msk [vmem:[#allocation4 + $0x198] sm:$0xff] %vm593_vm0, %v4309_v56  ;;  %v3135_v38 = vadd.f32 %v3042_v36, %v2943_v58  ;;  %v4308_v6 = vadd.f32 %v4189_v25, %v3664_v34  ;;  %v2940_v34 = vmul.f32 %v11099_v57, %v2876_v61  ;;  %v11100_v52 = vld [vmem:[#allocation26_spill] sm:$0xff] }
 0x38f   : > { %v3130_v13 = vadd.f32 %v3032_v24, %v2938_v30  ;;  %4752 = vperm.xlu1 %6919, %v7194_v33   ;;  %v6777_v4 = vpop.f32.mrf.mxu0  ;;  %v11098_v30 = vld [vmem:[#allocation25_spill] sm:$0xff]  ;;  %v3666_v36 = vmul.f32 %v9808_v29, %v3282_v23  ;;  %v4475_v24 = vld [vmem:[#allocation3 + $0xb0] sm:$0xff]  ;;  %v2897_v33 = vld [vmem:[#allocation3 + $0x1a0] sm:$0xff] }
 0x390   : > { %v4480_v49 = vld [vmem:[#allocation3 + $0xd8] sm:$0xff]  ;;  %3200 = vst.msk [vmem:[#allocation3 + $0x110] sm:$0xff] %vm464_vm2, %v3135_v38  ;;  %v4295_v31 = vadd.f32 %v6777_v4, %v3651_v53  ;;  %v2945_v32 = vmul.f32 %v11098_v30, %v2881_v60  ;;  %v3268_v38 = vld [vmem:[#allocation4 + $0x130] sm:$0xff]  ;;  %v2961_v47 = vmul.f32 %v11100_v52, %v2897_v33  ;;  %v2894_v60 = vld [vmem:[#allocation3 + $0x188] sm:$0xff] }
 0x391   : > { %3195 = vst.msk [vmem:[#allocation3 + $0xe8] sm:$0xff] %vm464_vm2, %v3130_v13  ;;  %7209 = vrcp.f32 %v4480_v49  ;;  %v3074_v62 = vpop.xlane.xlu0 %3073  ;;  %v4054_v56 = vpop.f32.mrf.mxu0  ;;  %v4479_v13 = vld [vmem:[#allocation3 + $0xd0] sm:$0xff] }
 0x392   : > { %4372 = vst.msk [vmem:[#allocation4 + $0x190] sm:$0xff] %vm593_vm0, %v4308_v6  ;;  %v3004_v41 = vpop.xlane.xlu1 %3003  ;;  %v7198_v51 = vpop.eup %7197  ;;  %4359 = vst.msk [vmem:[#allocation4 + $0x128] sm:$0xff] %vm593_vm0, %v4295_v31  ;;  %v3151_v35 = vadd.f32 %v3074_v62, %v2959_v43  ;;  %v4294_v0 = vadd.f32 %v4054_v56, %v3650_v46  ;;  %7211 = vrcp.f32 %v4460_v20  ;;  %v3285_v6 = vld [vmem:[#allocation4 + $0x1b8] sm:$0xff]  ;;  %v11101_v43 = vld [vmem:[#allocation10_spill] sm:$0xff] }
 0x393   : > { %v3116_v19 = vadd.f32 %v3004_v41, %v2924_v5  ;;  %4692 = vperm.xlu0 %6920, %v7198_v51   ;;  %4672 = vperm.xlu1 %6919, %v7196_v18   ;;  %v6833_v58 = vpop.f32.mrf.mxu1  ;;  %v7200_v55 = vpop.eup %7199  ;;  %7213 = vrcp.f32 %v4464_v12  ;;  %v2942_v40 = vmul.f32 %v11101_v43, %v2878_v50  ;;  %v3652_v18 = vmul.f32 %v9920_v48, %v3268_v38  ;;  %v4459_v46 = vld [vmem:[#allocation3 + $0x30] sm:$0xff]  ;;  %v3271_v56 = vld [vmem:[#allocation4 + $0x148] sm:$0xff]  ;;  %v3270_v50 = vld [vmem:[#allocation4 + $0x140] sm:$0xff] }
 0x394   : > { %3216 = vst.msk [vmem:[#allocation3 + $0x190] sm:$0xff] %vm464_vm2, %v3151_v35  ;;  %v4311_v21 = vadd.f32 %v6833_v58, %v3667_v44  ;;  %v7202_v53 = vpop.eup %7201  ;;  %7215 = vrcp.f32 %v4475_v24  ;;  %v2883_v41 = vld [vmem:[#allocation3 + $0x130] sm:$0xff]  ;;  %v3669_v51 = vmul.f32 %v9908_v1, %v3285_v6  ;;  %v11102_v58 = vld [vmem:[#allocation89_spill] sm:$0xff]  ;;  %v3655_v33 = vmul.f32 %v9796_v7, %v3271_v56 }
 0x395   : > { %3181 = vst.msk [vmem:[#allocation3 + $0x78] sm:$0xff] %vm464_vm2, %v3116_v19  ;;  %v3046_v42 = vpop.xlane.xlu0 %3045  ;;  %v4199_v49 = vpop.f32.mrf.mxu1  ;;  %7217 = vrcp.f32 %v4479_v13  ;;  %v3284_v44 = vld [vmem:[#allocation4 + $0x1b0] sm:$0xff]  ;;  %v2947_v1 = vmul.f32 %v11102_v58, %v2883_v41  ;;  %v3654_v52 = vmul.f32 %v9937_v11, %v3270_v50  ;;  %v4465_v50 = vld [vmem:[#allocation3 + $0x60] sm:$0xff] }
 0x396   : > { %4358 = vst.msk [vmem:[#allocation4 + $0x120] sm:$0xff] %vm593_vm0, %v4294_v0  ;;  %v3036_v59 = vpop.xlane.xlu1 %3035  ;;  %4375 = vst.msk [vmem:[#allocation4 + $0x1a8] sm:$0xff] %vm593_vm0, %v4311_v21  ;;  %v3137_v25 = vadd.f32 %v3046_v42, %v2945_v32  ;;  %v4310_v29 = vadd.f32 %v4199_v49, %v3666_v36  ;;  %v7204_v5 = vpop.eup %7203  ;;  %v4463_v23 = vld [vmem:[#allocation3 + $0x50] sm:$0xff]  ;;  %7219 = vrcp.f32 %v4459_v46  ;;  %v3668_v57 = vmul.f32 %v9928_v10, %v3284_v44  ;;  %v2880_v42 = vld [vmem:[#allocation3 + $0x118] sm:$0xff] }
 0x397   : > { %v3132_v22 = vadd.f32 %v3036_v59, %v2940_v34  ;;  %4747 = vperm.xlu1 %6919, %v7200_v55   ;;  %4767 = vperm.xlu0 %6920, %v7202_v53   ;;  %v6780_v4 = vpop.f32.mrf.mxu0  ;;  %v7206_v61 = vpop.eup %7205  ;;  %v11103_v21 = vld [vmem:[#allocation12_spill] sm:$0xff]  ;;  %7221 = vrcp.f32 %v4463_v23  ;;  %v4478_v34 = vld [vmem:[#allocation3 + $0xc8] sm:$0xff] }
 0x398   : > { %3202 = vst.msk [vmem:[#allocation3 + $0x120] sm:$0xff] %vm464_vm2, %v3137_v25  ;;  %v4297_v31 = vadd.f32 %v6780_v4, %v3653_v26  ;;  %v2958_v30 = vmul.f32 %v11103_v21, %v2894_v60  ;;  %v7208_v32 = vpop.eup %7207  ;;  %v2899_v24 = vld [vmem:[#allocation3 + $0x1b0] sm:$0xff]  ;;  %v4482_v53 = vld [vmem:[#allocation3 + $0xe8] sm:$0xff]  ;;  %7223 = vrcp.f32 %v4478_v34 }
 0x399   : > { %3197 = vst.msk [vmem:[#allocation3 + $0xf8] sm:$0xff] %vm464_vm2, %v3132_v22  ;;  %v3078_v20 = vpop.xlane.xlu0 %3077  ;;  %v4064_v19 = vpop.f32.mrf.mxu0  ;;  %v3287_v25 = vld [vmem:[#allocation4 + $0x1c8] sm:$0xff]  ;;  %v11104_v6 = vld [vmem:[#allocation104_spill] sm:$0xff]  ;;  %7225 = vrcp.f32 %v4482_v53 }
 0x39a   : > { %4374 = vst.msk [vmem:[#allocation4 + $0x1a0] sm:$0xff] %vm593_vm0, %v4310_v29  ;;  %v3040_v62 = vpop.xlane.xlu1 %3039  ;;  %4361 = vst.msk [vmem:[#allocation4 + $0x138] sm:$0xff] %vm593_vm0, %v4297_v31  ;;  %v3153_v12 = vadd.f32 %v3078_v20, %v2961_v47  ;;  %v4296_v48 = vadd.f32 %v4064_v19, %v3652_v18  ;;  %v2963_v7 = vmul.f32 %v11104_v6, %v2899_v24  ;;  %v11105_v29 = vld [vmem:[#allocation11_spill] sm:$0xff]  ;;  %v2896_v18 = vld [vmem:[#allocation3 + $0x198] sm:$0xff] }
 0x39b   : > { %v3134_v35 = vadd.f32 %v3040_v62, %v2942_v40  ;;  %4667 = vperm.xlu1 %6919, %v7204_v5   ;;  %4687 = vperm.xlu0 %6920, %v7206_v61   ;;  %v6836_v8 = vpop.f32.mrf.mxu1  ;;  %v2944_v4 = vmul.f32 %v11105_v29, %v2880_v42  ;;  %v4466_v47 = vld [vmem:[#allocation3 + $0x68] sm:$0xff]  ;;  %v2885_v5 = vld [vmem:[#allocation3 + $0x140] sm:$0xff]  ;;  %v3671_v20 = vmul.f32 %v9811_v9, %v3287_v25  ;;  %v11110_v6 = vld [vmem:[#allocation121_spill] sm:$0xff] }
 0x39c   : > { %3218 = vst.msk [vmem:[#allocation3 + $0x1a0] sm:$0xff] %vm464_vm2, %v3153_v12  ;;  %v4313_v0 = vadd.f32 %v6836_v8, %v3669_v51  ;;  %v3286_v62 = vld [vmem:[#allocation4 + $0x1c0] sm:$0xff]  ;;  %7227 = vrcp.f32 %v4466_v47  ;;  %v11106_v12 = vld [vmem:[#allocation119_spill] sm:$0xff] }
 0x39d   : > { %3199 = vst.msk [vmem:[#allocation3 + $0x108] sm:$0xff] %vm464_vm2, %v3134_v35  ;;  %v3050_v55 = vpop.xlane.xlu0 %3049  ;;  %v4209_v13 = vpop.f32.mrf.mxu1  ;;  %v2949_v35 = vmul.f32 %v11106_v12, %v2885_v5  ;;  %v11107_v9 = vld [vmem:[#allocation15_spill] sm:$0xff]  ;;  %v4481_v8 = vld [vmem:[#allocation3 + $0xe0] sm:$0xff]  ;;  %v2884_v5 = vld [vmem:[#allocation3 + $0x138] sm:$0xff] }
 0x39e   : > { %4360 = vst.msk [vmem:[#allocation4 + $0x130] sm:$0xff] %vm593_vm0, %v4296_v48  ;;  %v3072_v36 = vpop.xlane.xlu1 %3071  ;;  %v7210_v59 = vpop.eup %7209  ;;  %4377 = vst.msk [vmem:[#allocation4 + $0x1b8] sm:$0xff] %vm593_vm0, %v4313_v0  ;;  %v3139_v26 = vadd.f32 %v3050_v55, %v2947_v1  ;;  %v4312_v10 = vadd.f32 %v4209_v13, %v3668_v57  ;;  %v2960_v19 = vmul.f32 %v11107_v9, %v2896_v18  ;;  %v2901_v1 = vld [vmem:[#allocation3 + $0x1c0] sm:$0xff]  ;;  %v2882_v21 = vld [vmem:[#allocation3 + $0x128] sm:$0xff] }
 0x39f   : > { %v3150_v38 = vadd.f32 %v3072_v36, %v2958_v30  ;;  %4762 = vperm.xlu1 %6919, %v7208_v32   ;;  %4782 = vperm.xlu0 %6920, %v7210_v59   ;;  %v6783_v22 = vpop.f32.mrf.mxu0  ;;  %v7212_v31 = vpop.eup %7211  ;;  %v3670_v48 = vmul.f32 %v9836_v2, %v3286_v62  ;;  %v11108_v2 = vld [vmem:[#allocation20_spill] sm:$0xff]  ;;  %v11109_v42 = vld [vmem:[#allocation14_spill] sm:$0xff]  ;;  %v2898_v13 = vld [vmem:[#allocation3 + $0x1a8] sm:$0xff] }
 0x3a0   : > { %3204 = vst.msk [vmem:[#allocation3 + $0x130] sm:$0xff] %vm464_vm2, %v3139_v26  ;;  %v4299_v49 = vadd.f32 %v6783_v22, %v3655_v33  ;;  %v7214_v46 = vpop.eup %7213  ;;  %v2965_v24 = vmul.f32 %v11108_v2, %v2901_v1  ;;  %v2946_v59 = vmul.f32 %v11109_v42, %v2882_v21  ;;  %v11111_v29 = vld [vmem:[#allocation22_spill] sm:$0xff]  ;;  %v3289_v21 = vld [vmem:[#allocation4 + $0x1d8] sm:$0xff] }
 0x3a1   : > { %3215 = vst.msk [vmem:[#allocation3 + $0x188] sm:$0xff] %vm464_vm2, %v3150_v38  ;;  %v3082_v43 = vpop.xlane.xlu0 %3081  ;;  %v4074_v61 = vpop.f32.mrf.mxu0  ;;  %v2887_v38 = vld [vmem:[#allocation3 + $0x150] sm:$0xff]  ;;  %v2889_v9 = vld [vmem:[#allocation3 + $0x160] sm:$0xff] }
 0x3a2   : > { %4376 = vst.msk [vmem:[#allocation4 + $0x1b0] sm:$0xff] %vm593_vm0, %v4312_v10  ;;  %v3044_v40 = vpop.xlane.xlu1 %3043  ;;  %4363 = vst.msk [vmem:[#allocation4 + $0x148] sm:$0xff] %vm593_vm0, %v4299_v49  ;;  %v3155_v41 = vadd.f32 %v3082_v43, %v2963_v7  ;;  %v4298_v44 = vadd.f32 %v4074_v61, %v3654_v52  ;;  %v7216_v56 = vpop.eup %7215  ;;  %v4501_v10 = vld [vmem:[#allocation3 + $0x180] sm:$0xff]  ;;  %v2951_v7 = vmul.f32 %v11110_v6, %v2887_v38  ;;  %v4484_v52 = vld [vmem:[#allocation3 + $0xf8] sm:$0xff] }
 0x3a3   : > { %v3136_v60 = vadd.f32 %v3044_v40, %v2944_v4  ;;  %4682 = vperm.xlu1 %6919, %v7212_v31   ;;  %4702 = vperm.xlu0 %6920, %v7214_v46   ;;  %v6839_v11 = vpop.f32.mrf.mxu1  ;;  %v7218_v30 = vpop.eup %7217  ;;  %v2962_v4 = vmul.f32 %v11111_v29, %v2898_v13  ;;  %v2903_v40 = vld [vmem:[#allocation3 + $0x1d0] sm:$0xff] }
 0x3a4   : > { %v4486_v51 = vld [vmem:[#allocation3 + $0x108] sm:$0xff]  ;;  %3220 = vst.msk [vmem:[#allocation3 + $0x1b0] sm:$0xff] %vm464_vm2, %v3155_v41  ;;  %v4315_v23 = vadd.f32 %v6839_v11, %v3671_v20  ;;  %v7220_v33 = vpop.eup %7219  ;;  %v3273_v41 = vld [vmem:[#allocation4 + $0x158] sm:$0xff]  ;;  %v3288_v38 = vld [vmem:[#allocation4 + $0x1d0] sm:$0xff] }
 0x3a5   : > { %3201 = vst.msk [vmem:[#allocation3 + $0x118] sm:$0xff] %vm464_vm2, %v3136_v60  ;;  %7229 = vrcp.f32 %v4486_v51  ;;  %v3054_v0 = vpop.xlane.xlu0 %3053  ;;  %v4219_v34 = vpop.f32.mrf.mxu1  ;;  %v11112_v60 = vld [vmem:[#allocation80_spill] sm:$0xff] }
 0x3a6   : > { %4362 = vst.msk [vmem:[#allocation4 + $0x140] sm:$0xff] %vm593_vm0, %v4298_v44  ;;  %v3076_v58 = vpop.xlane.xlu1 %3075  ;;  %4379 = vst.msk [vmem:[#allocation4 + $0x1c8] sm:$0xff] %vm593_vm0, %v4315_v23  ;;  %v3141_v32 = vadd.f32 %v3054_v0, %v2949_v35  ;;  %v4314_v36 = vadd.f32 %v4219_v34, %v3670_v48  ;;  %7231 = vrcp.f32 %v4481_v8  ;;  %v7222_v25 = vpop.eup %7221  ;;  %v2967_v61 = vmul.f32 %v11112_v60, %v2903_v40  ;;  %v11113_v51 = vld [vmem:[#allocation72_spill] sm:$0xff]  ;;  %v4468_v23 = vld [vmem:[#allocation3 + $0x78] sm:$0xff] }
 0x3a7   : > { %v3152_v57 = vadd.f32 %v3076_v58, %v2960_v19  ;;  %4757 = vperm.xlu1 %6919, %v7216_v56   ;;  %4777 = vperm.xlu0 %6920, %v7218_v30   ;;  %v7224_v31 = vpop.eup %7223  ;;  %v2948_v44 = vmul.f32 %v11113_v51, %v2884_v5  ;;  %v2900_v19 = vld [vmem:[#allocation3 + $0x1b8] sm:$0xff]  ;;  %v3657_v48 = vmul.f32 %v9850_v63, %v3273_v41  ;;  %v3272_v8 = vld [vmem:[#allocation4 + $0x150] sm:$0xff] }
 0x3a8   : > { %v4502_v55 = vld [vmem:[#allocation3 + $0x188] sm:$0xff]  ;;  %3206 = vst.msk [vmem:[#allocation3 + $0x140] sm:$0xff] %vm464_vm2, %v3141_v32  ;;  %v7226_v18 = vpop.eup %7225  ;;  %v3656_v63 = vmul.f32 %v9945_v39, %v3272_v8  ;;  %v4487_v13 = vld [vmem:[#allocation3 + $0x110] sm:$0xff] }
 0x3a9   : > { %3217 = vst.msk [vmem:[#allocation3 + $0x198] sm:$0xff] %vm464_vm2, %v3152_v57  ;;  %7233 = vrcp.f32 %v4502_v55  ;;  %v3086_v53 = vpop.xlane.xlu0 %3085  ;;  %v7228_v11 = vpop.eup %7227  ;;  %v11114_v57 = vld [vmem:[#allocation123_spill] sm:$0xff]  ;;  %v2891_v5 = vld [vmem:[#allocation3 + $0x170] sm:$0xff] }
 0x3aa   : > { %4378 = vst.msk [vmem:[#allocation4 + $0x1c0] sm:$0xff] %vm593_vm0, %v4314_v36  ;;  %v3048_v26 = vpop.xlane.xlu1 %3047  ;;  %v3157_v22 = vadd.f32 %v3086_v53, %v2965_v24  ;;  %7235 = vrcp.f32 %v4465_v50  ;;  %v2953_v34 = vmul.f32 %v11114_v57, %v2889_v9  ;;  %v11115_v55 = vld [vmem:[#allocation107_spill] sm:$0xff]  ;;  %v4483_v24 = vld [vmem:[#allocation3 + $0xf0] sm:$0xff] }
 0x3ab   : > { %v3138_v49 = vadd.f32 %v3048_v26, %v2946_v59  ;;  %4677 = vperm.xlu1 %6919, %v7220_v33   ;;  %4697 = vperm.xlu0 %6920, %v7222_v25   ;;  %7237 = vrcp.f32 %v4501_v10  ;;  %v2964_v36 = vmul.f32 %v11115_v55, %v2900_v19  ;;  %v2905_v33 = vld [vmem:[#allocation3 + $0x1e0] sm:$0xff]  ;;  %v2886_v50 = vld [vmem:[#allocation3 + $0x148] sm:$0xff]  ;;  %v3673_v26 = vmul.f32 %v9857_v15, %v3289_v21  ;;  %v11117_v15 = vld [vmem:[#allocation17_spill] sm:$0xff] }
 0x3ac   : > { %3222 = vst.msk [vmem:[#allocation3 + $0x1c0] sm:$0xff] %vm464_vm2, %v3157_v22  ;;  %v4488_v46 = vld [vmem:[#allocation3 + $0x118] sm:$0xff]  ;;  %7239 = vrcp.f32 %v4484_v52  ;;  %v3672_v52 = vmul.f32 %v9876_v37, %v3288_v38  ;;  %v11118_v37 = vld [vmem:[#allocation31_spill] sm:$0xff]  ;;  %v2907_v19 = vld [vmem:[#allocation3 + $0x1f0] sm:$0xff] }
 0x3ad   : > { %3203 = vst.msk [vmem:[#allocation3 + $0x128] sm:$0xff] %vm464_vm2, %v3138_v49  ;;  %v3058_v47 = vpop.xlane.xlu0 %3057  ;;  %7241 = vrcp.f32 %v4488_v46  ;;  %v2955_v51 = vmul.f32 %v11118_v37, %v2891_v5  ;;  %v3274_v38 = vld [vmem:[#allocation4 + $0x160] sm:$0xff] }
 0x3ae   : > { %v3080_v43 = vpop.xlane.xlu1 %3079  ;;  %v3143_v20 = vadd.f32 %v3058_v47, %v2951_v7  ;;  %7243 = vrcp.f32 %v4468_v23  ;;  %v11116_v7 = vld [vmem:[#allocation82_spill] sm:$0xff]  ;;  %v4467_v47 = vld [vmem:[#allocation3 + $0x70] sm:$0xff] }
 0x3af   : > { %v3154_v62 = vadd.f32 %v3080_v43, %v2962_v4  ;;  %4772 = vperm.xlu1 %6919, %v7224_v31   ;;  %4792 = vperm.xlu0 %6920, %v7226_v18   ;;  %v2969_v29 = vmul.f32 %v11116_v7, %v2905_v33  ;;  %v2950_v4 = vmul.f32 %v11117_v15, %v2886_v50  ;;  %v2902_v18 = vld [vmem:[#allocation3 + $0x1c8] sm:$0xff]  ;;  %v11122_v50 = vld [vmem:[#allocation24_spill] sm:$0xff] }
 0x3b0   : > { %3208 = vst.msk [vmem:[#allocation3 + $0x150] sm:$0xff] %vm464_vm2, %v3143_v20  ;;  %v4504_v0 = vld [vmem:[#allocation3 + $0x198] sm:$0xff]  ;;  %v4503_v20 = vld [vmem:[#allocation3 + $0x190] sm:$0xff]  ;;  %v3658_v15 = vmul.f32 %v9955_v16, %v3274_v38  ;;  %v4582_v38 = vld [vmem:[#allocation4 + $0x8] sm:$0xff] }
 0x3b1   : > { %3219 = vst.msk [vmem:[#allocation3 + $0x1a8] sm:$0xff] %vm464_vm2, %v3154_v62  ;;  %v3090_v12 = vpop.xlane.xlu0 %3089  ;;  %7245 = vrcp.f32 %v4504_v0 }
 0x3b2   : > { %v3052_v35 = vpop.xlane.xlu1 %3051  ;;  %v7230_v56 = vpop.eup %7229  ;;  %v3159_v58 = vadd.f32 %v3090_v12, %v2967_v61  ;;  %7247 = vrcp.f32 %v4483_v24  ;;  %v4485_v12 = vld [vmem:[#allocation3 + $0x100] sm:$0xff] }
 0x3b3   : > { %v3140_v1 = vadd.f32 %v3052_v35, %v2948_v44  ;;  %4812 = vperm.xlu1 %6919, %v7230_v56   ;;  %4712 = vperm.xlu0 %6920, %v7228_v11   ;;  %v6786_v30 = vpop.f32.mrf.mxu0  ;;  %v7232_v2 = vpop.eup %7231  ;;  %7249 = vrcp.f32 %v4487_v13  ;;  %v11119_v44 = vld [vmem:[#allocation19_spill] sm:$0xff]  ;;  %v2888_v56 = vld [vmem:[#allocation3 + $0x158] sm:$0xff]  ;;  %v4489_v13 = vld [vmem:[#allocation3 + $0x120] sm:$0xff] }
 0x3b4   : > { %3224 = vst.msk [vmem:[#allocation3 + $0x1d0] sm:$0xff] %vm464_vm2, %v3159_v58  ;;  %v4301_v32 = vadd.f32 %v6786_v30, %v3657_v48  ;;  %7251 = vrcp.f32 %v4467_v47  ;;  %v2966_v11 = vmul.f32 %v11119_v44, %v2902_v18  ;;  %v4490_v8 = vld [vmem:[#allocation3 + $0x128] sm:$0xff]  ;;  %v11121_v30 = vld [vmem:[#allocation76_spill] sm:$0xff] }
 0x3b5   : > { %3205 = vst.msk [vmem:[#allocation3 + $0x138] sm:$0xff] %vm464_vm2, %v3140_v1  ;;  %v3062_v42 = vpop.xlane.xlu0 %3061  ;;  %v4084_v22 = vpop.f32.mrf.mxu0  ;;  %7253 = vrcp.f32 %v4503_v20  ;;  %v11120_v1 = vld [vmem:[#allocation118_spill] sm:$0xff]  ;;  %v2906_v18 = vld [vmem:[#allocation3 + $0x1e8] sm:$0xff] }
 0x3b6   : > { %v3084_v59 = vpop.xlane.xlu1 %3083  ;;  %v7234_v53 = vpop.eup %7233  ;;  %4365 = vst.msk [vmem:[#allocation4 + $0x158] sm:$0xff] %vm593_vm0, %v4301_v32  ;;  %v3145_v25 = vadd.f32 %v3062_v42, %v2953_v34  ;;  %v4300_v49 = vadd.f32 %v4084_v22, %v3656_v63  ;;  %7255 = vrcp.f32 %v4485_v12  ;;  %v2971_v21 = vmul.f32 %v11120_v1, %v2907_v19 }
 0x3b7   : > { %v3156_v10 = vadd.f32 %v3084_v59, %v2964_v36  ;;  %4892 = vperm.xlu1 %6919, %v7234_v53   ;;  %4787 = vperm.xlu0 %6920, %v7232_v2   ;;  %v6842_v39 = vpop.f32.mrf.mxu1  ;;  %v7236_v31 = vpop.eup %7235  ;;  %v2952_v32 = vmul.f32 %v11121_v30, %v2888_v56  ;;  %7257 = vrcp.f32 %v4490_v8  ;;  %v2904_v2 = vld [vmem:[#allocation3 + $0x1d8] sm:$0xff]  ;;  %v3275_v59 = vld [vmem:[#allocation4 + $0x168] sm:$0xff] }
 0x3b8   : > { %3210 = vst.msk [vmem:[#allocation3 + $0x160] sm:$0xff] %vm464_vm2, %v3145_v25  ;;  %v4317_v6 = vadd.f32 %v6842_v39, %v3673_v26  ;;  %v7238_v46 = vpop.eup %7237  ;;  %v4506_v34 = vld [vmem:[#allocation3 + $0x1a8] sm:$0xff]  ;;  %v2968_v53 = vmul.f32 %v11122_v50, %v2904_v2  ;;  %v4491_v2 = vld [vmem:[#allocation3 + $0x130] sm:$0xff] }
 0x3b9   : > { %3221 = vst.msk [vmem:[#allocation3 + $0x1b8] sm:$0xff] %vm464_vm2, %v3156_v10  ;;  %v3094_v43 = vpop.xlane.xlu0 %3093  ;;  %v4229_v60 = vpop.f32.mrf.mxu1  ;;  %7259 = vrcp.f32 %v4506_v34  ;;  %v2890_v10 = vld [vmem:[#allocation3 + $0x168] sm:$0xff]  ;;  %v11126_v34 = vld [vmem:[#allocation97_spill] sm:$0xff] }
 0x3ba   : > { %4364 = vst.msk [vmem:[#allocation4 + $0x150] sm:$0xff] %vm593_vm0, %v4300_v49  ;;  %v3056_v40 = vpop.xlane.xlu1 %3055  ;;  %4381 = vst.msk [vmem:[#allocation4 + $0x1d8] sm:$0xff] %vm593_vm0, %v4317_v6  ;;  %v3161_v62 = vadd.f32 %v3094_v43, %v2969_v29  ;;  %v4316_v61 = vadd.f32 %v4229_v60, %v3672_v52  ;;  %v7240_v23 = vpop.eup %7239  ;;  %v3659_v49 = vmul.f32 %v9890_v45, %v3275_v59  ;;  %v3291_v6 = vld [vmem:[#allocation4 + $0x1e8] sm:$0xff]  ;;  %v3290_v43 = vld [vmem:[#allocation4 + $0x1e0] sm:$0xff] }
 0x3bb   : > { %v3142_v41 = vadd.f32 %v3056_v40, %v2950_v4  ;;  %4707 = vperm.xlu0 %6920, %v7236_v31   ;;  %4887 = vperm.xlu1 %6919, %v7238_v46   ;;  %v7242_v48 = vpop.eup %7241  ;;  %v11123_v31 = vld [vmem:[#allocation100_spill] sm:$0xff]  ;;  %v4505_v40 = vld [vmem:[#allocation3 + $0x1a0] sm:$0xff]  ;;  %v3675_v20 = vmul.f32 %v9900_v28, %v3291_v6 }
 0x3bc   : > { %3226 = vst.msk [vmem:[#allocation3 + $0x1e0] sm:$0xff] %vm464_vm2, %v3161_v62  ;;  %v7244_v57 = vpop.eup %7243  ;;  %v2954_v52 = vmul.f32 %v11123_v31, %v2890_v10  ;;  %v4509_v62 = vld [vmem:[#allocation3 + $0x1c0] sm:$0xff]  ;;  %v4492_v28 = vld [vmem:[#allocation3 + $0x138] sm:$0xff] }
 0x3bd   : > { %3207 = vst.msk [vmem:[#allocation3 + $0x148] sm:$0xff] %vm464_vm2, %v3142_v41  ;;  %v3066_v35 = vpop.xlane.xlu0 %3065  ;;  %v4493_v31 = vld [vmem:[#allocation3 + $0x140] sm:$0xff] }
 0x3be   : > { %4380 = vst.msk [vmem:[#allocation4 + $0x1d0] sm:$0xff] %vm593_vm0, %v4316_v61  ;;  %v3088_v9 = vpop.xlane.xlu1 %3087  ;;  %v3147_v0 = vadd.f32 %v3066_v35, %v2955_v51  ;;  %v7246_v63 = vpop.eup %7245  ;;  %v3674_v61 = vmul.f32 %v9905_v3, %v3290_v43  ;;  %v11124_v51 = vld [vmem:[#allocation85_spill] sm:$0xff] }
 0x3bf   : > { %v3158_v58 = vadd.f32 %v3088_v9, %v2966_v11  ;;  %4802 = vperm.xlu0 %6920, %v7240_v23   ;;  %4822 = vperm.xlu1 %6919, %v7242_v48   ;;  %v7248_v26 = vpop.eup %7247  ;;  %v2970_v44 = vmul.f32 %v11124_v51, %v2906_v18  ;;  %v2892_v35 = vld [vmem:[#allocation3 + $0x178] sm:$0xff] }
 0x3c0   : > { %3212 = vst.msk [vmem:[#allocation3 + $0x170] sm:$0xff] %vm464_vm2, %v3147_v0  ;;  %v7250_v22 = vpop.eup %7249  ;;  %v11125_v48 = vld [vmem:[#allocation109_spill] sm:$0xff] }
 0x3c1   : > { %3223 = vst.msk [vmem:[#allocation3 + $0x1c8] sm:$0xff] %vm464_vm2, %v3158_v58  ;;  %v3098_v55 = vpop.xlane.xlu0 %3097  ;;  %v7252_v47 = vpop.eup %7251  ;;  %v2956_v8 = vmul.f32 %v11125_v48, %v2892_v35  ;;  %v4508_v58 = vld [vmem:[#allocation3 + $0x1b8] sm:$0xff] }
 0x3c2   : > { %v3060_v36 = vpop.xlane.xlu1 %3059  ;;  %v3163_v24 = vadd.f32 %v3098_v55, %v2971_v21  ;;  %v7254_v46 = vpop.eup %7253  ;;  %v2908_v21 = vld [vmem:[#allocation3 + $0x1f8] sm:$0xff] }
 0x3c3   : > { %v3144_v42 = vadd.f32 %v3060_v36, %v2952_v32  ;;  %4722 = vperm.xlu0 %6920, %v7244_v57   ;;  %4902 = vperm.xlu1 %6919, %v7246_v63   ;;  %v7256_v11 = vpop.eup %7255  ;;  %v2972_v55 = vmul.f32 %v11126_v34, %v2908_v21 }
 0x3c4   : > { %v4494_v33 = vld [vmem:[#allocation3 + $0x148] sm:$0xff]  ;;  %3228 = vst.msk [vmem:[#allocation3 + $0x1f0] sm:$0xff] %vm464_vm2, %v3163_v24  ;;  %v7258_v9 = vpop.eup %7257 }
 0x3c5   : > { %3209 = vst.msk [vmem:[#allocation3 + $0x158] sm:$0xff] %vm464_vm2, %v3144_v42  ;;  %7261 = vrcp.f32 %v4494_v33  ;;  %v4495_v42 = vld [vmem:[#allocation3 + $0x150] sm:$0xff]  ;;  %v3277_v33 = vld [vmem:[#allocation4 + $0x178] sm:$0xff] }
 0x3c6   : > { %v3092_v25 = vpop.xlane.xlu1 %3091  ;;  %7263 = vrcp.f32 %v4489_v13  ;;  %v7260_v0 = vpop.eup %7259  ;;  %v3661_v10 = vmul.f32 %v9918_v14, %v3277_v33 }
 0x3c7   : > { %v3160_v39 = vadd.f32 %v3092_v25, %v2968_v53  ;;  %4797 = vperm.xlu0 %6920, %v7248_v26   ;;  %4817 = vperm.xlu1 %6919, %v7250_v22   ;;  %v6789_v29 = vpop.f32.mrf.mxu0  ;;  %v3276_v53 = vld [vmem:[#allocation4 + $0x170] sm:$0xff] }
 0x3c8   : > { %v4510_v7 = vld [vmem:[#allocation3 + $0x1c8] sm:$0xff]  ;;  %v4303_v4 = vadd.f32 %v6789_v29, %v3659_v49  ;;  %v4507_v26 = vld [vmem:[#allocation3 + $0x1b0] sm:$0xff] }
 0x3c9   : > { %3225 = vst.msk [vmem:[#allocation3 + $0x1d8] sm:$0xff] %vm464_vm2, %v3160_v39  ;;  %7265 = vrcp.f32 %v4510_v7  ;;  %v4094_v45 = vpop.f32.mrf.mxu0  ;;  %v4511_v22 = vld [vmem:[#allocation3 + $0x1d0] sm:$0xff]  ;;  %v3293_v39 = vld [vmem:[#allocation4 + $0x1f8] sm:$0xff]  ;;  %v3660_v7 = vmul.f32 %v9963_v17, %v3276_v53 }
 0x3ca   : > { %v3064_v5 = vpop.xlane.xlu1 %3063  ;;  %4367 = vst.msk [vmem:[#allocation4 + $0x168] sm:$0xff] %vm593_vm0, %v4303_v4  ;;  %v4302_v41 = vadd.f32 %v4094_v45, %v3658_v15  ;;  %7267 = vrcp.f32 %v4505_v40  ;;  %v3292_v4 = vld [vmem:[#allocation4 + $0x1f0] sm:$0xff]  ;;  %v3677_v14 = vmul.f32 %v9926_v54, %v3293_v39 }
 0x3cb   : > { %v3146_v16 = vadd.f32 %v3064_v5, %v2954_v52  ;;  %4717 = vperm.xlu0 %6920, %v7252_v47   ;;  %4897 = vperm.xlu1 %6919, %v7254_v46   ;;  %v6845_v60 = vpop.f32.mrf.mxu1  ;;  %7269 = vrcp.f32 %v4509_v62  ;;  %v3676_v17 = vmul.f32 %v9934_v27, %v3292_v4  ;;  %v4497_v27 = vld [vmem:[#allocation3 + $0x160] sm:$0xff]  ;;  %v4583_v53 = vld [vmem:[#allocation4 + $0x10] sm:$0xff] }
 0x3cc   : > { %4366 = vst.msk [vmem:[#allocation4 + $0x160] sm:$0xff] %vm593_vm0, %v4302_v41  ;;  %v4319_v37 = vadd.f32 %v6845_v60, %v3675_v20  ;;  %v4496_v19 = vld [vmem:[#allocation3 + $0x158] sm:$0xff]  ;;  %7271 = vrcp.f32 %v4492_v28  ;;  %v4601_v4 = vld [vmem:[#allocation4 + $0xa0] sm:$0xff] }
 0x3cd   : > { %3211 = vst.msk [vmem:[#allocation3 + $0x168] sm:$0xff] %vm464_vm2, %v3146_v16  ;;  %v4239_v12 = vpop.f32.mrf.mxu1  ;;  %7273 = vrcp.f32 %v4496_v19 }
 0x3ce   : > { %v3096_v23 = vpop.xlane.xlu1 %3095  ;;  %4383 = vst.msk [vmem:[#allocation4 + $0x1e8] sm:$0xff] %vm593_vm0, %v4319_v37  ;;  %v4318_v3 = vadd.f32 %v4239_v12, %v3674_v61  ;;  %7275 = vrcp.f32 %v4508_v58  ;;  %v4513_v37 = vld [vmem:[#allocation3 + $0x1e0] sm:$0xff]  ;;  %v4598_v12 = vld [vmem:[#allocation4 + $0x88] sm:$0xff] }
 0x3cf   : > { %v3162_v56 = vadd.f32 %v3096_v23, %v2970_v44  ;;  %4807 = vperm.xlu0 %6920, %v7256_v11   ;;  %4832 = vperm.xlu1 %6919, %v7258_v9  }
 0x3d0   : > { %4382 = vst.msk [vmem:[#allocation4 + $0x1e0] sm:$0xff] %vm593_vm0, %v4318_v3  ;;  %v4512_v32 = vld [vmem:[#allocation3 + $0x1d8] sm:$0xff] }
 0x3d1   : > { %3227 = vst.msk [vmem:[#allocation3 + $0x1e8] sm:$0xff] %vm464_vm2, %v3162_v56  ;;  %7277 = vrcp.f32 %v4512_v32  ;;  %v4581_v56 = vld [vmem:[#allocation4] sm:$0xff]  ;;  %v4600_v32 = vld [vmem:[#allocation4 + $0x98] sm:$0xff] }
 0x3d2   : > { %v3068_v1 = vpop.xlane.xlu1 %3067  ;;  %v7262_v30 = vpop.eup %7261  ;;  %7279 = vrcp.f32 %v4491_v2 }
 0x3d3   : > { %v3148_v57 = vadd.f32 %v3068_v1, %v2956_v8  ;;  %4852 = vperm.xlu0 %6920, %v7262_v30   ;;  %4912 = vperm.xlu1 %6919, %v7260_v0   ;;  %v7264_v36 = vpop.eup %7263  ;;  %7281 = vrcp.f32 %v4495_v42  ;;  %v4597_v8 = vld [vmem:[#allocation4 + $0x80] sm:$0xff]  ;;  %v4499_v1 = vld [vmem:[#allocation3 + $0x170] sm:$0xff] }
 0x3d4   : > { %7283 = vrcp.f32 %v4507_v26  ;;  %v4498_v43 = vld [vmem:[#allocation3 + $0x168] sm:$0xff]  ;;  %v4515_v30 = vld [vmem:[#allocation3 + $0x1f0] sm:$0xff] }
 0x3d5   : > { %3213 = vst.msk [vmem:[#allocation3 + $0x178] sm:$0xff] %vm464_vm2, %v3148_v57  ;;  %7285 = vrcp.f32 %v4511_v22  ;;  %v4599_v42 = vld [vmem:[#allocation4 + $0x90] sm:$0xff] }
 0x3d6   : > { %v3100_v63 = vpop.xlane.xlu1 %3099  ;;  %v7266_v24 = vpop.eup %7265  ;;  %7287 = vrcp.f32 %v4493_v31 }
 0x3d7   : > { %v3164_v59 = vadd.f32 %v3100_v63, %v2972_v55  ;;  %4932 = vperm.xlu0 %6920, %v7266_v24   ;;  %4827 = vperm.xlu1 %6919, %v7264_v36   ;;  %v7268_v50 = vpop.eup %7267  ;;  %7289 = vrcp.f32 %v4498_v43  ;;  %v4584_v36 = vld [vmem:[#allocation4 + $0x18] sm:$0xff] }
 0x3d8   : > { %v7270_v25 = vpop.eup %7269  ;;  %v4514_v62 = vld [vmem:[#allocation3 + $0x1e8] sm:$0xff] }
 0x3d9   : > { %3229 = vst.msk [vmem:[#allocation3 + $0x1f8] sm:$0xff] %vm464_vm2, %v3164_v59  ;;  %v7272_v15 = vpop.eup %7271  ;;  %7291 = vrcp.f32 %v4514_v62 }
 0x3da   : > { %v4653_v13 = vpop.permute.xlu1 %4652  ;;  %v7274_v47 = vpop.eup %7273  ;;  %7293 = vrcp.f32 %v4497_v27 }
 0x3db   : > { %v4966_v49 = vmul.f32 %v4653_v13, %v4582_v38  ;;  %4907 = vperm.xlu1 %6919, %v7268_v50   ;;  %4927 = vperm.xlu0 %6920, %v7270_v25   ;;  %v6792_v6 = vpop.f32.mrf.mxu0  ;;  %v7276_v18 = vpop.eup %7275  ;;  %7295 = vrcp.f32 %v4513_v37  ;;  %v4602_v25 = vld [vmem:[#allocation4 + $0xa8] sm:$0xff]  ;;  %v4603_v37 = vld [vmem:[#allocation4 + $0xb0] sm:$0xff] }
 0x3dc   : > { %v4305_v29 = vadd.f32 %v6792_v6, %v3661_v10  ;;  %v4500_v11 = vld [vmem:[#allocation3 + $0x178] sm:$0xff]  ;;  %v4590_v6 = vld [vmem:[#allocation4 + $0x48] sm:$0xff] }
 0x3dd   : > { %5030 = vst.msk [vmem:[#allocation5 + $0x8] sm:$0xff] %vm593_vm0, %v4966_v49  ;;  %v4104_v52 = vpop.f32.mrf.mxu0  ;;  %7297 = vrcp.f32 %v4500_v11  ;;  %v4586_v49 = vld [vmem:[#allocation4 + $0x28] sm:$0xff] }
 0x3de   : > { %4369 = vst.msk [vmem:[#allocation4 + $0x178] sm:$0xff] %vm593_vm0, %v4305_v29  ;;  %v4304_v40 = vadd.f32 %v4104_v52, %v3660_v7  ;;  %v7278_v20 = vpop.eup %7277  ;;  %v4728_v28 = vpop.permute.xlu1 %4727 }
 0x3df   : > { %4842 = vperm.xlu1 %6919, %v7272_v15   ;;  %4862 = vperm.xlu0 %6920, %v7274_v47   ;;  %v6848_v5 = vpop.f32.mrf.mxu1  ;;  %v7280_v16 = vpop.eup %7279  ;;  %v4981_v0 = vmul.f32 %v4728_v28, %v4597_v8  ;;  %v4587_v28 = vld [vmem:[#allocation4 + $0x30] sm:$0xff] }
 0x3e0   : > { %4368 = vst.msk [vmem:[#allocation4 + $0x170] sm:$0xff] %vm593_vm0, %v4304_v40  ;;  %v4321_v45 = vadd.f32 %v6848_v5, %v3677_v14  ;;  %v7282_v41 = vpop.eup %7281  ;;  %v4516_v19 = vld [vmem:[#allocation3 + $0x1f8] sm:$0xff]  ;;  %v4585_v14 = vld [vmem:[#allocation4 + $0x20] sm:$0xff] }
 0x3e1   : > { %v4249_v46 = vpop.f32.mrf.mxu1  ;;  %v7284_v60 = vpop.eup %7283  ;;  %7299 = vrcp.f32 %v4516_v19  ;;  %v4589_v40 = vld [vmem:[#allocation4 + $0x40] sm:$0xff] }
 0x3e2   : > { %4385 = vst.msk [vmem:[#allocation4 + $0x1f8] sm:$0xff] %vm593_vm0, %v4321_v45  ;;  %v4320_v54 = vadd.f32 %v4249_v46, %v3676_v17  ;;  %v7286_v61 = vpop.eup %7285  ;;  %7301 = vrcp.f32 %v4499_v1 }
 0x3e3   : > { %4922 = vperm.xlu1 %6919, %v7276_v18   ;;  %4942 = vperm.xlu0 %6920, %v7278_v20   ;;  %v7288_v51 = vpop.eup %7287  ;;  %7303 = vrcp.f32 %v4515_v30  ;;  %v4604_v18 = vld [vmem:[#allocation4 + $0xb8] sm:$0xff] }
 0x3e4   : > { %4384 = vst.msk [vmem:[#allocation4 + $0x1f0] sm:$0xff] %vm593_vm0, %v4320_v54  ;;  %v7290_v44 = vpop.eup %7289  ;;  %v4588_v54 = vld [vmem:[#allocation4 + $0x38] sm:$0xff] }
 0x3e6   : > { %v7292_v9 = vpop.eup %7291 }
 0x3e7   : > { %4837 = vperm.xlu1 %6919, %v7280_v16   ;;  %4857 = vperm.xlu0 %6920, %v7282_v41   ;;  %v7294_v58 = vpop.eup %7293  ;;  %v4592_v41 = vld [vmem:[#allocation4 + $0x58] sm:$0xff] }
 0x3e8   : > { %v7296_v21 = vpop.eup %7295 }
 0x3ea   : > { %v7298_v55 = vpop.eup %7297 }
 0x3eb   : > { %4917 = vperm.xlu1 %6919, %v7284_v60   ;;  %4937 = vperm.xlu0 %6920, %v7286_v61  }
 0x3ed   : > { %v4733_v23 = vpop.permute.xlu0 %4732 }
 0x3ee   : > { %v4982_v35 = vmul.f32 %v4733_v23, %v4598_v12  ;;  %v7300_v24 = vpop.eup %7299  ;;  %v4591_v12 = vld [vmem:[#allocation4 + $0x50] sm:$0xff] }
 0x3ef   : > { %4847 = vperm.xlu1 %6919, %v7288_v51   ;;  %4872 = vperm.xlu0 %6920, %v7290_v44   ;;  %v7302_v50 = vpop.eup %7301 }
 0x3f0   : > { %v7304_v13 = vpop.eup %7303 }
 0x3f2   : > { %v4648_v3 = vpop.permute.xlu1 %4647 }
 0x3f3   : > { %v4965_v48 = vmul.f32 %v4648_v3, %v4581_v56  ;;  %4952 = vperm.xlu0 %6920, %v7292_v9   ;;  %5063 = vrot.lane.b32.xlu1 %v4982_v35, %s7364_s19  ;;  %v4606_v56 = vld [vmem:[#allocation4 + $0xc8] sm:$0xff] }
 0x3f5   : > { %5029 = vst.msk [vmem:[#allocation5] sm:$0xff] %vm593_vm0, %v4965_v48 }
 0x3f7   : > { %4867 = vperm.xlu0 %6920, %v7294_v58   ;;  %5061 = vrot.lane.b32.xlu1 %v4981_v0, %s7364_s19  ;;  %v4605_v0 = vld [vmem:[#allocation4 + $0xc0] sm:$0xff]  ;;  %v4614_v58 = vld [vmem:[#allocation4 + $0x108] sm:$0xff] }
 0x3fa   : > { %v4743_v57 = vpop.permute.xlu1 %4742 }
 0x3fb   : > { %v4984_v34 = vmul.f32 %v4743_v57, %v4600_v32  ;;  %4947 = vperm.xlu0 %6920, %v7296_v21   ;;  %v4594_v21 = vld [vmem:[#allocation4 + $0x68] sm:$0xff] }
 0x3fd   : > { %5067 = vrot.lane.b32.xlu1 %v4984_v34, %s7364_s19 }
 0x3fe   : > { %v4663_v2 = vpop.permute.xlu1 %4662 }
 0x3ff   : > { %v4968_v63 = vmul.f32 %v4663_v2, %v4584_v36  ;;  %4882 = vperm.xlu0 %6920, %v7298_v55   ;;  %v4608_v55 = vld [vmem:[#allocation4 + $0xd8] sm:$0xff]  ;;  %v4630_v36 = vld [vmem:[#allocation4 + $0x188] sm:$0xff] }
 0x401   : > { %5032 = vst.msk [vmem:[#allocation5 + $0x18] sm:$0xff] %vm593_vm0, %v4968_v63 }
 0x402   : > { %v4738_v59 = vpop.permute.xlu1 %4737 }
 0x403   : > { %v4983_v33 = vmul.f32 %v4738_v59, %v4599_v42  ;;  %4962 = vperm.xlu0 %6920, %v7300_v24   ;;  %v4607_v59 = vld [vmem:[#allocation4 + $0xd0] sm:$0xff] }
 0x405   : > { %5065 = vrot.lane.b32.xlu1 %v4983_v33, %s7364_s19 }
 0x406   : > { %v4658_v26 = vpop.permute.xlu1 %4657 }
 0x407   : > { %v4967_v38 = vmul.f32 %v4658_v26, %v4583_v53  ;;  %4877 = vperm.xlu0 %6920, %v7302_v50   ;;  %v4593_v50 = vld [vmem:[#allocation4 + $0x60] sm:$0xff] }
 0x409   : > { %5031 = vst.msk [vmem:[#allocation5 + $0x10] sm:$0xff] %vm593_vm0, %v4967_v38 }
 0x40a   : > { %v4753_v10 = vpop.permute.xlu1 %4752 }
 0x40b   : > { %v4986_v22 = vmul.f32 %v4753_v10, %v4602_v25  ;;  %4957 = vperm.xlu0 %6920, %v7304_v13   ;;  %v4610_v13 = vld [vmem:[#allocation4 + $0xe8] sm:$0xff] }
 0x40d   : > { %5071 = vrot.lane.b32.xlu1 %v4986_v22, %s7364_s19 }
 0x40e   : > { %v4673_v39 = vpop.permute.xlu1 %4672  ;;  %v4693_v7 = vpop.permute.xlu0 %4692 }
 0x40f   : > { %v4970_v29 = vmul.f32 %v4673_v39, %v4586_v49  ;;  %v4974_v15 = vmul.f32 %v4693_v7, %v4590_v6  ;;  %v4609_v49 = vld [vmem:[#allocation4 + $0xe0] sm:$0xff]  ;;  %v4596_v6 = vld [vmem:[#allocation4 + $0x78] sm:$0xff] }
 0x411   : > { %5034 = vst.msk [vmem:[#allocation5 + $0x28] sm:$0xff] %vm593_vm0, %v4970_v29  ;;  %5038 = vst.msk [vmem:[#allocation5 + $0x48] sm:$0xff] %vm593_vm0, %v4974_v15 }
 0x412   : > { %v4748_v31 = vpop.permute.xlu1 %4747  ;;  %v4768_v52 = vpop.permute.xlu0 %4767 }
 0x413   : > { %v4985_v47 = vmul.f32 %v4748_v31, %v4601_v4  ;;  %v4989_v32 = vmul.f32 %v4768_v52, %v4605_v0  ;;  %v4612_v4 = vld [vmem:[#allocation4 + $0xf8] sm:$0xff]  ;;  %v4615_v0 = vld [vmem:[#allocation4 + $0x110] sm:$0xff] }
 0x415   : > { %5069 = vrot.lane.b32.xlu1 %v4985_v47, %s7364_s19 }
 0x416   : > { %v4668_v43 = vpop.permute.xlu1 %4667  ;;  %v4688_v5 = vpop.permute.xlu0 %4687 }
 0x417   : > { %v4969_v17 = vmul.f32 %v4668_v43, %v4585_v14  ;;  %v4973_v45 = vmul.f32 %v4688_v5, %v4589_v40  ;;  %v5307_v14 = vld [vmem:[%s10611_s4 + $0x18] sm:$0xff]  ;;  %v5306_v43 = vld [vmem:[%s10611_s4 + $0x10] sm:$0xff] }
 0x418   : > { %6849 = vmatprep.subr.mxu0 %v5307_v14  ;;  %v4611_v40 = vld [vmem:[#allocation4 + $0xf0] sm:$0xff]  ;;  %6881 = vmatprep.subr.mxu1 %v5307_v14 }
 0x419   : > { %5033 = vst.msk [vmem:[#allocation5 + $0x20] sm:$0xff] %vm593_vm0, %v4969_v17  ;;  %5037 = vst.msk [vmem:[#allocation5 + $0x40] sm:$0xff] %vm593_vm0, %v4973_v45  ;;  %v4595_v17 = vld [vmem:[#allocation4 + $0x70] sm:$0xff]  ;;  %6850 = vmatpush3.msra.mxu0 %v5307_v14  ;;  %6885 = vmatpush3.msra.mxu1 %v5307_v14 }
 0x41a   : > { %v4763_v46 = vpop.permute.xlu1 %4762  ;;  %v4783_v20 = vpop.permute.xlu0 %4782  ;;  %6851 = vmatprep.subr.mxu0 %v5306_v43  ;;  %6882 = vmatprep.subr.mxu1 %v5306_v43  ;;  %v4619_v14 = vld [vmem:[#allocation4 + $0x130] sm:$0xff] }
 0x41b   : > { %v4988_v62 = vmul.f32 %v4763_v46, %v4604_v18  ;;  %v4992_v24 = vmul.f32 %v4783_v20, %v4608_v55  ;;  %6852 = vmatpush3.msra.mxu0 %v5306_v43  ;;  %v5305_v20 = vld [vmem:[%s10611_s4 + $0x8] sm:$0xff]  ;;  %6886 = vmatpush3.msra.mxu1 %v5306_v43 }
 0x41c   : > { %6853 = vmatprep.subr.mxu0 %v5305_v20  ;;  %6883 = vmatprep.subr.mxu1 %v5305_v20  ;;  %v4618_v55 = vld [vmem:[#allocation4 + $0x128] sm:$0xff] }
 0x41d   : > { %5075 = vrot.lane.b32.xlu1 %v4988_v62, %s7364_s19  ;;  %v5304_v62 = vld [vmem:[%s10611_s4] sm:$0xff]  ;;  %6854 = vmatpush3.msra.mxu0 %v5305_v20 }
 0x41e   : > { %v4683_v16 = vpop.permute.xlu1 %4682  ;;  %v4703_v27 = vpop.permute.xlu0 %4702  ;;  %6855 = vmatprep.subr.mxu0 %v5304_v62  ;;  %6887 = vmatpush3.msra.mxu1 %v5305_v20 }
 0x41f   : > { %v4972_v60 = vmul.f32 %v4683_v16, %v4588_v54  ;;  %v4976_v61 = vmul.f32 %v4703_v27, %v4592_v41  ;;  %v4613_v16 = vld [vmem:[#allocation4 + $0x100] sm:$0xff]  ;;  %6856 = vmatpush3.msra.mxu0 %v5304_v62  ;;  %6884 = vmatprep.subr.mxu1 %v5304_v62 }
 0x420   : > { %6888 = vmatpush3.msra.mxu1 %v5304_v62 }
 0x421   : > { %5036 = vst.msk [vmem:[#allocation5 + $0x38] sm:$0xff] %vm593_vm0, %v4972_v60  ;;  %5040 = vst.msk [vmem:[#allocation5 + $0x58] sm:$0xff] %vm593_vm0, %v4976_v61  ;;  %v4629_v60 = vld [vmem:[#allocation4 + $0x180] sm:$0xff] }
 0x422   : > { %v4758_v51 = vpop.permute.xlu1 %4757  ;;  %v4778_v44 = vpop.permute.xlu0 %4777 }
 0x423   : > { %v4987_v11 = vmul.f32 %v4758_v51, %v4603_v37  ;;  %v4991_v26 = vmul.f32 %v4778_v44, %v4607_v59  ;;  %v4622_v37 = vld [vmem:[#allocation4 + $0x148] sm:$0xff] }
 0x425   : > { %5073 = vrot.lane.b32.xlu1 %v4987_v11, %s7364_s19 }
 0x426   : > { %v4678_v23 = vpop.permute.xlu1 %4677  ;;  %v4698_v35 = vpop.permute.xlu0 %4697 }
 0x427   : > { %v4971_v9 = vmul.f32 %v4678_v23, %v4587_v28  ;;  %v4975_v19 = vmul.f32 %v4698_v35, %v4591_v12  ;;  %v4616_v28 = vld [vmem:[#allocation4 + $0x118] sm:$0xff]  ;;  %v4638_v12 = vld [vmem:[#allocation4 + $0x1c8] sm:$0xff] }
 0x429   : > { %5035 = vst.msk [vmem:[#allocation5 + $0x30] sm:$0xff] %vm593_vm0, %v4971_v9  ;;  %5039 = vst.msk [vmem:[#allocation5 + $0x50] sm:$0xff] %vm593_vm0, %v4975_v19 }
 0x42a   : > { %v4773_v3 = vpop.permute.xlu1 %4772  ;;  %v4793_v48 = vpop.permute.xlu0 %4792 }
 0x42b   : > { %v4990_v8 = vmul.f32 %v4773_v3, %v4606_v56  ;;  %v4994_v22 = vmul.f32 %v4793_v48, %v4610_v13  ;;  %v4632_v56 = vld [vmem:[#allocation4 + $0x198] sm:$0xff] }
 0x42d   : > { %5079 = vrot.lane.b32.xlu0 %v4990_v8, %s7364_s19 }
 0x42e   : > { %v4813_v1 = vpop.permute.xlu1 %4812  ;;  %v4713_v30 = vpop.permute.xlu0 %4712 }
 0x42f   : > { %v4998_v57 = vmul.f32 %v4813_v1, %v4614_v58  ;;  %v4978_v34 = vmul.f32 %v4713_v30, %v4594_v21  ;;  %v4631_v30 = vld [vmem:[#allocation4 + $0x190] sm:$0xff] }
 0x431   : > { %5042 = vst.msk [vmem:[#allocation5 + $0x68] sm:$0xff] %vm593_vm0, %v4978_v34  ;;  %5144 = vrot.lane.b32.xlu1 %v4998_v57, %s7365_s20  ;;  %5077 = vrot.lane.b32.xlu0 %v4989_v32, %s7364_s19 }
 0x432   : > { %v4893_v2 = vpop.permute.xlu1 %4892  ;;  %v4788_v63 = vpop.permute.xlu0 %4787 }
 0x433   : > { %v5014_v42 = vmul.f32 %v4893_v2, %v4630_v36  ;;  %v4993_v29 = vmul.f32 %v4788_v63, %v4609_v49 }
 0x435   : > { %5225 = vrot.lane.b32.xlu1 %v5014_v42, %s7366_s21  ;;  %5083 = vrot.lane.b32.xlu0 %v4992_v24, %s7364_s19  ;;  %v4634_v24 = vld [vmem:[#allocation4 + $0x1a8] sm:$0xff] }
 0x436   : > { %v4888_v33 = vpop.permute.xlu1 %4887  ;;  %v4708_v53 = vpop.permute.xlu0 %4707 }
 0x437   : > { %v4977_v38 = vmul.f32 %v4708_v53, %v4593_v50  ;;  %v5013_v44 = vmul.f32 %v4888_v33, %v4629_v60  ;;  %v4617_v50 = vld [vmem:[#allocation4 + $0x120] sm:$0xff] }
 0x438   : > { %v4621_v53 = vld [vmem:[#allocation4 + $0x140] sm:$0xff] }
 0x439   : > { %5041 = vst.msk [vmem:[#allocation5 + $0x60] sm:$0xff] %vm593_vm0, %v4977_v38  ;;  %5081 = vrot.lane.b32.xlu0 %v4991_v26, %s7364_s19 }
 0x43a   : > { %v4823_v25 = vpop.permute.xlu1 %4822  ;;  %v4803_v10 = vpop.permute.xlu0 %4802 }
 0x43b   : > { %v4996_v47 = vmul.f32 %v4803_v10, %v4612_v4  ;;  %v5000_v9 = vmul.f32 %v4823_v25, %v4616_v28  ;;  %v4633_v25 = vld [vmem:[#allocation4 + $0x1a0] sm:$0xff] }
 0x43c   : > { %v4637_v10 = vld [vmem:[#allocation4 + $0x1c0] sm:$0xff] }
 0x43d   : > { %5087 = vrot.lane.b32.xlu0 %v4994_v22, %s7364_s19 }
 0x43e   : > { %v10182_v39 = vpop.permute.xlu1 %4902  ;;  %v4723_v7 = vpop.permute.xlu0 %4722 }
 0x43f   : > { %v4980_v15 = vmul.f32 %v4723_v7, %v4596_v6  ;;  %v5016_v8 = vmul.f32 %v10182_v39, %v4632_v56  ;;  %v4620_v7 = vld [vmem:[#allocation4 + $0x138] sm:$0xff] }
 0x441   : > { %5044 = vst.msk [vmem:[#allocation5 + $0x78] sm:$0xff] %vm593_vm0, %v4980_v15  ;;  %5085 = vrot.lane.b32.xlu0 %v4993_v29, %s7364_s19  ;;  %v4624_v29 = vld [vmem:[#allocation4 + $0x158] sm:$0xff] }
 0x442   : > { %v4818_v31 = vpop.permute.xlu1 %4817  ;;  %v4798_v52 = vpop.permute.xlu0 %4797 }
 0x443   : > { %v4995_v18 = vmul.f32 %v4798_v52, %v4611_v40  ;;  %v4999_v21 = vmul.f32 %v4818_v31, %v4615_v0 }
 0x445   : > { %5091 = vrot.lane.b32.xlu0 %v4996_v47, %s7364_s19  ;;  %v4640_v47 = vld [vmem:[#allocation4 + $0x1d8] sm:$0xff] }
 0x446   : > { %v4898_v5 = vpop.permute.xlu1 %4897  ;;  %v4718_v45 = vpop.permute.xlu0 %4717 }
 0x447   : > { %v4979_v46 = vmul.f32 %v4718_v45, %v4595_v17  ;;  %v5015_v34 = vmul.f32 %v4898_v5, %v4631_v30  ;;  %v4623_v17 = vld [vmem:[#allocation4 + $0x150] sm:$0xff] }
 0x448   : > { %v4635_v45 = vld [vmem:[#allocation4 + $0x1b0] sm:$0xff] }
 0x449   : > { %5043 = vst.msk [vmem:[#allocation5 + $0x70] sm:$0xff] %vm593_vm0, %v4979_v46  ;;  %5089 = vrot.lane.b32.xlu0 %v4995_v18, %s7364_s19 }
 0x44a   : > { %v4833_v54 = vpop.permute.xlu1 %4832  ;;  %v4808_v41 = vpop.permute.xlu0 %4807 }
 0x44b   : > { %v4997_v27 = vmul.f32 %v4808_v41, %v4613_v16  ;;  %v5002_v63 = vmul.f32 %v4833_v54, %v4618_v55  ;;  %v4636_v54 = vld [vmem:[#allocation4 + $0x1b8] sm:$0xff]  ;;  %v4639_v16 = vld [vmem:[#allocation4 + $0x1d0] sm:$0xff] }
 0x44d   : > { %5142 = vrot.lane.b32.xlu1 %v4997_v27, %s7365_s20 }
 0x44e   : > { %v4913_v61 = vpop.permute.xlu1 %4912  ;;  %v4853_v51 = vpop.permute.xlu0 %4852 }
 0x44f   : > { %v5006_v11 = vmul.f32 %v4853_v51, %v4622_v37  ;;  %v5018_v59 = vmul.f32 %v4913_v61, %v4634_v24  ;;  %v4626_v37 = vld [vmem:[#allocation4 + $0x168] sm:$0xff] }
 0x451   : > { %5223 = vrot.lane.b32.xlu1 %v5013_v44, %s7366_s21  ;;  %5160 = vrot.lane.b32.xlu0 %v5006_v11, %s7365_s20  ;;  %v4642_v44 = vld [vmem:[#allocation4 + $0x1e8] sm:$0xff] }
 0x452   : > { %v4828_v23 = vpop.permute.xlu1 %4827  ;;  %v4933_v35 = vpop.permute.xlu0 %4932 }
 0x453   : > { %v5022_v19 = vmul.f32 %v4933_v35, %v4638_v12  ;;  %v5001_v38 = vmul.f32 %v4828_v23, %v4617_v50  ;;  %v4625_v12 = vld [vmem:[#allocation4 + $0x160] sm:$0xff] }
 0x455   : > { %5148 = vrot.lane.b32.xlu1 %v5000_v9, %s7365_s20  ;;  %5241 = vrot.lane.b32.xlu0 %v5022_v19, %s7366_s21  ;;  %v4641_v19 = vld [vmem:[#allocation4 + $0x1e0] sm:$0xff] }
 0x456   : > { %v4908_v3 = vpop.permute.xlu1 %4907  ;;  %v4928_v48 = vpop.permute.xlu0 %4927 }
 0x457   : > { %v5017_v39 = vmul.f32 %v4908_v3, %v4633_v25  ;;  %v5021_v6 = vmul.f32 %v4928_v48, %v4637_v10  ;;  %v4628_v48 = vld [vmem:[#allocation4 + $0x178] sm:$0xff] }
 0x459   : > { %5229 = vrot.lane.b32.xlu1 %v5016_v8, %s7366_s21 }
 0x45a   : > { %v4843_v58 = vpop.permute.xlu1 %4842  ;;  %v4863_v1 = vpop.permute.xlu0 %4862 }
 0x45b   : > { %v5004_v4 = vmul.f32 %v4843_v58, %v4620_v7  ;;  %v5008_v31 = vmul.f32 %v4863_v1, %v4624_v29  ;;  %v4627_v58 = vld [vmem:[#allocation4 + $0x170] sm:$0xff] }
 0x45d   : > { %5146 = vrot.lane.b32.xlu1 %v4999_v21, %s7365_s20 }
 0x45e   : > { %v4923_v32 = vpop.permute.xlu1 %4922  ;;  %v4943_v57 = vpop.permute.xlu0 %4942 }
 0x45f   : > { %v5024_v40 = vmul.f32 %v4943_v57, %v4640_v47  ;;  %v5020_v41 = vmul.f32 %v4923_v32, %v4636_v54  ;;  %v4643_v32 = vld [vmem:[#allocation4 + $0x1f0] sm:$0xff] }
 0x461   : > { %5227 = vrot.lane.b32.xlu1 %v5015_v34, %s7366_s21  ;;  %v4644_v34 = vld [vmem:[#allocation4 + $0x1f8] sm:$0xff] }
 0x462   : > { %v4838_v36 = vpop.permute.xlu1 %4837  ;;  %v4858_v2 = vpop.permute.xlu0 %4857 }
 0x463   : > { %v5003_v5 = vmul.f32 %v4838_v36, %v4619_v14  ;;  %v5007_v20 = vmul.f32 %v4858_v2, %v4623_v17 }
 0x465   : > { %5152 = vrot.lane.b32.xlu1 %v5002_v63, %s7365_s20 }
 0x466   : > { %v4918_v42 = vpop.permute.xlu1 %4917  ;;  %v4938_v33 = vpop.permute.xlu0 %4937 }
 0x467   : > { %v5019_v62 = vmul.f32 %v4918_v42, %v4635_v45  ;;  %v5023_v27 = vmul.f32 %v4938_v33, %v4639_v16 }
 0x469   : > { %5233 = vrot.lane.b32.xlu1 %v5018_v59, %s7366_s21 }
 0x46a   : > { %v4848_v26 = vpop.permute.xlu1 %4847  ;;  %v4873_v22 = vpop.permute.xlu0 %4872 }
 0x46b   : > { %v5005_v13 = vmul.f32 %v4848_v26, %v4621_v53  ;;  %v5010_v51 = vmul.f32 %v4873_v22, %v4626_v37 }
 0x46d   : > { %5150 = vrot.lane.b32.xlu1 %v5001_v38, %s7365_s20  ;;  %5158 = vrot.lane.b32.xlu0 %v5005_v13, %s7365_s20 }
 0x46e   : > { %v5064_v49 = vpop.permute.xlu1 %5063  ;;  %v4953_v52 = vpop.permute.xlu0 %4952 }
 0x46f   : > { %5111 = vst.msk [vmem:[#allocation5 + $0x8] sm:$0xff] %vm5109_vm3, %v5064_v49  ;;  %v5026_v28 = vmul.f32 %v4953_v52, %v4642_v44 }
 0x471   : > { %5231 = vrot.lane.b32.xlu1 %v5017_v39, %s7366_s21  ;;  %5239 = vrot.lane.b32.xlu0 %v5021_v6, %s7366_s21 }
 0x472   : > { %v5062_v15 = vpop.permute.xlu1 %5061  ;;  %v4868_v18 = vpop.permute.xlu0 %4867 }
 0x473   : > { %5110 = vst.msk [vmem:[#allocation5] sm:$0xff] %vm5109_vm3, %v5062_v15  ;;  %v5009_v35 = vmul.f32 %v4868_v18, %v4625_v12 }
 0x475   : > { %5156 = vrot.lane.b32.xlu1 %v5004_v4, %s7365_s20  ;;  %5164 = vrot.lane.b32.xlu0 %v5008_v31, %s7365_s20 }
 0x476   : > { %v5068_v43 = vpop.permute.xlu1 %5067  ;;  %v4948_v61 = vpop.permute.xlu0 %4947 }
 0x477   : > { %5113 = vst.msk [vmem:[#allocation5 + $0x18] sm:$0xff] %vm5109_vm3, %v5068_v43  ;;  %v5025_v56 = vmul.f32 %v4948_v61, %v4641_v19 }
 0x479   : > { %5154 = vrot.lane.b32.xlu1 %v5003_v5, %s7365_s20  ;;  %5245 = vrot.lane.b32.xlu0 %v5024_v40, %s7366_s21 }
 0x47a   : > { %v5066_v46 = vpop.permute.xlu1 %5065  ;;  %v4883_v11 = vpop.permute.xlu0 %4882 }
 0x47b   : > { %5112 = vst.msk [vmem:[#allocation5 + $0x10] sm:$0xff] %vm5109_vm3, %v5066_v46  ;;  %v5012_v0 = vmul.f32 %v4883_v11, %v4628_v48 }
 0x47d   : > { %5235 = vrot.lane.b32.xlu1 %v5019_v62, %s7366_s21  ;;  %5162 = vrot.lane.b32.xlu0 %v5007_v20, %s7365_s20 }
 0x47e   : > { %v4963_v9 = vpop.permute.xlu0 %4962 }
 0x47f   : > { %v5072_v60 = vpop.permute.xlu1 %5071  ;;  %v5028_v55 = vmul.f32 %v4963_v9, %v4644_v34 }
 0x480   : > { %5115 = vst.msk [vmem:[#allocation5 + $0x28] sm:$0xff] %vm5109_vm3, %v5072_v60 }
 0x481   : > { %5237 = vrot.lane.b32.xlu1 %v5020_v41, %s7366_s21  ;;  %5243 = vrot.lane.b32.xlu0 %v5023_v27, %s7366_s21 }
 0x482   : > { %v4878_v8 = vpop.permute.xlu0 %4877 }
 0x483   : > { %v5011_v1 = vmul.f32 %v4878_v8, %v4627_v58  ;;  %v10307_v58 = vld [vmem:[%s10612_s5] ss:$0 sm:$0xff] }
 0x485   : > { %5168 = vrot.lane.b32.xlu0 %v5010_v51, %s7365_s20 }
 0x486   : > { %v4958_v30 = vpop.permute.xlu0 %4957 }
 0x487   : > { %v5070_v23 = vpop.permute.xlu1 %5069  ;;  %v5027_v57 = vmul.f32 %v4958_v30, %v4643_v32 }
 0x488   : > { %5114 = vst.msk [vmem:[#allocation5 + $0x20] sm:$0xff] %vm5109_vm3, %v5070_v23 }
 0x489   : > { %5249 = vrot.lane.b32.xlu0 %v5026_v28, %s7366_s21 }
 0x48d   : > { %5166 = vrot.lane.b32.xlu0 %v5009_v35, %s7365_s20 }
 0x48f   : > { %v5076_v3 = vpop.permute.xlu1 %5075 }
 0x490   : > { %5117 = vst.msk [vmem:[#allocation5 + $0x38] sm:$0xff] %vm5109_vm3, %v5076_v3 }
 0x491   : > { %5247 = vrot.lane.b32.xlu0 %v5025_v56, %s7366_s21 }
 0x495   : > { %5172 = vrot.lane.b32.xlu0 %v5012_v0, %s7365_s20 }
 0x497   : > { %v5074_v21 = vpop.permute.xlu1 %5073 }
 0x498   : > { %5116 = vst.msk [vmem:[#allocation5 + $0x30] sm:$0xff] %vm5109_vm3, %v5074_v21  ;;  %v5510_v21 = vld [vmem:[%s10302_s15 + $0x8] sm:$0xff] }
 0x499   : > { %5170 = vrot.lane.b32.xlu0 %v5011_v1, %s7365_s20 }
 0x49d   : > { %5251 = vrot.lane.b32.xlu0 %v5027_v57, %s7366_s21  ;;  %v5509_v57 = vld [vmem:[%s10302_s15] sm:$0xff] }
 0x49f   : > { %v5080_v36 = vpop.permute.xlu0 %5079 }
 0x4a0   : > { %5119 = vst.msk [vmem:[#allocation5 + $0x48] sm:$0xff] %vm5109_vm3, %v5080_v36 }
 0x4a1   : > { %5253 = vrot.lane.b32.xlu0 %v5028_v55, %s7366_s21 }
 0x4a3   : > { %v5145_v2 = vpop.permute.xlu1 %5144  ;;  %v5078_v63 = vpop.permute.xlu0 %5077 }
 0x4a4   : > { %5192 = vst.msk [vmem:[#allocation5 + $0x8] sm:$0xff] %vm5190_vm4, %v5145_v2 }
 0x4a5   : > { %5118 = vst.msk [vmem:[#allocation5 + $0x40] sm:$0xff] %vm5109_vm3, %v5078_v63 }
 0x4a7   : > { %v5226_v24 = vpop.permute.xlu1 %5225  ;;  %v5084_v42 = vpop.permute.xlu0 %5083 }
 0x4a8   : > { %5273 = vst.msk [vmem:[#allocation5 + $0x8] sm:$0xff] %vm5271_vm5, %v5226_v24 }
 0x4a9   : > { %5121 = vst.msk [vmem:[#allocation5 + $0x58] sm:$0xff] %vm5109_vm3, %v5084_v42  ;;  %v5512_v42 = vld [vmem:[%s10302_s15 + $0x18] sm:$0xff] }
 0x4ab   : > { %v5082_v59 = vpop.permute.xlu0 %5081 }
 0x4ac   : > { %5120 = vst.msk [vmem:[#allocation5 + $0x50] sm:$0xff] %vm5109_vm3, %v5082_v59 }
 0x4af   : > { %v5088_v33 = vpop.permute.xlu0 %5087  ;;  %v5289_v6 = vld [vmem:[#allocation5 + $0x8] sm:$0xff] }
 0x4b0   : > { %5123 = vst.msk [vmem:[#allocation5 + $0x68] sm:$0xff] %vm5109_vm3, %v5088_v33 }
 0x4b3   : > { %v5086_v50 = vpop.permute.xlu0 %5085 }
 0x4b4   : > { %5122 = vst.msk [vmem:[#allocation5 + $0x60] sm:$0xff] %vm5109_vm3, %v5086_v50  ;;  %v5511_v50 = vld [vmem:[%s10302_s15 + $0x10] sm:$0xff] }
 0x4b7   : > { %v5092_v53 = vpop.permute.xlu0 %5091 }
 0x4b8   : > { %5125 = vst.msk [vmem:[#allocation5 + $0x78] sm:$0xff] %vm5109_vm3, %v5092_v53 }
 0x4bb   : > { %v5090_v26 = vpop.permute.xlu0 %5089 }
 0x4bc   : > { %5124 = vst.msk [vmem:[#allocation5 + $0x70] sm:$0xff] %vm5109_vm3, %v5090_v26 }
 0x4bf   : > { %v5143_v38 = vpop.permute.xlu1 %5142 }
 0x4c0   : > { %5191 = vst.msk [vmem:[#allocation5] sm:$0xff] %vm5190_vm4, %v5143_v38 }
 0x4c3   : > { %v5224_v13 = vpop.permute.xlu1 %5223  ;;  %v5161_v25 = vpop.permute.xlu0 %5160 }
 0x4c4   : > { %5272 = vst.msk [vmem:[#allocation5] sm:$0xff] %vm5271_vm5, %v5224_v13 }
 0x4c5   : > { %5200 = vst.msk [vmem:[#allocation5 + $0x48] sm:$0xff] %vm5190_vm4, %v5161_v25 }
 0x4c7   : > { %v5149_v10 = vpop.permute.xlu1 %5148  ;;  %v5242_v22 = vpop.permute.xlu0 %5241 }
 0x4c8   : > { %5194 = vst.msk [vmem:[#allocation5 + $0x18] sm:$0xff] %vm5190_vm4, %v5149_v10 }
 0x4c9   : > { %5281 = vst.msk [vmem:[#allocation5 + $0x48] sm:$0xff] %vm5271_vm5, %v5242_v22  ;;  %v5514_v22 = vld [vmem:[%s10302_s15 + $0x28] sm:$0xff] }
 0x4cb   : > { %v5230_v49 = vpop.permute.xlu1 %5229  ;;  %v5288_v39 = vld [vmem:[#allocation5] sm:$0xff] }
 0x4cc   : > { %5275 = vst.msk [vmem:[#allocation5 + $0x18] sm:$0xff] %vm5271_vm5, %v5230_v49  ;;  %6857 = vmatprep.mubr.msk.f32.mxu0 %vm5315_vm6, %v5288_v39 }
 0x4cd   : > { %6858 = vmatmul.mubr.msk.f32.vlgmr.msra.gmra.mxu0 %vm5315_vm6, %v5289_v6  ;;  %v5513_v6 = vld [vmem:[%s10302_s15 + $0x20] sm:$0xff] }
 0x4cf   : > { %v5147_v7 = vpop.permute.xlu1 %5146 }
 0x4d0   : > { %5193 = vst.msk [vmem:[#allocation5 + $0x10] sm:$0xff] %vm5190_vm4, %v5147_v7  ;;  %v5297_v54 = vld [vmem:[#allocation5 + $0x48] sm:$0xff] }
 0x4d3   : > { %v5228_v29 = vpop.permute.xlu1 %5227  ;;  %v5291_v52 = vld [vmem:[#allocation5 + $0x18] sm:$0xff] }
 0x4d4   : > { %5274 = vst.msk [vmem:[#allocation5 + $0x10] sm:$0xff] %vm5271_vm5, %v5228_v29 }
 0x4d7   : > { %v5153_v15 = vpop.permute.xlu1 %5152 }
 0x4d8   : > { %5196 = vst.msk [vmem:[#allocation5 + $0x28] sm:$0xff] %vm5190_vm4, %v5153_v15 }
 0x4db   : > { %v5234_v4 = vpop.permute.xlu1 %5233  ;;  %v5290_v31 = vld [vmem:[#allocation5 + $0x10] sm:$0xff] }
 0x4dc   : > { %5277 = vst.msk [vmem:[#allocation5 + $0x28] sm:$0xff] %vm5271_vm5, %v5234_v4  ;;  %6860 = vmatprep.mubr.msk.f32.mxu0 %vm5315_vm6, %v5290_v31 }
 0x4dd   : > { %6861 = vmatmul.mubr.msk.f32.gmra.mxu0 %vm5315_vm6, %v5291_v52 }
 0x4df   : > { %v5151_v47 = vpop.permute.xlu1 %5150  ;;  %v5159_v14 = vpop.permute.xlu0 %5158 }
 0x4e0   : > { %5195 = vst.msk [vmem:[#allocation5 + $0x20] sm:$0xff] %vm5190_vm4, %v5151_v47  ;;  %5199 = vst.msk [vmem:[#allocation5 + $0x40] sm:$0xff] %vm5190_vm4, %v5159_v14 }
 0x4e3   : > { %v5232_v43 = vpop.permute.xlu1 %5231  ;;  %v5240_v40 = vpop.permute.xlu0 %5239  ;;  %v5293_v62 = vld [vmem:[#allocation5 + $0x28] sm:$0xff] }
 0x4e4   : > { %5276 = vst.msk [vmem:[#allocation5 + $0x20] sm:$0xff] %vm5271_vm5, %v5232_v43  ;;  %5280 = vst.msk [vmem:[#allocation5 + $0x40] sm:$0xff] %vm5271_vm5, %v5240_v40  ;;  %v5516_v43 = vld [vmem:[%s10302_s15 + $0x38] sm:$0xff] }
 0x4e7   : > { %v5157_v5 = vpop.permute.xlu1 %5156  ;;  %v5165_v17 = vpop.permute.xlu0 %5164 }
 0x4e8   : > { %5198 = vst.msk [vmem:[#allocation5 + $0x38] sm:$0xff] %vm5190_vm4, %v5157_v5  ;;  %5202 = vst.msk [vmem:[#allocation5 + $0x58] sm:$0xff] %vm5190_vm4, %v5165_v17 }
 0x4eb   : > { %v5155_v45 = vpop.permute.xlu1 %5154  ;;  %v5246_v18 = vpop.permute.xlu0 %5245  ;;  %v5292_v46 = vld [vmem:[#allocation5 + $0x20] sm:$0xff] }
 0x4ec   : > { %v5296_v20 = vld [vmem:[#allocation5 + $0x40] sm:$0xff]  ;;  %5197 = vst.msk [vmem:[#allocation5 + $0x30] sm:$0xff] %vm5190_vm4, %v5155_v45  ;;  %6863 = vmatprep.mubr.msk.f32.mxu0 %vm5315_vm6, %v5292_v46  ;;  %v5518_v45 = vld [vmem:[%s10302_s15 + $0x48] sm:$0xff]  ;;  %v5515_v46 = vld [vmem:[%s10302_s15 + $0x30] sm:$0xff] }
 0x4ed   : > { %5283 = vst.msk [vmem:[#allocation5 + $0x58] sm:$0xff] %vm5271_vm5, %v5246_v18  ;;  %6869 = vmatprep.mubr.msk.f32.mxu1 %vm5315_vm6, %v5296_v20  ;;  %6864 = vmatmul.mubr.msk.f32.gmra.mxu0 %vm5315_vm6, %v5293_v62 }
 0x4ee   : > { %6870 = vmatmul.mubr.msk.f32.vlgmr.msra.gmra.mxu1 %vm5315_vm6, %v5297_v54 }
 0x4ef   : > { %v5236_v16 = vpop.permute.xlu1 %5235  ;;  %v5163_v41 = vpop.permute.xlu0 %5162 }
 0x4f0   : > { %5278 = vst.msk [vmem:[#allocation5 + $0x30] sm:$0xff] %vm5271_vm5, %v5236_v16  ;;  %v5517_v16 = vld [vmem:[%s10302_s15 + $0x40] sm:$0xff] }
 0x4f1   : > { %5201 = vst.msk [vmem:[#allocation5 + $0x50] sm:$0xff] %vm5190_vm4, %v5163_v41 }
 0x4f3   : > { %v5238_v27 = vpop.permute.xlu1 %5237  ;;  %v5244_v60 = vpop.permute.xlu0 %5243 }
 0x4f4   : > { %5279 = vst.msk [vmem:[#allocation5 + $0x38] sm:$0xff] %vm5271_vm5, %v5238_v27  ;;  %5282 = vst.msk [vmem:[#allocation5 + $0x50] sm:$0xff] %vm5271_vm5, %v5244_v60  ;;  %v5299_v28 = vld [vmem:[#allocation5 + $0x58] sm:$0xff] }
 0x4f7   : > { %v5169_v61 = vpop.permute.xlu0 %5168  ;;  %v5294_v37 = vld [vmem:[#allocation5 + $0x30] sm:$0xff] }
 0x4f8   : > { %5204 = vst.msk [vmem:[#allocation5 + $0x68] sm:$0xff] %vm5190_vm4, %v5169_v61  ;;  %6866 = vmatprep.mubr.msk.f32.mxu0 %vm5315_vm6, %v5294_v37 }
 0x4fb   : > { %v5250_v51 = vpop.permute.xlu0 %5249  ;;  %v5295_v44 = vld [vmem:[#allocation5 + $0x38] sm:$0xff]  ;;  %v5298_v11 = vld [vmem:[#allocation5 + $0x50] sm:$0xff] }
 0x4fc   : > { %5285 = vst.msk [vmem:[#allocation5 + $0x68] sm:$0xff] %vm5271_vm5, %v5250_v51  ;;  %6867 = vmatmul.mubr.msk.f32.gmra.mxu0 %vm5315_vm6, %v5295_v44  ;;  %6872 = vmatprep.mubr.msk.f32.mxu1 %vm5315_vm6, %v5298_v11  ;;  %v5520_v51 = vld [vmem:[%s10302_s15 + $0x58] sm:$0xff] }
 0x4fd   : > { %6873 = vmatmul.mubr.msk.f32.gmra.mxu1 %vm5315_vm6, %v5299_v28 }
 0x4ff   : > { %v5167_v23 = vpop.permute.xlu0 %5166 }
 0x500   : > { %5203 = vst.msk [vmem:[#allocation5 + $0x60] sm:$0xff] %vm5190_vm4, %v5167_v23  ;;  %v5519_v23 = vld [vmem:[%s10302_s15 + $0x50] sm:$0xff] }
 0x503   : > { %v5248_v12 = vpop.permute.xlu0 %5247  ;;  %v5301_v56 = vld [vmem:[#allocation5 + $0x68] sm:$0xff] }
 0x504   : > { %5284 = vst.msk [vmem:[#allocation5 + $0x60] sm:$0xff] %vm5271_vm5, %v5248_v12 }
 0x507   : > { %v5173_v35 = vpop.permute.xlu0 %5172 }
 0x508   : > { %5206 = vst.msk [vmem:[#allocation5 + $0x78] sm:$0xff] %vm5190_vm4, %v5173_v35 }
 0x50b   : > { %v5171_v9 = vpop.permute.xlu0 %5170  ;;  %v5300_v19 = vld [vmem:[#allocation5 + $0x60] sm:$0xff] }
 0x50c   : > { %5205 = vst.msk [vmem:[#allocation5 + $0x70] sm:$0xff] %vm5190_vm4, %v5171_v9  ;;  %6875 = vmatprep.mubr.msk.f32.mxu1 %vm5315_vm6, %v5300_v19 }
 0x50d   : > { %6876 = vmatmul.mubr.msk.f32.gmra.mxu1 %vm5315_vm6, %v5301_v56 }
 0x50f   : > { %v5252_v3 = vpop.permute.xlu0 %5251 }
 0x510   : > { %5286 = vst.msk [vmem:[#allocation5 + $0x70] sm:$0xff] %vm5271_vm5, %v5252_v3 }
 0x513   : > { %v5254_v48 = vpop.permute.xlu0 %5253 }
 0x514   : > { %5287 = vst.msk [vmem:[#allocation5 + $0x78] sm:$0xff] %vm5271_vm5, %v5254_v48 }
 0x517   : > { %v5302_v8 = vld [vmem:[#allocation5 + $0x70] sm:$0xff] }
 0x518   : > { %6878 = vmatprep.mubr.msk.f32.mxu1 %vm5315_vm6, %v5302_v8  ;;  %v5522_v8 = vld [vmem:[%s10302_s15 + $0x68] sm:$0xff] }
 0x51b   : > { %v5303_v0 = vld [vmem:[#allocation5 + $0x78] sm:$0xff] }
 0x51c   : > { %6879 = vmatmul.mubr.msk.f32.gmra.mxu1 %vm5315_vm6, %v5303_v0 }
 0x58d   : > { %v6859_v1 = vpop.f32.mrf.mxu0 }
 0x58e   : > { %v5436_v30 = vadd.f32 %v6859_v1, %v10307_v58 }
 0x58f   : > { %v5430_v32 = vpop.f32.mrf.mxu0 }
 0x590   : > { %v10312_v34 = vadd.f32 %v5510_v21, %v5436_v30  ;;  %v5431_v55 = vadd.f32 %v10307_v58, %v5430_v32  ;;  %v5521_v21 = vld [vmem:[%s10302_s15 + $0x60] sm:$0xff] }
 0x592   : > { %v10315_v36 = vadd.f32 %v5509_v57, %v5431_v55  ;;  %v5544_v2 = vsel %vm5315_vm6, %v10312_v34, 0.0 }
 0x593   : > { %5545 = vadd.xlane.f32.xlu0 %v5544_v2 }
 0x594   : > { %v5541_v63 = vsel %vm5315_vm6, %v10315_v36, 0.0 }
 0x595   : > { %5542 = vadd.xlane.f32.xlu1 %v5541_v63 }
 0x59d   : > { %v6862_v24 = vpop.f32.mrf.mxu0 }
 0x59e   : > { %v5446_v59 = vadd.f32 %v6862_v24, %v10307_v58  ;;  %v5524_v24 = vld [vmem:[%s10302_s15 + $0x78] sm:$0xff] }
 0x59f   : > { %v5440_v33 = vpop.f32.mrf.mxu0 }
 0x5a0   : > { %v10324_v53 = vadd.f32 %v5512_v42, %v5446_v59  ;;  %v5441_v26 = vadd.f32 %v10307_v58, %v5440_v33  ;;  %v5523_v33 = vld [vmem:[%s10302_s15 + $0x70] sm:$0xff] }
 0x5a2   : > { %v10327_v38 = vadd.f32 %v5511_v50, %v5441_v26  ;;  %v5550_v13 = vsel %vm5315_vm6, %v10324_v53, 0.0 }
 0x5a3   : > { %5551 = vadd.xlane.f32.xlu1 %v5550_v13 }
 0x5a4   : > { %v5547_v25 = vsel %vm5315_vm6, %v10327_v38, 0.0 }
 0x5a5   : > { %5548 = vadd.xlane.f32.xlu0 %v5547_v25 }
 0x5ad   : > { %v6865_v10 = vpop.f32.mrf.mxu0 }
 0x5ae   : > { %v5456_v49 = vadd.f32 %v6865_v10, %v10307_v58  ;;  %v6871_v52 = vpop.f32.mrf.mxu1 }
 0x5af   : > { %v5450_v39 = vpop.f32.mrf.mxu0  ;;  %v5476_v40 = vadd.f32 %v6871_v52, %v10307_v58 }
 0x5b0   : > { %v10336_v7 = vadd.f32 %v5514_v22, %v5456_v49  ;;  %v5451_v29 = vadd.f32 %v10307_v58, %v5450_v39  ;;  %v5470_v47 = vpop.f32.mrf.mxu1 }
 0x5b1   : > { %v5471_v20 = vadd.f32 %v10307_v58, %v5470_v47  ;;  %v10355_v27 = vadd.f32 %v5518_v45, %v5476_v40 }
 0x5b2   : > { %v10339_v15 = vadd.f32 %v5513_v6, %v5451_v29  ;;  %v5556_v4 = vsel %vm5315_vm6, %v10336_v7, 0.0 }
 0x5b3   : > { %5557 = vadd.xlane.f32.xlu1 %v5556_v4  ;;  %v10363_v44 = vadd.f32 %v5517_v16, %v5471_v20  ;;  %v5568_v35 = vsel %vm5315_vm6, %v10355_v27, 0.0 }
 0x5b4   : > { %v5553_v31 = vsel %vm5315_vm6, %v10339_v15, 0.0 }
 0x5b5   : > { %5554 = vadd.xlane.f32.xlu0 %v5553_v31  ;;  %v5565_v19 = vsel %vm5315_vm6, %v10363_v44, 0.0 }
 0x5bc   : > { %v6868_v14 = vpop.f32.mrf.mxu0 }
 0x5bd   : > { %v5466_v5 = vadd.f32 %v6868_v14, %v10307_v58  ;;  %v6874_v17 = vpop.f32.mrf.mxu1 }
 0x5be   : > { %v5460_v18 = vpop.f32.mrf.mxu0  ;;  %v5486_v60 = vadd.f32 %v6874_v17, %v10307_v58 }
 0x5bf   : > { %v10351_v62 = vadd.f32 %v5516_v43, %v5466_v5  ;;  %v5461_v54 = vadd.f32 %v10307_v58, %v5460_v18  ;;  %v5480_v41 = vpop.f32.mrf.mxu1 }
 0x5c0   : > { %v5481_v11 = vadd.f32 %v10307_v58, %v5480_v41  ;;  %v10369_v12 = vadd.f32 %v5520_v51, %v5486_v60 }
 0x5c1   : > { %v10358_v61 = vadd.f32 %v5515_v46, %v5461_v54  ;;  %v5562_v37 = vsel %vm5315_vm6, %v10351_v62, 0.0 }
 0x5c2   : > { %5563 = vadd.xlane.f32.xlu1 %v5562_v37  ;;  %v10373_v9 = vadd.f32 %v5519_v23, %v5481_v11  ;;  %v5574_v56 = vsel %vm5315_vm6, %v10369_v12, 0.0 }
 0x5c3   : > { %v5559_v28 = vsel %vm5315_vm6, %v10358_v61, 0.0 }
 0x5c4   : > { %5560 = vadd.xlane.f32.xlu0 %v5559_v28  ;;  %v5571_v3 = vsel %vm5315_vm6, %v10373_v9, 0.0 }
 0x5c6   : > { %5569 = vadd.xlane.f32.xlu1 %v5568_v35 }
 0x5c8   : > { %5566 = vadd.xlane.f32.xlu0 %v5565_v19 }
 0x5ca   : > { %5575 = vadd.xlane.f32.xlu1 %v5574_v56 }
 0x5cc   : > { %5572 = vadd.xlane.f32.xlu0 %v5571_v3 }
 0x5cd   : > { %v6877_v48 = vpop.f32.mrf.mxu1 }
 0x5ce   : > { %v5496_v0 = vadd.f32 %v6877_v48, %v10307_v58 }
 0x5cf   : > { %v5490_v1 = vpop.f32.mrf.mxu1 }
 0x5d0   : > { %v10384_v30 = vadd.f32 %v5522_v8, %v5496_v0  ;;  %v5491_v32 = vadd.f32 %v10307_v58, %v5490_v1 }
 0x5d2   : > { %v10387_v57 = vadd.f32 %v5521_v21, %v5491_v32  ;;  %v5580_v55 = vsel %vm5315_vm6, %v10384_v30, 0.0 }
 0x5d3   : > { %5581 = vadd.xlane.f32.xlu1 %v5580_v55 }
 0x5d4   : > { %v5577_v2 = vsel %vm5315_vm6, %v10387_v57, 0.0 }
 0x5d5   : > { %5578 = vadd.xlane.f32.xlu0 %v5577_v2 }
 0x5dc   : > { %v6880_v63 = vpop.f32.mrf.mxu1 }
 0x5dd   : > { %v5506_v42 = vadd.f32 %v6880_v63, %v10307_v58 }
 0x5de   : > { %v5500_v59 = vpop.f32.mrf.mxu1 }
 0x5df   : > { %v10396_v50 = vadd.f32 %v5524_v24, %v5506_v42  ;;  %v5501_v26 = vadd.f32 %v10307_v58, %v5500_v59 }
 0x5e1   : > { %v10399_v13 = vadd.f32 %v5523_v33, %v5501_v26  ;;  %v5586_v25 = vsel %vm5315_vm6, %v10396_v50, 0.0 }
 0x5e2   : > { %5587 = vadd.xlane.f32.xlu1 %v5586_v25 }
 0x5e3   : > { %v5583_v10 = vsel %vm5315_vm6, %v10399_v13, 0.0 }
 0x5e4   : > { %5584 = vadd.xlane.f32.xlu0 %v5583_v10 }
 0x61c   : > { %v5546_v22 = vpop.xlane.xlu0 %5545 }
 0x61d   : > { %v5591_v49 = vmul.f32 0.03125, %v5546_v22 }
 0x61e   : > { %v5543_v39 = vpop.xlane.xlu1 %5542 }
 0x61f   : > { %v10406_v6 = vsub.f32 %v10312_v34, %v5591_v49  ;;  %v5590_v29 = vmul.f32 0.03125, %v5543_v39 }
 0x621   : > { %v10409_v4 = vsub.f32 %v10315_v36, %v5590_v29  ;;  %v5623_v58 = vmul.f32 %v10406_v6, %v10406_v6 }
 0x623   : > { %v5641_v31 = vsel %vm5315_vm6, %v5623_v58, 0.0  ;;  %v5622_v52 = vmul.f32 %v10409_v4, %v10409_v4 }
 0x624   : > { %5642 = vadd.xlane.f32.xlu1 %v5641_v31 }
 0x625   : > { %v5638_v47 = vsel %vm5315_vm6, %v5622_v52, 0.0 }
 0x626   : > { %5639 = vadd.xlane.f32.xlu0 %v5638_v47 }
 0x62c   : > { %v5552_v14 = vpop.xlane.xlu1 %5551 }
 0x62d   : > { %v5593_v43 = vmul.f32 0.03125, %v5552_v14 }
 0x62e   : > { %v5549_v34 = vpop.xlane.xlu0 %5548 }
 0x62f   : > { %v10418_v40 = vsub.f32 %v10324_v53, %v5593_v43  ;;  %v5592_v36 = vmul.f32 0.03125, %v5549_v34 }
 0x631   : > { %v10421_v5 = vsub.f32 %v10327_v38, %v5592_v36  ;;  %v5625_v17 = vmul.f32 %v10418_v40, %v10418_v40 }
 0x633   : > { %v5647_v45 = vsel %vm5315_vm6, %v5625_v17, 0.0  ;;  %v5624_v18 = vmul.f32 %v10421_v5, %v10421_v5 }
 0x634   : > { %5648 = vadd.xlane.f32.xlu1 %v5647_v45 }
 0x635   : > { %v5644_v46 = vsel %vm5315_vm6, %v5624_v18, 0.0 }
 0x636   : > { %5645 = vadd.xlane.f32.xlu0 %v5644_v46 }
 0x63c   : > { %v5558_v20 = vpop.xlane.xlu1 %5557 }
 0x63d   : > { %v5595_v54 = vmul.f32 0.03125, %v5558_v20 }
 0x63e   : > { %v5555_v53 = vpop.xlane.xlu0 %5554 }
 0x63f   : > { %v10430_v16 = vsub.f32 %v10336_v7, %v5595_v54  ;;  %v5594_v38 = vmul.f32 0.03125, %v5555_v53 }
 0x641   : > { %v10433_v41 = vsub.f32 %v10339_v15, %v5594_v38  ;;  %v5627_v60 = vmul.f32 %v10430_v16, %v10430_v16 }
 0x643   : > { %v5653_v37 = vsel %vm5315_vm6, %v5627_v60, 0.0  ;;  %v5626_v51 = vmul.f32 %v10433_v41, %v10433_v41 }
 0x644   : > { %5654 = vadd.xlane.f32.xlu1 %v5653_v37 }
 0x645   : > { %v5650_v11 = vsel %vm5315_vm6, %v5626_v51, 0.0 }
 0x646   : > { %5651 = vadd.xlane.f32.xlu0 %v5650_v11 }
 0x64b   : > { %v5564_v28 = vpop.xlane.xlu1 %5563 }
 0x64c   : > { %v5597_v23 = vmul.f32 0.03125, %v5564_v28 }
 0x64d   : > { %v5561_v7 = vpop.xlane.xlu0 %5560 }
 0x64e   : > { %v10442_v35 = vsub.f32 %v10351_v62, %v5597_v23  ;;  %v5596_v15 = vmul.f32 0.03125, %v5561_v7  ;;  %v10504_v23 = vld [vmem:[%s10613_s6] ss:$0 sm:$0xff] }
 0x64f   : > { %v5570_v19 = vpop.xlane.xlu1 %5569 }
 0x650   : > { %v10445_v56 = vsub.f32 %v10358_v61, %v5596_v15  ;;  %v5599_v3 = vmul.f32 0.03125, %v5570_v19  ;;  %v5629_v48 = vmul.f32 %v10442_v35, %v10442_v35 }
 0x651   : > { %v5567_v8 = vpop.xlane.xlu0 %5566 }
 0x652   : > { %v10450_v0 = vsub.f32 %v10355_v27, %v5599_v3  ;;  %v5598_v1 = vmul.f32 0.03125, %v5567_v8  ;;  %v5659_v21 = vsel %vm5315_vm6, %v5629_v48, 0.0  ;;  %v5628_v62 = vmul.f32 %v10445_v56, %v10445_v56  ;;  %v10510_v8 = vld [vmem:[%s10614_s7] ss:$0 sm:$0xff] }
 0x653   : > { %5660 = vadd.xlane.f32.xlu1 %v5659_v21  ;;  %v5576_v32 = vpop.xlane.xlu1 %5575 }
 0x654   : > { %v10456_v55 = vsub.f32 %v10363_v44, %v5598_v1  ;;  %v5601_v61 = vmul.f32 0.03125, %v5576_v32  ;;  %v5656_v2 = vsel %vm5315_vm6, %v5628_v62, 0.0  ;;  %v5631_v63 = vmul.f32 %v10450_v0, %v10450_v0 }
 0x655   : > { %v5573_v24 = vpop.xlane.xlu0 %5572  ;;  %5657 = vadd.xlane.f32.xlu0 %v5656_v2 }
 0x656   : > { %v10462_v27 = vsub.f32 %v10369_v12, %v5601_v61  ;;  %v5600_v42 = vmul.f32 0.03125, %v5573_v24  ;;  %v5665_v59 = vsel %vm5315_vm6, %v5631_v63, 0.0  ;;  %v5630_v33 = vmul.f32 %v10456_v55, %v10456_v55 }
 0x657   : > { %5666 = vadd.xlane.f32.xlu1 %v5665_v59 }
 0x658   : > { %v10468_v44 = vsub.f32 %v10373_v9, %v5600_v42  ;;  %v5662_v26 = vsel %vm5315_vm6, %v5630_v33, 0.0  ;;  %v5633_v25 = vmul.f32 %v10462_v27, %v10462_v27 }
 0x659   : > { %5663 = vadd.xlane.f32.xlu0 %v5662_v26 }
 0x65a   : > { %v5671_v10 = vsel %vm5315_vm6, %v5633_v25, 0.0  ;;  %v5632_v12 = vmul.f32 %v10468_v44, %v10468_v44 }
 0x65b   : > { %5672 = vadd.xlane.f32.xlu1 %v5671_v10 }
 0x65c   : > { %v5582_v22 = vpop.xlane.xlu1 %5581  ;;  %v5668_v49 = vsel %vm5315_vm6, %v5632_v12, 0.0 }
 0x65d   : > { %v5603_v39 = vmul.f32 0.03125, %v5582_v22  ;;  %5669 = vadd.xlane.f32.xlu0 %v5668_v49 }
 0x65e   : > { %v5579_v29 = vpop.xlane.xlu0 %5578 }
 0x65f   : > { %v10478_v9 = vsub.f32 %v10384_v30, %v5603_v39  ;;  %v5602_v58 = vmul.f32 0.03125, %v5579_v29 }
 0x661   : > { %v10481_v31 = vsub.f32 %v10387_v57, %v5602_v58  ;;  %v5635_v52 = vmul.f32 %v10478_v9, %v10478_v9 }
 0x663   : > { %v5677_v47 = vsel %vm5315_vm6, %v5635_v52, 0.0  ;;  %v5634_v14 = vmul.f32 %v10481_v31, %v10481_v31 }
 0x664   : > { %5678 = vadd.xlane.f32.xlu1 %v5677_v47 }
 0x665   : > { %v5674_v43 = vsel %vm5315_vm6, %v5634_v14, 0.0 }
 0x666   : > { %5675 = vadd.xlane.f32.xlu0 %v5674_v43 }
 0x66b   : > { %v5588_v34 = vpop.xlane.xlu1 %5587 }
 0x66c   : > { %v5605_v36 = vmul.f32 0.03125, %v5588_v34 }
 0x66d   : > { %v5585_v30 = vpop.xlane.xlu0 %5584 }
 0x66e   : > { %v10490_v17 = vsub.f32 %v10396_v50, %v5605_v36  ;;  %v5604_v57 = vmul.f32 0.03125, %v5585_v30 }
 0x670   : > { %v10493_v45 = vsub.f32 %v10399_v13, %v5604_v57  ;;  %v5637_v18 = vmul.f32 %v10490_v17, %v10490_v17 }
 0x672   : > { %v5683_v46 = vsel %vm5315_vm6, %v5637_v18, 0.0  ;;  %v5636_v20 = vmul.f32 %v10493_v45, %v10493_v45 }
 0x673   : > { %5684 = vadd.xlane.f32.xlu1 %v5683_v46 }
 0x674   : > { %v5680_v54 = vsel %vm5315_vm6, %v5636_v20, 0.0 }
 0x675   : > { %5681 = vadd.xlane.f32.xlu0 %v5680_v54 }
 0x6ad   : > { %v5643_v53 = vpop.xlane.xlu1 %5642 }
 0x6ae   : > { %v5687_v38 = vmul.f32 0.03125, %v5643_v53 }
 0x6af   : > { %v5640_v50 = vpop.xlane.xlu0 %5639 }
 0x6b0   : > { %v5703_v60 = vadd.f32 1e-05, %v5687_v38  ;;  %v5686_v37 = vmul.f32 0.03125, %v5640_v50 }
 0x6b2   : > { %7305 = vrsqrt.f32 %v5703_v60  ;;  %v5702_v13 = vadd.f32 1e-05, %v5686_v37 }
 0x6b4   : > { %7307 = vrsqrt.f32 %v5702_v13 }
 0x6bd   : > { %v5649_v51 = vpop.xlane.xlu1 %5648 }
 0x6be   : > { %v5689_v11 = vmul.f32 0.03125, %v5649_v51 }
 0x6bf   : > { %v7306_v28 = vpop.eup %7305  ;;  %v5646_v7 = vpop.xlane.xlu0 %5645 }
 0x6c0   : > { %v5735_v15 = vmul.f32 %v7306_v28, %v10406_v6  ;;  %v5705_v19 = vadd.f32 1e-05, %v5689_v11  ;;  %v5688_v3 = vmul.f32 0.03125, %v5646_v7 }
 0x6c1   : > { %v7308_v48 = vpop.eup %7307 }
 0x6c2   : > { %v5758_v1 = vmul.f32 %v10504_v23, %v5735_v15  ;;  %v5734_v21 = vmul.f32 %v7308_v48, %v10409_v4  ;;  %7309 = vrsqrt.f32 %v5705_v19  ;;  %v5704_v62 = vadd.f32 1e-05, %v5688_v3 }
 0x6c4   : > { %v5781_v6 = vadd.f32 %v10510_v8, %v5758_v1  ;;  %v5757_v32 = vmul.f32 %v10504_v23, %v5734_v21  ;;  %7311 = vrsqrt.f32 %v5704_v62 }
 0x6c6   : > { %5797 = vst.msk [vmem:[%s10519_s24 + $0x8] sm:$0xff] %vm5315_vm6, %v5781_v6  ;;  %v5780_v61 = vadd.f32 %v10510_v8, %v5757_v32 }
 0x6c8   : > { %5796 = vst.msk [vmem:[%s10519_s24] sm:$0xff] %vm5315_vm6, %v5780_v61 }
 0x6cd   : > { %v5655_v4 = vpop.xlane.xlu1 %5654 }
 0x6ce   : > { %v5691_v2 = vmul.f32 0.03125, %v5655_v4 }
 0x6cf   : > { %v7310_v63 = vpop.eup %7309  ;;  %v5652_v24 = vpop.xlane.xlu0 %5651 }
 0x6d0   : > { %v5737_v42 = vmul.f32 %v7310_v63, %v10418_v40  ;;  %v5707_v59 = vadd.f32 1e-05, %v5691_v2  ;;  %v5690_v33 = vmul.f32 0.03125, %v5652_v24 }
 0x6d1   : > { %v7312_v26 = vpop.eup %7311 }
 0x6d2   : > { %v5760_v25 = vmul.f32 %v10504_v23, %v5737_v42  ;;  %v5736_v10 = vmul.f32 %v7312_v26, %v10421_v5  ;;  %7313 = vrsqrt.f32 %v5707_v59  ;;  %v5706_v12 = vadd.f32 1e-05, %v5690_v33 }
 0x6d4   : > { %v5783_v22 = vadd.f32 %v10510_v8, %v5760_v25  ;;  %v5759_v49 = vmul.f32 %v10504_v23, %v5736_v10  ;;  %7315 = vrsqrt.f32 %v5706_v12 }
 0x6d6   : > { %5799 = vst.msk [vmem:[%s10519_s24 + $0x18] sm:$0xff] %vm5315_vm6, %v5783_v22  ;;  %v5782_v39 = vadd.f32 %v10510_v8, %v5759_v49 }
 0x6d8   : > { %5798 = vst.msk [vmem:[%s10519_s24 + $0x10] sm:$0xff] %vm5315_vm6, %v5782_v39 }
 0x6dc   : > { %v5661_v40 = vpop.xlane.xlu1 %5660 }
 0x6dd   : > { %v5693_v29 = vmul.f32 0.03125, %v5661_v40 }
 0x6de   : > { %v5658_v58 = vpop.xlane.xlu0 %5657 }
 0x6df   : > { %v7314_v52 = vpop.eup %7313  ;;  %v5709_v47 = vadd.f32 1e-05, %v5693_v29  ;;  %v5692_v14 = vmul.f32 0.03125, %v5658_v58 }
 0x6e0   : > { %v5739_v5 = vmul.f32 %v7314_v52, %v10430_v16  ;;  %v5667_v43 = vpop.xlane.xlu1 %5666 }
 0x6e1   : > { %v7316_v34 = vpop.eup %7315  ;;  %7317 = vrsqrt.f32 %v5709_v47  ;;  %v5708_v36 = vadd.f32 1e-05, %v5692_v14  ;;  %v5695_v30 = vmul.f32 0.03125, %v5667_v43 }
 0x6e2   : > { %v5762_v57 = vmul.f32 %v10504_v23, %v5739_v5  ;;  %v5738_v18 = vmul.f32 %v7316_v34, %v10433_v41  ;;  %v5664_v46 = vpop.xlane.xlu0 %5663 }
 0x6e3   : > { %7319 = vrsqrt.f32 %v5708_v36  ;;  %v5711_v20 = vadd.f32 1e-05, %v5695_v30  ;;  %v5694_v54 = vmul.f32 0.03125, %v5664_v46 }
 0x6e4   : > { %v5785_v53 = vadd.f32 %v10510_v8, %v5762_v57  ;;  %v5761_v38 = vmul.f32 %v10504_v23, %v5738_v18  ;;  %v5673_v16 = vpop.xlane.xlu1 %5672 }
 0x6e5   : > { %7321 = vrsqrt.f32 %v5711_v20  ;;  %v5710_v50 = vadd.f32 1e-05, %v5694_v54  ;;  %v5697_v60 = vmul.f32 0.03125, %v5673_v16 }
 0x6e6   : > { %5801 = vst.msk [vmem:[%s10519_s24 + $0x28] sm:$0xff] %vm5315_vm6, %v5785_v53  ;;  %v5784_v37 = vadd.f32 %v10510_v8, %v5761_v38  ;;  %v5670_v13 = vpop.xlane.xlu0 %5669 }
 0x6e7   : > { %7323 = vrsqrt.f32 %v5710_v50  ;;  %v5713_v41 = vadd.f32 1e-05, %v5697_v60  ;;  %v5696_v51 = vmul.f32 0.03125, %v5670_v13 }
 0x6e8   : > { %5800 = vst.msk [vmem:[%s10519_s24 + $0x20] sm:$0xff] %vm5315_vm6, %v5784_v37 }
 0x6e9   : > { %7325 = vrsqrt.f32 %v5713_v41  ;;  %v5712_v11 = vadd.f32 1e-05, %v5696_v51 }
 0x6eb   : > { %7327 = vrsqrt.f32 %v5712_v11 }
 0x6ed   : > { %v5679_v28 = vpop.xlane.xlu1 %5678 }
 0x6ee   : > { %v7318_v7 = vpop.eup %7317  ;;  %v5699_v15 = vmul.f32 0.03125, %v5679_v28 }
 0x6ef   : > { %v5741_v19 = vmul.f32 %v7318_v7, %v10442_v35  ;;  %v5676_v3 = vpop.xlane.xlu0 %5675 }
 0x6f0   : > { %v7320_v48 = vpop.eup %7319  ;;  %v5715_v1 = vadd.f32 1e-05, %v5699_v15  ;;  %v5698_v21 = vmul.f32 0.03125, %v5676_v3 }
 0x6f1   : > { %v5764_v62 = vmul.f32 %v10504_v23, %v5741_v19  ;;  %v5740_v6 = vmul.f32 %v7320_v48, %v10445_v56 }
 0x6f2   : > { %v7322_v32 = vpop.eup %7321  ;;  %7329 = vrsqrt.f32 %v5715_v1  ;;  %v5714_v61 = vadd.f32 1e-05, %v5698_v21 }
 0x6f3   : > { %v5787_v4 = vadd.f32 %v10510_v8, %v5764_v62  ;;  %v5763_v2 = vmul.f32 %v10504_v23, %v5740_v6  ;;  %v5743_v63 = vmul.f32 %v7322_v32, %v10450_v0 }
 0x6f4   : > { %v7324_v35 = vpop.eup %7323  ;;  %7331 = vrsqrt.f32 %v5714_v61 }
 0x6f5   : > { %5803 = vst.msk [vmem:[%s10519_s24 + $0x38] sm:$0xff] %vm5315_vm6, %v5787_v4  ;;  %v5786_v24 = vadd.f32 %v10510_v8, %v5763_v2  ;;  %v5766_v42 = vmul.f32 %v10504_v23, %v5743_v63  ;;  %v5742_v56 = vmul.f32 %v7324_v35, %v10456_v55 }
 0x6f6   : > { %v7326_v59 = vpop.eup %7325 }
 0x6f7   : > { %5802 = vst.msk [vmem:[%s10519_s24 + $0x30] sm:$0xff] %vm5315_vm6, %v5786_v24  ;;  %v5789_v33 = vadd.f32 %v10510_v8, %v5766_v42  ;;  %v5765_v26 = vmul.f32 %v10504_v23, %v5742_v56  ;;  %v5745_v0 = vmul.f32 %v7326_v59, %v10462_v27 }
 0x6f8   : > { %v7328_v25 = vpop.eup %7327 }
 0x6f9   : > { %5805 = vst.msk [vmem:[%s10519_s24 + $0x48] sm:$0xff] %vm5315_vm6, %v5789_v33  ;;  %v5788_v10 = vadd.f32 %v10510_v8, %v5765_v26  ;;  %v5768_v12 = vmul.f32 %v10504_v23, %v5745_v0  ;;  %v5744_v22 = vmul.f32 %v7328_v25, %v10468_v44 }
 0x6fb   : > { %5804 = vst.msk [vmem:[%s10519_s24 + $0x40] sm:$0xff] %vm5315_vm6, %v5788_v10  ;;  %v5791_v55 = vadd.f32 %v10510_v8, %v5768_v12  ;;  %v5767_v49 = vmul.f32 %v10504_v23, %v5744_v22 }
 0x6fc   : > { %v5685_v39 = vpop.xlane.xlu1 %5684 }
 0x6fd   : > { %5807 = vst.msk [vmem:[%s10519_s24 + $0x58] sm:$0xff] %vm5315_vm6, %v5791_v55  ;;  %v5790_v27 = vadd.f32 %v10510_v8, %v5767_v49  ;;  %v5701_v40 = vmul.f32 0.03125, %v5685_v39 }
 0x6fe   : > { %v5682_v29 = vpop.xlane.xlu0 %5681 }
 0x6ff   : > { %v7330_v58 = vpop.eup %7329  ;;  %5806 = vst.msk [vmem:[%s10519_s24 + $0x50] sm:$0xff] %vm5315_vm6, %v5790_v27  ;;  %v5717_v52 = vadd.f32 1e-05, %v5701_v40  ;;  %v5700_v44 = vmul.f32 0.03125, %v5682_v29 }
 0x700   : > { %v5747_v47 = vmul.f32 %v7330_v58, %v10478_v9 }
 0x701   : > { %v7332_v14 = vpop.eup %7331  ;;  %7333 = vrsqrt.f32 %v5717_v52  ;;  %v5716_v5 = vadd.f32 1e-05, %v5700_v44 }
 0x702   : > { %v5770_v43 = vmul.f32 %v10504_v23, %v5747_v47  ;;  %v5746_v34 = vmul.f32 %v7332_v14, %v10481_v31 }
 0x703   : > { %7335 = vrsqrt.f32 %v5716_v5 }
 0x704   : > { %v5793_v36 = vadd.f32 %v10510_v8, %v5770_v43  ;;  %v5769_v30 = vmul.f32 %v10504_v23, %v5746_v34 }
 0x706   : > { %5809 = vst.msk [vmem:[%s10519_s24 + $0x68] sm:$0xff] %vm5315_vm6, %v5793_v36  ;;  %v5792_v57 = vadd.f32 %v10510_v8, %v5769_v30 }
 0x708   : > { %5808 = vst.msk [vmem:[%s10519_s24 + $0x60] sm:$0xff] %vm5315_vm6, %v5792_v57 }
 0x70e   : > { %v7334_v9 = vpop.eup %7333 }
 0x70f   : > { %v5749_v18 = vmul.f32 %v7334_v9, %v10490_v17 }
 0x710   : > { %v7336_v46 = vpop.eup %7335 }
 0x711   : > { %v5772_v20 = vmul.f32 %v10504_v23, %v5749_v18  ;;  %v5748_v31 = vmul.f32 %v7336_v46, %v10493_v45 }
 0x713   : > { %v5795_v54 = vadd.f32 %v10510_v8, %v5772_v20  ;;  %v5771_v53 = vmul.f32 %v10504_v23, %v5748_v31 }
 0x715   : > { %5811 = vst.msk [vmem:[%s10519_s24 + $0x78] sm:$0xff] %vm5315_vm6, %v5795_v54  ;;  %v5794_v38 = vadd.f32 %v10510_v8, %v5771_v53 }
 0x717   : > { %5810 = vst.msk [vmem:[%s10519_s24 + $0x70] sm:$0xff] %vm5315_vm6, %v5794_v38 }
 0x718 PF: > { %s18_s29 = sadd.s32 1, %s7359_s29   ;;  %s11127_s27 = smov %s7355_s28 }
 0x719   : > { %p15_p5 = scmp.ge.s32.totalorder %s18_s29, 4   ;;  %s11128_s28 = smov %s11130_s30 }
 0x71b   :  { %17 = sbr.rel (!%p15_p5) target bundleno = 2 (0x2), region = 99 }

</bundles_post_ra>
